<compile_context>
chip_gen: v5e
topology: v5e:2x2
jax: 0.10.0
libtpu: 0.0.40
codegen_flags: <defaults>
</compile_context>

<pallas_src>
import jax
import jax.numpy as jnp
from jax import lax
from jax.experimental import pallas as pl
from jax.experimental.pallas import tpu as pltpu

N = 128           # in_features = out_features = 128 (fixed by At_Gaussian reshape)
K = N * N         # flattened matrix length


# ---- Kernel 1 (tiled over M): R_row = vec(L0)^T + u * (y - GA vec(L0))^T GA ----
def _make_grad_step_kernel(u):
    u = float(u)

    def kernel(y_ref, ga_ref, l0_ref, r_ref):
        step = pl.program_id(0)

        @pl.when(step == 0)
        def _():
            r_ref[...] = l0_ref[...]              # init accumulator with vec(L0)^T

        ga = ga_ref[...]                          # (tm, K) tile, native layout
        # residual tile (exact f32 on the VPU; K-long contraction as a lane reduce):
        #   res = y_tile - GA_tile @ vec(L0)      -> (tm, 1)
        res = y_ref[...] - jnp.sum(ga * l0_ref[...], axis=1, keepdims=True)
        # adjoint partial (exact f32; M-short contraction as a sublane reduce):
        #   g_partial = res^T @ GA_tile           -> (1, K), lane-dense
        r_ref[...] += u * jnp.sum(ga * res, axis=0, keepdims=True)

    return kernel


# ---- Kernel 2: Z = U diag(s * 1[i<r]) Vt ;  Lo = c*Z - a*R  --------------------
def _make_shrink_kernel(a, c):
    a = float(a)
    c = float(c)

    def kernel(rank_ref, umat_ref, s_ref, vt_ref, rmat_ref, lo_ref):
        r = rank_ref[0]
        rmat = rmat_ref[...]                      # load before the aliased store
        mask = lax.broadcasted_iota(jnp.int32, (1, N), 1) < r
        s_masked = jnp.where(mask, s_ref[...], 0.0)        # (1, N)
        us = umat_ref[...] * s_masked                      # U @ diag(s * mask)
        # 128^3 matmul: ~8 MXU pushes even at 6-pass HIGHEST; the kernel is
        # launch/DMA-bound, so keep exact f32 parity here at zero perf cost.
        z = lax.dot_general(us, vt_ref[...], (((1,), (0,)), ((), ())),
                            precision=lax.Precision.HIGHEST,
                            preferred_element_type=jnp.float32)
        lo_ref[...] = c * z - a * rmat

    return kernel


def _pick_m_tile(m):
    for t in (32, 16, 8):                         # 32 -> 2 MiB GA tiles (review rec.)
        if m % t == 0:
            return t
    return m                                      # fallback: whole-M block


def input_layer_forward(y, r, GA, *, u, a, c, L0):
    """Pallas implementation of input_layer.forward((y, r, GA))."""
    M = y.shape[0]
    assert y.shape == (M, 1), y.shape
    assert GA.shape == (M, K), GA.shape
    assert L0.shape == (N, N), L0.shape

    tm = _pick_m_tile(M)
    l0_row = L0.reshape(1, K)                     # lane-dense vec(L0)^T

    # R (row-flattened) = vec(L0)^T + u * At_Gaussian(y - A_Gaussian(L0, GA), GA)^T
    # GA streamed from HBM once in (tm, K) tiles; accumulator block stays in VMEM.
    R_row = pl.pallas_call(
        _make_grad_step_kernel(u),
        out_shape=jax.ShapeDtypeStruct((1, K), jnp.float32),
        grid=(M // tm,),
        in_specs=[pl.BlockSpec((tm, 1), lambda i: (i, 0)),    # y tile (column)
                  pl.BlockSpec((tm, K), lambda i: (i, 0)),    # GA tile (streamed once)
                  pl.BlockSpec((1, K), lambda i: (0, 0))],    # vec(L0)^T (resident)
        out_specs=pl.BlockSpec((1, K), lambda i: (0, 0)),     # accumulator block
        compiler_params=pltpu.CompilerParams(
            dimension_semantics=("arbitrary",)),               # reduction over M
    )(y, GA, l0_row)
    R = R_row.reshape(N, N)

    # TODO(synk): SVD has no Pallas TPU primitive; jnp.linalg.svd dominates this
    # layer's latency (a rank-r randomized SVD would be the real end-to-end win).
    U, s, Vt = jnp.linalg.svd(R, full_matrices=False)

    # Lo = c * (U[:, :r] diag(s[:r]) Vt[:r, :]) - a * R   (rank-r mask in-kernel)
    rank = jnp.clip(jnp.asarray(r, jnp.int32), 0, N).reshape(1)
    Lo = pl.pallas_call(
        _make_shrink_kernel(a, c),
        out_shape=jax.ShapeDtypeStruct((N, N), jnp.float32),
        in_specs=[pl.BlockSpec(memory_space=pltpu.MemorySpace.SMEM),   # r
                  pl.BlockSpec(memory_space=pltpu.MemorySpace.VMEM),   # U
                  pl.BlockSpec(memory_space=pltpu.MemorySpace.VMEM),   # s (1, N)
                  pl.BlockSpec(memory_space=pltpu.MemorySpace.VMEM),   # Vt
                  pl.BlockSpec(memory_space=pltpu.MemorySpace.VMEM)],  # R
        out_specs=pl.BlockSpec(memory_space=pltpu.MemorySpace.VMEM),
        input_output_aliases={4: 0},                    # reuse R's buffer for Lo
    )(rank, U, s.reshape(1, N), Vt, R)

    return [Lo, GA, y, r]


if __name__ == "__main__":
    key = jax.random.PRNGKey(0)
    k1, k2 = jax.random.split(key)

    # Module parameters (deterministic init, matching input_layer.__init__)
    in_features = out_features = N
    indexs = list(range(4096))                    # synthetic index set
    u0 = in_features * out_features / len(indexs) # = 4.0
    a0 = 0.1
    c0 = 1.0
    L0 = jnp.zeros((N, N), jnp.float32)           # registered buffer

    # Forward inputs: (y, r, GA)
    M = 128                                       # number of measurements
    GA = jax.random.normal(k1, (M, K), jnp.float32) / jnp.sqrt(float(M))
    y = jax.random.normal(k2, (M, 1), jnp.float32)
    r = 8

    Lo, GA_out, y_out, r_out = input_layer_forward(
        y, r, GA, u=u0, a=a0, c=c0, L0=L0)
    jax.block_until_ready(Lo)

    assert Lo.shape == (N, N) and Lo.dtype == jnp.float32
    assert bool(jnp.all(jnp.isfinite(Lo)))
    print("KERNEL_OK")
</pallas_src>

<mosaic_0001>
module attributes {stable_mosaic.version = 11 : i64} {
  func.func @kernel(%arg0: i32, %arg1: memref<32x1xf32, #tpu.memory_space<vmem>>, %arg2: memref<32x16384xf32, #tpu.memory_space<vmem>>, %arg3: memref<1x16384xf32, #tpu.memory_space<vmem>>, %arg4: memref<1x16384xf32, #tpu.memory_space<vmem>>) attributes {dimension_semantics = [#tpu.dimension_semantics<arbitrary>], iteration_bounds = array<i64: 4>, scalar_prefetch = 0 : i64, scratch_operands = 0 : i64, tpu.core_type = #tpu.core_type<tc>, window_params = [{transform_indices = @transform_0, window_bounds = array<i64: 32, 1>}, {transform_indices = @transform_1, window_bounds = array<i64: 32, 16384>}, {pipeline_mode = #tpu.pipeline_mode<synchronous>, transform_indices = @transform_2, window_bounds = array<i64: 1, 16384>}, {pipeline_mode = #tpu.pipeline_mode<synchronous>, transform_indices = @transform_3, window_bounds = array<i64: 1, 16384>}]} {
    %c0_i32 = arith.constant 0 : i32
    %0 = arith.cmpi eq, %arg0, %c0_i32 : i32
    %1 = arith.extui %0 : i1 to i32
    %c0_i32_0 = arith.constant 0 : i32
    %2 = arith.cmpi ne, %1, %c0_i32_0 : i32
    scf.if %2 {
      %c0_12 = arith.constant 0 : index
      %c0_13 = arith.constant 0 : index
      %20 = vector.load %arg3[%c0_12, %c0_13] : memref<1x16384xf32, #tpu.memory_space<vmem>>, vector<1x16384xf32>
      %c0_14 = arith.constant 0 : index
      %c0_15 = arith.constant 0 : index
      %21 = vector.load %arg4[%c0_14, %c0_15] : memref<1x16384xf32, #tpu.memory_space<vmem>>, vector<1x16384xf32>
      tpu.vector_store %arg4[%c0_14, %c0_15], %20 {strides = array<i32>} : memref<1x16384xf32, #tpu.memory_space<vmem>>, vector<1x16384xf32>,
    } else {
    }
    %c0 = arith.constant 0 : index
    %c0_1 = arith.constant 0 : index
    %3 = vector.load %arg2[%c0, %c0_1] : memref<32x16384xf32, #tpu.memory_space<vmem>>, vector<32x16384xf32>
    %c0_2 = arith.constant 0 : index
    %c0_3 = arith.constant 0 : index
    %4 = vector.load %arg1[%c0_2, %c0_3] : memref<32x1xf32, #tpu.memory_space<vmem>>, vector<32x1xf32>
    %c0_4 = arith.constant 0 : index
    %c0_5 = arith.constant 0 : index
    %5 = vector.load %arg3[%c0_4, %c0_5] : memref<1x16384xf32, #tpu.memory_space<vmem>>, vector<1x16384xf32>
    %6 = vector.broadcast %5 : vector<1x16384xf32> to vector<32x16384xf32>
    %7 = arith.mulf %3, %6 : vector<32x16384xf32>
    %cst = arith.constant dense<0.000000e+00> : vector<32xf32>
    %8 = vector.multi_reduction <add>, %7, %cst [1] : vector<32x16384xf32> to vector<32xf32>
    %9 = vector.shape_cast %8 : vector<32xf32> to vector<32x1xf32>
    %10 = arith.subf %4, %9 : vector<32x1xf32>
    %c0_6 = arith.constant 0 : index
    %c0_7 = arith.constant 0 : index
    %11 = vector.load %arg4[%c0_6, %c0_7] : memref<1x16384xf32, #tpu.memory_space<vmem>>, vector<1x16384xf32>
    %12 = vector.broadcast %10 : vector<32x1xf32> to vector<32x16384xf32>
    %13 = arith.mulf %3, %12 : vector<32x16384xf32>
    %cst_8 = arith.constant dense<0.000000e+00> : vector<16384xf32>
    %14 = vector.multi_reduction <add>, %13, %cst_8 [0] : vector<32x16384xf32> to vector<16384xf32>
    %15 = vector.shape_cast %14 : vector<16384xf32> to vector<1x16384xf32>
    %cst_9 = arith.constant 4.000000e+00 : f32
    %16 = vector.broadcast %cst_9 : f32 to vector<1x16384xf32>
    %17 = arith.mulf %16, %15 : vector<1x16384xf32>
    %18 = arith.addf %11, %17 : vector<1x16384xf32>
    %c0_10 = arith.constant 0 : index
    %c0_11 = arith.constant 0 : index
    %19 = vector.load %arg4[%c0_10, %c0_11] : memref<1x16384xf32, #tpu.memory_space<vmem>>, vector<1x16384xf32>
    tpu.vector_store %arg4[%c0_10, %c0_11], %18 {strides = array<i32>} : memref<1x16384xf32, #tpu.memory_space<vmem>>, vector<1x16384xf32>,
    return
  }
  func.func @transform_0(%arg0: i32) -> (i32, i32) {
    %c0_i32 = arith.constant 0 : i32
    %c0_i32_0 = arith.constant 0 : i32
    return %arg0, %c0_i32 : i32, i32
  }
  func.func @transform_1(%arg0: i32) -> (i32, i32) {
    %c0_i32 = arith.constant 0 : i32
    %c0_i32_0 = arith.constant 0 : i32
    return %arg0, %c0_i32 : i32, i32
  }
  func.func @transform_2(%arg0: i32) -> (i32, i32) {
    %c0_i32 = arith.constant 0 : i32
    %c0_i32_0 = arith.constant 0 : i32
    %c0_i32_1 = arith.constant 0 : i32
    return %c0_i32, %c0_i32_0 : i32, i32
  }
  func.func @transform_3(%arg0: i32) -> (i32, i32) {
    %c0_i32 = arith.constant 0 : i32
    %c0_i32_0 = arith.constant 0 : i32
    %c0_i32_1 = arith.constant 0 : i32
    return %c0_i32, %c0_i32_0 : i32, i32
  }
}

</mosaic_0001>

<bundles_post_ra>
// kernel: tpu_custom_call.1
= control target key start
LH: loop header
LB: loop body
LE: loop exit
PB: predicated region body
PF: predicated region fallthrough
CT: control target
= control target key end

     0   :  { %8 = vsyncpa [#allocation3], 0  ;;  %s10421_s0 = inlined_call_operand.vmem [shape: f32[128,1], index: 0, kind: input, shape index: {}]   ;;  %s10422_s1 = inlined_call_operand.hbm [shape: f32[128,16384], index: 1, kind: input, shape index: {}]   ;;  %s10423_s2 = inlined_call_operand.hbm [shape: f32[1,16384], index: 2, kind: input, shape index: {}]   ;;  %s10424_s3 = inlined_call_operand.hbm [shape: f32[1,16384], index: 3, kind: output, shape index: {}]  }
   0x1   :  { %10 = vsyncpa [#allocation3 + $0x1], 0 }
   0x2   :  { %11 = vsyncpa [#allocation6], 0 }
   0x3   :  { %12 = vsyncpa [#allocation4], 0  ;;  %s5097_s12 = smov 0   ;;  %s5099_s13 = smov 0  }
   0x4   :  { %s5101_s14 = smov 0   ;;  %s5103_s15 = smov 0  }
   0x5 LB: > { %s5116_s16 = sadd.s32 4294967295, %s5070_s15   ;;  %s5119_s17 = sadd.s32 1, %s5070_s15   ;;  %s5070_s15 = sphi %s5103_s15, %s12284_s15   ;;  %s5066_s14 = sphi %s5101_s14, %s12283_s14   ;;  %s5062_s13 = sphi %s5099_s13, %s12282_s13   ;;  %s5058_s12 = sphi %s5097_s12, %s12281_s12  }
   0x6   : > { %s48_s18 = ssub.s32 %s5070_s15, %s5119_s17  ;;  %s51_s19 = sadd.s32 1, %s5066_s14 }
   0x7   : > { %p49_p0 = scmp.eq.s32.totalorder %s48_s18, 0  ;;  %p58_p1 = scmp.ne.s32.totalorder %s5066_s14, %s5062_s13 }
   0x8   : > { %p59_p2 = scmp.eq.s32.totalorder %s5070_s15, 0  ;;  %p64_p3 = scmp.ne.s32.totalorder %s5062_s13, %s5058_s12 }
   0x9   : > { %s5129_s20 = scalar_select %p49_p0, %s5066_s14, %s51_s19  }
   0xa   : > { %p5131_p4 = por %p59_p2, %p58_p1  ;;  %p65_p5 = scmp.eq.s32.totalorder %s5116_s16, 0 }
   0xb   : > { %p4407_p6 = scmp.ge.s32.totalorder %s5070_s15, 1  ;;  %p117_p7 = scmp.lt.s32.totalorder %s5070_s15, 5 }
   0xc   : > { %p5140_p8 = por %p65_p5, %p64_p3  ;;  %p4408_p9 = scmp.ne.s32.totalorder %s5116_s16, 0 }
   0xd   : > { %p5145_p10 = pnand %p4407_p6, %p117_p7  ;;  %s129_s26 = sshll.u32 %s10423_s2, 4  ;;  %s130_s26 = int_to_ptr.hbm [resolvable:$true] %s129_s26 }
   0xe   : > { %s5072_s27 = smov [#allocation5]   ;;  %p4445_p13 = scmp.lt.s32.totalorder %s5070_s15, 4 }
   0xf   : > { %p4436_p11 = pneg %p5145_p10  ;;  %s131_s28 = sshll.u32 %s5072_s27, 4  ;;  %s132_s28 = int_to_ptr.vmem [resolvable:$true] %s131_s28 }
  0x10   : > { %s151_s29 = sand.u32 1, %s5066_s14   ;;  %s4425_s30 = sshll.u32 %s5070_s15, 12 }
  0x11   : > { %p4437_p12 = pnand %p4436_p11, %p65_p5  ;;  %p5161_p0 = pnand %p4445_p13, %p5131_p4 }
  0x12   : > { %s4410_s5 = sshll.u32 %s151_s29, 12  ;;  %s161_s8 = scalar_lea.hbm %s10422_s1, %s4425_s30 }
  0x13   : > { %4439 = dma.hbm_to_vmem [thread:$0]  (!%p4437_p12), %s130_s26, 2048, %s132_s28, [#allocation6]  }
  0x14   : > { %s162_s9 = sshll.u32 %s161_s8, 4  ;;  %s155_s10 = scalar_lea.vmem [#allocation2], %s4410_s5  ;;  %s163_s9 = int_to_ptr.hbm [resolvable:$true] %s162_s9 }
  0x15   : > { %s164_s11 = sshll.u32 %s155_s10, 4  ;;  %s152_s12 = scalar_lea.sflag [#allocation3], %s151_s29  ;;  %s165_s11 = int_to_ptr.vmem [resolvable:$true] %s164_s11 }
  0x16   : > { %s4970_s18 = sshra.s32 %s163_s9, 4  ;;  %p4974_p2 = pneg %p5161_p0  ;;  %s4971_s18 = int_to_ptr.hbm [resolvable:$true] %s4970_s18 }
  0x17   : > { %s4972_s15 = scalar_lea.hbm %s4971_s18, 4096  ;;  %s4977_s24 = scalar_lea.hbm %s10422_s1, 16384 }
  0x18   : > { %p4973_p1 = scmp.ne.s32.totalorder %s4971_s18, %s4972_s15  ;;  %p4978_p6 = scmp.lt.s32.totalorder %s4971_s18, %s10422_s1 }
  0x19   : > { %p4979_p7 = scmp.lt.s32.totalorder %s4977_s24, %s4972_s15 }
  0x1a   : > { %p4975_p3 = pnand %p4974_p2, %p4973_p1 }
  0x1b   : > { %p4980_p11 = por %p4979_p7, %p4978_p6 }
  0x1c   : > { %p4976_p4 = pneg %p4975_p3 }
  0x1e   : > { %p4981_p12 = pnand %p4980_p11, %p4976_p4 }
  0x20   : > { %4984 = shalt.err (!%p4981_p12)
}
  0x21   : > { %s5073_s27 = smov 16384   ;;  %s5074_s28 = smov 1024  }
  0x22   : > { %4443 = dma.hbm_to_vmem [thread:$0]  (!%p5161_p0), %s163_s9, 65536, %s165_s11, %s152_s12, %s5073_s27, %s5073_s27, %s5074_s28  }
  0x23   : > { %176 = sbr.rel (%p5145_p10) target bundleno = 1521 (0x5f1), region = 32 }
  0x28   : > { %s178_s29 = sand.u32 1, %s5062_s13  }
  0x29   : > { %s4415_s30 = sshll.u32 %s178_s29, 12  ;;  %s179_s5 = scalar_lea.sflag [#allocation3], %s178_s29 }
  0x2a   : > { %s5181_s6 = scalar_lea.vmem [#allocation2], %s4415_s30 }
  0x2b   : > { %5045 = dma.done.wait (%p5140_p8), %s179_s5, 65536  }
  0x2c   : > { %5047 = vsyncadd (%p5140_p8), %s179_s5, 4294901760 }
  0x2d   : > { %5049 = dma.done.wait (%p65_p5), [#allocation6], 2048  }
  0x2e   : > { %5051 = vsyncadd (%p65_p5), [#allocation6], 4294965248  ;;  %s4417_s23 = sshll.u32 %s5116_s16, 2 }
  0x2f   : > { %p212_p10 = scmp.lt.s32.totalorder %s4417_s23, 15  ;;  %221 = sbr.rel (%p4408_p9) target bundleno = 69 (0x45), region = 44 }
  0x31   : > { %s12286_s23 = smov (!%p212_p10, %s4417_s23), 15 }
  0x32   : > { %s4418_s4 = sshll.u32 %s12286_s23, 3 }
  0x33   : > { %s5195_s9 = scalar_lea.vmem %s10421_s0, %s4418_s4 }
  0x34   : > { %v222_v0 = vld [vmem:[#allocation5] sm:$0xff]  ;;  %v223_v1 = vld [vmem:[#allocation5 + $0x8] sm:$0xff]  ;;  %v224_v2 = vld [vmem:[#allocation5 + $0x10] sm:$0xff] }
  0x35   : > { %238 = vst [vmem:[#allocation7] sm:$0xff] %v222_v0  ;;  %v225_v3 = vld [vmem:[#allocation5 + $0x18] sm:$0xff]  ;;  %v226_v4 = vld [vmem:[#allocation5 + $0x20] sm:$0xff]  ;;  %v227_v5 = vld [vmem:[#allocation5 + $0x28] sm:$0xff] }
  0x36   : > { %239 = vst [vmem:[#allocation7 + $0x8] sm:$0xff] %v223_v1  ;;  %v228_v6 = vld [vmem:[#allocation5 + $0x30] sm:$0xff]  ;;  %v229_v7 = vld [vmem:[#allocation5 + $0x38] sm:$0xff]  ;;  %v230_v8 = vld [vmem:[#allocation5 + $0x40] sm:$0xff] }
  0x37   : > { %240 = vst [vmem:[#allocation7 + $0x10] sm:$0xff] %v224_v2  ;;  %v231_v9 = vld [vmem:[#allocation5 + $0x48] sm:$0xff]  ;;  %v232_v10 = vld [vmem:[#allocation5 + $0x50] sm:$0xff]  ;;  %v233_v11 = vld [vmem:[#allocation5 + $0x58] sm:$0xff] }
  0x38   : > { %241 = vst [vmem:[#allocation7 + $0x18] sm:$0xff] %v225_v3  ;;  %v234_v12 = vld [vmem:[#allocation5 + $0x60] sm:$0xff]  ;;  %v235_v13 = vld [vmem:[#allocation5 + $0x68] sm:$0xff]  ;;  %v236_v14 = vld [vmem:[#allocation5 + $0x70] sm:$0xff] }
  0x39   : > { %242 = vst [vmem:[#allocation7 + $0x20] sm:$0xff] %v226_v4  ;;  %v237_v15 = vld [vmem:[#allocation5 + $0x78] sm:$0xff] }
  0x3a   : > { %243 = vst [vmem:[#allocation7 + $0x28] sm:$0xff] %v227_v5 }
  0x3b   : > { %244 = vst [vmem:[#allocation7 + $0x30] sm:$0xff] %v228_v6 }
  0x3c   : > { %245 = vst [vmem:[#allocation7 + $0x38] sm:$0xff] %v229_v7 }
  0x3d   : > { %246 = vst [vmem:[#allocation7 + $0x40] sm:$0xff] %v230_v8 }
  0x3e   : > { %247 = vst [vmem:[#allocation7 + $0x48] sm:$0xff] %v231_v9 }
  0x3f   : > { %248 = vst [vmem:[#allocation7 + $0x50] sm:$0xff] %v232_v10 }
  0x40   : > { %249 = vst [vmem:[#allocation7 + $0x58] sm:$0xff] %v233_v11 }
  0x41   : > { %250 = vst [vmem:[#allocation7 + $0x60] sm:$0xff] %v234_v12 }
  0x42   : > { %251 = vst [vmem:[#allocation7 + $0x68] sm:$0xff] %v235_v13 }
  0x43   : > { %252 = vst [vmem:[#allocation7 + $0x70] sm:$0xff] %v236_v14 }
  0x44   : > { %253 = vst [vmem:[#allocation7 + $0x78] sm:$0xff] %v237_v15 }
  0x45 PF: > { %v770_v16 = vld [vmem:[#allocation5] sm:$0xff]  ;;  %v771_v19 = vld [vmem:[#allocation5 + $0x8] sm:$0xff]  ;;  %v512_v24 = vld [vmem:[%s5181_s6 + $0x810] sm:$0xff]  ;;  %vm4158_vm0 = vcmask 1040384   ;;  %vm4160_vm1 = vcmask 1042434   ;;  %vm4162_vm2 = vcmask 1041408  }
  0x46   : > { %v5199_v17 = vperm.slane %v770_v16, 0  ;;  %v510_v18 = vld [vmem:[%s5181_s6 + $0x800] sm:$0xff]  ;;  %v5202_v20 = vperm.slane %v770_v16, 1  ;;  %v511_v21 = vld [vmem:[%s5181_s6 + $0x808] sm:$0xff]  ;;  %v5205_v22 = vperm.slane %v770_v16, 2  ;;  %v5207_v23 = vperm.slane %v770_v16, 3 }
  0x47   : > { %v772_v25 = vld [vmem:[#allocation5 + $0x10] sm:$0xff]  ;;  %v5210_v26 = vperm.slane %v770_v16, 4  ;;  %v5212_v27 = vperm.slane %v770_v16, 5  ;;  %v5214_v28 = vperm.slane %v770_v16, 6  ;;  %v5216_v29 = vperm.slane %v770_v16, 7  ;;  %v773_v34 = vld [vmem:[#allocation5 + $0x18] sm:$0xff] }
  0x48   : > { %v5218_v30 = vperm.slane %v771_v19, 0  ;;  %v5220_v31 = vperm.slane %v771_v19, 1  ;;  %v5222_v32 = vperm.slane %v771_v19, 2  ;;  %v5225_v33 = vmul.f32 %v5199_v17, %v510_v18  ;;  %v774_v43 = vld [vmem:[#allocation5 + $0x20] sm:$0xff]  ;;  %v775_v52 = vld [vmem:[#allocation5 + $0x28] sm:$0xff]  ;;  %v776_v61 = vld [vmem:[#allocation5 + $0x30] sm:$0xff] }
  0x49   : > { %v5227_v35 = vperm.slane %v771_v19, 3  ;;  %v5229_v36 = vperm.slane %v771_v19, 4  ;;  %v5231_v37 = vperm.slane %v771_v19, 5  ;;  %v5234_v38 = vmul.f32 %v5202_v20, %v511_v21  ;;  %v777_v6 = vld [vmem:[#allocation5 + $0x38] sm:$0xff]  ;;  %v778_v15 = vld [vmem:[#allocation5 + $0x40] sm:$0xff]  ;;  %s5076_s22 = smov [#allocation7]  }
  0x4a   : > { %v5236_v39 = vperm.slane %v771_v19, 6  ;;  %v5238_v40 = vperm.slane %v771_v19, 7  ;;  %v5240_v41 = vperm.slane %v772_v25, 0  ;;  %v5243_v42 = vmul.f32 %v5205_v22, %v512_v24  ;;  %s4331_s10 = sshll.u32 %s5076_s22, 4  ;;  %s4333_s18 = sshll.u32 %s10424_s3, 4  ;;  %s4332_s10 = int_to_ptr.vmem [resolvable:$true] %s4331_s10  ;;  %s4334_s18 = int_to_ptr.hbm [resolvable:$true] %s4333_s18 }
  0x4b   : > { %v5245_v44 = vperm.slane %v772_v25, 1  ;;  %v5247_v45 = vperm.slane %v772_v25, 2  ;;  %v5249_v46 = vperm.slane %v772_v25, 3  ;;  %v5251_v47 = vperm.slane %v772_v25, 4  ;;  %p4447_p5 = scmp.eq.s32.totalorder %s5116_s16, 3 }
  0x4c   : > { %v5253_v48 = vperm.slane %v772_v25, 5  ;;  %v5255_v49 = vperm.slane %v772_v25, 6  ;;  %v5257_v50 = vperm.slane %v772_v25, 7  ;;  %v5259_v51 = vperm.slane %v773_v34, 0 }
  0x4d   : > { %v5261_v53 = vperm.slane %v773_v34, 1  ;;  %v5263_v54 = vperm.slane %v773_v34, 2  ;;  %v5265_v55 = vperm.slane %v773_v34, 3  ;;  %v5267_v56 = vperm.slane %v773_v34, 4 }
  0x4e   : > { %v5269_v57 = vperm.slane %v773_v34, 5  ;;  %v5271_v58 = vperm.slane %v773_v34, 6  ;;  %v5273_v59 = vperm.slane %v773_v34, 7  ;;  %v5275_v60 = vperm.slane %v774_v43, 0 }
  0x4f   : > { %v5277_v62 = vperm.slane %v774_v43, 1  ;;  %v5279_v63 = vperm.slane %v774_v43, 2  ;;  %v5281_v0 = vperm.slane %v774_v43, 3  ;;  %v5283_v1 = vperm.slane %v774_v43, 4 }
  0x50   : > { %v5285_v2 = vperm.slane %v774_v43, 5  ;;  %v5287_v3 = vperm.slane %v774_v43, 6  ;;  %v5289_v4 = vperm.slane %v774_v43, 7  ;;  %v5291_v5 = vperm.slane %v775_v52, 0 }
  0x51   : > { %10624 = vst [vmem:[#allocation11_spill] sm:$0xff] %v5279_v63  ;;  %v5293_v7 = vperm.slane %v775_v52, 1  ;;  %v5295_v8 = vperm.slane %v775_v52, 2  ;;  %v5297_v9 = vperm.slane %v775_v52, 3  ;;  %v5299_v10 = vperm.slane %v775_v52, 4  ;;  %v527_v63 = vld [vmem:[%s5181_s6 + $0x888] sm:$0xff] }
  0x52   : > { %10625 = vst [vmem:[#allocation12_spill] sm:$0xff] %v5281_v0  ;;  %v5301_v11 = vperm.slane %v775_v52, 5  ;;  %v5303_v12 = vperm.slane %v775_v52, 6  ;;  %v5305_v13 = vperm.slane %v775_v52, 7  ;;  %v5307_v14 = vperm.slane %v776_v61, 0  ;;  %v779_v52 = vld [vmem:[#allocation5 + $0x48] sm:$0xff] }
  0x53   : > { %10626 = vst [vmem:[#allocation13_spill] sm:$0xff] %v5283_v1  ;;  %v5309_v16 = vperm.slane %v776_v61, 1  ;;  %v5311_v18 = vperm.slane %v776_v61, 2  ;;  %v5313_v19 = vperm.slane %v776_v61, 3  ;;  %v5315_v21 = vperm.slane %v776_v61, 4  ;;  %v522_v1 = vld [vmem:[%s5181_s6 + $0x860] sm:$0xff] }
  0x54   : > { %10627 = vst [vmem:[#allocation14_spill] sm:$0xff] %v5285_v2  ;;  %v5317_v24 = vperm.slane %v776_v61, 5  ;;  %v5319_v25 = vperm.slane %v776_v61, 6  ;;  %v5321_v34 = vperm.slane %v776_v61, 7  ;;  %v5323_v43 = vperm.slane %v777_v6, 0  ;;  %v780_v61 = vld [vmem:[#allocation5 + $0x50] sm:$0xff] }
  0x55   : > { %10628 = vst [vmem:[#allocation15_spill] sm:$0xff] %v5287_v3  ;;  %v5488_v2 = vld [vmem:[#allocation5 + $0x78] sm:$0xff]  ;;  %vm4164_vm3 = vcmask 1044484   ;;  %vm4166_vm4 = vcmask 1046534   ;;  %vm4168_vm5 = vcmask 1045508   ;;  %vm4170_vm6 = vcmask 1043456  }
  0x56   : > { %10629 = vst [vmem:[#allocation16_spill] sm:$0xff] %v5289_v4  ;;  %v519_v4 = vld [vmem:[%s5181_s6 + $0x848] sm:$0xff] }
  0x57   : > { %10630 = vst [vmem:[#allocation17_spill] sm:$0xff] %v5291_v5 }
  0x58   : > { %10631 = vst [vmem:[#allocation18_spill] sm:$0xff] %v5293_v7 }
  0x59   : > { %10632 = vst [vmem:[#allocation19_spill] sm:$0xff] %v5295_v8 }
  0x5a   : > { %10633 = vst [vmem:[#allocation20_spill] sm:$0xff] %v5297_v9 }
  0x5b   : > { %10634 = vst [vmem:[#allocation21_spill] sm:$0xff] %v5299_v10 }
  0x5c   : > { %10635 = vst [vmem:[#allocation22_spill] sm:$0xff] %v5301_v11  ;;  %v515_v11 = vld [vmem:[%s5181_s6 + $0x828] sm:$0xff] }
  0x5d   : > { %10636 = vst [vmem:[#allocation23_spill] sm:$0xff] %v5303_v12  ;;  %v514_v12 = vld [vmem:[%s5181_s6 + $0x820] sm:$0xff] }
  0x5e   : > { %10637 = vst [vmem:[#allocation24_spill] sm:$0xff] %v5305_v13  ;;  %v5325_v13 = vperm.slane %v777_v6, 1 }
  0x5f   : > { %10638 = vst [vmem:[#allocation25_spill] sm:$0xff] %v5307_v14  ;;  %v5327_v14 = vperm.slane %v777_v6, 2 }
  0x60   : > { %10639 = vst [vmem:[#allocation26_spill] sm:$0xff] %v5309_v16  ;;  %v5329_v16 = vperm.slane %v777_v6, 3 }
  0x61   : > { %10640 = vst [vmem:[#allocation27_spill] sm:$0xff] %v5311_v18  ;;  %v5331_v18 = vperm.slane %v777_v6, 4 }
  0x62   : > { %10641 = vst [vmem:[#allocation28_spill] sm:$0xff] %v5313_v19  ;;  %v5333_v19 = vperm.slane %v777_v6, 5 }
  0x63   : > { %10642 = vst [vmem:[#allocation29_spill] sm:$0xff] %v5315_v21  ;;  %v5335_v21 = vperm.slane %v777_v6, 6 }
  0x64   : > { %10643 = vst [vmem:[#allocation30_spill] sm:$0xff] %v5317_v24  ;;  %v5337_v24 = vperm.slane %v777_v6, 7  ;;  %v5355_v6 = vperm.slane %v779_v52, 0 }
  0x65   : > { %10644 = vst [vmem:[#allocation31_spill] sm:$0xff] %v5319_v25  ;;  %v5339_v25 = vperm.slane %v778_v15, 0 }
  0x66   : > { %10645 = vst [vmem:[#allocation32_spill] sm:$0xff] %v5321_v34  ;;  %v5341_v34 = vperm.slane %v778_v15, 1 }
  0x67   : > { %10646 = vst [vmem:[#allocation33_spill] sm:$0xff] %v5323_v43  ;;  %v5343_v43 = vperm.slane %v778_v15, 2 }
  0x68   : > { %10647 = vst [vmem:[#allocation34_spill] sm:$0xff] %v5325_v13  ;;  %v5345_v13 = vperm.slane %v778_v15, 3 }
  0x69   : > { %10648 = vst [vmem:[#allocation35_spill] sm:$0xff] %v5327_v14  ;;  %v5347_v14 = vperm.slane %v778_v15, 4 }
  0x6a   : > { %10649 = vst [vmem:[#allocation36_spill] sm:$0xff] %v5329_v16  ;;  %v5349_v16 = vperm.slane %v778_v15, 5 }
  0x6b   : > { %10650 = vst [vmem:[#allocation37_spill] sm:$0xff] %v5331_v18  ;;  %v5351_v18 = vperm.slane %v778_v15, 6 }
  0x6c   : > { %10651 = vst [vmem:[#allocation38_spill] sm:$0xff] %v5333_v19  ;;  %v5353_v19 = vperm.slane %v778_v15, 7  ;;  %v5369_v15 = vperm.slane %v779_v52, 7 }
  0x6d   : > { %10652 = vst [vmem:[#allocation39_spill] sm:$0xff] %v5335_v21  ;;  %v5359_v21 = vperm.slane %v779_v52, 2 }
  0x6e   : > { %10653 = vst [vmem:[#allocation40_spill] sm:$0xff] %v5337_v24  ;;  %v781_v24 = vld [vmem:[#allocation5 + $0x58] sm:$0xff] }
  0x6f   : > { %10654 = vst [vmem:[#allocation41_spill] sm:$0xff] %v5339_v25  ;;  %v5357_v25 = vperm.slane %v779_v52, 1 }
  0x70   : > { %10655 = vst [vmem:[#allocation42_spill] sm:$0xff] %v5341_v34  ;;  %v5361_v34 = vperm.slane %v779_v52, 3 }
  0x71   : > { %10656 = vst [vmem:[#allocation43_spill] sm:$0xff] %v5343_v43  ;;  %v5363_v43 = vperm.slane %v779_v52, 4 }
  0x72   : > { %10657 = vst [vmem:[#allocation44_spill] sm:$0xff] %v5345_v13  ;;  %v5380_v13 = vperm.slane %v780_v61, 4 }
  0x73   : > { %10658 = vst [vmem:[#allocation45_spill] sm:$0xff] %v5347_v14  ;;  %v5365_v14 = vperm.slane %v779_v52, 5 }
  0x74   : > { %10659 = vst [vmem:[#allocation46_spill] sm:$0xff] %v5349_v16  ;;  %v5367_v16 = vperm.slane %v779_v52, 6  ;;  %v5386_v52 = vperm.slane %v780_v61, 7 }
  0x75   : > { %10660 = vst [vmem:[#allocation47_spill] sm:$0xff] %v5351_v18  ;;  %v782_v18 = vld [vmem:[#allocation5 + $0x60] sm:$0xff] }
  0x76   : > { %10661 = vst [vmem:[#allocation48_spill] sm:$0xff] %v5353_v19  ;;  %v5371_v19 = vperm.slane %v780_v61, 0  ;;  %v5416_v10 = vperm.slane %v782_v18, 1  ;;  %v5431_v9 = vperm.slane %v782_v18, 6 }
  0x77   : > { %10662 = vst [vmem:[#allocation49_spill] sm:$0xff] %v5355_v6  ;;  %v513_v6 = vld [vmem:[%s5181_s6 + $0x818] sm:$0xff] }
  0x78   : > { %10663 = vst [vmem:[#allocation50_spill] sm:$0xff] %v5357_v25  ;;  %v5374_v25 = vperm.slane %v780_v61, 1 }
  0x79   : > { %10664 = vst [vmem:[#allocation51_spill] sm:$0xff] %v5359_v21  ;;  %v5376_v21 = vperm.slane %v780_v61, 2 }
  0x7a   : > { %10665 = vst [vmem:[#allocation52_spill] sm:$0xff] %v5361_v34  ;;  %v5378_v34 = vperm.slane %v780_v61, 3 }
  0x7b   : > { %10666 = vst [vmem:[#allocation53_spill] sm:$0xff] %v5363_v43  ;;  %v5382_v43 = vperm.slane %v780_v61, 5 }
  0x7c   : > { %10667 = vst [vmem:[#allocation54_spill] sm:$0xff] %v5365_v14  ;;  %v5384_v14 = vperm.slane %v780_v61, 6  ;;  %v1317_v61 = vmul.f32 %v5207_v23, %v513_v6  ;;  %v1318_v6 = vmul.f32 %v5210_v26, %v514_v12 }
  0x7d   : > { %10668 = vst [vmem:[#allocation55_spill] sm:$0xff] %v5367_v16  ;;  %v639_v16 = vld [vmem:[%s5181_s6 + $0xc08] sm:$0xff] }
  0x7e   : > { %10669 = vst [vmem:[#allocation56_spill] sm:$0xff] %v5369_v15  ;;  %v5388_v15 = vperm.slane %v781_v24, 0 }
  0x7f   : > { %10670 = vst [vmem:[#allocation57_spill] sm:$0xff] %v5371_v19  ;;  %v638_v19 = vld [vmem:[%s5181_s6 + $0xc00] sm:$0xff] }
  0x80   : > { %10671 = vst [vmem:[#allocation58_spill] sm:$0xff] %v5374_v25  ;;  %v5393_v25 = vperm.slane %v781_v24, 1 }
  0x81   : > { %10672 = vst [vmem:[#allocation59_spill] sm:$0xff] %v5376_v21  ;;  %v5395_v21 = vperm.slane %v781_v24, 2 }
  0x82   : > { %10673 = vst [vmem:[#allocation60_spill] sm:$0xff] %v5378_v34  ;;  %v5397_v34 = vperm.slane %v781_v24, 3 }
  0x83   : > { %10674 = vst [vmem:[#allocation61_spill] sm:$0xff] %v5380_v13  ;;  %v5399_v13 = vperm.slane %v781_v24, 4 }
  0x84   : > { %10675 = vst [vmem:[#allocation62_spill] sm:$0xff] %v5382_v43  ;;  %v5401_v43 = vperm.slane %v781_v24, 5 }
  0x85   : > { %10676 = vst [vmem:[#allocation63_spill] sm:$0xff] %v5384_v14  ;;  %v5403_v14 = vperm.slane %v781_v24, 6 }
  0x86   : > { %10677 = vst [vmem:[#allocation64_spill] sm:$0xff] %v5386_v52  ;;  %v640_v52 = vld [vmem:[%s5181_s6 + $0xc10] sm:$0xff] }
  0x87   : > { %10678 = vst [vmem:[#allocation65_spill] sm:$0xff] %v5388_v15  ;;  %v1828_v15 = vadd.f32 %v5234_v38, %v5225_v33  ;;  %v641_v38 = vld [vmem:[%s5181_s6 + $0xc18] sm:$0xff] }
  0x88   : > { %10679 = vst [vmem:[#allocation66_spill] sm:$0xff] %v5393_v25  ;;  %v5410_v25 = vperm.slane %v781_v24, 7  ;;  %v516_v24 = vld [vmem:[%s5181_s6 + $0x830] sm:$0xff] }
  0x89   : > { %10680 = vst [vmem:[#allocation67_spill] sm:$0xff] %v5395_v21  ;;  %v5412_v21 = vperm.slane %v782_v18, 0  ;;  %v1829_v33 = vadd.f32 %v1828_v15, %v5243_v42  ;;  %v1319_v42 = vmul.f32 %v5212_v27, %v515_v11  ;;  %v642_v15 = vld [vmem:[%s5181_s6 + $0xc20] sm:$0xff]  ;;  %v643_v11 = vld [vmem:[%s5181_s6 + $0xc28] sm:$0xff] }
  0x8a   : > { %10681 = vst [vmem:[#allocation68_spill] sm:$0xff] %v5397_v34  ;;  %v1442_v34 = vmul.f32 %v5199_v17, %v638_v19  ;;  %v5428_v19 = vperm.slane %v782_v18, 5 }
  0x8b   : > { %10682 = vst [vmem:[#allocation69_spill] sm:$0xff] %v5399_v13  ;;  %v1443_v13 = vmul.f32 %v5202_v20, %v639_v16  ;;  %v1444_v16 = vmul.f32 %v5205_v22, %v640_v52  ;;  %v1830_v12 = vadd.f32 %v1829_v33, %v1317_v61  ;;  %v254_v61 = vld [vmem:[%s5181_s6] sm:$0xff]  ;;  %v255_v33 = vld [vmem:[%s5181_s6 + $0x8] sm:$0xff] }
  0x8c   : > { %10683 = vst [vmem:[#allocation70_spill] sm:$0xff] %v5401_v43  ;;  %v783_v43 = vld [vmem:[#allocation5 + $0x68] sm:$0xff] }
  0x8d   : > { %10684 = vst [vmem:[#allocation71_spill] sm:$0xff] %v5403_v14  ;;  %v5418_v14 = vperm.slane %v782_v18, 2  ;;  %v1957_v8 = vadd.f32 %v1443_v13, %v1442_v34  ;;  %v5443_v52 = vperm.slane %v783_v43, 2  ;;  %v5445_v7 = vperm.slane %v783_v43, 3 }
  0x8e   : > { %10685 = vst [vmem:[#allocation72_spill] sm:$0xff] %v5410_v25  ;;  %v5424_v25 = vperm.slane %v782_v18, 3  ;;  %v5452_v5 = vperm.slane %v783_v43, 4  ;;  %v1446_v13 = vmul.f32 %v5210_v26, %v642_v15  ;;  %v257_v15 = vld [vmem:[%s5181_s6 + $0x18] sm:$0xff] }
  0x8f   : > { %10686 = vst [vmem:[#allocation73_spill] sm:$0xff] %v5412_v21  ;;  %v5426_v21 = vperm.slane %v782_v18, 4  ;;  %v1958_v34 = vadd.f32 %v1957_v8, %v1444_v16  ;;  %v1059_v8 = vmul.f32 %v5202_v20, %v255_v33 }
  0x90   : > { %10687 = vst [vmem:[#allocation74_spill] sm:$0xff] %v5416_v10  ;;  %v517_v10 = vld [vmem:[%s5181_s6 + $0x838] sm:$0xff] }
  0x91   : > { %10688 = vst [vmem:[#allocation75_spill] sm:$0xff] %v5418_v14  ;;  %v5433_v14 = vperm.slane %v782_v18, 7  ;;  %v1320_v18 = vmul.f32 %v5214_v28, %v516_v24  ;;  %v5459_v24 = vperm.slane %v783_v43, 7 }
  0x92   : > { %10689 = vst [vmem:[#allocation76_spill] sm:$0xff] %v5424_v25  ;;  %v5438_v25 = vperm.slane %v783_v43, 0 }
  0x93   : > { %10690 = vst [vmem:[#allocation77_spill] sm:$0xff] %v5426_v21  ;;  %v5440_v21 = vperm.slane %v783_v43, 1 }
  0x94   : > { %10691 = vst [vmem:[#allocation78_spill] sm:$0xff] %v5428_v19  ;;  %v1445_v19 = vmul.f32 %v5207_v23, %v641_v38  ;;  %v5457_v38 = vperm.slane %v783_v43, 6 }
  0x95   : > { %10692 = vst [vmem:[#allocation79_spill] sm:$0xff] %v5431_v9  ;;  %v518_v9 = vld [vmem:[%s5181_s6 + $0x840] sm:$0xff] }
  0x96   : > { %10693 = vst [vmem:[#allocation80_spill] sm:$0xff] %v5433_v14  ;;  %v1831_v14 = vadd.f32 %v1830_v12, %v1318_v6  ;;  %v1321_v6 = vmul.f32 %v5216_v29, %v517_v10  ;;  %v1959_v3 = vadd.f32 %v1958_v34, %v1445_v19  ;;  %v1322_v10 = vmul.f32 %v5218_v30, %v518_v9 }
  0x97   : > { %10694 = vst [vmem:[#allocation81_spill] sm:$0xff] %v5438_v25  ;;  %v784_v25 = vld [vmem:[#allocation5 + $0x70] sm:$0xff] }
  0x98   : > { %10695 = vst [vmem:[#allocation82_spill] sm:$0xff] %v5440_v21  ;;  %v5454_v21 = vperm.slane %v783_v43, 5  ;;  %v1832_v12 = vadd.f32 %v1831_v14, %v1319_v42  ;;  %v5468_v16 = vperm.slane %v784_v25, 0  ;;  %v5470_v43 = vperm.slane %v784_v25, 1  ;;  %v645_v42 = vld [vmem:[%s5181_s6 + $0xc38] sm:$0xff] }
  0x99   : > { %10696 = vst [vmem:[#allocation83_spill] sm:$0xff] %v5443_v52  ;;  %v256_v52 = vld [vmem:[%s5181_s6 + $0x10] sm:$0xff]  ;;  %v5480_v33 = vperm.slane %v784_v25, 3  ;;  %v5482_v34 = vperm.slane %v784_v25, 4 }
  0x9a   : > { %10697 = vst [vmem:[#allocation84_spill] sm:$0xff] %v5445_v7  ;;  %v644_v7 = vld [vmem:[%s5181_s6 + $0xc30] sm:$0xff]  ;;  %v1833_v14 = vadd.f32 %v1832_v12, %v1320_v18  ;;  %v646_v18 = vld [vmem:[%s5181_s6 + $0xc40] sm:$0xff] }
  0x9b   : > { %10698 = vst [vmem:[#allocation85_spill] sm:$0xff] %v5452_v5  ;;  %v1447_v5 = vmul.f32 %v5212_v27, %v643_v11  ;;  %v1448_v19 = vmul.f32 %v5214_v28, %v644_v7  ;;  %v1960_v11 = vadd.f32 %v1959_v3, %v1446_v13  ;;  %v258_v12 = vld [vmem:[%s5181_s6 + $0x20] sm:$0xff]  ;;  %v1449_v7 = vmul.f32 %v5216_v29, %v645_v42 }
  0x9c   : > { %10699 = vst [vmem:[#allocation86_spill] sm:$0xff] %v5454_v21  ;;  %v1058_v21 = vmul.f32 %v5199_v17, %v254_v61  ;;  %v1060_v61 = vmul.f32 %v5205_v22, %v256_v52  ;;  %v1834_v9 = vadd.f32 %v1833_v14, %v1321_v6  ;;  %v1061_v52 = vmul.f32 %v5207_v23, %v257_v15  ;;  %v647_v14 = vld [vmem:[%s5181_s6 + $0xc48] sm:$0xff] }
  0x9d   : > { %10700 = vst [vmem:[#allocation87_spill] sm:$0xff] %v5457_v38  ;;  %v5476_v38 = vperm.slane %v784_v25, 2  ;;  %v1961_v3 = vadd.f32 %v1960_v11, %v1447_v5  ;;  %v1450_v0 = vmul.f32 %v5218_v30, %v646_v18  ;;  %v1062_v5 = vmul.f32 %v5210_v26, %v258_v12  ;;  %v648_v11 = vld [vmem:[%s5181_s6 + $0xc50] sm:$0xff] }
  0x9e   : > { %10701 = vst [vmem:[#allocation88_spill] sm:$0xff] %v5459_v24  ;;  %v520_v24 = vld [vmem:[%s5181_s6 + $0x850] sm:$0xff]  ;;  %v1570_v13 = vadd.f32 %v1059_v8, %v1058_v21  ;;  %v1835_v6 = vadd.f32 %v1834_v9, %v1322_v10  ;;  %v5502_v21 = vperm.slane %v784_v25, 7  ;;  %v5505_v8 = vperm.slane %v5488_v2, 0 }
  0x9f   : > { %10702 = vst [vmem:[#allocation89_spill] sm:$0xff] %v5468_v16  ;;  %v521_v16 = vld [vmem:[%s5181_s6 + $0x858] sm:$0xff]  ;;  %v1962_v42 = vadd.f32 %v1961_v3, %v1448_v19  ;;  %v260_v9 = vld [vmem:[%s5181_s6 + $0x30] sm:$0xff]  ;;  %v1451_v18 = vmul.f32 %v5220_v31, %v647_v14  ;;  %v5517_v3 = vperm.slane %v5488_v2, 2 }
  0xa0   : > { %10703 = vst [vmem:[#allocation90_spill] sm:$0xff] %v5470_v43  ;;  %v1323_v43 = vmul.f32 %v5220_v31, %v519_v4  ;;  %v1324_v4 = vmul.f32 %v5222_v32, %v520_v24  ;;  %v1571_v15 = vadd.f32 %v1570_v13, %v1060_v61  ;;  %v1325_v24 = vmul.f32 %v5227_v35, %v521_v16  ;;  %v649_v13 = vld [vmem:[%s5181_s6 + $0xc58] sm:$0xff] }
  0xa1   : > { %10704 = vst [vmem:[#allocation91_spill] sm:$0xff] %v5476_v38  ;;  %v259_v38 = vld [vmem:[%s5181_s6 + $0x28] sm:$0xff]  ;;  %v1963_v19 = vadd.f32 %v1962_v42, %v1449_v7  ;;  %v1326_v16 = vmul.f32 %v5229_v36, %v522_v1  ;;  %v1452_v7 = vmul.f32 %v5222_v32, %v648_v11  ;;  %v5526_v42 = vperm.slane %v5488_v2, 3  ;;  %v525_v11 = vld [vmem:[%s5181_s6 + $0x878] sm:$0xff] }
  0xa2   : > { %10705 = vst [vmem:[#allocation92_spill] sm:$0xff] %v5480_v33  ;;  %v5492_v33 = vperm.slane %v784_v25, 5  ;;  %v1836_v10 = vadd.f32 %v1835_v6, %v1323_v43  ;;  %v1063_v12 = vmul.f32 %v5212_v27, %v259_v38  ;;  %v1572_v61 = vadd.f32 %v1571_v15, %v1061_v52  ;;  %v261_v6 = vld [vmem:[%s5181_s6 + $0x38] sm:$0xff] }
  0xa3   : > { %10706 = vst [vmem:[#allocation93_spill] sm:$0xff] %v5482_v34  ;;  %v5494_v34 = vperm.slane %v784_v25, 6  ;;  %v5514_v25 = vperm.slane %v5488_v2, 1  ;;  %v1964_v38 = vadd.f32 %v1963_v19, %v1450_v0  ;;  %v1064_v52 = vmul.f32 %v5214_v28, %v260_v9 }
  0xa4   : > { %10707 = vst [vmem:[#allocation94_spill] sm:$0xff] %v5492_v33  ;;  %v1837_v43 = vadd.f32 %v1836_v10, %v1324_v4  ;;  %v1573_v14 = vadd.f32 %v1572_v61, %v1062_v5  ;;  %v5529_v15 = vperm.slane %v5488_v2, 4  ;;  %v650_v10 = vld [vmem:[%s5181_s6 + $0xc60] sm:$0xff]  ;;  %v1453_v0 = vmul.f32 %v5227_v35, %v649_v13  ;;  %v651_v13 = vld [vmem:[%s5181_s6 + $0xc68] sm:$0xff]  ;;  %v652_v33 = vld [vmem:[%s5181_s6 + $0xc70] sm:$0xff] }
  0xa5   : > { %10708 = vst [vmem:[#allocation95_spill] sm:$0xff] %v5494_v34  ;;  %v523_v34 = vld [vmem:[%s5181_s6 + $0x868] sm:$0xff]  ;;  %v1965_v19 = vadd.f32 %v1964_v38, %v1451_v18  ;;  %v1065_v5 = vmul.f32 %v5216_v29, %v261_v6  ;;  %v382_v61 = vld [vmem:[%s5181_s6 + $0x400] sm:$0xff]  ;;  %v1454_v6 = vmul.f32 %v5229_v36, %v650_v10  ;;  %v1455_v10 = vmul.f32 %v5231_v37, %v651_v13 }
  0xa6   : > { %10709 = vst [vmem:[#allocation96_spill] sm:$0xff] %v5502_v21  ;;  %v1327_v1 = vmul.f32 %v5231_v37, %v523_v34  ;;  %v1838_v4 = vadd.f32 %v1837_v43, %v1325_v24  ;;  %v1574_v9 = vadd.f32 %v1573_v14, %v1063_v12  ;;  %v5543_v34 = vperm.slane %v5488_v2, 6  ;;  %v263_v18 = vld [vmem:[%s5181_s6 + $0x48] sm:$0xff]  ;;  %v526_v38 = vld [vmem:[%s5181_s6 + $0x880] sm:$0xff]  ;;  %v384_v21 = vld [vmem:[%s5181_s6 + $0x410] sm:$0xff] }
  0xa7   : > { %10710 = vst [vmem:[#allocation97_spill] sm:$0xff] %v5505_v8  ;;  %v524_v8 = vld [vmem:[%s5181_s6 + $0x870] sm:$0xff]  ;;  %v1966_v12 = vadd.f32 %v1965_v19, %v1452_v7  ;;  %v385_v19 = vld [vmem:[%s5181_s6 + $0x418] sm:$0xff]  ;;  %v386_v13 = vld [vmem:[%s5181_s6 + $0x420] sm:$0xff] }
  0xa8   : > { %10711 = vst [vmem:[#allocation98_spill] sm:$0xff] %v5514_v25  ;;  %v1328_v24 = vmul.f32 %v5236_v39, %v524_v8  ;;  %v1839_v43 = vadd.f32 %v1838_v4, %v1326_v16  ;;  %v1575_v25 = vadd.f32 %v1574_v9, %v1064_v52  ;;  %v264_v8 = vld [vmem:[%s5181_s6 + $0x50] sm:$0xff]  ;;  %v1186_v16 = vmul.f32 %v5199_v17, %v382_v61  ;;  %v653_v17 = vld [vmem:[%s5181_s6 + $0xc78] sm:$0xff] }
  0xa9   : > { %10712 = vst [vmem:[#allocation99_spill] sm:$0xff] %v5517_v3  ;;  %v262_v3 = vld [vmem:[%s5181_s6 + $0x40] sm:$0xff]  ;;  %v1967_v7 = vadd.f32 %v1966_v12, %v1453_v0  ;;  %v528_v61 = vld [vmem:[%s5181_s6 + $0x890] sm:$0xff]  ;;  %v1456_v0 = vmul.f32 %v5236_v39, %v652_v33  ;;  %v1457_v33 = vmul.f32 %v5238_v40, %v653_v17 }
  0xaa   : > { %10713 = vst [vmem:[#allocation100_spill] sm:$0xff] %v5526_v42  ;;  %v383_v42 = vld [vmem:[%s5181_s6 + $0x408] sm:$0xff]  ;;  %v1066_v14 = vmul.f32 %v5218_v30, %v262_v3  ;;  %v1067_v3 = vmul.f32 %v5220_v31, %v263_v18  ;;  %v1576_v52 = vadd.f32 %v1575_v25, %v1065_v5  ;;  %v1068_v25 = vmul.f32 %v5222_v32, %v264_v8  ;;  %v388_v17 = vld [vmem:[%s5181_s6 + $0x430] sm:$0xff] }
  0xab   : > { %10714 = vst [vmem:[#allocation101_spill] sm:$0xff] %v5529_v15  ;;  %v5540_v15 = vperm.slane %v5488_v2, 5  ;;  %v1187_v4 = vmul.f32 %v5202_v20, %v383_v42  ;;  %v265_v20 = vld [vmem:[%s5181_s6 + $0x58] sm:$0xff]  ;;  %v1188_v42 = vmul.f32 %v5205_v22, %v384_v21  ;;  %v387_v8 = vld [vmem:[%s5181_s6 + $0x428] sm:$0xff] }
  0xac   : > { %10716 = vst [vmem:[#allocation103_spill] sm:$0xff] %v5543_v34  ;;  %v1840_v34 = vadd.f32 %v1839_v43, %v1327_v1  ;;  %v5562_v1 = vperm.slane %v5488_v2, 7  ;;  %v1968_v43 = vadd.f32 %v1967_v7, %v1454_v6  ;;  %v1577_v5 = vadd.f32 %v1576_v52, %v1066_v14  ;;  %v529_v21 = vld [vmem:[%s5181_s6 + $0x898] sm:$0xff]  ;;  %v655_v7 = vld [vmem:[%s5181_s6 + $0xc88] sm:$0xff] }
  0xad   : > { %10715 = vst [vmem:[#allocation102_spill] sm:$0xff] %v5540_v15  ;;  %v1329_v15 = vmul.f32 %v5238_v40, %v525_v11  ;;  %v1330_v11 = vmul.f32 %v5240_v41, %v526_v38  ;;  %v1331_v2 = vmul.f32 %v5245_v44, %v527_v63  ;;  %v1189_v38 = vmul.f32 %v5207_v23, %v385_v19  ;;  %v267_v52 = vld [vmem:[%s5181_s6 + $0x68] sm:$0xff] }
  0xae   : > { %v1841_v9 = vadd.f32 %v1840_v34, %v1328_v24  ;;  %v654_v34 = vld [vmem:[%s5181_s6 + $0xc80] sm:$0xff]  ;;  %v1699_v22 = vadd.f32 %v1187_v4, %v1186_v16  ;;  %v1969_v6 = vadd.f32 %v1968_v43, %v1455_v10  ;;  %v1069_v12 = vmul.f32 %v5227_v35, %v265_v20  ;;  %v268_v43 = vld [vmem:[%s5181_s6 + $0x70] sm:$0xff] }
  0xaf   : > { %v266_v24 = vld [vmem:[%s5181_s6 + $0x60] sm:$0xff]  ;;  %v1578_v14 = vadd.f32 %v1577_v5, %v1067_v3  ;;  %v1332_v63 = vmul.f32 %v5247_v45, %v528_v61  ;;  %v1190_v23 = vmul.f32 %v5210_v26, %v386_v13  ;;  %v1458_v19 = vmul.f32 %v5240_v41, %v654_v34  ;;  %v656_v61 = vld [vmem:[%s5181_s6 + $0xc90] sm:$0xff]  ;;  %v531_v5 = vld [vmem:[%s5181_s6 + $0x8a8] sm:$0xff] }
  0xb0   : > { %v1842_v18 = vadd.f32 %v1841_v9, %v1329_v15  ;;  %v1700_v16 = vadd.f32 %v1699_v22, %v1188_v42  ;;  %v530_v4 = vld [vmem:[%s5181_s6 + $0x8a0] sm:$0xff]  ;;  %v1970_v10 = vadd.f32 %v1969_v6, %v1456_v0  ;;  %v1070_v9 = vmul.f32 %v5229_v36, %v266_v24  ;;  %v389_v34 = vld [vmem:[%s5181_s6 + $0x438] sm:$0xff]  ;;  %v532_v6 = vld [vmem:[%s5181_s6 + $0x8b0] sm:$0xff] }
  0xb1   : > { %v1579_v3 = vadd.f32 %v1578_v14, %v1068_v25  ;;  %v1333_v20 = vmul.f32 %v5249_v46, %v529_v21  ;;  %v1191_v26 = vmul.f32 %v5212_v27, %v387_v8  ;;  %v1459_v13 = vmul.f32 %v5245_v44, %v655_v7  ;;  %v657_v22 = vld [vmem:[%s5181_s6 + $0xc98] sm:$0xff] }
  0xb2   : > { %v1843_v15 = vadd.f32 %v1842_v18, %v1330_v11  ;;  %v1701_v42 = vadd.f32 %v1700_v16, %v1189_v38  ;;  %v1971_v0 = vadd.f32 %v1970_v10, %v1457_v33  ;;  %v1071_v18 = vmul.f32 %v5231_v37, %v267_v52  ;;  %v269_v21 = vld [vmem:[%s5181_s6 + $0x78] sm:$0xff]  ;;  %v658_v52 = vld [vmem:[%s5181_s6 + $0xca0] sm:$0xff] }
  0xb3   : > { %v1580_v25 = vadd.f32 %v1579_v3, %v1069_v12  ;;  %v1334_v24 = vmul.f32 %v5251_v47, %v530_v4  ;;  %v1192_v27 = vmul.f32 %v5214_v28, %v388_v17  ;;  %v1460_v14 = vmul.f32 %v5247_v45, %v656_v61  ;;  %v270_v16 = vld [vmem:[%s5181_s6 + $0x80] sm:$0xff]  ;;  %v533_v4 = vld [vmem:[%s5181_s6 + $0x8b8] sm:$0xff]  ;;  %v391_v17 = vld [vmem:[%s5181_s6 + $0x448] sm:$0xff] }
  0xb4   : > { %v1844_v11 = vadd.f32 %v1843_v15, %v1331_v2  ;;  %v1702_v38 = vadd.f32 %v1701_v42, %v1190_v23  ;;  %v1972_v33 = vadd.f32 %v1971_v0, %v1458_v19  ;;  %v1072_v8 = vmul.f32 %v5236_v39, %v268_v43  ;;  %v390_v15 = vld [vmem:[%s5181_s6 + $0x440] sm:$0xff]  ;;  %v659_v61 = vld [vmem:[%s5181_s6 + $0xca8] sm:$0xff] }
  0xb5   : > { %v1581_v12 = vadd.f32 %v1580_v25, %v1070_v9  ;;  %v1335_v7 = vmul.f32 %v5253_v48, %v531_v5  ;;  %v1193_v28 = vmul.f32 %v5216_v29, %v389_v34  ;;  %v1461_v10 = vmul.f32 %v5249_v46, %v657_v22  ;;  %v271_v43 = vld [vmem:[%s5181_s6 + $0x88] sm:$0xff]  ;;  %v534_v42 = vld [vmem:[%s5181_s6 + $0x8c0] sm:$0xff]  ;;  %v392_v25 = vld [vmem:[%s5181_s6 + $0x450] sm:$0xff] }
  0xb6   : > { %v1845_v2 = vadd.f32 %v1844_v11, %v1332_v63  ;;  %v1703_v23 = vadd.f32 %v1702_v38, %v1191_v26  ;;  %v1973_v19 = vadd.f32 %v1972_v33, %v1459_v13  ;;  %v1073_v3 = vmul.f32 %v5238_v40, %v269_v21  ;;  %v272_v22 = vld [vmem:[%s5181_s6 + $0x90] sm:$0xff] }
  0xb7   : > { %v1582_v9 = vadd.f32 %v1581_v12, %v1071_v18  ;;  %v1336_v11 = vmul.f32 %v5255_v49, %v532_v6  ;;  %v1194_v29 = vmul.f32 %v5218_v30, %v390_v15  ;;  %v1462_v5 = vmul.f32 %v5251_v47, %v658_v52 }
  0xb8   : > { %v1846_v63 = vadd.f32 %v1845_v2, %v1333_v20  ;;  %v1704_v26 = vadd.f32 %v1703_v23, %v1192_v27  ;;  %v1974_v13 = vadd.f32 %v1973_v19, %v1460_v14  ;;  %v1074_v0 = vmul.f32 %v5240_v41, %v270_v16  ;;  %v660_v2 = vld [vmem:[%s5181_s6 + $0xcb0] sm:$0xff]  ;;  %v535_v27 = vld [vmem:[%s5181_s6 + $0x8c8] sm:$0xff]  ;;  %v394_v19 = vld [vmem:[%s5181_s6 + $0x460] sm:$0xff] }
  0xb9   : > { %v1583_v18 = vadd.f32 %v1582_v9, %v1072_v8  ;;  %v1337_v34 = vmul.f32 %v5257_v50, %v533_v4  ;;  %v1195_v30 = vmul.f32 %v5220_v31, %v391_v17  ;;  %v1463_v38 = vmul.f32 %v5253_v48, %v659_v61  ;;  %v393_v8 = vld [vmem:[%s5181_s6 + $0x458] sm:$0xff]  ;;  %v536_v16 = vld [vmem:[%s5181_s6 + $0x8d0] sm:$0xff]  ;;  %v662_v17 = vld [vmem:[%s5181_s6 + $0xcc0] sm:$0xff] }
  0xba   : > { %v1847_v20 = vadd.f32 %v1846_v63, %v1334_v24  ;;  %v1705_v21 = vadd.f32 %v1704_v26, %v1193_v28  ;;  %v1975_v6 = vadd.f32 %v1974_v13, %v1461_v10  ;;  %v1075_v14 = vmul.f32 %v5245_v44, %v271_v43  ;;  %v273_v63 = vld [vmem:[%s5181_s6 + $0x98] sm:$0xff] }
  0xbb   : > { %v1584_v33 = vadd.f32 %v1583_v18, %v1073_v3  ;;  %v1338_v12 = vmul.f32 %v5259_v51, %v534_v42  ;;  %v1196_v31 = vmul.f32 %v5222_v32, %v392_v25  ;;  %v1464_v28 = vmul.f32 %v5255_v49, %v660_v2  ;;  %v537_v61 = vld [vmem:[%s5181_s6 + $0x8d8] sm:$0xff]  ;;  %v663_v18 = vld [vmem:[%s5181_s6 + $0xcc8] sm:$0xff] }
  0xbc   : > { %v1848_v24 = vadd.f32 %v1847_v20, %v1335_v7  ;;  %v661_v7 = vld [vmem:[%s5181_s6 + $0xcb8] sm:$0xff]  ;;  %v1706_v52 = vadd.f32 %v1705_v21, %v1194_v29  ;;  %v1976_v23 = vadd.f32 %v1975_v6, %v1462_v5  ;;  %v1076_v4 = vmul.f32 %v5247_v45, %v272_v22  ;;  %v395_v5 = vld [vmem:[%s5181_s6 + $0x468] sm:$0xff] }
  0xbd   : > { %v1585_v10 = vadd.f32 %v1584_v33, %v1074_v0  ;;  %v1339_v3 = vmul.f32 %v5261_v53, %v535_v27  ;;  %v1197_v32 = vmul.f32 %v5227_v35, %v393_v8  ;;  %v1465_v43 = vmul.f32 %v5257_v50, %v661_v7  ;;  %v275_v25 = vld [vmem:[%s5181_s6 + $0xa8] sm:$0xff]  ;;  %v396_v27 = vld [vmem:[%s5181_s6 + $0x470] sm:$0xff] }
  0xbe   : > { %v1849_v15 = vadd.f32 %v1848_v24, %v1336_v11  ;;  %v274_v11 = vld [vmem:[%s5181_s6 + $0xa0] sm:$0xff]  ;;  %v1707_v20 = vadd.f32 %v1706_v52, %v1195_v30  ;;  %v1977_v29 = vadd.f32 %v1976_v23, %v1463_v38  ;;  %v1077_v26 = vmul.f32 %v5249_v46, %v273_v63  ;;  %v276_v33 = vld [vmem:[%s5181_s6 + $0xb0] sm:$0xff]  ;;  %v397_v52 = vld [vmem:[%s5181_s6 + $0x478] sm:$0xff] }
  0xbf   : > { %v1586_v42 = vadd.f32 %v1585_v10, %v1075_v14  ;;  %v1340_v13 = vmul.f32 %v5263_v54, %v536_v16  ;;  %v1198_v35 = vmul.f32 %v5229_v36, %v394_v19  ;;  %v538_v24 = vld [vmem:[%s5181_s6 + $0x8e0] sm:$0xff]  ;;  %v1466_v2 = vmul.f32 %v5259_v51, %v662_v17  ;;  %v664_v14 = vld [vmem:[%s5181_s6 + $0xcd0] sm:$0xff]  ;;  %v665_v23 = vld [vmem:[%s5181_s6 + $0xcd8] sm:$0xff] }
  0xc0   : > { %v1850_v9 = vadd.f32 %v1849_v15, %v1337_v34  ;;  %v1708_v34 = vadd.f32 %v1707_v20, %v1196_v31  ;;  %v1978_v22 = vadd.f32 %v1977_v29, %v1464_v28  ;;  %v1078_v30 = vmul.f32 %v5251_v47, %v274_v11  ;;  %v540_v19 = vld [vmem:[%s5181_s6 + $0x8f0] sm:$0xff]  ;;  %v278_v29 = vld [vmem:[%s5181_s6 + $0xc0] sm:$0xff] }
  0xc1   : > { %v1587_v21 = vadd.f32 %v1586_v42, %v1076_v4  ;;  %v1341_v38 = vmul.f32 %v5265_v55, %v537_v61  ;;  %v1199_v36 = vmul.f32 %v5231_v37, %v395_v5  ;;  %v1467_v15 = vmul.f32 %v5261_v53, %v663_v18  ;;  %v277_v4 = vld [vmem:[%s5181_s6 + $0xb8] sm:$0xff] }
  0xc2   : > { %v1851_v0 = vadd.f32 %v1850_v9, %v1338_v12  ;;  %v1709_v8 = vadd.f32 %v1708_v34, %v1197_v32  ;;  %v539_v12 = vld [vmem:[%s5181_s6 + $0x8e8] sm:$0xff]  ;;  %v1979_v7 = vadd.f32 %v1978_v22, %v1465_v43  ;;  %v1079_v63 = vmul.f32 %v5253_v48, %v275_v25  ;;  %v398_v32 = vld [vmem:[%s5181_s6 + $0x480] sm:$0xff]  ;;  %v541_v42 = vld [vmem:[%s5181_s6 + $0x8f8] sm:$0xff] }
  0xc3   : > { %v1588_v31 = vadd.f32 %v1587_v21, %v1077_v26  ;;  %v1342_v16 = vmul.f32 %v5267_v56, %v538_v24  ;;  %v1200_v37 = vmul.f32 %v5236_v39, %v396_v27  ;;  %v1080_v17 = vmul.f32 %v5255_v49, %v276_v33  ;;  %v666_v43 = vld [vmem:[%s5181_s6 + $0xce0] sm:$0xff]  ;;  %v399_v25 = vld [vmem:[%s5181_s6 + $0x488] sm:$0xff] }
  0xc4   : > { %v1852_v6 = vadd.f32 %v1851_v0, %v1339_v3  ;;  %v1710_v10 = vadd.f32 %v1709_v8, %v1198_v35  ;;  %v1468_v3 = vmul.f32 %v5263_v54, %v664_v14  ;;  %v1980_v9 = vadd.f32 %v1979_v7, %v1466_v2  ;;  %v667_v24 = vld [vmem:[%s5181_s6 + $0xce8] sm:$0xff]  ;;  %v400_v14 = vld [vmem:[%s5181_s6 + $0x490] sm:$0xff] }
  0xc5   : > { %v1589_v11 = vadd.f32 %v1588_v31, %v1078_v30  ;;  %v1343_v20 = vmul.f32 %v5269_v57, %v539_v12  ;;  %v1201_v39 = vmul.f32 %v5238_v40, %v397_v52  ;;  %v1469_v5 = vmul.f32 %v5265_v55, %v665_v23  ;;  %v279_v2 = vld [vmem:[%s5181_s6 + $0xc8] sm:$0xff]  ;;  %v542_v30 = vld [vmem:[%s5181_s6 + $0x900] sm:$0xff]  ;;  %v668_v8 = vld [vmem:[%s5181_s6 + $0xcf0] sm:$0xff] }
  0xc6   : > { %v1853_v28 = vadd.f32 %v1852_v6, %v1340_v13  ;;  %v1711_v26 = vadd.f32 %v1710_v10, %v1199_v36  ;;  %v1981_v13 = vadd.f32 %v1980_v9, %v1467_v15  ;;  %v1081_v0 = vmul.f32 %v5257_v50, %v277_v4  ;;  %v280_v12 = vld [vmem:[%s5181_s6 + $0xd0] sm:$0xff]  ;;  %v543_v7 = vld [vmem:[%s5181_s6 + $0x908] sm:$0xff]  ;;  %v281_v10 = vld [vmem:[%s5181_s6 + $0xd8] sm:$0xff] }
  0xc7   : > { %v1590_v18 = vadd.f32 %v1589_v11, %v1079_v63  ;;  %v1344_v35 = vmul.f32 %v5271_v58, %v540_v19  ;;  %v1202_v40 = vmul.f32 %v5240_v41, %v398_v32  ;;  %v1470_v21 = vmul.f32 %v5267_v56, %v666_v43 }
  0xc8   : > { %v1854_v61 = vadd.f32 %v1853_v28, %v1341_v38  ;;  %v1712_v22 = vadd.f32 %v1711_v26, %v1200_v37  ;;  %v1982_v27 = vadd.f32 %v1981_v13, %v1468_v3  ;;  %v1082_v38 = vmul.f32 %v5259_v51, %v278_v29  ;;  %v401_v28 = vld [vmem:[%s5181_s6 + $0x498] sm:$0xff]  ;;  %v544_v3 = vld [vmem:[%s5181_s6 + $0x910] sm:$0xff]  ;;  %v670_v29 = vld [vmem:[%s5181_s6 + $0xd00] sm:$0xff] }
  0xc9   : > { %v1591_v6 = vadd.f32 %v1590_v18, %v1080_v17  ;;  %v1345_v33 = vmul.f32 %v5273_v59, %v541_v42  ;;  %v1203_v41 = vmul.f32 %v5245_v44, %v399_v25  ;;  %v1471_v63 = vmul.f32 %v5269_v57, %v667_v24  ;;  %v669_v37 = vld [vmem:[%s5181_s6 + $0xcf8] sm:$0xff]  ;;  %v403_v25 = vld [vmem:[%s5181_s6 + $0x4a8] sm:$0xff] }
  0xca   : > { %v1855_v34 = vadd.f32 %v1854_v61, %v1342_v16  ;;  %v1713_v15 = vadd.f32 %v1712_v22, %v1201_v39  ;;  %v1983_v31 = vadd.f32 %v1982_v27, %v1469_v5  ;;  %v1083_v52 = vmul.f32 %v5261_v53, %v279_v2  ;;  %v282_v39 = vld [vmem:[%s5181_s6 + $0xe0] sm:$0xff]  ;;  %v545_v42 = vld [vmem:[%s5181_s6 + $0x918] sm:$0xff]  ;;  %v671_v2 = vld [vmem:[%s5181_s6 + $0xd08] sm:$0xff] }
  0xcb   : > { %v1592_v16 = vadd.f32 %v1591_v6, %v1081_v0  ;;  %v1346_v23 = vmul.f32 %v5275_v60, %v542_v30  ;;  %v1204_v44 = vmul.f32 %v5247_v45, %v400_v14  ;;  %v1472_v9 = vmul.f32 %v5271_v58, %v668_v8  ;;  %v546_v30 = vld [vmem:[%s5181_s6 + $0x920] sm:$0xff]  ;;  %v404_v14 = vld [vmem:[%s5181_s6 + $0x4b0] sm:$0xff] }
  0xcc   : > { %v1856_v36 = vadd.f32 %v1855_v34, %v1343_v20  ;;  %v1714_v19 = vadd.f32 %v1713_v15, %v1202_v40  ;;  %v1984_v17 = vadd.f32 %v1983_v31, %v1470_v21  ;;  %v1084_v11 = vmul.f32 %v5263_v54, %v280_v12  ;;  %v402_v20 = vld [vmem:[%s5181_s6 + $0x4a0] sm:$0xff]  ;;  %v283_v40 = vld [vmem:[%s5181_s6 + $0xe8] sm:$0xff]  ;;  %v672_v12 = vld [vmem:[%s5181_s6 + $0xd10] sm:$0xff] }
  0xcd   : > { %v1593_v32 = vadd.f32 %v1592_v16, %v1082_v38  ;;  %v1347_v61 = vmul.f32 %v5277_v62, %v543_v7  ;;  %v1205_v45 = vmul.f32 %v5249_v46, %v401_v28  ;;  %v1473_v5 = vmul.f32 %v5273_v59, %v669_v37  ;;  %v547_v7 = vld [vmem:[%s5181_s6 + $0x928] sm:$0xff]  ;;  %v405_v28 = vld [vmem:[%s5181_s6 + $0x4b8] sm:$0xff] }
  0xce   : > { %v1857_v4 = vadd.f32 %v1856_v36, %v1344_v35  ;;  %v1715_v26 = vadd.f32 %v1714_v19, %v1203_v41  ;;  %v1985_v13 = vadd.f32 %v1984_v17, %v1471_v63  ;;  %v1085_v0 = vmul.f32 %v5265_v55, %v281_v10  ;;  %v10717_v35 = vld [vmem:[#allocation11_spill] sm:$0xff]  ;;  %v284_v41 = vld [vmem:[%s5181_s6 + $0xf0] sm:$0xff]  ;;  %v673_v10 = vld [vmem:[%s5181_s6 + $0xd18] sm:$0xff] }
  0xcf   : > { %v1594_v18 = vadd.f32 %v1593_v32, %v1083_v52  ;;  %v1348_v34 = vmul.f32 %v10717_v35, %v544_v3  ;;  %v1206_v46 = vmul.f32 %v5251_v47, %v402_v20  ;;  %v1474_v21 = vmul.f32 %v5275_v60, %v670_v29  ;;  %v548_v3 = vld [vmem:[%s5181_s6 + $0x930] sm:$0xff]  ;;  %v406_v20 = vld [vmem:[%s5181_s6 + $0x4c0] sm:$0xff] }
  0xd0   : > { %v1858_v43 = vadd.f32 %v1857_v4, %v1345_v33  ;;  %v1716_v22 = vadd.f32 %v1715_v26, %v1204_v44  ;;  %v1986_v27 = vadd.f32 %v1985_v13, %v1472_v9  ;;  %v1086_v38 = vmul.f32 %v5267_v56, %v282_v39  ;;  %v10718_v33 = vld [vmem:[#allocation12_spill] sm:$0xff]  ;;  %v285_v44 = vld [vmem:[%s5181_s6 + $0xf8] sm:$0xff]  ;;  %v674_v39 = vld [vmem:[%s5181_s6 + $0xd20] sm:$0xff] }
  0xd1   : > { %v1595_v6 = vadd.f32 %v1594_v18, %v1084_v11  ;;  %v1349_v36 = vmul.f32 %v10718_v33, %v545_v42  ;;  %v1207_v47 = vmul.f32 %v5253_v48, %v403_v25  ;;  %v1475_v63 = vmul.f32 %v5277_v62, %v671_v2  ;;  %v549_v42 = vld [vmem:[%s5181_s6 + $0x938] sm:$0xff]  ;;  %v407_v25 = vld [vmem:[%s5181_s6 + $0x4c8] sm:$0xff] }
  0xd2   : > { %v1859_v24 = vadd.f32 %v1858_v43, %v1346_v23  ;;  %v1717_v15 = vadd.f32 %v1716_v22, %v1205_v45  ;;  %v1987_v31 = vadd.f32 %v1986_v27, %v1473_v5  ;;  %v1087_v52 = vmul.f32 %v5269_v57, %v283_v40  ;;  %v10719_v23 = vld [vmem:[#allocation13_spill] sm:$0xff]  ;;  %v286_v45 = vld [vmem:[%s5181_s6 + $0x100] sm:$0xff]  ;;  %v675_v40 = vld [vmem:[%s5181_s6 + $0xd28] sm:$0xff] }
  0xd3   : > { %v1596_v16 = vadd.f32 %v1595_v6, %v1085_v0  ;;  %v1350_v4 = vmul.f32 %v10719_v23, %v546_v30  ;;  %v1208_v48 = vmul.f32 %v5255_v49, %v404_v14  ;;  %v1476_v9 = vmul.f32 %v10717_v35, %v672_v12  ;;  %v550_v30 = vld [vmem:[%s5181_s6 + $0x940] sm:$0xff]  ;;  %v408_v14 = vld [vmem:[%s5181_s6 + $0x4d0] sm:$0xff] }
  0xd4   : > { %v1860_v8 = vadd.f32 %v1859_v24, %v1347_v61  ;;  %v1718_v19 = vadd.f32 %v1717_v15, %v1206_v46  ;;  %v1988_v17 = vadd.f32 %v1987_v31, %v1474_v21  ;;  %v1088_v11 = vmul.f32 %v5271_v58, %v284_v41  ;;  %v10720_v61 = vld [vmem:[#allocation14_spill] sm:$0xff]  ;;  %v287_v46 = vld [vmem:[%s5181_s6 + $0x108] sm:$0xff]  ;;  %v676_v41 = vld [vmem:[%s5181_s6 + $0xd30] sm:$0xff] }
  0xd5   : > { %v1597_v32 = vadd.f32 %v1596_v16, %v1086_v38  ;;  %v1351_v43 = vmul.f32 %v10720_v61, %v547_v7  ;;  %v1209_v49 = vmul.f32 %v5257_v50, %v405_v28  ;;  %v1477_v5 = vmul.f32 %v10718_v33, %v673_v10  ;;  %v551_v7 = vld [vmem:[%s5181_s6 + $0x948] sm:$0xff]  ;;  %v409_v28 = vld [vmem:[%s5181_s6 + $0x4d8] sm:$0xff] }
  0xd6   : > { %v1861_v37 = vadd.f32 %v1860_v8, %v1348_v34  ;;  %v1719_v26 = vadd.f32 %v1718_v19, %v1207_v47  ;;  %v1989_v13 = vadd.f32 %v1988_v17, %v1475_v63  ;;  %v1089_v0 = vmul.f32 %v5273_v59, %v285_v44  ;;  %v10721_v34 = vld [vmem:[#allocation15_spill] sm:$0xff]  ;;  %v288_v47 = vld [vmem:[%s5181_s6 + $0x110] sm:$0xff]  ;;  %v677_v44 = vld [vmem:[%s5181_s6 + $0xd38] sm:$0xff] }
  0xd7   : > { %v1598_v18 = vadd.f32 %v1597_v32, %v1087_v52  ;;  %v1352_v24 = vmul.f32 %v10721_v34, %v548_v3  ;;  %v1210_v50 = vmul.f32 %v5259_v51, %v406_v20  ;;  %v1478_v21 = vmul.f32 %v10719_v23, %v674_v39  ;;  %v552_v3 = vld [vmem:[%s5181_s6 + $0x950] sm:$0xff]  ;;  %v410_v20 = vld [vmem:[%s5181_s6 + $0x4e0] sm:$0xff] }
  0xd8   : > { %v1862_v29 = vadd.f32 %v1861_v37, %v1349_v36  ;;  %v1720_v22 = vadd.f32 %v1719_v26, %v1208_v48  ;;  %v1990_v27 = vadd.f32 %v1989_v13, %v1476_v9  ;;  %v1090_v38 = vmul.f32 %v5275_v60, %v286_v45  ;;  %v10722_v36 = vld [vmem:[#allocation16_spill] sm:$0xff]  ;;  %v289_v48 = vld [vmem:[%s5181_s6 + $0x118] sm:$0xff]  ;;  %v678_v45 = vld [vmem:[%s5181_s6 + $0xd40] sm:$0xff] }
  0xd9   : > { %v1599_v6 = vadd.f32 %v1598_v18, %v1088_v11  ;;  %v1353_v8 = vmul.f32 %v10722_v36, %v549_v42  ;;  %v1211_v51 = vmul.f32 %v5261_v53, %v407_v25  ;;  %v1479_v63 = vmul.f32 %v10720_v61, %v675_v40  ;;  %v553_v42 = vld [vmem:[%s5181_s6 + $0x958] sm:$0xff]  ;;  %v411_v25 = vld [vmem:[%s5181_s6 + $0x4e8] sm:$0xff] }
  0xda   : > { %v1863_v2 = vadd.f32 %v1862_v29, %v1350_v4  ;;  %v1721_v15 = vadd.f32 %v1720_v22, %v1209_v49  ;;  %v1991_v31 = vadd.f32 %v1990_v27, %v1477_v5  ;;  %v1091_v52 = vmul.f32 %v5277_v62, %v287_v46  ;;  %v10723_v4 = vld [vmem:[#allocation17_spill] sm:$0xff]  ;;  %v290_v49 = vld [vmem:[%s5181_s6 + $0x120] sm:$0xff]  ;;  %v679_v46 = vld [vmem:[%s5181_s6 + $0xd48] sm:$0xff] }
  0xdb   : > { %v1600_v16 = vadd.f32 %v1599_v6, %v1089_v0  ;;  %v1354_v37 = vmul.f32 %v10723_v4, %v550_v30  ;;  %v1212_v53 = vmul.f32 %v5263_v54, %v408_v14  ;;  %v1480_v9 = vmul.f32 %v10721_v34, %v676_v41  ;;  %v554_v30 = vld [vmem:[%s5181_s6 + $0x960] sm:$0xff]  ;;  %v412_v14 = vld [vmem:[%s5181_s6 + $0x4f0] sm:$0xff] }
  0xdc   : > { %v1864_v12 = vadd.f32 %v1863_v2, %v1351_v43  ;;  %v1722_v19 = vadd.f32 %v1721_v15, %v1210_v50  ;;  %v1992_v17 = vadd.f32 %v1991_v31, %v1478_v21  ;;  %v1092_v11 = vmul.f32 %v10717_v35, %v288_v47  ;;  %v10724_v43 = vld [vmem:[#allocation18_spill] sm:$0xff]  ;;  %v291_v50 = vld [vmem:[%s5181_s6 + $0x128] sm:$0xff]  ;;  %v680_v47 = vld [vmem:[%s5181_s6 + $0xd50] sm:$0xff] }
  0xdd   : > { %v1601_v32 = vadd.f32 %v1600_v16, %v1090_v38  ;;  %v1355_v29 = vmul.f32 %v10724_v43, %v551_v7  ;;  %v1213_v54 = vmul.f32 %v5265_v55, %v409_v28  ;;  %v1481_v5 = vmul.f32 %v10722_v36, %v677_v44  ;;  %v555_v7 = vld [vmem:[%s5181_s6 + $0x968] sm:$0xff]  ;;  %v413_v28 = vld [vmem:[%s5181_s6 + $0x4f8] sm:$0xff] }
  0xde   : > { %v1865_v10 = vadd.f32 %v1864_v12, %v1352_v24  ;;  %v1723_v26 = vadd.f32 %v1722_v19, %v1211_v51  ;;  %v1993_v13 = vadd.f32 %v1992_v17, %v1479_v63  ;;  %v1093_v0 = vmul.f32 %v10718_v33, %v289_v48  ;;  %v10725_v24 = vld [vmem:[#allocation19_spill] sm:$0xff]  ;;  %v292_v51 = vld [vmem:[%s5181_s6 + $0x130] sm:$0xff]  ;;  %v681_v48 = vld [vmem:[%s5181_s6 + $0xd58] sm:$0xff] }
  0xdf   : > { %v1602_v18 = vadd.f32 %v1601_v32, %v1091_v52  ;;  %v1356_v2 = vmul.f32 %v10725_v24, %v552_v3  ;;  %v1214_v55 = vmul.f32 %v5267_v56, %v410_v20  ;;  %v1482_v21 = vmul.f32 %v10723_v4, %v678_v45  ;;  %v556_v3 = vld [vmem:[%s5181_s6 + $0x970] sm:$0xff]  ;;  %v414_v20 = vld [vmem:[%s5181_s6 + $0x500] sm:$0xff] }
  0xe0   : > { %v1866_v39 = vadd.f32 %v1865_v10, %v1353_v8  ;;  %v1724_v22 = vadd.f32 %v1723_v26, %v1212_v53  ;;  %v1994_v27 = vadd.f32 %v1993_v13, %v1480_v9  ;;  %v1094_v38 = vmul.f32 %v10719_v23, %v290_v49  ;;  %v10726_v8 = vld [vmem:[#allocation20_spill] sm:$0xff]  ;;  %v293_v53 = vld [vmem:[%s5181_s6 + $0x138] sm:$0xff]  ;;  %v682_v49 = vld [vmem:[%s5181_s6 + $0xd60] sm:$0xff] }
  0xe1   : > { %v1603_v6 = vadd.f32 %v1602_v18, %v1092_v11  ;;  %v1357_v12 = vmul.f32 %v10726_v8, %v553_v42  ;;  %v1215_v56 = vmul.f32 %v5269_v57, %v411_v25  ;;  %v1483_v63 = vmul.f32 %v10724_v43, %v679_v46  ;;  %v557_v42 = vld [vmem:[%s5181_s6 + $0x978] sm:$0xff]  ;;  %v415_v25 = vld [vmem:[%s5181_s6 + $0x508] sm:$0xff] }
  0xe2   : > { %v1867_v40 = vadd.f32 %v1866_v39, %v1354_v37  ;;  %v1725_v15 = vadd.f32 %v1724_v22, %v1213_v54  ;;  %v1995_v31 = vadd.f32 %v1994_v27, %v1481_v5  ;;  %v1095_v52 = vmul.f32 %v10720_v61, %v291_v50  ;;  %v10727_v37 = vld [vmem:[#allocation21_spill] sm:$0xff]  ;;  %v294_v54 = vld [vmem:[%s5181_s6 + $0x140] sm:$0xff]  ;;  %v683_v50 = vld [vmem:[%s5181_s6 + $0xd68] sm:$0xff] }
  0xe3   : > { %v1604_v16 = vadd.f32 %v1603_v6, %v1093_v0  ;;  %v1358_v10 = vmul.f32 %v10727_v37, %v554_v30  ;;  %v1216_v57 = vmul.f32 %v5271_v58, %v412_v14  ;;  %v1484_v9 = vmul.f32 %v10725_v24, %v680_v47  ;;  %v558_v30 = vld [vmem:[%s5181_s6 + $0x980] sm:$0xff]  ;;  %v416_v14 = vld [vmem:[%s5181_s6 + $0x510] sm:$0xff] }
  0xe4   : > { %v1868_v41 = vadd.f32 %v1867_v40, %v1355_v29  ;;  %v1726_v19 = vadd.f32 %v1725_v15, %v1214_v55  ;;  %v1996_v17 = vadd.f32 %v1995_v31, %v1482_v21  ;;  %v1096_v11 = vmul.f32 %v10721_v34, %v292_v51  ;;  %v10728_v29 = vld [vmem:[#allocation22_spill] sm:$0xff]  ;;  %v295_v55 = vld [vmem:[%s5181_s6 + $0x148] sm:$0xff]  ;;  %v684_v51 = vld [vmem:[%s5181_s6 + $0xd70] sm:$0xff] }
  0xe5   : > { %v1605_v32 = vadd.f32 %v1604_v16, %v1094_v38  ;;  %v1359_v39 = vmul.f32 %v10728_v29, %v555_v7  ;;  %v1217_v58 = vmul.f32 %v5273_v59, %v413_v28  ;;  %v1485_v5 = vmul.f32 %v10726_v8, %v681_v48  ;;  %v559_v7 = vld [vmem:[%s5181_s6 + $0x988] sm:$0xff]  ;;  %v417_v28 = vld [vmem:[%s5181_s6 + $0x518] sm:$0xff] }
  0xe6   : > { %v1869_v44 = vadd.f32 %v1868_v41, %v1356_v2  ;;  %v1727_v26 = vadd.f32 %v1726_v19, %v1215_v56  ;;  %v1997_v13 = vadd.f32 %v1996_v17, %v1483_v63  ;;  %v1097_v0 = vmul.f32 %v10722_v36, %v293_v53  ;;  %v10729_v2 = vld [vmem:[#allocation23_spill] sm:$0xff]  ;;  %v296_v56 = vld [vmem:[%s5181_s6 + $0x150] sm:$0xff]  ;;  %v685_v53 = vld [vmem:[%s5181_s6 + $0xd78] sm:$0xff] }
  0xe7   : > { %v1606_v18 = vadd.f32 %v1605_v32, %v1095_v52  ;;  %v1360_v40 = vmul.f32 %v10729_v2, %v556_v3  ;;  %v1218_v59 = vmul.f32 %v5275_v60, %v414_v20  ;;  %v1486_v21 = vmul.f32 %v10727_v37, %v682_v49  ;;  %v560_v3 = vld [vmem:[%s5181_s6 + $0x990] sm:$0xff]  ;;  %v418_v20 = vld [vmem:[%s5181_s6 + $0x520] sm:$0xff] }
  0xe8   : > { %v1870_v45 = vadd.f32 %v1869_v44, %v1357_v12  ;;  %v1728_v22 = vadd.f32 %v1727_v26, %v1216_v57  ;;  %v1998_v27 = vadd.f32 %v1997_v13, %v1484_v9  ;;  %v1098_v38 = vmul.f32 %v10723_v4, %v294_v54  ;;  %v10730_v12 = vld [vmem:[#allocation24_spill] sm:$0xff]  ;;  %v297_v57 = vld [vmem:[%s5181_s6 + $0x158] sm:$0xff]  ;;  %v686_v54 = vld [vmem:[%s5181_s6 + $0xd80] sm:$0xff] }
  0xe9   : > { %v1607_v6 = vadd.f32 %v1606_v18, %v1096_v11  ;;  %v1361_v41 = vmul.f32 %v10730_v12, %v557_v42  ;;  %v1219_v60 = vmul.f32 %v5277_v62, %v415_v25  ;;  %v1487_v63 = vmul.f32 %v10728_v29, %v683_v50  ;;  %v561_v42 = vld [vmem:[%s5181_s6 + $0x998] sm:$0xff]  ;;  %v419_v25 = vld [vmem:[%s5181_s6 + $0x528] sm:$0xff] }
  0xea   : > { %v1871_v46 = vadd.f32 %v1870_v45, %v1358_v10  ;;  %v1729_v15 = vadd.f32 %v1728_v22, %v1217_v58  ;;  %v1999_v31 = vadd.f32 %v1998_v27, %v1485_v5  ;;  %v1099_v52 = vmul.f32 %v10724_v43, %v295_v55  ;;  %v10731_v10 = vld [vmem:[#allocation25_spill] sm:$0xff]  ;;  %v298_v58 = vld [vmem:[%s5181_s6 + $0x160] sm:$0xff]  ;;  %v687_v55 = vld [vmem:[%s5181_s6 + $0xd88] sm:$0xff] }
  0xeb   : > { %v1608_v16 = vadd.f32 %v1607_v6, %v1097_v0  ;;  %v1362_v44 = vmul.f32 %v10731_v10, %v558_v30  ;;  %v1220_v62 = vmul.f32 %v10717_v35, %v416_v14  ;;  %v1488_v9 = vmul.f32 %v10729_v2, %v684_v51  ;;  %v562_v30 = vld [vmem:[%s5181_s6 + $0x9a0] sm:$0xff]  ;;  %v420_v14 = vld [vmem:[%s5181_s6 + $0x530] sm:$0xff] }
  0xec   : > { %v1872_v47 = vadd.f32 %v1871_v46, %v1359_v39  ;;  %v1730_v19 = vadd.f32 %v1729_v15, %v1218_v59  ;;  %v2000_v17 = vadd.f32 %v1999_v31, %v1486_v21  ;;  %v1100_v11 = vmul.f32 %v10725_v24, %v296_v56  ;;  %v10732_v39 = vld [vmem:[#allocation26_spill] sm:$0xff]  ;;  %v299_v59 = vld [vmem:[%s5181_s6 + $0x168] sm:$0xff]  ;;  %v688_v56 = vld [vmem:[%s5181_s6 + $0xd90] sm:$0xff] }
  0xed   : > { %v1609_v32 = vadd.f32 %v1608_v16, %v1098_v38  ;;  %v1363_v45 = vmul.f32 %v10732_v39, %v559_v7  ;;  %v1221_v35 = vmul.f32 %v10718_v33, %v417_v28  ;;  %v1489_v5 = vmul.f32 %v10730_v12, %v685_v53  ;;  %v563_v7 = vld [vmem:[%s5181_s6 + $0x9a8] sm:$0xff]  ;;  %v421_v28 = vld [vmem:[%s5181_s6 + $0x538] sm:$0xff] }
  0xee   : > { %v1873_v48 = vadd.f32 %v1872_v47, %v1360_v40  ;;  %v1731_v26 = vadd.f32 %v1730_v19, %v1219_v60  ;;  %v2001_v13 = vadd.f32 %v2000_v17, %v1487_v63  ;;  %v1101_v0 = vmul.f32 %v10726_v8, %v297_v57  ;;  %v10733_v40 = vld [vmem:[#allocation27_spill] sm:$0xff]  ;;  %v300_v60 = vld [vmem:[%s5181_s6 + $0x170] sm:$0xff]  ;;  %v689_v57 = vld [vmem:[%s5181_s6 + $0xd98] sm:$0xff] }
  0xef   : > { %v1610_v18 = vadd.f32 %v1609_v32, %v1099_v52  ;;  %v1364_v46 = vmul.f32 %v10733_v40, %v560_v3  ;;  %v1222_v33 = vmul.f32 %v10719_v23, %v418_v20  ;;  %v1490_v21 = vmul.f32 %v10731_v10, %v686_v54  ;;  %v564_v3 = vld [vmem:[%s5181_s6 + $0x9b0] sm:$0xff]  ;;  %v422_v20 = vld [vmem:[%s5181_s6 + $0x540] sm:$0xff] }
  0xf0   : > { %v1874_v49 = vadd.f32 %v1873_v48, %v1361_v41  ;;  %v1732_v22 = vadd.f32 %v1731_v26, %v1220_v62  ;;  %v2002_v27 = vadd.f32 %v2001_v13, %v1488_v9  ;;  %v1102_v38 = vmul.f32 %v10727_v37, %v298_v58  ;;  %v10734_v41 = vld [vmem:[#allocation28_spill] sm:$0xff]  ;;  %v301_v62 = vld [vmem:[%s5181_s6 + $0x178] sm:$0xff]  ;;  %v690_v58 = vld [vmem:[%s5181_s6 + $0xda0] sm:$0xff] }
  0xf1   : > { %v1611_v6 = vadd.f32 %v1610_v18, %v1100_v11  ;;  %v1365_v47 = vmul.f32 %v10734_v41, %v561_v42  ;;  %v1223_v23 = vmul.f32 %v10720_v61, %v419_v25  ;;  %v1491_v63 = vmul.f32 %v10732_v39, %v687_v55  ;;  %v565_v42 = vld [vmem:[%s5181_s6 + $0x9b8] sm:$0xff]  ;;  %v423_v25 = vld [vmem:[%s5181_s6 + $0x548] sm:$0xff] }
  0xf2   : > { %v1875_v50 = vadd.f32 %v1874_v49, %v1362_v44  ;;  %v1733_v15 = vadd.f32 %v1732_v22, %v1221_v35  ;;  %v2003_v31 = vadd.f32 %v2002_v27, %v1489_v5  ;;  %v1103_v52 = vmul.f32 %v10728_v29, %v299_v59  ;;  %v10735_v44 = vld [vmem:[#allocation29_spill] sm:$0xff]  ;;  %v302_v35 = vld [vmem:[%s5181_s6 + $0x180] sm:$0xff]  ;;  %v691_v59 = vld [vmem:[%s5181_s6 + $0xda8] sm:$0xff] }
  0xf3   : > { %v1612_v16 = vadd.f32 %v1611_v6, %v1101_v0  ;;  %v1366_v48 = vmul.f32 %v10735_v44, %v562_v30  ;;  %v1224_v61 = vmul.f32 %v10721_v34, %v420_v14  ;;  %v1492_v9 = vmul.f32 %v10733_v40, %v688_v56  ;;  %v566_v30 = vld [vmem:[%s5181_s6 + $0x9c0] sm:$0xff]  ;;  %v424_v14 = vld [vmem:[%s5181_s6 + $0x550] sm:$0xff] }
  0xf4   : > { %v1876_v51 = vadd.f32 %v1875_v50, %v1363_v45  ;;  %v1734_v19 = vadd.f32 %v1733_v15, %v1222_v33  ;;  %v2004_v17 = vadd.f32 %v2003_v31, %v1490_v21  ;;  %v1104_v11 = vmul.f32 %v10729_v2, %v300_v60  ;;  %v10736_v45 = vld [vmem:[#allocation30_spill] sm:$0xff]  ;;  %v303_v33 = vld [vmem:[%s5181_s6 + $0x188] sm:$0xff]  ;;  %v692_v60 = vld [vmem:[%s5181_s6 + $0xdb0] sm:$0xff] }
  0xf5   : > { %v1613_v32 = vadd.f32 %v1612_v16, %v1102_v38  ;;  %v1367_v49 = vmul.f32 %v10736_v45, %v563_v7  ;;  %v1225_v34 = vmul.f32 %v10722_v36, %v421_v28  ;;  %v1493_v5 = vmul.f32 %v10734_v41, %v689_v57  ;;  %v567_v7 = vld [vmem:[%s5181_s6 + $0x9c8] sm:$0xff]  ;;  %v425_v28 = vld [vmem:[%s5181_s6 + $0x558] sm:$0xff] }
  0xf6   : > { %v1877_v53 = vadd.f32 %v1876_v51, %v1364_v46  ;;  %v1735_v26 = vadd.f32 %v1734_v19, %v1223_v23  ;;  %v2005_v13 = vadd.f32 %v2004_v17, %v1491_v63  ;;  %v1105_v0 = vmul.f32 %v10730_v12, %v301_v62  ;;  %v10737_v46 = vld [vmem:[#allocation31_spill] sm:$0xff]  ;;  %v304_v23 = vld [vmem:[%s5181_s6 + $0x190] sm:$0xff]  ;;  %v693_v62 = vld [vmem:[%s5181_s6 + $0xdb8] sm:$0xff] }
  0xf7   : > { %v1614_v18 = vadd.f32 %v1613_v32, %v1103_v52  ;;  %v1368_v50 = vmul.f32 %v10737_v46, %v564_v3  ;;  %v1226_v36 = vmul.f32 %v10723_v4, %v422_v20  ;;  %v1494_v21 = vmul.f32 %v10735_v44, %v690_v58  ;;  %v568_v3 = vld [vmem:[%s5181_s6 + $0x9d0] sm:$0xff]  ;;  %v426_v20 = vld [vmem:[%s5181_s6 + $0x560] sm:$0xff] }
  0xf8   : > { %v1878_v54 = vadd.f32 %v1877_v53, %v1365_v47  ;;  %v1736_v22 = vadd.f32 %v1735_v26, %v1224_v61  ;;  %v2006_v27 = vadd.f32 %v2005_v13, %v1492_v9  ;;  %v1106_v38 = vmul.f32 %v10731_v10, %v302_v35  ;;  %v10738_v47 = vld [vmem:[#allocation32_spill] sm:$0xff]  ;;  %v305_v61 = vld [vmem:[%s5181_s6 + $0x198] sm:$0xff]  ;;  %v694_v35 = vld [vmem:[%s5181_s6 + $0xdc0] sm:$0xff] }
  0xf9   : > { %v1615_v6 = vadd.f32 %v1614_v18, %v1104_v11  ;;  %v1369_v51 = vmul.f32 %v10738_v47, %v565_v42  ;;  %v1227_v4 = vmul.f32 %v10724_v43, %v423_v25  ;;  %v1495_v63 = vmul.f32 %v10736_v45, %v691_v59  ;;  %v569_v42 = vld [vmem:[%s5181_s6 + $0x9d8] sm:$0xff]  ;;  %v427_v25 = vld [vmem:[%s5181_s6 + $0x568] sm:$0xff] }
  0xfa   : > { %v1879_v55 = vadd.f32 %v1878_v54, %v1366_v48  ;;  %v1737_v15 = vadd.f32 %v1736_v22, %v1225_v34  ;;  %v2007_v31 = vadd.f32 %v2006_v27, %v1493_v5  ;;  %v1107_v52 = vmul.f32 %v10732_v39, %v303_v33  ;;  %v10739_v48 = vld [vmem:[#allocation33_spill] sm:$0xff]  ;;  %v306_v34 = vld [vmem:[%s5181_s6 + $0x1a0] sm:$0xff]  ;;  %v695_v33 = vld [vmem:[%s5181_s6 + $0xdc8] sm:$0xff] }
  0xfb   : > { %v1616_v16 = vadd.f32 %v1615_v6, %v1105_v0  ;;  %v1370_v53 = vmul.f32 %v10739_v48, %v566_v30  ;;  %v1228_v43 = vmul.f32 %v10725_v24, %v424_v14  ;;  %v1496_v9 = vmul.f32 %v10737_v46, %v692_v60  ;;  %v570_v30 = vld [vmem:[%s5181_s6 + $0x9e0] sm:$0xff]  ;;  %v428_v14 = vld [vmem:[%s5181_s6 + $0x570] sm:$0xff] }
  0xfc   : > { %v1880_v56 = vadd.f32 %v1879_v55, %v1367_v49  ;;  %v1738_v19 = vadd.f32 %v1737_v15, %v1226_v36  ;;  %v2008_v17 = vadd.f32 %v2007_v31, %v1494_v21  ;;  %v1108_v11 = vmul.f32 %v10733_v40, %v304_v23  ;;  %v10740_v49 = vld [vmem:[#allocation34_spill] sm:$0xff]  ;;  %v307_v36 = vld [vmem:[%s5181_s6 + $0x1a8] sm:$0xff]  ;;  %v696_v23 = vld [vmem:[%s5181_s6 + $0xdd0] sm:$0xff] }
  0xfd   : > { %v1617_v32 = vadd.f32 %v1616_v16, %v1106_v38  ;;  %v1371_v54 = vmul.f32 %v10740_v49, %v567_v7  ;;  %v1229_v24 = vmul.f32 %v10726_v8, %v425_v28  ;;  %v1497_v5 = vmul.f32 %v10738_v47, %v693_v62  ;;  %v571_v7 = vld [vmem:[%s5181_s6 + $0x9e8] sm:$0xff]  ;;  %v429_v28 = vld [vmem:[%s5181_s6 + $0x578] sm:$0xff] }
  0xfe   : > { %v1881_v57 = vadd.f32 %v1880_v56, %v1368_v50  ;;  %v1739_v26 = vadd.f32 %v1738_v19, %v1227_v4  ;;  %v2009_v13 = vadd.f32 %v2008_v17, %v1495_v63  ;;  %v1109_v0 = vmul.f32 %v10734_v41, %v305_v61  ;;  %v10741_v50 = vld [vmem:[#allocation35_spill] sm:$0xff]  ;;  %v308_v4 = vld [vmem:[%s5181_s6 + $0x1b0] sm:$0xff]  ;;  %v697_v61 = vld [vmem:[%s5181_s6 + $0xdd8] sm:$0xff] }
  0xff   : > { %v1618_v18 = vadd.f32 %v1617_v32, %v1107_v52  ;;  %v1372_v55 = vmul.f32 %v10741_v50, %v568_v3  ;;  %v1230_v8 = vmul.f32 %v10727_v37, %v426_v20  ;;  %v1498_v21 = vmul.f32 %v10739_v48, %v694_v35  ;;  %v572_v3 = vld [vmem:[%s5181_s6 + $0x9f0] sm:$0xff]  ;;  %v430_v20 = vld [vmem:[%s5181_s6 + $0x580] sm:$0xff] }
 0x100   : > { %v1882_v58 = vadd.f32 %v1881_v57, %v1369_v51  ;;  %v1740_v22 = vadd.f32 %v1739_v26, %v1228_v43  ;;  %v2010_v27 = vadd.f32 %v2009_v13, %v1496_v9  ;;  %v1110_v38 = vmul.f32 %v10735_v44, %v306_v34  ;;  %v10742_v51 = vld [vmem:[#allocation36_spill] sm:$0xff]  ;;  %v309_v43 = vld [vmem:[%s5181_s6 + $0x1b8] sm:$0xff]  ;;  %v698_v34 = vld [vmem:[%s5181_s6 + $0xde0] sm:$0xff] }
 0x101   : > { %v1619_v6 = vadd.f32 %v1618_v18, %v1108_v11  ;;  %v1373_v56 = vmul.f32 %v10742_v51, %v569_v42  ;;  %v1231_v37 = vmul.f32 %v10728_v29, %v427_v25  ;;  %v1499_v63 = vmul.f32 %v10740_v49, %v695_v33  ;;  %v573_v42 = vld [vmem:[%s5181_s6 + $0x9f8] sm:$0xff]  ;;  %v431_v25 = vld [vmem:[%s5181_s6 + $0x588] sm:$0xff] }
 0x102   : > { %v1883_v59 = vadd.f32 %v1882_v58, %v1370_v53  ;;  %v1741_v15 = vadd.f32 %v1740_v22, %v1229_v24  ;;  %v2011_v31 = vadd.f32 %v2010_v27, %v1497_v5  ;;  %v1111_v52 = vmul.f32 %v10736_v45, %v307_v36  ;;  %v10743_v53 = vld [vmem:[#allocation37_spill] sm:$0xff]  ;;  %v310_v24 = vld [vmem:[%s5181_s6 + $0x1c0] sm:$0xff]  ;;  %v699_v36 = vld [vmem:[%s5181_s6 + $0xde8] sm:$0xff] }
 0x103   : > { %v1620_v16 = vadd.f32 %v1619_v6, %v1109_v0  ;;  %v1374_v57 = vmul.f32 %v10743_v53, %v570_v30  ;;  %v1232_v29 = vmul.f32 %v10729_v2, %v428_v14  ;;  %v1500_v9 = vmul.f32 %v10741_v50, %v696_v23  ;;  %v574_v30 = vld [vmem:[%s5181_s6 + $0xa00] sm:$0xff]  ;;  %v432_v14 = vld [vmem:[%s5181_s6 + $0x590] sm:$0xff] }
 0x104   : > { %v1884_v60 = vadd.f32 %v1883_v59, %v1371_v54  ;;  %v1742_v19 = vadd.f32 %v1741_v15, %v1230_v8  ;;  %v2012_v17 = vadd.f32 %v2011_v31, %v1498_v21  ;;  %v1112_v11 = vmul.f32 %v10737_v46, %v308_v4  ;;  %v10744_v54 = vld [vmem:[#allocation38_spill] sm:$0xff]  ;;  %v311_v8 = vld [vmem:[%s5181_s6 + $0x1c8] sm:$0xff]  ;;  %v700_v4 = vld [vmem:[%s5181_s6 + $0xdf0] sm:$0xff] }
 0x105   : > { %v1621_v32 = vadd.f32 %v1620_v16, %v1110_v38  ;;  %v1375_v58 = vmul.f32 %v10744_v54, %v571_v7  ;;  %v1233_v2 = vmul.f32 %v10730_v12, %v429_v28  ;;  %v1501_v5 = vmul.f32 %v10742_v51, %v697_v61  ;;  %v575_v7 = vld [vmem:[%s5181_s6 + $0xa08] sm:$0xff]  ;;  %v433_v28 = vld [vmem:[%s5181_s6 + $0x598] sm:$0xff] }
 0x106   : > { %v1885_v62 = vadd.f32 %v1884_v60, %v1372_v55  ;;  %v1743_v26 = vadd.f32 %v1742_v19, %v1231_v37  ;;  %v2013_v13 = vadd.f32 %v2012_v17, %v1499_v63  ;;  %v1113_v0 = vmul.f32 %v10738_v47, %v309_v43  ;;  %v10745_v55 = vld [vmem:[#allocation39_spill] sm:$0xff]  ;;  %v312_v37 = vld [vmem:[%s5181_s6 + $0x1d0] sm:$0xff]  ;;  %v701_v43 = vld [vmem:[%s5181_s6 + $0xdf8] sm:$0xff] }
 0x107   : > { %v1622_v18 = vadd.f32 %v1621_v32, %v1111_v52  ;;  %v1376_v59 = vmul.f32 %v10745_v55, %v572_v3  ;;  %v1234_v12 = vmul.f32 %v10731_v10, %v430_v20  ;;  %v1502_v21 = vmul.f32 %v10743_v53, %v698_v34  ;;  %v576_v3 = vld [vmem:[%s5181_s6 + $0xa10] sm:$0xff]  ;;  %v434_v20 = vld [vmem:[%s5181_s6 + $0x5a0] sm:$0xff] }
 0x108   : > { %v1886_v35 = vadd.f32 %v1885_v62, %v1373_v56  ;;  %v1744_v22 = vadd.f32 %v1743_v26, %v1232_v29  ;;  %v2014_v27 = vadd.f32 %v2013_v13, %v1500_v9  ;;  %v1114_v38 = vmul.f32 %v10739_v48, %v310_v24  ;;  %v10746_v56 = vld [vmem:[#allocation40_spill] sm:$0xff]  ;;  %v313_v29 = vld [vmem:[%s5181_s6 + $0x1d8] sm:$0xff]  ;;  %v702_v24 = vld [vmem:[%s5181_s6 + $0xe00] sm:$0xff] }
 0x109   : > { %v1623_v6 = vadd.f32 %v1622_v18, %v1112_v11  ;;  %v1377_v60 = vmul.f32 %v10746_v56, %v573_v42  ;;  %v1235_v10 = vmul.f32 %v10732_v39, %v431_v25  ;;  %v1503_v63 = vmul.f32 %v10744_v54, %v699_v36  ;;  %v577_v42 = vld [vmem:[%s5181_s6 + $0xa18] sm:$0xff]  ;;  %v435_v25 = vld [vmem:[%s5181_s6 + $0x5a8] sm:$0xff] }
 0x10a   : > { %v1887_v33 = vadd.f32 %v1886_v35, %v1374_v57  ;;  %v1745_v15 = vadd.f32 %v1744_v22, %v1233_v2  ;;  %v2015_v31 = vadd.f32 %v2014_v27, %v1501_v5  ;;  %v1115_v52 = vmul.f32 %v10740_v49, %v311_v8  ;;  %v10747_v57 = vld [vmem:[#allocation41_spill] sm:$0xff]  ;;  %v314_v2 = vld [vmem:[%s5181_s6 + $0x1e0] sm:$0xff]  ;;  %v703_v8 = vld [vmem:[%s5181_s6 + $0xe08] sm:$0xff] }
 0x10b   : > { %v1624_v16 = vadd.f32 %v1623_v6, %v1113_v0  ;;  %v1378_v62 = vmul.f32 %v10747_v57, %v574_v30  ;;  %v1236_v39 = vmul.f32 %v10733_v40, %v432_v14  ;;  %v1504_v9 = vmul.f32 %v10745_v55, %v700_v4  ;;  %v578_v30 = vld [vmem:[%s5181_s6 + $0xa20] sm:$0xff]  ;;  %v436_v14 = vld [vmem:[%s5181_s6 + $0x5b0] sm:$0xff] }
 0x10c   : > { %v1888_v23 = vadd.f32 %v1887_v33, %v1375_v58  ;;  %v1746_v19 = vadd.f32 %v1745_v15, %v1234_v12  ;;  %v2016_v17 = vadd.f32 %v2015_v31, %v1502_v21  ;;  %v1116_v11 = vmul.f32 %v10741_v50, %v312_v37  ;;  %v10748_v58 = vld [vmem:[#allocation42_spill] sm:$0xff]  ;;  %v315_v12 = vld [vmem:[%s5181_s6 + $0x1e8] sm:$0xff]  ;;  %v704_v37 = vld [vmem:[%s5181_s6 + $0xe10] sm:$0xff] }
 0x10d   : > { %v1625_v32 = vadd.f32 %v1624_v16, %v1114_v38  ;;  %v1379_v35 = vmul.f32 %v10748_v58, %v575_v7  ;;  %v1237_v40 = vmul.f32 %v10734_v41, %v433_v28  ;;  %v1505_v5 = vmul.f32 %v10746_v56, %v701_v43  ;;  %v579_v7 = vld [vmem:[%s5181_s6 + $0xa28] sm:$0xff]  ;;  %v437_v28 = vld [vmem:[%s5181_s6 + $0x5b8] sm:$0xff] }
 0x10e   : > { %v1889_v61 = vadd.f32 %v1888_v23, %v1376_v59  ;;  %v1747_v26 = vadd.f32 %v1746_v19, %v1235_v10  ;;  %v2017_v13 = vadd.f32 %v2016_v17, %v1503_v63  ;;  %v1117_v0 = vmul.f32 %v10742_v51, %v313_v29  ;;  %v10749_v59 = vld [vmem:[#allocation43_spill] sm:$0xff]  ;;  %v316_v10 = vld [vmem:[%s5181_s6 + $0x1f0] sm:$0xff]  ;;  %v705_v29 = vld [vmem:[%s5181_s6 + $0xe18] sm:$0xff] }
 0x10f   : > { %v1626_v18 = vadd.f32 %v1625_v32, %v1115_v52  ;;  %v1380_v33 = vmul.f32 %v10749_v59, %v576_v3  ;;  %v1238_v41 = vmul.f32 %v10735_v44, %v434_v20  ;;  %v1506_v21 = vmul.f32 %v10747_v57, %v702_v24  ;;  %v580_v3 = vld [vmem:[%s5181_s6 + $0xa30] sm:$0xff]  ;;  %v438_v20 = vld [vmem:[%s5181_s6 + $0x5c0] sm:$0xff] }
 0x110   : > { %v1890_v34 = vadd.f32 %v1889_v61, %v1377_v60  ;;  %v1748_v22 = vadd.f32 %v1747_v26, %v1236_v39  ;;  %v2018_v27 = vadd.f32 %v2017_v13, %v1504_v9  ;;  %v1118_v38 = vmul.f32 %v10743_v53, %v314_v2  ;;  %v10750_v60 = vld [vmem:[#allocation44_spill] sm:$0xff]  ;;  %v317_v39 = vld [vmem:[%s5181_s6 + $0x1f8] sm:$0xff]  ;;  %v706_v2 = vld [vmem:[%s5181_s6 + $0xe20] sm:$0xff] }
 0x111   : > { %v1627_v6 = vadd.f32 %v1626_v18, %v1116_v11  ;;  %v1381_v23 = vmul.f32 %v10750_v60, %v577_v42  ;;  %v1239_v44 = vmul.f32 %v10736_v45, %v435_v25  ;;  %v1507_v63 = vmul.f32 %v10748_v58, %v703_v8  ;;  %v581_v42 = vld [vmem:[%s5181_s6 + $0xa38] sm:$0xff]  ;;  %v439_v25 = vld [vmem:[%s5181_s6 + $0x5c8] sm:$0xff] }
 0x112   : > { %v1891_v36 = vadd.f32 %v1890_v34, %v1378_v62  ;;  %v1749_v15 = vadd.f32 %v1748_v22, %v1237_v40  ;;  %v2019_v31 = vadd.f32 %v2018_v27, %v1505_v5  ;;  %v1119_v52 = vmul.f32 %v10744_v54, %v315_v12  ;;  %v10751_v62 = vld [vmem:[#allocation45_spill] sm:$0xff]  ;;  %v318_v40 = vld [vmem:[%s5181_s6 + $0x200] sm:$0xff]  ;;  %v707_v12 = vld [vmem:[%s5181_s6 + $0xe28] sm:$0xff] }
 0x113   : > { %v1628_v16 = vadd.f32 %v1627_v6, %v1117_v0  ;;  %v1382_v61 = vmul.f32 %v10751_v62, %v578_v30  ;;  %v1240_v45 = vmul.f32 %v10737_v46, %v436_v14  ;;  %v1508_v9 = vmul.f32 %v10749_v59, %v704_v37  ;;  %v582_v30 = vld [vmem:[%s5181_s6 + $0xa40] sm:$0xff]  ;;  %v440_v14 = vld [vmem:[%s5181_s6 + $0x5d0] sm:$0xff] }
 0x114   : > { %v1892_v4 = vadd.f32 %v1891_v36, %v1379_v35  ;;  %v1750_v19 = vadd.f32 %v1749_v15, %v1238_v41  ;;  %v2020_v17 = vadd.f32 %v2019_v31, %v1506_v21  ;;  %v1120_v11 = vmul.f32 %v10745_v55, %v316_v10  ;;  %v10752_v35 = vld [vmem:[#allocation46_spill] sm:$0xff]  ;;  %v319_v41 = vld [vmem:[%s5181_s6 + $0x208] sm:$0xff]  ;;  %v708_v10 = vld [vmem:[%s5181_s6 + $0xe30] sm:$0xff] }
 0x115   : > { %v1629_v32 = vadd.f32 %v1628_v16, %v1118_v38  ;;  %v1383_v34 = vmul.f32 %v10752_v35, %v579_v7  ;;  %v1241_v46 = vmul.f32 %v10738_v47, %v437_v28  ;;  %v1509_v5 = vmul.f32 %v10750_v60, %v705_v29  ;;  %v583_v7 = vld [vmem:[%s5181_s6 + $0xa48] sm:$0xff]  ;;  %v441_v28 = vld [vmem:[%s5181_s6 + $0x5d8] sm:$0xff] }
 0x116   : > { %v1893_v43 = vadd.f32 %v1892_v4, %v1380_v33  ;;  %v1751_v26 = vadd.f32 %v1750_v19, %v1239_v44  ;;  %v2021_v13 = vadd.f32 %v2020_v17, %v1507_v63  ;;  %v1121_v0 = vmul.f32 %v10746_v56, %v317_v39  ;;  %v10753_v33 = vld [vmem:[#allocation47_spill] sm:$0xff]  ;;  %v320_v44 = vld [vmem:[%s5181_s6 + $0x210] sm:$0xff]  ;;  %v709_v39 = vld [vmem:[%s5181_s6 + $0xe38] sm:$0xff] }
 0x117   : > { %v1630_v18 = vadd.f32 %v1629_v32, %v1119_v52  ;;  %v1384_v36 = vmul.f32 %v10753_v33, %v580_v3  ;;  %v1242_v47 = vmul.f32 %v10739_v48, %v438_v20  ;;  %v1510_v21 = vmul.f32 %v10751_v62, %v706_v2  ;;  %v584_v3 = vld [vmem:[%s5181_s6 + $0xa50] sm:$0xff]  ;;  %v442_v20 = vld [vmem:[%s5181_s6 + $0x5e0] sm:$0xff] }
 0x118   : > { %v1894_v24 = vadd.f32 %v1893_v43, %v1381_v23  ;;  %v1752_v22 = vadd.f32 %v1751_v26, %v1240_v45  ;;  %v2022_v27 = vadd.f32 %v2021_v13, %v1508_v9  ;;  %v1122_v38 = vmul.f32 %v10747_v57, %v318_v40  ;;  %v10754_v23 = vld [vmem:[#allocation48_spill] sm:$0xff]  ;;  %v321_v45 = vld [vmem:[%s5181_s6 + $0x218] sm:$0xff]  ;;  %v710_v40 = vld [vmem:[%s5181_s6 + $0xe40] sm:$0xff] }
 0x119   : > { %v1631_v6 = vadd.f32 %v1630_v18, %v1120_v11  ;;  %v1385_v4 = vmul.f32 %v10754_v23, %v581_v42  ;;  %v1243_v48 = vmul.f32 %v10740_v49, %v439_v25  ;;  %v1511_v63 = vmul.f32 %v10752_v35, %v707_v12  ;;  %v585_v42 = vld [vmem:[%s5181_s6 + $0xa58] sm:$0xff]  ;;  %v443_v25 = vld [vmem:[%s5181_s6 + $0x5e8] sm:$0xff] }
 0x11a   : > { %v1895_v8 = vadd.f32 %v1894_v24, %v1382_v61  ;;  %v1753_v15 = vadd.f32 %v1752_v22, %v1241_v46  ;;  %v2023_v31 = vadd.f32 %v2022_v27, %v1509_v5  ;;  %v1123_v52 = vmul.f32 %v10748_v58, %v319_v41  ;;  %v10755_v61 = vld [vmem:[#allocation49_spill] sm:$0xff]  ;;  %v322_v46 = vld [vmem:[%s5181_s6 + $0x220] sm:$0xff]  ;;  %v711_v41 = vld [vmem:[%s5181_s6 + $0xe48] sm:$0xff] }
 0x11b   : > { %v1632_v16 = vadd.f32 %v1631_v6, %v1121_v0  ;;  %v1386_v43 = vmul.f32 %v10755_v61, %v582_v30  ;;  %v1244_v49 = vmul.f32 %v10741_v50, %v440_v14  ;;  %v1512_v9 = vmul.f32 %v10753_v33, %v708_v10  ;;  %v586_v30 = vld [vmem:[%s5181_s6 + $0xa60] sm:$0xff]  ;;  %v444_v14 = vld [vmem:[%s5181_s6 + $0x5f0] sm:$0xff] }
 0x11c   : > { %v1896_v37 = vadd.f32 %v1895_v8, %v1383_v34  ;;  %v1754_v19 = vadd.f32 %v1753_v15, %v1242_v47  ;;  %v2024_v17 = vadd.f32 %v2023_v31, %v1510_v21  ;;  %v1124_v11 = vmul.f32 %v10749_v59, %v320_v44  ;;  %v10756_v34 = vld [vmem:[#allocation50_spill] sm:$0xff]  ;;  %v323_v47 = vld [vmem:[%s5181_s6 + $0x228] sm:$0xff]  ;;  %v712_v44 = vld [vmem:[%s5181_s6 + $0xe50] sm:$0xff] }
 0x11d   : > { %v1633_v32 = vadd.f32 %v1632_v16, %v1122_v38  ;;  %v1387_v24 = vmul.f32 %v10756_v34, %v583_v7  ;;  %v1245_v50 = vmul.f32 %v10742_v51, %v441_v28  ;;  %v1513_v5 = vmul.f32 %v10754_v23, %v709_v39  ;;  %v587_v7 = vld [vmem:[%s5181_s6 + $0xa68] sm:$0xff]  ;;  %v445_v28 = vld [vmem:[%s5181_s6 + $0x5f8] sm:$0xff] }
 0x11e   : > { %v1897_v29 = vadd.f32 %v1896_v37, %v1384_v36  ;;  %v1755_v26 = vadd.f32 %v1754_v19, %v1243_v48  ;;  %v2025_v13 = vadd.f32 %v2024_v17, %v1511_v63  ;;  %v1125_v0 = vmul.f32 %v10750_v60, %v321_v45  ;;  %v10757_v36 = vld [vmem:[#allocation51_spill] sm:$0xff]  ;;  %v324_v48 = vld [vmem:[%s5181_s6 + $0x230] sm:$0xff]  ;;  %v713_v45 = vld [vmem:[%s5181_s6 + $0xe58] sm:$0xff] }
 0x11f   : > { %v1634_v18 = vadd.f32 %v1633_v32, %v1123_v52  ;;  %v1388_v8 = vmul.f32 %v10757_v36, %v584_v3  ;;  %v1246_v51 = vmul.f32 %v10743_v53, %v442_v20  ;;  %v1514_v21 = vmul.f32 %v10755_v61, %v710_v40  ;;  %v588_v3 = vld [vmem:[%s5181_s6 + $0xa70] sm:$0xff]  ;;  %v446_v20 = vld [vmem:[%s5181_s6 + $0x600] sm:$0xff] }
 0x120   : > { %v1898_v2 = vadd.f32 %v1897_v29, %v1385_v4  ;;  %v1756_v22 = vadd.f32 %v1755_v26, %v1244_v49  ;;  %v2026_v27 = vadd.f32 %v2025_v13, %v1512_v9  ;;  %v1126_v38 = vmul.f32 %v10751_v62, %v322_v46  ;;  %v10758_v4 = vld [vmem:[#allocation52_spill] sm:$0xff]  ;;  %v325_v49 = vld [vmem:[%s5181_s6 + $0x238] sm:$0xff]  ;;  %v714_v46 = vld [vmem:[%s5181_s6 + $0xe60] sm:$0xff] }
 0x121   : > { %v1635_v6 = vadd.f32 %v1634_v18, %v1124_v11  ;;  %v1389_v37 = vmul.f32 %v10758_v4, %v585_v42  ;;  %v1247_v53 = vmul.f32 %v10744_v54, %v443_v25  ;;  %v1515_v63 = vmul.f32 %v10756_v34, %v711_v41  ;;  %v589_v42 = vld [vmem:[%s5181_s6 + $0xa78] sm:$0xff]  ;;  %v447_v25 = vld [vmem:[%s5181_s6 + $0x608] sm:$0xff] }
 0x122   : > { %v1899_v12 = vadd.f32 %v1898_v2, %v1386_v43  ;;  %v1757_v15 = vadd.f32 %v1756_v22, %v1245_v50  ;;  %v2027_v31 = vadd.f32 %v2026_v27, %v1513_v5  ;;  %v1127_v52 = vmul.f32 %v10752_v35, %v323_v47  ;;  %v10759_v43 = vld [vmem:[#allocation53_spill] sm:$0xff]  ;;  %v326_v50 = vld [vmem:[%s5181_s6 + $0x240] sm:$0xff]  ;;  %v715_v47 = vld [vmem:[%s5181_s6 + $0xe68] sm:$0xff] }
 0x123   : > { %v1636_v16 = vadd.f32 %v1635_v6, %v1125_v0  ;;  %v1390_v29 = vmul.f32 %v10759_v43, %v586_v30  ;;  %v1248_v54 = vmul.f32 %v10745_v55, %v444_v14  ;;  %v1516_v9 = vmul.f32 %v10757_v36, %v712_v44  ;;  %v590_v30 = vld [vmem:[%s5181_s6 + $0xa80] sm:$0xff]  ;;  %v448_v14 = vld [vmem:[%s5181_s6 + $0x610] sm:$0xff] }
 0x124   : > { %v1900_v10 = vadd.f32 %v1899_v12, %v1387_v24  ;;  %v1758_v19 = vadd.f32 %v1757_v15, %v1246_v51  ;;  %v2028_v17 = vadd.f32 %v2027_v31, %v1514_v21  ;;  %v1128_v11 = vmul.f32 %v10753_v33, %v324_v48  ;;  %v10760_v24 = vld [vmem:[#allocation54_spill] sm:$0xff]  ;;  %v327_v51 = vld [vmem:[%s5181_s6 + $0x248] sm:$0xff]  ;;  %v716_v48 = vld [vmem:[%s5181_s6 + $0xe70] sm:$0xff] }
 0x125   : > { %v1637_v32 = vadd.f32 %v1636_v16, %v1126_v38  ;;  %v1391_v2 = vmul.f32 %v10760_v24, %v587_v7  ;;  %v1249_v55 = vmul.f32 %v10746_v56, %v445_v28  ;;  %v1517_v5 = vmul.f32 %v10758_v4, %v713_v45  ;;  %v591_v7 = vld [vmem:[%s5181_s6 + $0xa88] sm:$0xff]  ;;  %v449_v28 = vld [vmem:[%s5181_s6 + $0x618] sm:$0xff] }
 0x126   : > { %v1901_v39 = vadd.f32 %v1900_v10, %v1388_v8  ;;  %v1759_v26 = vadd.f32 %v1758_v19, %v1247_v53  ;;  %v2029_v13 = vadd.f32 %v2028_v17, %v1515_v63  ;;  %v1129_v0 = vmul.f32 %v10754_v23, %v325_v49  ;;  %v10761_v8 = vld [vmem:[#allocation55_spill] sm:$0xff]  ;;  %v328_v53 = vld [vmem:[%s5181_s6 + $0x250] sm:$0xff]  ;;  %v717_v49 = vld [vmem:[%s5181_s6 + $0xe78] sm:$0xff] }
 0x127   : > { %v1638_v18 = vadd.f32 %v1637_v32, %v1127_v52  ;;  %v1392_v12 = vmul.f32 %v10761_v8, %v588_v3  ;;  %v1250_v56 = vmul.f32 %v10747_v57, %v446_v20  ;;  %v1518_v21 = vmul.f32 %v10759_v43, %v714_v46  ;;  %v592_v3 = vld [vmem:[%s5181_s6 + $0xa90] sm:$0xff]  ;;  %v450_v20 = vld [vmem:[%s5181_s6 + $0x620] sm:$0xff] }
 0x128   : > { %v1902_v40 = vadd.f32 %v1901_v39, %v1389_v37  ;;  %v1760_v22 = vadd.f32 %v1759_v26, %v1248_v54  ;;  %v2030_v27 = vadd.f32 %v2029_v13, %v1516_v9  ;;  %v1130_v38 = vmul.f32 %v10755_v61, %v326_v50  ;;  %v10762_v37 = vld [vmem:[#allocation56_spill] sm:$0xff]  ;;  %v329_v54 = vld [vmem:[%s5181_s6 + $0x258] sm:$0xff]  ;;  %v718_v50 = vld [vmem:[%s5181_s6 + $0xe80] sm:$0xff] }
 0x129   : > { %v1639_v6 = vadd.f32 %v1638_v18, %v1128_v11  ;;  %v1393_v10 = vmul.f32 %v10762_v37, %v589_v42  ;;  %v1251_v57 = vmul.f32 %v10748_v58, %v447_v25  ;;  %v1519_v63 = vmul.f32 %v10760_v24, %v715_v47  ;;  %v593_v42 = vld [vmem:[%s5181_s6 + $0xa98] sm:$0xff]  ;;  %v451_v25 = vld [vmem:[%s5181_s6 + $0x628] sm:$0xff] }
 0x12a   : > { %v1903_v41 = vadd.f32 %v1902_v40, %v1390_v29  ;;  %v1761_v15 = vadd.f32 %v1760_v22, %v1249_v55  ;;  %v2031_v31 = vadd.f32 %v2030_v27, %v1517_v5  ;;  %v1131_v52 = vmul.f32 %v10756_v34, %v327_v51  ;;  %v10763_v29 = vld [vmem:[#allocation57_spill] sm:$0xff]  ;;  %v330_v55 = vld [vmem:[%s5181_s6 + $0x260] sm:$0xff]  ;;  %v719_v51 = vld [vmem:[%s5181_s6 + $0xe88] sm:$0xff] }
 0x12b   : > { %v1640_v16 = vadd.f32 %v1639_v6, %v1129_v0  ;;  %v1394_v39 = vmul.f32 %v10763_v29, %v590_v30  ;;  %v1252_v58 = vmul.f32 %v10749_v59, %v448_v14  ;;  %v1520_v9 = vmul.f32 %v10761_v8, %v716_v48  ;;  %v594_v30 = vld [vmem:[%s5181_s6 + $0xaa0] sm:$0xff]  ;;  %v452_v14 = vld [vmem:[%s5181_s6 + $0x630] sm:$0xff] }
 0x12c   : > { %v1904_v44 = vadd.f32 %v1903_v41, %v1391_v2  ;;  %v1762_v19 = vadd.f32 %v1761_v15, %v1250_v56  ;;  %v2032_v17 = vadd.f32 %v2031_v31, %v1518_v21  ;;  %v1132_v11 = vmul.f32 %v10757_v36, %v328_v53  ;;  %v10764_v2 = vld [vmem:[#allocation58_spill] sm:$0xff]  ;;  %v331_v56 = vld [vmem:[%s5181_s6 + $0x268] sm:$0xff]  ;;  %v720_v53 = vld [vmem:[%s5181_s6 + $0xe90] sm:$0xff] }
 0x12d   : > { %v1641_v32 = vadd.f32 %v1640_v16, %v1130_v38  ;;  %v1395_v40 = vmul.f32 %v10764_v2, %v591_v7  ;;  %v1253_v59 = vmul.f32 %v10750_v60, %v449_v28  ;;  %v1521_v5 = vmul.f32 %v10762_v37, %v717_v49  ;;  %v595_v7 = vld [vmem:[%s5181_s6 + $0xaa8] sm:$0xff]  ;;  %v453_v28 = vld [vmem:[%s5181_s6 + $0x638] sm:$0xff] }
 0x12e   : > { %v1905_v45 = vadd.f32 %v1904_v44, %v1392_v12  ;;  %v1763_v26 = vadd.f32 %v1762_v19, %v1251_v57  ;;  %v2033_v13 = vadd.f32 %v2032_v17, %v1519_v63  ;;  %v1133_v0 = vmul.f32 %v10758_v4, %v329_v54  ;;  %v10765_v12 = vld [vmem:[#allocation59_spill] sm:$0xff]  ;;  %v332_v57 = vld [vmem:[%s5181_s6 + $0x270] sm:$0xff]  ;;  %v721_v54 = vld [vmem:[%s5181_s6 + $0xe98] sm:$0xff] }
 0x12f   : > { %v1642_v18 = vadd.f32 %v1641_v32, %v1131_v52  ;;  %v1396_v41 = vmul.f32 %v10765_v12, %v592_v3  ;;  %v1254_v60 = vmul.f32 %v10751_v62, %v450_v20  ;;  %v1522_v21 = vmul.f32 %v10763_v29, %v718_v50  ;;  %v596_v3 = vld [vmem:[%s5181_s6 + $0xab0] sm:$0xff]  ;;  %v454_v20 = vld [vmem:[%s5181_s6 + $0x640] sm:$0xff] }
 0x130   : > { %v1906_v46 = vadd.f32 %v1905_v45, %v1393_v10  ;;  %v1764_v22 = vadd.f32 %v1763_v26, %v1252_v58  ;;  %v2034_v27 = vadd.f32 %v2033_v13, %v1520_v9  ;;  %v1134_v38 = vmul.f32 %v10759_v43, %v330_v55  ;;  %v10766_v10 = vld [vmem:[#allocation60_spill] sm:$0xff]  ;;  %v333_v58 = vld [vmem:[%s5181_s6 + $0x278] sm:$0xff]  ;;  %v722_v55 = vld [vmem:[%s5181_s6 + $0xea0] sm:$0xff] }
 0x131   : > { %v1643_v6 = vadd.f32 %v1642_v18, %v1132_v11  ;;  %v1397_v44 = vmul.f32 %v10766_v10, %v593_v42  ;;  %v1255_v62 = vmul.f32 %v10752_v35, %v451_v25  ;;  %v1523_v63 = vmul.f32 %v10764_v2, %v719_v51  ;;  %v597_v42 = vld [vmem:[%s5181_s6 + $0xab8] sm:$0xff]  ;;  %v455_v25 = vld [vmem:[%s5181_s6 + $0x648] sm:$0xff] }
 0x132   : > { %v1907_v47 = vadd.f32 %v1906_v46, %v1394_v39  ;;  %v1765_v15 = vadd.f32 %v1764_v22, %v1253_v59  ;;  %v2035_v31 = vadd.f32 %v2034_v27, %v1521_v5  ;;  %v1135_v52 = vmul.f32 %v10760_v24, %v331_v56  ;;  %v10767_v39 = vld [vmem:[#allocation61_spill] sm:$0xff]  ;;  %v334_v59 = vld [vmem:[%s5181_s6 + $0x280] sm:$0xff]  ;;  %v723_v56 = vld [vmem:[%s5181_s6 + $0xea8] sm:$0xff] }
 0x133   : > { %v1644_v16 = vadd.f32 %v1643_v6, %v1133_v0  ;;  %v1398_v45 = vmul.f32 %v10767_v39, %v594_v30  ;;  %v1256_v35 = vmul.f32 %v10753_v33, %v452_v14  ;;  %v1524_v9 = vmul.f32 %v10765_v12, %v720_v53  ;;  %v598_v30 = vld [vmem:[%s5181_s6 + $0xac0] sm:$0xff]  ;;  %v456_v14 = vld [vmem:[%s5181_s6 + $0x650] sm:$0xff] }
 0x134   : > { %v1908_v48 = vadd.f32 %v1907_v47, %v1395_v40  ;;  %v1766_v19 = vadd.f32 %v1765_v15, %v1254_v60  ;;  %v2036_v17 = vadd.f32 %v2035_v31, %v1522_v21  ;;  %v1136_v11 = vmul.f32 %v10761_v8, %v332_v57  ;;  %v10768_v40 = vld [vmem:[#allocation62_spill] sm:$0xff]  ;;  %v335_v60 = vld [vmem:[%s5181_s6 + $0x288] sm:$0xff]  ;;  %v724_v57 = vld [vmem:[%s5181_s6 + $0xeb0] sm:$0xff] }
 0x135   : > { %v1645_v32 = vadd.f32 %v1644_v16, %v1134_v38  ;;  %v1399_v46 = vmul.f32 %v10768_v40, %v595_v7  ;;  %v1257_v33 = vmul.f32 %v10754_v23, %v453_v28  ;;  %v1525_v5 = vmul.f32 %v10766_v10, %v721_v54  ;;  %v599_v7 = vld [vmem:[%s5181_s6 + $0xac8] sm:$0xff]  ;;  %v457_v28 = vld [vmem:[%s5181_s6 + $0x658] sm:$0xff] }
 0x136   : > { %v1909_v49 = vadd.f32 %v1908_v48, %v1396_v41  ;;  %v1767_v26 = vadd.f32 %v1766_v19, %v1255_v62  ;;  %v2037_v13 = vadd.f32 %v2036_v17, %v1523_v63  ;;  %v1137_v0 = vmul.f32 %v10762_v37, %v333_v58  ;;  %v10769_v41 = vld [vmem:[#allocation63_spill] sm:$0xff]  ;;  %v336_v62 = vld [vmem:[%s5181_s6 + $0x290] sm:$0xff]  ;;  %v725_v58 = vld [vmem:[%s5181_s6 + $0xeb8] sm:$0xff] }
 0x137   : > { %v1646_v18 = vadd.f32 %v1645_v32, %v1135_v52  ;;  %v1400_v47 = vmul.f32 %v10769_v41, %v596_v3  ;;  %v1258_v23 = vmul.f32 %v10755_v61, %v454_v20  ;;  %v1526_v21 = vmul.f32 %v10767_v39, %v722_v55  ;;  %v600_v3 = vld [vmem:[%s5181_s6 + $0xad0] sm:$0xff]  ;;  %v458_v20 = vld [vmem:[%s5181_s6 + $0x660] sm:$0xff] }
 0x138   : > { %v1910_v50 = vadd.f32 %v1909_v49, %v1397_v44  ;;  %v1768_v22 = vadd.f32 %v1767_v26, %v1256_v35  ;;  %v2038_v27 = vadd.f32 %v2037_v13, %v1524_v9  ;;  %v1138_v38 = vmul.f32 %v10763_v29, %v334_v59  ;;  %v10770_v44 = vld [vmem:[#allocation64_spill] sm:$0xff]  ;;  %v337_v35 = vld [vmem:[%s5181_s6 + $0x298] sm:$0xff]  ;;  %v726_v59 = vld [vmem:[%s5181_s6 + $0xec0] sm:$0xff] }
 0x139   : > { %v1647_v6 = vadd.f32 %v1646_v18, %v1136_v11  ;;  %v1401_v48 = vmul.f32 %v10770_v44, %v597_v42  ;;  %v1259_v61 = vmul.f32 %v10756_v34, %v455_v25  ;;  %v1527_v63 = vmul.f32 %v10768_v40, %v723_v56  ;;  %v601_v42 = vld [vmem:[%s5181_s6 + $0xad8] sm:$0xff]  ;;  %v459_v25 = vld [vmem:[%s5181_s6 + $0x668] sm:$0xff] }
 0x13a   : > { %v1911_v51 = vadd.f32 %v1910_v50, %v1398_v45  ;;  %v1769_v15 = vadd.f32 %v1768_v22, %v1257_v33  ;;  %v2039_v31 = vadd.f32 %v2038_v27, %v1525_v5  ;;  %v1139_v52 = vmul.f32 %v10764_v2, %v335_v60  ;;  %v10771_v45 = vld [vmem:[#allocation65_spill] sm:$0xff]  ;;  %v338_v33 = vld [vmem:[%s5181_s6 + $0x2a0] sm:$0xff]  ;;  %v727_v60 = vld [vmem:[%s5181_s6 + $0xec8] sm:$0xff] }
 0x13b   : > { %v1648_v16 = vadd.f32 %v1647_v6, %v1137_v0  ;;  %v1402_v49 = vmul.f32 %v10771_v45, %v598_v30  ;;  %v1260_v34 = vmul.f32 %v10757_v36, %v456_v14  ;;  %v1528_v9 = vmul.f32 %v10769_v41, %v724_v57  ;;  %v602_v30 = vld [vmem:[%s5181_s6 + $0xae0] sm:$0xff]  ;;  %v460_v14 = vld [vmem:[%s5181_s6 + $0x670] sm:$0xff] }
 0x13c   : > { %v1912_v53 = vadd.f32 %v1911_v51, %v1399_v46  ;;  %v1770_v19 = vadd.f32 %v1769_v15, %v1258_v23  ;;  %v2040_v17 = vadd.f32 %v2039_v31, %v1526_v21  ;;  %v1140_v11 = vmul.f32 %v10765_v12, %v336_v62  ;;  %v10772_v46 = vld [vmem:[#allocation66_spill] sm:$0xff]  ;;  %v339_v23 = vld [vmem:[%s5181_s6 + $0x2a8] sm:$0xff]  ;;  %v728_v62 = vld [vmem:[%s5181_s6 + $0xed0] sm:$0xff] }
 0x13d   : > { %v1649_v32 = vadd.f32 %v1648_v16, %v1138_v38  ;;  %v1403_v50 = vmul.f32 %v10772_v46, %v599_v7  ;;  %v1261_v36 = vmul.f32 %v10758_v4, %v457_v28  ;;  %v1529_v5 = vmul.f32 %v10770_v44, %v725_v58  ;;  %v603_v7 = vld [vmem:[%s5181_s6 + $0xae8] sm:$0xff]  ;;  %v461_v28 = vld [vmem:[%s5181_s6 + $0x678] sm:$0xff] }
 0x13e   : > { %v1913_v54 = vadd.f32 %v1912_v53, %v1400_v47  ;;  %v1771_v26 = vadd.f32 %v1770_v19, %v1259_v61  ;;  %v2041_v13 = vadd.f32 %v2040_v17, %v1527_v63  ;;  %v1141_v0 = vmul.f32 %v10766_v10, %v337_v35  ;;  %v10773_v47 = vld [vmem:[#allocation67_spill] sm:$0xff]  ;;  %v340_v61 = vld [vmem:[%s5181_s6 + $0x2b0] sm:$0xff]  ;;  %v729_v35 = vld [vmem:[%s5181_s6 + $0xed8] sm:$0xff] }
 0x13f   : > { %v1650_v18 = vadd.f32 %v1649_v32, %v1139_v52  ;;  %v1404_v51 = vmul.f32 %v10773_v47, %v600_v3  ;;  %v1262_v4 = vmul.f32 %v10759_v43, %v458_v20  ;;  %v1530_v21 = vmul.f32 %v10771_v45, %v726_v59  ;;  %v604_v3 = vld [vmem:[%s5181_s6 + $0xaf0] sm:$0xff]  ;;  %v462_v20 = vld [vmem:[%s5181_s6 + $0x680] sm:$0xff] }
 0x140   : > { %v1914_v55 = vadd.f32 %v1913_v54, %v1401_v48  ;;  %v1772_v22 = vadd.f32 %v1771_v26, %v1260_v34  ;;  %v2042_v27 = vadd.f32 %v2041_v13, %v1528_v9  ;;  %v1142_v38 = vmul.f32 %v10767_v39, %v338_v33  ;;  %v10774_v48 = vld [vmem:[#allocation68_spill] sm:$0xff]  ;;  %v341_v34 = vld [vmem:[%s5181_s6 + $0x2b8] sm:$0xff]  ;;  %v730_v33 = vld [vmem:[%s5181_s6 + $0xee0] sm:$0xff] }
 0x141   : > { %v1651_v6 = vadd.f32 %v1650_v18, %v1140_v11  ;;  %v1405_v53 = vmul.f32 %v10774_v48, %v601_v42  ;;  %v1263_v43 = vmul.f32 %v10760_v24, %v459_v25  ;;  %v1531_v63 = vmul.f32 %v10772_v46, %v727_v60  ;;  %v605_v42 = vld [vmem:[%s5181_s6 + $0xaf8] sm:$0xff]  ;;  %v463_v25 = vld [vmem:[%s5181_s6 + $0x688] sm:$0xff] }
 0x142   : > { %v1915_v56 = vadd.f32 %v1914_v55, %v1402_v49  ;;  %v1773_v15 = vadd.f32 %v1772_v22, %v1261_v36  ;;  %v2043_v31 = vadd.f32 %v2042_v27, %v1529_v5  ;;  %v1143_v52 = vmul.f32 %v10768_v40, %v339_v23  ;;  %v10775_v49 = vld [vmem:[#allocation69_spill] sm:$0xff]  ;;  %v342_v36 = vld [vmem:[%s5181_s6 + $0x2c0] sm:$0xff]  ;;  %v731_v23 = vld [vmem:[%s5181_s6 + $0xee8] sm:$0xff] }
 0x143   : > { %v1652_v16 = vadd.f32 %v1651_v6, %v1141_v0  ;;  %v1406_v54 = vmul.f32 %v10775_v49, %v602_v30  ;;  %v1264_v24 = vmul.f32 %v10761_v8, %v460_v14  ;;  %v1532_v9 = vmul.f32 %v10773_v47, %v728_v62  ;;  %v606_v30 = vld [vmem:[%s5181_s6 + $0xb00] sm:$0xff]  ;;  %v464_v14 = vld [vmem:[%s5181_s6 + $0x690] sm:$0xff] }
 0x144   : > { %v1916_v57 = vadd.f32 %v1915_v56, %v1403_v50  ;;  %v1774_v19 = vadd.f32 %v1773_v15, %v1262_v4  ;;  %v2044_v17 = vadd.f32 %v2043_v31, %v1530_v21  ;;  %v1144_v11 = vmul.f32 %v10769_v41, %v340_v61  ;;  %v10776_v50 = vld [vmem:[#allocation70_spill] sm:$0xff]  ;;  %v343_v4 = vld [vmem:[%s5181_s6 + $0x2c8] sm:$0xff]  ;;  %v732_v61 = vld [vmem:[%s5181_s6 + $0xef0] sm:$0xff] }
 0x145   : > { %v1653_v32 = vadd.f32 %v1652_v16, %v1142_v38  ;;  %v1407_v55 = vmul.f32 %v10776_v50, %v603_v7  ;;  %v1265_v8 = vmul.f32 %v10762_v37, %v461_v28  ;;  %v1533_v5 = vmul.f32 %v10774_v48, %v729_v35  ;;  %v607_v7 = vld [vmem:[%s5181_s6 + $0xb08] sm:$0xff]  ;;  %v465_v28 = vld [vmem:[%s5181_s6 + $0x698] sm:$0xff] }
 0x146   : > { %v1917_v58 = vadd.f32 %v1916_v57, %v1404_v51  ;;  %v1775_v26 = vadd.f32 %v1774_v19, %v1263_v43  ;;  %v2045_v13 = vadd.f32 %v2044_v17, %v1531_v63  ;;  %v1145_v0 = vmul.f32 %v10770_v44, %v341_v34  ;;  %v10777_v51 = vld [vmem:[#allocation71_spill] sm:$0xff]  ;;  %v344_v43 = vld [vmem:[%s5181_s6 + $0x2d0] sm:$0xff]  ;;  %v733_v34 = vld [vmem:[%s5181_s6 + $0xef8] sm:$0xff] }
 0x147   : > { %v1654_v18 = vadd.f32 %v1653_v32, %v1143_v52  ;;  %v1408_v56 = vmul.f32 %v10777_v51, %v604_v3  ;;  %v1266_v37 = vmul.f32 %v10763_v29, %v462_v20  ;;  %v1534_v21 = vmul.f32 %v10775_v49, %v730_v33  ;;  %v608_v3 = vld [vmem:[%s5181_s6 + $0xb10] sm:$0xff]  ;;  %v466_v20 = vld [vmem:[%s5181_s6 + $0x6a0] sm:$0xff] }
 0x148   : > { %v1918_v59 = vadd.f32 %v1917_v58, %v1405_v53  ;;  %v1776_v22 = vadd.f32 %v1775_v26, %v1264_v24  ;;  %v2046_v27 = vadd.f32 %v2045_v13, %v1532_v9  ;;  %v1146_v38 = vmul.f32 %v10771_v45, %v342_v36  ;;  %v10778_v53 = vld [vmem:[#allocation72_spill] sm:$0xff]  ;;  %v345_v24 = vld [vmem:[%s5181_s6 + $0x2d8] sm:$0xff]  ;;  %v734_v36 = vld [vmem:[%s5181_s6 + $0xf00] sm:$0xff] }
 0x149   : > { %v1655_v6 = vadd.f32 %v1654_v18, %v1144_v11  ;;  %v1409_v57 = vmul.f32 %v10778_v53, %v605_v42  ;;  %v1267_v29 = vmul.f32 %v10764_v2, %v463_v25  ;;  %v1535_v63 = vmul.f32 %v10776_v50, %v731_v23  ;;  %v609_v42 = vld [vmem:[%s5181_s6 + $0xb18] sm:$0xff]  ;;  %v467_v25 = vld [vmem:[%s5181_s6 + $0x6a8] sm:$0xff] }
 0x14a   : > { %v1919_v60 = vadd.f32 %v1918_v59, %v1406_v54  ;;  %v1777_v15 = vadd.f32 %v1776_v22, %v1265_v8  ;;  %v2047_v31 = vadd.f32 %v2046_v27, %v1533_v5  ;;  %v1147_v52 = vmul.f32 %v10772_v46, %v343_v4  ;;  %v10779_v54 = vld [vmem:[#allocation73_spill] sm:$0xff]  ;;  %v346_v8 = vld [vmem:[%s5181_s6 + $0x2e0] sm:$0xff]  ;;  %v735_v4 = vld [vmem:[%s5181_s6 + $0xf08] sm:$0xff] }
 0x14b   : > { %v1656_v16 = vadd.f32 %v1655_v6, %v1145_v0  ;;  %v1410_v58 = vmul.f32 %v10779_v54, %v606_v30  ;;  %v1268_v2 = vmul.f32 %v10765_v12, %v464_v14  ;;  %v1536_v9 = vmul.f32 %v10777_v51, %v732_v61  ;;  %v610_v30 = vld [vmem:[%s5181_s6 + $0xb20] sm:$0xff]  ;;  %v468_v14 = vld [vmem:[%s5181_s6 + $0x6b0] sm:$0xff] }
 0x14c   : > { %v1920_v62 = vadd.f32 %v1919_v60, %v1407_v55  ;;  %v1778_v19 = vadd.f32 %v1777_v15, %v1266_v37  ;;  %v2048_v17 = vadd.f32 %v2047_v31, %v1534_v21  ;;  %v1148_v11 = vmul.f32 %v10773_v47, %v344_v43  ;;  %v10780_v55 = vld [vmem:[#allocation74_spill] sm:$0xff]  ;;  %v347_v37 = vld [vmem:[%s5181_s6 + $0x2e8] sm:$0xff]  ;;  %v736_v43 = vld [vmem:[%s5181_s6 + $0xf10] sm:$0xff] }
 0x14d   : > { %v1657_v32 = vadd.f32 %v1656_v16, %v1146_v38  ;;  %v1411_v59 = vmul.f32 %v10780_v55, %v607_v7  ;;  %v1269_v12 = vmul.f32 %v10766_v10, %v465_v28  ;;  %v1537_v5 = vmul.f32 %v10778_v53, %v733_v34  ;;  %v611_v7 = vld [vmem:[%s5181_s6 + $0xb28] sm:$0xff]  ;;  %v469_v28 = vld [vmem:[%s5181_s6 + $0x6b8] sm:$0xff] }
 0x14e   : > { %v1921_v35 = vadd.f32 %v1920_v62, %v1408_v56  ;;  %v1779_v26 = vadd.f32 %v1778_v19, %v1267_v29  ;;  %v2049_v13 = vadd.f32 %v2048_v17, %v1535_v63  ;;  %v1149_v0 = vmul.f32 %v10774_v48, %v345_v24  ;;  %v10781_v56 = vld [vmem:[#allocation75_spill] sm:$0xff]  ;;  %v348_v29 = vld [vmem:[%s5181_s6 + $0x2f0] sm:$0xff]  ;;  %v737_v24 = vld [vmem:[%s5181_s6 + $0xf18] sm:$0xff] }
 0x14f   : > { %v1658_v18 = vadd.f32 %v1657_v32, %v1147_v52  ;;  %v1412_v60 = vmul.f32 %v10781_v56, %v608_v3  ;;  %v1270_v10 = vmul.f32 %v10767_v39, %v466_v20  ;;  %v1538_v21 = vmul.f32 %v10779_v54, %v734_v36  ;;  %v612_v3 = vld [vmem:[%s5181_s6 + $0xb30] sm:$0xff]  ;;  %v470_v20 = vld [vmem:[%s5181_s6 + $0x6c0] sm:$0xff] }
 0x150   : > { %v1922_v33 = vadd.f32 %v1921_v35, %v1409_v57  ;;  %v1780_v22 = vadd.f32 %v1779_v26, %v1268_v2  ;;  %v2050_v27 = vadd.f32 %v2049_v13, %v1536_v9  ;;  %v1150_v38 = vmul.f32 %v10775_v49, %v346_v8  ;;  %v10782_v57 = vld [vmem:[#allocation76_spill] sm:$0xff]  ;;  %v349_v2 = vld [vmem:[%s5181_s6 + $0x2f8] sm:$0xff]  ;;  %v738_v8 = vld [vmem:[%s5181_s6 + $0xf20] sm:$0xff] }
 0x151   : > { %v1659_v6 = vadd.f32 %v1658_v18, %v1148_v11  ;;  %v1413_v62 = vmul.f32 %v10782_v57, %v609_v42  ;;  %v1271_v39 = vmul.f32 %v10768_v40, %v467_v25  ;;  %v1539_v63 = vmul.f32 %v10780_v55, %v735_v4  ;;  %v613_v42 = vld [vmem:[%s5181_s6 + $0xb38] sm:$0xff]  ;;  %v471_v25 = vld [vmem:[%s5181_s6 + $0x6c8] sm:$0xff] }
 0x152   : > { %v1923_v23 = vadd.f32 %v1922_v33, %v1410_v58  ;;  %v1781_v15 = vadd.f32 %v1780_v22, %v1269_v12  ;;  %v2051_v31 = vadd.f32 %v2050_v27, %v1537_v5  ;;  %v1151_v52 = vmul.f32 %v10776_v50, %v347_v37  ;;  %v10783_v58 = vld [vmem:[#allocation77_spill] sm:$0xff]  ;;  %v6247_v12 = vld [vmem:[%s5181_s6 + $0x300] sm:$0xff]  ;;  %v739_v37 = vld [vmem:[%s5181_s6 + $0xf28] sm:$0xff] }
 0x153   : > { %v1660_v16 = vadd.f32 %v1659_v6, %v1149_v0  ;;  %v1414_v35 = vmul.f32 %v10783_v58, %v610_v30  ;;  %v1272_v40 = vmul.f32 %v10769_v41, %v468_v14  ;;  %v1540_v9 = vmul.f32 %v10781_v56, %v736_v43  ;;  %v614_v30 = vld [vmem:[%s5181_s6 + $0xb40] sm:$0xff]  ;;  %v472_v14 = vld [vmem:[%s5181_s6 + $0x6d0] sm:$0xff] }
 0x154   : > { %v1924_v61 = vadd.f32 %v1923_v23, %v1411_v59  ;;  %v1782_v19 = vadd.f32 %v1781_v15, %v1270_v10  ;;  %v2052_v17 = vadd.f32 %v2051_v31, %v1538_v21  ;;  %v1152_v11 = vmul.f32 %v10777_v51, %v348_v29  ;;  %v10784_v59 = vld [vmem:[#allocation78_spill] sm:$0xff]  ;;  %v6257_v10 = vld [vmem:[%s5181_s6 + $0x308] sm:$0xff]  ;;  %v740_v29 = vld [vmem:[%s5181_s6 + $0xf30] sm:$0xff] }
 0x155   : > { %v1661_v32 = vadd.f32 %v1660_v16, %v1150_v38  ;;  %v1415_v33 = vmul.f32 %v10784_v59, %v611_v7  ;;  %v1273_v41 = vmul.f32 %v10770_v44, %v469_v28  ;;  %v1541_v5 = vmul.f32 %v10782_v57, %v737_v24  ;;  %v615_v7 = vld [vmem:[%s5181_s6 + $0xb48] sm:$0xff]  ;;  %v473_v28 = vld [vmem:[%s5181_s6 + $0x6d8] sm:$0xff] }
 0x156   : > { %v1925_v34 = vadd.f32 %v1924_v61, %v1412_v60  ;;  %v1783_v26 = vadd.f32 %v1782_v19, %v1271_v39  ;;  %v2053_v13 = vadd.f32 %v2052_v17, %v1539_v63  ;;  %v1153_v0 = vmul.f32 %v10778_v53, %v349_v2  ;;  %v10785_v60 = vld [vmem:[#allocation79_spill] sm:$0xff]  ;;  %v6268_v39 = vld [vmem:[%s5181_s6 + $0x310] sm:$0xff]  ;;  %v741_v2 = vld [vmem:[%s5181_s6 + $0xf38] sm:$0xff] }
 0x157   : > { %v1662_v18 = vadd.f32 %v1661_v32, %v1151_v52  ;;  %v1416_v23 = vmul.f32 %v10785_v60, %v612_v3  ;;  %v1274_v44 = vmul.f32 %v10771_v45, %v470_v20  ;;  %v1542_v21 = vmul.f32 %v10783_v58, %v738_v8  ;;  %v616_v3 = vld [vmem:[%s5181_s6 + $0xb50] sm:$0xff]  ;;  %v474_v20 = vld [vmem:[%s5181_s6 + $0x6e0] sm:$0xff] }
 0x158   : > { %v1926_v36 = vadd.f32 %v1925_v34, %v1413_v62  ;;  %v1784_v22 = vadd.f32 %v1783_v26, %v1272_v40  ;;  %v2054_v27 = vadd.f32 %v2053_v13, %v1540_v9  ;;  %v1154_v38 = vmul.f32 %v10779_v54, %v6247_v12  ;;  %v10786_v62 = vld [vmem:[#allocation80_spill] sm:$0xff]  ;;  %v6279_v40 = vld [vmem:[%s5181_s6 + $0x318] sm:$0xff]  ;;  %v6290_v26 = vld [vmem:[%s5181_s6 + $0x320] sm:$0xff] }
 0x159   : > { %v1663_v6 = vadd.f32 %v1662_v18, %v1152_v11  ;;  %v1417_v61 = vmul.f32 %v10786_v62, %v613_v42  ;;  %v1275_v45 = vmul.f32 %v10772_v46, %v471_v25  ;;  %v1543_v63 = vmul.f32 %v10784_v59, %v739_v37 }
 0x15a   : > { %v1927_v4 = vadd.f32 %v1926_v36, %v1414_v35  ;;  %v1785_v15 = vadd.f32 %v1784_v22, %v1273_v41  ;;  %v2055_v31 = vadd.f32 %v2054_v27, %v1541_v5  ;;  %v1155_v52 = vmul.f32 %v10780_v55, %v6257_v10  ;;  %v10787_v35 = vld [vmem:[#allocation81_spill] sm:$0xff]  ;;  %v742_v41 = vld [vmem:[%s5181_s6 + $0xf40] sm:$0xff]  ;;  %v617_v5 = vld [vmem:[%s5181_s6 + $0xb58] sm:$0xff] }
 0x15b   : > { %v1664_v16 = vadd.f32 %v1663_v6, %v1153_v0  ;;  %v1418_v34 = vmul.f32 %v10787_v35, %v614_v30  ;;  %v1276_v46 = vmul.f32 %v10773_v47, %v472_v14  ;;  %v1544_v9 = vmul.f32 %v10785_v60, %v740_v29  ;;  %v743_v22 = vld [vmem:[%s5181_s6 + $0xf48] sm:$0xff]  ;;  %v618_v27 = vld [vmem:[%s5181_s6 + $0xb60] sm:$0xff] }
 0x15c   : > { %v1928_v43 = vadd.f32 %v1927_v4, %v1415_v33  ;;  %v1786_v19 = vadd.f32 %v1785_v15, %v1274_v44  ;;  %v2056_v17 = vadd.f32 %v2055_v31, %v1542_v21  ;;  %v1156_v11 = vmul.f32 %v10781_v56, %v6268_v39  ;;  %v10788_v33 = vld [vmem:[#allocation82_spill] sm:$0xff]  ;;  %v10789_v4 = vld [vmem:[#allocation83_spill] sm:$0xff]  ;;  %v6301_v30 = vld [vmem:[%s5181_s6 + $0x328] sm:$0xff] }
 0x15d   : > { %v1665_v32 = vadd.f32 %v1664_v16, %v1154_v38  ;;  %v1419_v36 = vmul.f32 %v10788_v33, %v615_v7  ;;  %v1277_v47 = vmul.f32 %v10774_v48, %v473_v28  ;;  %v1545_v13 = vmul.f32 %v10786_v62, %v741_v2  ;;  %v10790_v29 = vld [vmem:[#allocation84_spill] sm:$0xff]  ;;  %v744_v7 = vld [vmem:[%s5181_s6 + $0xf50] sm:$0xff]  ;;  %v477_v2 = vld [vmem:[%s5181_s6 + $0x6f8] sm:$0xff] }
 0x15e   : > { %v1929_v24 = vadd.f32 %v1928_v43, %v1416_v23  ;;  %v1787_v42 = vadd.f32 %v1786_v19, %v1275_v45  ;;  %v2057_v0 = vadd.f32 %v2056_v17, %v1543_v63  ;;  %v1157_v18 = vmul.f32 %v10782_v57, %v6279_v40  ;;  %v475_v23 = vld [vmem:[%s5181_s6 + $0x6e8] sm:$0xff]  ;;  %v476_v43 = vld [vmem:[%s5181_s6 + $0x6f0] sm:$0xff]  ;;  %v6323_v17 = vld [vmem:[%s5181_s6 + $0x338] sm:$0xff] }
 0x15f   : > { %v1666_v25 = vadd.f32 %v1665_v32, %v1155_v52  ;;  %v1420_v37 = vmul.f32 %v10789_v4, %v616_v3  ;;  %v1278_v48 = vmul.f32 %v10775_v49, %v474_v20  ;;  %v1546_v38 = vmul.f32 %v10787_v35, %v742_v41  ;;  %v6312_v63 = vld [vmem:[%s5181_s6 + $0x330] sm:$0xff]  ;;  %v619_v52 = vld [vmem:[%s5181_s6 + $0xb68] sm:$0xff] }
 0x160   : > { %v1930_v8 = vadd.f32 %v1929_v24, %v1417_v61  ;;  %v1788_v21 = vadd.f32 %v1787_v42, %v1276_v46  ;;  %v2058_v6 = vadd.f32 %v2057_v0, %v1544_v9  ;;  %v1158_v14 = vmul.f32 %v10783_v58, %v6290_v26  ;;  %v10791_v46 = vld [vmem:[#allocation85_spill] sm:$0xff]  ;;  %v745_v9 = vld [vmem:[%s5181_s6 + $0xf58] sm:$0xff]  ;;  %v746_v0 = vld [vmem:[%s5181_s6 + $0xf60] sm:$0xff] }
 0x161   : > { %v1667_v61 = vadd.f32 %v1666_v25, %v1156_v11  ;;  %v1421_v45 = vmul.f32 %v10790_v29, %v617_v5  ;;  %v1279_v49 = vmul.f32 %v10776_v50, %v475_v23  ;;  %v1547_v16 = vmul.f32 %v10788_v33, %v743_v22  ;;  %v620_v32 = vld [vmem:[%s5181_s6 + $0xb70] sm:$0xff]  ;;  %v10792_v42 = vld [vmem:[#allocation86_spill] sm:$0xff] }
 0x162   : > { %v1931_v44 = vadd.f32 %v1930_v8, %v1418_v34  ;;  %v1789_v31 = vadd.f32 %v1788_v21, %v1277_v47  ;;  %v2059_v28 = vadd.f32 %v2058_v6, %v1545_v13  ;;  %v1159_v34 = vmul.f32 %v10784_v59, %v6301_v30  ;;  %v478_v47 = vld [vmem:[%s5181_s6 + $0x700] sm:$0xff]  ;;  %v621_v23 = vld [vmem:[%s5181_s6 + $0xb78] sm:$0xff]  ;;  %v479_v21 = vld [vmem:[%s5181_s6 + $0x708] sm:$0xff] }
 0x163   : > { %v1668_v24 = vadd.f32 %v1667_v61, %v1157_v18  ;;  %v1422_v19 = vmul.f32 %v10791_v46, %v618_v27  ;;  %v1280_v50 = vmul.f32 %v10777_v51, %v476_v43  ;;  %v1548_v20 = vmul.f32 %v10789_v4, %v744_v7  ;;  %v6334_v18 = vld [vmem:[%s5181_s6 + $0x340] sm:$0xff]  ;;  %v6345_v61 = vld [vmem:[%s5181_s6 + $0x348] sm:$0xff] }
 0x164   : > { %v1932_v15 = vadd.f32 %v1931_v44, %v1419_v36  ;;  %v1790_v11 = vadd.f32 %v1789_v31, %v1278_v48  ;;  %v2060_v36 = vadd.f32 %v2059_v28, %v1546_v38  ;;  %v1160_v8 = vmul.f32 %v10785_v60, %v6312_v63  ;;  %v10793_v27 = vld [vmem:[#allocation87_spill] sm:$0xff] }
 0x165   : > { %v1669_v41 = vadd.f32 %v1668_v24, %v1158_v14  ;;  %v1423_v5 = vmul.f32 %v10792_v42, %v619_v52  ;;  %v1281_v51 = vmul.f32 %v10778_v53, %v477_v2  ;;  %v1161_v22 = vmul.f32 %v10786_v62, %v6323_v17  ;;  %v747_v14 = vld [vmem:[%s5181_s6 + $0xf68] sm:$0xff]  ;;  %v480_v52 = vld [vmem:[%s5181_s6 + $0x710] sm:$0xff] }
 0x166   : > { %v1933_v3 = vadd.f32 %v1932_v15, %v1420_v37  ;;  %v1791_v25 = vadd.f32 %v1790_v11, %v1279_v49  ;;  %v1549_v37 = vmul.f32 %v10790_v29, %v745_v9  ;;  %v2061_v44 = vadd.f32 %v2060_v36, %v1547_v16  ;;  %v10794_v16 = vld [vmem:[#allocation88_spill] sm:$0xff]  ;;  %v748_v24 = vld [vmem:[%s5181_s6 + $0xf70] sm:$0xff] }
 0x167   : > { %v1670_v48 = vadd.f32 %v1669_v41, %v1159_v34  ;;  %v1424_v38 = vmul.f32 %v10793_v27, %v620_v32  ;;  %v1282_v53 = vmul.f32 %v10779_v54, %v478_v47  ;;  %v1550_v15 = vmul.f32 %v10791_v46, %v746_v0  ;;  %v6356_v2 = vld [vmem:[%s5181_s6 + $0x350] sm:$0xff]  ;;  %v749_v47 = vld [vmem:[%s5181_s6 + $0xf78] sm:$0xff] }
 0x168   : > { %v1934_v13 = vadd.f32 %v1933_v3, %v1421_v45  ;;  %v1792_v43 = vadd.f32 %v1791_v25, %v1280_v50  ;;  %v622_v45 = vld [vmem:[%s5181_s6 + $0xb80] sm:$0xff]  ;;  %v2062_v7 = vadd.f32 %v2061_v44, %v1548_v20  ;;  %v1162_v49 = vmul.f32 %v10787_v35, %v6334_v18  ;;  %v623_v3 = vld [vmem:[%s5181_s6 + $0xb88] sm:$0xff]  ;;  %v481_v20 = vld [vmem:[%s5181_s6 + $0x718] sm:$0xff] }
 0x169   : > { %v1671_v31 = vadd.f32 %v1670_v48, %v1160_v8  ;;  %v1425_v28 = vmul.f32 %v10794_v16, %v621_v23  ;;  %v1283_v54 = vmul.f32 %v10780_v55, %v479_v21  ;;  %v1551_v9 = vmul.f32 %v10792_v42, %v747_v14  ;;  %v10795_v36 = vld [vmem:[#allocation89_spill] sm:$0xff]  ;;  %v6375_v44 = vld [vmem:[%s5181_s6 + $0x720] sm:$0xff] }
 0x16a   : > { %v1935_v6 = vadd.f32 %v1934_v13, %v1422_v19  ;;  %v1793_v19 = vadd.f32 %v1792_v43, %v1281_v51  ;;  %v2063_v50 = vadd.f32 %v2062_v7, %v1549_v37  ;;  %v1163_v11 = vmul.f32 %v10788_v33, %v6345_v61  ;;  %v624_v0 = vld [vmem:[%s5181_s6 + $0xb90] sm:$0xff]  ;;  %10796 = vst [vmem:[#allocation11_spill] sm:$0xff] %v6375_v44 }
 0x16b   : > { %v1672_v32 = vadd.f32 %v1671_v31, %v1161_v22  ;;  %v1426_v8 = vmul.f32 %v10795_v36, %v622_v45  ;;  %v1284_v55 = vmul.f32 %v10781_v56, %v480_v52  ;;  %v1552_v51 = vmul.f32 %v10793_v27, %v748_v24  ;;  %v10797_v22 = vld [vmem:[#allocation90_spill] sm:$0xff]  ;;  %v6380_v56 = vld [vmem:[%s5181_s6 + $0x360] sm:$0xff] }
 0x16c   : > { %v1936_v34 = vadd.f32 %v1935_v6, %v1423_v5  ;;  %v6367_v5 = vld [vmem:[%s5181_s6 + $0x358] sm:$0xff]  ;;  %v1794_v13 = vadd.f32 %v1793_v19, %v1282_v53  ;;  %v2064_v25 = vadd.f32 %v2063_v50, %v1550_v15  ;;  %v1164_v23 = vmul.f32 %v10789_v4, %v6356_v2  ;;  %v10799_v31 = vld [vmem:[#allocation91_spill] sm:$0xff] }
 0x16d   : > { %v1673_v37 = vadd.f32 %v1672_v32, %v1162_v49  ;;  %v1427_v48 = vmul.f32 %v10797_v22, %v623_v3  ;;  %v1285_v6 = vmul.f32 %v10782_v57, %v481_v20  ;;  %v625_v53 = vld [vmem:[%s5181_s6 + $0xb98] sm:$0xff]  ;;  %v1553_v43 = vmul.f32 %v10794_v16, %v749_v47  ;;  %v6388_v49 = vld [vmem:[%s5181_s6 + $0x728] sm:$0xff]  ;;  %v626_v19 = vld [vmem:[%s5181_s6 + $0xba0] sm:$0xff] }
 0x16e   : > { %v1937_v41 = vadd.f32 %v1936_v34, %v1424_v38  ;;  %v750_v38 = vld [vmem:[%s5181_s6 + $0xf80] sm:$0xff]  ;;  %v1795_v14 = vadd.f32 %v1794_v13, %v1283_v54  ;;  %v2065_v45 = vadd.f32 %v2064_v25, %v1551_v9  ;;  %v1165_v15 = vmul.f32 %v10790_v29, %v6367_v5  ;;  %10798 = vst [vmem:[#allocation12_spill] sm:$0xff] %v6388_v49  ;;  %v751_v34 = vld [vmem:[%s5181_s6 + $0xf88] sm:$0xff]  ;;  %v6402_v32 = vld [vmem:[%s5181_s6 + $0x730] sm:$0xff] }
 0x16f   : > { %v1674_v7 = vadd.f32 %v1673_v37, %v1163_v11  ;;  %v1428_v52 = vmul.f32 %v10799_v31, %v624_v0  ;;  %v6393_v57 = vld [vmem:[%s5181_s6 + $0x368] sm:$0xff]  ;;  %v1286_v24 = vmul.f32 %v10783_v58, %v6375_v44  ;;  %v1554_v3 = vmul.f32 %v10795_v36, %v750_v38  ;;  %10800 = vst [vmem:[#allocation13_spill] sm:$0xff] %v6402_v32  ;;  %v752_v47 = vld [vmem:[%s5181_s6 + $0xf90] sm:$0xff]  ;;  %v757_v44 = vld [vmem:[%s5181_s6 + $0xfb8] sm:$0xff] }
 0x170   : > { %v1938_v21 = vadd.f32 %v1937_v41, %v1425_v28  ;;  %v1796_v54 = vadd.f32 %v1795_v14, %v1284_v55  ;;  %v2066_v9 = vadd.f32 %v2065_v45, %v1552_v51  ;;  %v1166_v50 = vmul.f32 %v10791_v46, %v6380_v56  ;;  %v10801_v20 = vld [vmem:[#allocation92_spill] sm:$0xff]  ;;  %v6407_v58 = vld [vmem:[%s5181_s6 + $0x370] sm:$0xff] }
 0x171   : > { %v1675_v11 = vadd.f32 %v1674_v7, %v1164_v23  ;;  %v1287_v55 = vmul.f32 %v10784_v59, %v6388_v49  ;;  %v627_v0 = vld [vmem:[%s5181_s6 + $0xba8] sm:$0xff]  ;;  %v1555_v51 = vmul.f32 %v10797_v22, %v751_v34  ;;  %v1167_v23 = vmul.f32 %v10792_v42, %v6393_v57  ;;  %v6421_v59 = vld [vmem:[%s5181_s6 + $0x378] sm:$0xff]  ;;  %v756_v49 = vld [vmem:[%s5181_s6 + $0xfb0] sm:$0xff] }
 0x172   : > { %v1939_v28 = vadd.f32 %v1938_v21, %v1426_v8  ;;  %v1429_v8 = vmul.f32 %v10801_v20, %v625_v53  ;;  %v1797_v13 = vadd.f32 %v1796_v54, %v1285_v6  ;;  %v2067_v25 = vadd.f32 %v2066_v9, %v1553_v43  ;;  %v6416_v21 = vld [vmem:[%s5181_s6 + $0x738] sm:$0xff]  ;;  %v628_v43 = vld [vmem:[%s5181_s6 + $0xbb0] sm:$0xff]  ;;  %v6430_v54 = vld [vmem:[%s5181_s6 + $0x740] sm:$0xff] }
 0x173   : > { %v1676_v37 = vadd.f32 %v1675_v11, %v1165_v15  ;;  %10802 = vst [vmem:[#allocation14_spill] sm:$0xff] %v6416_v21  ;;  %v753_v53 = vld [vmem:[%s5181_s6 + $0xf98] sm:$0xff]  ;;  %v1288_v6 = vmul.f32 %v10785_v60, %v6402_v32  ;;  %v1556_v7 = vmul.f32 %v10799_v31, %v752_v47  ;;  %v754_v11 = vld [vmem:[%s5181_s6 + $0xfa0] sm:$0xff]  ;;  %v755_v32 = vld [vmem:[%s5181_s6 + $0xfa8] sm:$0xff] }
 0x174   : > { %v1940_v41 = vadd.f32 %v1939_v28, %v1427_v48  ;;  %v10803_v48 = vld [vmem:[#allocation93_spill] sm:$0xff]  ;;  %v1798_v45 = vadd.f32 %v1797_v13, %v1286_v24  ;;  %v2068_v15 = vadd.f32 %v2067_v25, %v1554_v3  ;;  %v1168_v28 = vmul.f32 %v10793_v27, %v6407_v58  ;;  %10804 = vst [vmem:[#allocation15_spill] sm:$0xff] %v6430_v54  ;;  %v6435_v60 = vld [vmem:[%s5181_s6 + $0x380] sm:$0xff]  ;;  %v629_v3 = vld [vmem:[%s5181_s6 + $0xbb8] sm:$0xff] }
 0x175   : > { %v1430_v38 = vmul.f32 %v10803_v48, %v626_v19  ;;  %v1677_v34 = vadd.f32 %v1676_v37, %v1166_v50  ;;  %10806 = vst [vmem:[#allocation16_spill] sm:$0xff] %v6435_v60  ;;  %v1289_v24 = vmul.f32 %v10786_v62, %v6416_v21  ;;  %v1557_v47 = vmul.f32 %v10801_v20, %v753_v53  ;;  %v6449_v62 = vld [vmem:[%s5181_s6 + $0x388] sm:$0xff] }
 0x176   : > { %v1941_v14 = vadd.f32 %v1940_v41, %v1428_v52  ;;  %v10805_v52 = vld [vmem:[#allocation94_spill] sm:$0xff]  ;;  %v1799_v41 = vadd.f32 %v1798_v45, %v1287_v55  ;;  %v2069_v50 = vadd.f32 %v2068_v15, %v1555_v51  ;;  %v1169_v13 = vmul.f32 %v10794_v16, %v6421_v59  ;;  %10809 = vst [vmem:[#allocation18_spill] sm:$0xff] %v6449_v62  ;;  %v630_v51 = vld [vmem:[%s5181_s6 + $0xbc0] sm:$0xff] }
 0x177   : > { %v1431_v19 = vmul.f32 %v10805_v52, %v627_v0  ;;  %v1678_v25 = vadd.f32 %v1677_v34, %v1167_v23  ;;  %v6444_v0 = vld [vmem:[%s5181_s6 + $0x748] sm:$0xff]  ;;  %v1290_v55 = vmul.f32 %v10787_v35, %v6430_v54  ;;  %v1558_v45 = vmul.f32 %v10803_v48, %v754_v11  ;;  %v6463_v35 = vld [vmem:[%s5181_s6 + $0x390] sm:$0xff] }
 0x178   : > { %v1942_v9 = vadd.f32 %v1941_v14, %v1429_v8  ;;  %10807 = vst [vmem:[#allocation17_spill] sm:$0xff] %v6444_v0  ;;  %v10808_v8 = vld [vmem:[#allocation95_spill] sm:$0xff]  ;;  %v1800_v53 = vadd.f32 %v1799_v41, %v1288_v6  ;;  %v2070_v23 = vadd.f32 %v2069_v50, %v1556_v7  ;;  %v1170_v15 = vmul.f32 %v10795_v36, %v6435_v60  ;;  %v631_v7 = vld [vmem:[%s5181_s6 + $0xbc8] sm:$0xff] }
 0x179   : > { %v1432_v37 = vmul.f32 %v10808_v8, %v628_v43  ;;  %v1679_v34 = vadd.f32 %v1678_v25, %v1168_v28  ;;  %v6458_v43 = vld [vmem:[%s5181_s6 + $0x750] sm:$0xff]  ;;  %10812 = vst [vmem:[#allocation20_spill] sm:$0xff] %v6463_v35  ;;  %v1291_v6 = vmul.f32 %v10788_v33, %v6444_v0  ;;  %v1559_v41 = vmul.f32 %v10805_v52, %v755_v32  ;;  %v6477_v33 = vld [vmem:[%s5181_s6 + $0x398] sm:$0xff]  ;;  %v6547_v60 = vld [vmem:[%s5181_s6 + $0x3c0] sm:$0xff] }
 0x17a   : > { %v1943_v14 = vadd.f32 %v1942_v9, %v1430_v38  ;;  %10810 = vst [vmem:[#allocation19_spill] sm:$0xff] %v6458_v43  ;;  %v10811_v38 = vld [vmem:[#allocation96_spill] sm:$0xff]  ;;  %v1801_v11 = vadd.f32 %v1800_v53, %v1289_v24  ;;  %v2071_v28 = vadd.f32 %v2070_v23, %v1557_v47  ;;  %v1171_v50 = vmul.f32 %v10797_v22, %v6449_v62  ;;  %v632_v47 = vld [vmem:[%s5181_s6 + $0xbd0] sm:$0xff]  ;;  %v758_v62 = vld [vmem:[%s5181_s6 + $0xfc0] sm:$0xff] }
 0x17b   : > { %v1433_v9 = vmul.f32 %v10811_v38, %v629_v3  ;;  %v1680_v25 = vadd.f32 %v1679_v34, %v1169_v13  ;;  %v6472_v3 = vld [vmem:[%s5181_s6 + $0x758] sm:$0xff]  ;;  %10815 = vst [vmem:[#allocation22_spill] sm:$0xff] %v6477_v33  ;;  %v1292_v32 = vmul.f32 %v10789_v4, %v6458_v43  ;;  %v1560_v53 = vmul.f32 %v10808_v8, %v756_v49  ;;  %v6491_v4 = vld [vmem:[%s5181_s6 + $0x3a0] sm:$0xff] }
 0x17c   : > { %v1944_v21 = vadd.f32 %v1943_v14, %v1431_v19  ;;  %10813 = vst [vmem:[#allocation21_spill] sm:$0xff] %v6472_v3  ;;  %v10814_v19 = vld [vmem:[#allocation97_spill] sm:$0xff]  ;;  %v1802_v24 = vadd.f32 %v1801_v11, %v1290_v55  ;;  %v2072_v13 = vadd.f32 %v2071_v28, %v1558_v45  ;;  %v1172_v23 = vmul.f32 %v10799_v31, %v6463_v35  ;;  %v633_v45 = vld [vmem:[%s5181_s6 + $0xbd8] sm:$0xff]  ;;  %v759_v35 = vld [vmem:[%s5181_s6 + $0xfc8] sm:$0xff] }
 0x17d   : > { %v1434_v14 = vmul.f32 %v10814_v19, %v630_v51  ;;  %v1681_v34 = vadd.f32 %v1680_v25, %v1170_v15  ;;  %v6486_v51 = vld [vmem:[%s5181_s6 + $0x760] sm:$0xff]  ;;  %10818 = vst [vmem:[#allocation24_spill] sm:$0xff] %v6491_v4  ;;  %v1293_v49 = vmul.f32 %v10790_v29, %v6472_v3  ;;  %v1561_v11 = vmul.f32 %v10811_v38, %v757_v44  ;;  %v6505_v29 = vld [vmem:[%s5181_s6 + $0x3a8] sm:$0xff] }
 0x17e   : > { %v1945_v54 = vadd.f32 %v1944_v21, %v1432_v37  ;;  %10816 = vst [vmem:[#allocation23_spill] sm:$0xff] %v6486_v51  ;;  %v10817_v21 = vld [vmem:[#allocation98_spill] sm:$0xff]  ;;  %v1803_v55 = vadd.f32 %v1802_v24, %v1291_v6  ;;  %v2073_v15 = vadd.f32 %v2072_v13, %v1559_v41  ;;  %v1173_v28 = vmul.f32 %v10801_v20, %v6477_v33  ;;  %v634_v41 = vld [vmem:[%s5181_s6 + $0xbe0] sm:$0xff]  ;;  %v760_v33 = vld [vmem:[%s5181_s6 + $0xfd0] sm:$0xff] }
 0x17f   : > { %v1435_v37 = vmul.f32 %v10817_v21, %v631_v7  ;;  %v1682_v25 = vadd.f32 %v1681_v34, %v1171_v50  ;;  %v6500_v7 = vld [vmem:[%s5181_s6 + $0x768] sm:$0xff]  ;;  %10821 = vst [vmem:[#allocation26_spill] sm:$0xff] %v6505_v29  ;;  %v1294_v44 = vmul.f32 %v10791_v46, %v6486_v51  ;;  %v1562_v24 = vmul.f32 %v10814_v19, %v758_v62  ;;  %v6519_v46 = vld [vmem:[%s5181_s6 + $0x3b0] sm:$0xff] }
 0x180   : > { %v1946_v0 = vadd.f32 %v1945_v54, %v1433_v9  ;;  %10819 = vst [vmem:[#allocation25_spill] sm:$0xff] %v6500_v7  ;;  %v10820_v54 = vld [vmem:[#allocation99_spill] sm:$0xff]  ;;  %v1804_v6 = vadd.f32 %v1803_v55, %v1292_v32  ;;  %v2074_v50 = vadd.f32 %v2073_v15, %v1560_v53  ;;  %v1174_v13 = vmul.f32 %v10803_v48, %v6491_v4  ;;  %v635_v53 = vld [vmem:[%s5181_s6 + $0xbe8] sm:$0xff]  ;;  %v761_v4 = vld [vmem:[%s5181_s6 + $0xfd8] sm:$0xff] }
 0x181   : > { %v1436_v9 = vmul.f32 %v10820_v54, %v632_v47  ;;  %v1683_v34 = vadd.f32 %v1682_v25, %v1172_v23  ;;  %v6514_v47 = vld [vmem:[%s5181_s6 + $0x770] sm:$0xff]  ;;  %v1295_v62 = vmul.f32 %v10792_v42, %v6500_v7  ;;  %v1563_v55 = vmul.f32 %v10817_v21, %v759_v35  ;;  %v6533_v42 = vld [vmem:[%s5181_s6 + $0x3b8] sm:$0xff] }
 0x182   : > { %v1947_v43 = vadd.f32 %v1946_v0, %v1434_v14  ;;  %10822 = vst [vmem:[#allocation27_spill] sm:$0xff] %v6514_v47  ;;  %v10823_v0 = vld [vmem:[#allocation100_spill] sm:$0xff]  ;;  %v1805_v32 = vadd.f32 %v1804_v6, %v1293_v49  ;;  %v2075_v23 = vadd.f32 %v2074_v50, %v1561_v11  ;;  %v1175_v15 = vmul.f32 %v10805_v52, %v6505_v29  ;;  %v636_v11 = vld [vmem:[%s5181_s6 + $0xbf0] sm:$0xff]  ;;  %v762_v29 = vld [vmem:[%s5181_s6 + $0xfe0] sm:$0xff] }
 0x183   : > { %v1437_v14 = vmul.f32 %v10823_v0, %v633_v45  ;;  %v1684_v25 = vadd.f32 %v1683_v34, %v1173_v28  ;;  %v6528_v45 = vld [vmem:[%s5181_s6 + $0x778] sm:$0xff]  ;;  %v1296_v35 = vmul.f32 %v10793_v27, %v6514_v47  ;;  %v1564_v6 = vmul.f32 %v10820_v54, %v760_v33  ;;  %v763_v47 = vld [vmem:[%s5181_s6 + $0xfe8] sm:$0xff] }
 0x184   : > { %v1948_v3 = vadd.f32 %v1947_v43, %v1435_v37  ;;  %10824 = vst [vmem:[#allocation28_spill] sm:$0xff] %v6528_v45  ;;  %v10825_v43 = vld [vmem:[#allocation101_spill] sm:$0xff]  ;;  %v1806_v49 = vadd.f32 %v1805_v32, %v1294_v44  ;;  %v2076_v28 = vadd.f32 %v2075_v23, %v1562_v24  ;;  %v1176_v50 = vmul.f32 %v10808_v8, %v6519_v46  ;;  %v6552_v44 = vld [vmem:[%s5181_s6 + $0xbf8] sm:$0xff] }
 0x185   : > { %v1438_v37 = vmul.f32 %v10825_v43, %v634_v41  ;;  %v1685_v34 = vadd.f32 %v1684_v25, %v1174_v13  ;;  %v6542_v41 = vld [vmem:[%s5181_s6 + $0x780] sm:$0xff]  ;;  %v1297_v27 = vmul.f32 %v10794_v16, %v6528_v45  ;;  %10827 = vst [vmem:[#allocation29_spill] sm:$0xff] %v6552_v44  ;;  %v1565_v24 = vmul.f32 %v10823_v0, %v761_v4  ;;  %v6563_v16 = vld [vmem:[%s5181_s6 + $0x3c8] sm:$0xff]  ;;  %v6577_v45 = vld [vmem:[%s5181_s6 + $0x3d0] sm:$0xff] }
 0x186   : > { %v1949_v51 = vadd.f32 %v1948_v3, %v1436_v9  ;;  %v10826_v3 = vld [vmem:[#allocation102_spill] sm:$0xff]  ;;  %v1807_v33 = vadd.f32 %v1806_v49, %v1295_v62  ;;  %v2077_v13 = vadd.f32 %v2076_v28, %v1563_v55  ;;  %v1177_v32 = vmul.f32 %v10811_v38, %v6533_v42 }
 0x187   : > { %v1439_v9 = vmul.f32 %v10826_v3, %v635_v53  ;;  %v1686_v23 = vadd.f32 %v1685_v34, %v1175_v15  ;;  %v1298_v62 = vmul.f32 %v10795_v36, %v6542_v41  ;;  %v1566_v4 = vmul.f32 %v10825_v43, %v762_v29  ;;  %v6571_v34 = vld [vmem:[%s5181_s6 + $0x790] sm:$0xff] }
 0x188   : > { %v1950_v7 = vadd.f32 %v1949_v51, %v1437_v14  ;;  %v6558_v51 = vld [vmem:[%s5181_s6 + $0x788] sm:$0xff]  ;;  %v10828_v14 = vld [vmem:[#allocation103_spill] sm:$0xff]  ;;  %v1808_v49 = vadd.f32 %v1807_v33, %v1296_v35  ;;  %v2078_v55 = vadd.f32 %v2077_v13, %v1564_v6  ;;  %v1178_v15 = vmul.f32 %v10814_v19, %v6547_v60  ;;  %v6585_v13 = vld [vmem:[%s5181_s6 + $0x798] sm:$0xff] }
 0x189   : > { %v1440_v53 = vmul.f32 %v10828_v14, %v636_v11  ;;  %v1687_v28 = vadd.f32 %v1686_v23, %v1176_v50  ;;  %v764_v11 = vld [vmem:[%s5181_s6 + $0xff0] sm:$0xff]  ;;  %v1299_v36 = vmul.f32 %v10797_v22, %v6558_v51  ;;  %v1567_v35 = vmul.f32 %v10826_v3, %v763_v47 }
 0x18a   : > { %v1951_v25 = vadd.f32 %v1950_v7, %v1438_v37  ;;  %v1441_v7 = vmul.f32 %v5562_v1, %v6552_v44  ;;  %v1809_v29 = vadd.f32 %v1808_v49, %v1297_v27  ;;  %v2079_v6 = vadd.f32 %v2078_v55, %v1565_v24  ;;  %v765_v44 = vld [vmem:[%s5181_s6 + $0xff8] sm:$0xff] }
 0x18b   : > { %v1179_v50 = vmul.f32 %v10817_v21, %v6563_v16  ;;  %v1688_v33 = vadd.f32 %v1687_v28, %v1177_v32  ;;  %v1568_v47 = vmul.f32 %v10828_v14, %v764_v11  ;;  %v1180_v24 = vmul.f32 %v10820_v54, %v6577_v45  ;;  %v6597_v32 = vld [vmem:[%s5181_s6 + $0x7a0] sm:$0xff]  ;;  %v6607_v11 = vld [vmem:[%s5181_s6 + $0x7a8] sm:$0xff] }
 0x18c   : > { %v1952_v37 = vadd.f32 %v1951_v25, %v1439_v9  ;;  %v6588_v9 = vld [vmem:[%s5181_s6 + $0x3d8] sm:$0xff]  ;;  %v1300_v25 = vmul.f32 %v10799_v31, %v6571_v34  ;;  %v1810_v22 = vadd.f32 %v1809_v29, %v1298_v62  ;;  %v2080_v27 = vadd.f32 %v2079_v6, %v1566_v4 }
 0x18d   : > { %v1689_v49 = vadd.f32 %v1688_v33, %v1178_v15  ;;  %v1301_v31 = vmul.f32 %v10801_v20, %v6585_v13  ;;  %v1569_v15 = vmul.f32 %v5562_v1, %v765_v44  ;;  %v1302_v29 = vmul.f32 %v10803_v48, %v6597_v32  ;;  %v6621_v33 = vld [vmem:[%s5181_s6 + $0x3f0] sm:$0xff] }
 0x18e   : > { %v1953_v23 = vadd.f32 %v1952_v37, %v1440_v53  ;;  %v6600_v53 = vld [vmem:[%s5181_s6 + $0x3e0] sm:$0xff]  ;;  %v1811_v62 = vadd.f32 %v1810_v22, %v1299_v36  ;;  %v2081_v28 = vadd.f32 %v2080_v27, %v1567_v35  ;;  %v1181_v37 = vmul.f32 %v10823_v0, %v6588_v9  ;;  %v6631_v27 = vld [vmem:[%s5181_s6 + $0x3f8] sm:$0xff] }
 0x18f   : > { %v1690_v4 = vadd.f32 %v1689_v49, %v1179_v50  ;;  %v1182_v36 = vmul.f32 %v10825_v43, %v6600_v53  ;;  %v6618_v50 = vld [vmem:[%s5181_s6 + $0x7b0] sm:$0xff] }
 0x190   : > { %v1954_v55 = vadd.f32 %v1953_v23, %v1441_v7  ;;  %v6611_v7 = vld [vmem:[%s5181_s6 + $0x3e8] sm:$0xff]  ;;  %v1812_v6 = vadd.f32 %v1811_v62, %v1300_v25  ;;  %v2082_v20 = vadd.f32 %v2081_v28, %v1568_v47  ;;  %v1303_v23 = vmul.f32 %v10805_v52, %v6607_v11  ;;  %v6628_v25 = vld [vmem:[%s5181_s6 + $0x7b8] sm:$0xff] }
 0x191   : > { %v1691_v35 = vadd.f32 %v1690_v4, %v1180_v24  ;;  %v1183_v22 = vmul.f32 %v10826_v3, %v6611_v7  ;;  %v1304_v24 = vmul.f32 %v10808_v8, %v6618_v50  ;;  %v1305_v62 = vmul.f32 %v10811_v38, %v6628_v25 }
 0x192   : > { %1955 = vadd.xlane.f32.xlu1 %v1954_v55  ;;  %v1813_v44 = vadd.f32 %v1812_v6, %v1301_v31  ;;  %v2083_v47 = vadd.f32 %v2082_v20, %v1569_v15  ;;  %v1184_v55 = vmul.f32 %v10828_v14, %v6621_v33  ;;  %v6638_v31 = vld [vmem:[%s5181_s6 + $0x7c0] sm:$0xff]  ;;  %v6645_v15 = vld [vmem:[%s5181_s6 + $0x7c8] sm:$0xff]  ;;  %v6650_v20 = vld [vmem:[%s5181_s6 + $0x7d0] sm:$0xff] }
 0x193   : > { %v1692_v48 = vadd.f32 %v1691_v35, %v1181_v37  ;;  %v1185_v37 = vmul.f32 %v5562_v1, %v6631_v27  ;;  %v1306_v8 = vmul.f32 %v10814_v19, %v6638_v31  ;;  %v1307_v38 = vmul.f32 %v10817_v21, %v6645_v15 }
 0x194   : > { %v1814_v49 = vadd.f32 %v1813_v44, %v1302_v29  ;;  %v1308_v44 = vmul.f32 %v10820_v54, %v6650_v20 }
 0x195   : > { %v1693_v52 = vadd.f32 %v1692_v48, %v1182_v36  ;;  %v6660_v48 = vld [vmem:[%s5181_s6 + $0x7e0] sm:$0xff] }
 0x196   : > { %v1815_v28 = vadd.f32 %v1814_v49, %v1303_v23  ;;  %v6655_v23 = vld [vmem:[%s5181_s6 + $0x7d8] sm:$0xff]  ;;  %v1310_v21 = vmul.f32 %v10825_v43, %v6660_v48 }
 0x197   : > { %v1694_v4 = vadd.f32 %v1693_v52, %v1183_v22  ;;  %v1309_v19 = vmul.f32 %v10823_v0, %v6655_v23 }
 0x198   : > { %v1816_v29 = vadd.f32 %v1815_v28, %v1304_v24  ;;  %v6665_v24 = vld [vmem:[%s5181_s6 + $0x7e8] sm:$0xff] }
 0x199   : > { %v1695_v6 = vadd.f32 %v1694_v4, %v1184_v55  ;;  %v6670_v55 = vld [vmem:[%s5181_s6 + $0x7f0] sm:$0xff]  ;;  %v1311_v54 = vmul.f32 %v10826_v3, %v6665_v24 }
 0x19a   : > { %2084 = vadd.xlane.f32.xlu1 %v2083_v47  ;;  %v1817_v36 = vadd.f32 %v1816_v29, %v1305_v62  ;;  %v6675_v62 = vld [vmem:[%s5181_s6 + $0x7f8] sm:$0xff]  ;;  %v1312_v0 = vmul.f32 %v10828_v14, %v6670_v55  ;;  %v5075_v29 = vmov 0   ;;  %v768_v3 = vld [vmem:[%s5195_s9 + $0x10] sm:$0xff] }
 0x19b   : > { %v1696_v35 = vadd.f32 %v1695_v6, %v1185_v37  ;;  %v1313_v37 = vmul.f32 %v5562_v1, %v6675_v62  ;;  %4487 = vset.pattern.permute.xlu0 %v5075_v29  ;;  %4488 = vset.pattern.permute.xlu1 %v5075_v29  ;;  %v769_v14 = vld [vmem:[%s5195_s9 + $0x18] sm:$0xff] }
 0x19c   : > { %v1818_v22 = vadd.f32 %v1817_v36, %v1306_v8  ;;  %4486 = vset.pattern.permute.xlu2 %v5075_v29  ;;  %v4493_v29 = vld [vmem:[%s5181_s6 + $0x20] sm:$0xff] }
 0x19d   : > { %1697 = vadd.xlane.f32.xlu0 %v1696_v35  ;;  %v766_v35 = vld [vmem:[%s5195_s9] sm:$0xff] }
 0x19e   : > { %v1819_v47 = vadd.f32 %v1818_v22, %v1307_v38 }
 0x1a0   : > { %v1820_v49 = vadd.f32 %v1819_v47, %v1308_v44 }
 0x1a2   : > { %v1821_v52 = vadd.f32 %v1820_v49, %v1309_v19  ;;  %v767_v19 = vld [vmem:[%s5195_s9 + $0x8] sm:$0xff] }
 0x1a4   : > { %v1822_v28 = vadd.f32 %v1821_v52, %v1310_v21 }
 0x1a6   : > { %v1823_v4 = vadd.f32 %v1822_v28, %v1311_v54  ;;  %v4489_v54 = vld [vmem:[%s5181_s6] sm:$0xff] }
 0x1a8   : > { %v1824_v43 = vadd.f32 %v1823_v4, %v1312_v0  ;;  %v4490_v0 = vld [vmem:[%s5181_s6 + $0x8] sm:$0xff] }
 0x1aa   : > { %v1825_v8 = vadd.f32 %v1824_v43, %v1313_v37  ;;  %v4491_v37 = vld [vmem:[%s5181_s6 + $0x10] sm:$0xff]  ;;  %v4492_v43 = vld [vmem:[%s5181_s6 + $0x18] sm:$0xff] }
 0x1ac   : > { %1826 = vadd.xlane.f32.xlu0 %v1825_v8 }
 0x205   : > { %v1956_v6 = vpop.xlane.xlu1 %1955 }
 0x206   : > { %v2088_v38 = vsub.f32 %v768_v3, %v1956_v6  ;;  %v4494_v6 = vld [vmem:[%s5181_s6 + $0x28] sm:$0xff] }
 0x208   : > { %2118 = vperm.xlu0 %4487, %v2088_v38  }
 0x20d   : > { %v2085_v36 = vpop.xlane.xlu1 %2084 }
 0x20e   : > { %v2089_v1 = vsub.f32 %v769_v14, %v2085_v36  ;;  %v4495_v14 = vld [vmem:[%s5181_s6 + $0x30] sm:$0xff] }
 0x210   : > { %2123 = vperm.xlu1 %4488, %v2089_v1   ;;  %v1698_v44 = vpop.xlane.xlu0 %1697  ;;  %v4496_v1 = vld [vmem:[%s5181_s6 + $0x38] sm:$0xff] }
 0x211   : > { %v2086_v22 = vsub.f32 %v766_v35, %v1698_v44  ;;  %v4497_v44 = vld [vmem:[%s5181_s6 + $0x40] sm:$0xff] }
 0x213   : > { %2108 = vperm.xlu2 %4486, %v2086_v22  }
 0x21f   : > { %v1827_v47 = vpop.xlane.xlu0 %1826 }
 0x220   : > { %v2087_v21 = vsub.f32 %v767_v19, %v1827_v47  ;;  %v4498_v19 = vld [vmem:[%s5181_s6 + $0x48] sm:$0xff] }
 0x222   : > { %2113 = vperm.xlu2 %4486, %v2087_v21   ;;  %v4499_v21 = vld [vmem:[%s5181_s6 + $0x50] sm:$0xff] }
 0x26d   : > { %v6685_v49 = vpop.permute.xlu2 %2108 }
 0x26e   : > { %v6689_v52 = vmul.f32 %v4489_v54, %v6685_v49  ;;  %v6693_v28 = vmul.f32 %v4490_v0, %v6685_v49  ;;  %v6697_v4 = vmul.f32 %v4491_v37, %v6685_v49  ;;  %v6701_v8 = vmul.f32 %v4492_v43, %v6685_v49  ;;  %v4500_v0 = vld [vmem:[%s5181_s6 + $0x58] sm:$0xff]  ;;  %v4501_v43 = vld [vmem:[%s5181_s6 + $0x60] sm:$0xff] }
 0x26f   : > { %v6705_v3 = vmul.f32 %v4493_v29, %v6685_v49  ;;  %v6709_v38 = vmul.f32 %v4494_v6, %v6685_v49  ;;  %v6713_v36 = vmul.f32 %v4495_v14, %v6685_v49  ;;  %v6717_v35 = vmul.f32 %v4496_v1, %v6685_v49  ;;  %v4502_v6 = vld [vmem:[%s5181_s6 + $0x68] sm:$0xff]  ;;  %v4503_v1 = vld [vmem:[%s5181_s6 + $0x70] sm:$0xff] }
 0x270   : > { %v6721_v22 = vmul.f32 %v4497_v44, %v6685_v49  ;;  %v6725_v47 = vmul.f32 %v4498_v19, %v6685_v49  ;;  %v6729_v54 = vmul.f32 %v4499_v21, %v6685_v49  ;;  %v6733_v37 = vmul.f32 %v4500_v0, %v6685_v49  ;;  %v4504_v19 = vld [vmem:[%s5181_s6 + $0x78] sm:$0xff]  ;;  %v4505_v0 = vld [vmem:[%s5181_s6 + $0x80] sm:$0xff] }
 0x271   : > { %v6737_v29 = vmul.f32 %v4501_v43, %v6685_v49  ;;  %v6741_v14 = vmul.f32 %v4502_v6, %v6685_v49  ;;  %v6745_v44 = vmul.f32 %v4503_v1, %v6685_v49  ;;  %v6749_v21 = vmul.f32 %v4504_v19, %v6685_v49 }
 0x272   : > { %10829 = vst [vmem:[#allocation30_spill] sm:$0xff] %v6729_v54  ;;  %v6753_v43 = vmul.f32 %v4505_v0, %v6685_v49  ;;  %v4580_v54 = vld [vmem:[%s5181_s6 + $0x2d8] sm:$0xff] }
 0x273   : > { %10830 = vst [vmem:[#allocation31_spill] sm:$0xff] %v6733_v37 }
 0x274   : > { %10831 = vst [vmem:[#allocation32_spill] sm:$0xff] %v6737_v29  ;;  %v4506_v29 = vld [vmem:[%s5181_s6 + $0x88] sm:$0xff] }
 0x275   : > { %10832 = vst [vmem:[#allocation33_spill] sm:$0xff] %v6741_v14  ;;  %v6757_v6 = vmul.f32 %v4506_v29, %v6685_v49  ;;  %v4507_v14 = vld [vmem:[%s5181_s6 + $0x90] sm:$0xff] }
 0x276   : > { %10833 = vst [vmem:[#allocation34_spill] sm:$0xff] %v6745_v44  ;;  %v6761_v1 = vmul.f32 %v4507_v14, %v6685_v49  ;;  %v4508_v44 = vld [vmem:[%s5181_s6 + $0x98] sm:$0xff] }
 0x277   : > { %10834 = vst [vmem:[#allocation35_spill] sm:$0xff] %v6749_v21  ;;  %v6765_v19 = vmul.f32 %v4508_v44, %v6685_v49  ;;  %v4509_v21 = vld [vmem:[%s5181_s6 + $0xa0] sm:$0xff] }
 0x278   : > { %10835 = vst [vmem:[#allocation36_spill] sm:$0xff] %v6753_v43  ;;  %v6769_v0 = vmul.f32 %v4509_v21, %v6685_v49  ;;  %v4510_v43 = vld [vmem:[%s5181_s6 + $0xa8] sm:$0xff] }
 0x279   : > { %10836 = vst [vmem:[#allocation37_spill] sm:$0xff] %v6757_v6  ;;  %v6773_v29 = vmul.f32 %v4510_v43, %v6685_v49  ;;  %v4511_v6 = vld [vmem:[%s5181_s6 + $0xb0] sm:$0xff] }
 0x27a   : > { %10837 = vst [vmem:[#allocation38_spill] sm:$0xff] %v6761_v1  ;;  %v6777_v14 = vmul.f32 %v4511_v6, %v6685_v49  ;;  %v4512_v1 = vld [vmem:[%s5181_s6 + $0xb8] sm:$0xff] }
 0x27b   : > { %10838 = vst [vmem:[#allocation39_spill] sm:$0xff] %v6765_v19  ;;  %v6781_v44 = vmul.f32 %v4512_v1, %v6685_v49  ;;  %v4513_v19 = vld [vmem:[%s5181_s6 + $0xc0] sm:$0xff] }
 0x27c   : > { %10839 = vst [vmem:[#allocation40_spill] sm:$0xff] %v6769_v0  ;;  %v6785_v21 = vmul.f32 %v4513_v19, %v6685_v49  ;;  %v4514_v0 = vld [vmem:[%s5181_s6 + $0xc8] sm:$0xff] }
 0x27d   : > { %10840 = vst [vmem:[#allocation41_spill] sm:$0xff] %v6773_v29  ;;  %v6789_v43 = vmul.f32 %v4514_v0, %v6685_v49  ;;  %v4515_v29 = vld [vmem:[%s5181_s6 + $0xd0] sm:$0xff] }
 0x27e   : > { %10841 = vst [vmem:[#allocation42_spill] sm:$0xff] %v6777_v14  ;;  %v6793_v6 = vmul.f32 %v4515_v29, %v6685_v49  ;;  %v4516_v14 = vld [vmem:[%s5181_s6 + $0xd8] sm:$0xff] }
 0x27f   : > { %10842 = vst [vmem:[#allocation43_spill] sm:$0xff] %v6781_v44  ;;  %v6797_v1 = vmul.f32 %v4516_v14, %v6685_v49  ;;  %v4517_v44 = vld [vmem:[%s5181_s6 + $0xe0] sm:$0xff] }
 0x280   : > { %10843 = vst [vmem:[#allocation44_spill] sm:$0xff] %v6785_v21  ;;  %v6801_v19 = vmul.f32 %v4517_v44, %v6685_v49  ;;  %v4518_v21 = vld [vmem:[%s5181_s6 + $0xe8] sm:$0xff] }
 0x281   : > { %10844 = vst [vmem:[#allocation45_spill] sm:$0xff] %v6789_v43  ;;  %v6805_v0 = vmul.f32 %v4518_v21, %v6685_v49  ;;  %v4519_v43 = vld [vmem:[%s5181_s6 + $0xf0] sm:$0xff] }
 0x282   : > { %10845 = vst [vmem:[#allocation46_spill] sm:$0xff] %v6793_v6  ;;  %v6809_v29 = vmul.f32 %v4519_v43, %v6685_v49  ;;  %v4520_v6 = vld [vmem:[%s5181_s6 + $0xf8] sm:$0xff] }
 0x283   : > { %10846 = vst [vmem:[#allocation47_spill] sm:$0xff] %v6797_v1  ;;  %v6813_v14 = vmul.f32 %v4520_v6, %v6685_v49  ;;  %v4521_v1 = vld [vmem:[%s5181_s6 + $0x100] sm:$0xff] }
 0x284   : > { %10847 = vst [vmem:[#allocation48_spill] sm:$0xff] %v6801_v19  ;;  %v6817_v44 = vmul.f32 %v4521_v1, %v6685_v49  ;;  %v4522_v19 = vld [vmem:[%s5181_s6 + $0x108] sm:$0xff] }
 0x285   : > { %10848 = vst [vmem:[#allocation49_spill] sm:$0xff] %v6805_v0  ;;  %v6821_v21 = vmul.f32 %v4522_v19, %v6685_v49  ;;  %v4523_v0 = vld [vmem:[%s5181_s6 + $0x110] sm:$0xff] }
 0x286   : > { %10849 = vst [vmem:[#allocation50_spill] sm:$0xff] %v6809_v29  ;;  %v6825_v43 = vmul.f32 %v4523_v0, %v6685_v49  ;;  %v4524_v29 = vld [vmem:[%s5181_s6 + $0x118] sm:$0xff] }
 0x287   : > { %10850 = vst [vmem:[#allocation51_spill] sm:$0xff] %v6813_v14  ;;  %v6829_v6 = vmul.f32 %v4524_v29, %v6685_v49  ;;  %v4525_v14 = vld [vmem:[%s5181_s6 + $0x120] sm:$0xff] }
 0x288   : > { %10851 = vst [vmem:[#allocation52_spill] sm:$0xff] %v6817_v44  ;;  %v6833_v1 = vmul.f32 %v4525_v14, %v6685_v49  ;;  %v4526_v44 = vld [vmem:[%s5181_s6 + $0x128] sm:$0xff] }
 0x289   : > { %10852 = vst [vmem:[#allocation53_spill] sm:$0xff] %v6821_v21  ;;  %v6837_v19 = vmul.f32 %v4526_v44, %v6685_v49  ;;  %v4527_v21 = vld [vmem:[%s5181_s6 + $0x130] sm:$0xff] }
 0x28a   : > { %10853 = vst [vmem:[#allocation54_spill] sm:$0xff] %v6825_v43  ;;  %v6841_v0 = vmul.f32 %v4527_v21, %v6685_v49  ;;  %v4528_v43 = vld [vmem:[%s5181_s6 + $0x138] sm:$0xff] }
 0x28b   : > { %10854 = vst [vmem:[#allocation55_spill] sm:$0xff] %v6829_v6  ;;  %v6845_v29 = vmul.f32 %v4528_v43, %v6685_v49  ;;  %v4529_v6 = vld [vmem:[%s5181_s6 + $0x140] sm:$0xff] }
 0x28c   : > { %10855 = vst [vmem:[#allocation56_spill] sm:$0xff] %v6833_v1  ;;  %v6849_v14 = vmul.f32 %v4529_v6, %v6685_v49  ;;  %v4530_v1 = vld [vmem:[%s5181_s6 + $0x148] sm:$0xff] }
 0x28d   : > { %10856 = vst [vmem:[#allocation57_spill] sm:$0xff] %v6837_v19  ;;  %v6853_v44 = vmul.f32 %v4530_v1, %v6685_v49  ;;  %v4531_v19 = vld [vmem:[%s5181_s6 + $0x150] sm:$0xff] }
 0x28e   : > { %10857 = vst [vmem:[#allocation58_spill] sm:$0xff] %v6841_v0  ;;  %v6857_v21 = vmul.f32 %v4531_v19, %v6685_v49  ;;  %v4532_v0 = vld [vmem:[%s5181_s6 + $0x158] sm:$0xff] }
 0x28f   : > { %10858 = vst [vmem:[#allocation59_spill] sm:$0xff] %v6845_v29  ;;  %v6861_v43 = vmul.f32 %v4532_v0, %v6685_v49  ;;  %v4533_v29 = vld [vmem:[%s5181_s6 + $0x160] sm:$0xff] }
 0x290   : > { %10859 = vst [vmem:[#allocation60_spill] sm:$0xff] %v6849_v14  ;;  %v6865_v6 = vmul.f32 %v4533_v29, %v6685_v49  ;;  %v4534_v14 = vld [vmem:[%s5181_s6 + $0x168] sm:$0xff] }
 0x291   : > { %10860 = vst [vmem:[#allocation61_spill] sm:$0xff] %v6853_v44  ;;  %v6869_v1 = vmul.f32 %v4534_v14, %v6685_v49  ;;  %v4535_v44 = vld [vmem:[%s5181_s6 + $0x170] sm:$0xff] }
 0x292   : > { %10861 = vst [vmem:[#allocation62_spill] sm:$0xff] %v6857_v21  ;;  %v6873_v19 = vmul.f32 %v4535_v44, %v6685_v49  ;;  %v4536_v21 = vld [vmem:[%s5181_s6 + $0x178] sm:$0xff] }
 0x293   : > { %10862 = vst [vmem:[#allocation63_spill] sm:$0xff] %v6861_v43  ;;  %v6877_v0 = vmul.f32 %v4536_v21, %v6685_v49  ;;  %v4537_v43 = vld [vmem:[%s5181_s6 + $0x180] sm:$0xff] }
 0x294   : > { %10863 = vst [vmem:[#allocation64_spill] sm:$0xff] %v6865_v6  ;;  %v6881_v29 = vmul.f32 %v4537_v43, %v6685_v49  ;;  %v4538_v6 = vld [vmem:[%s5181_s6 + $0x188] sm:$0xff] }
 0x295   : > { %10864 = vst [vmem:[#allocation65_spill] sm:$0xff] %v6869_v1  ;;  %v6885_v14 = vmul.f32 %v4538_v6, %v6685_v49  ;;  %v4539_v1 = vld [vmem:[%s5181_s6 + $0x190] sm:$0xff] }
 0x296   : > { %10865 = vst [vmem:[#allocation66_spill] sm:$0xff] %v6873_v19  ;;  %v6889_v44 = vmul.f32 %v4539_v1, %v6685_v49  ;;  %v4540_v19 = vld [vmem:[%s5181_s6 + $0x198] sm:$0xff] }
 0x297   : > { %10866 = vst [vmem:[#allocation67_spill] sm:$0xff] %v6877_v0  ;;  %v6893_v21 = vmul.f32 %v4540_v19, %v6685_v49  ;;  %v4541_v0 = vld [vmem:[%s5181_s6 + $0x1a0] sm:$0xff] }
 0x298   : > { %10867 = vst [vmem:[#allocation68_spill] sm:$0xff] %v6881_v29  ;;  %v6897_v43 = vmul.f32 %v4541_v0, %v6685_v49  ;;  %v4542_v29 = vld [vmem:[%s5181_s6 + $0x1a8] sm:$0xff] }
 0x299   : > { %10868 = vst [vmem:[#allocation69_spill] sm:$0xff] %v6885_v14  ;;  %v6901_v6 = vmul.f32 %v4542_v29, %v6685_v49  ;;  %v4543_v14 = vld [vmem:[%s5181_s6 + $0x1b0] sm:$0xff] }
 0x29a   : > { %10869 = vst [vmem:[#allocation70_spill] sm:$0xff] %v6889_v44  ;;  %v6905_v1 = vmul.f32 %v4543_v14, %v6685_v49  ;;  %v4544_v44 = vld [vmem:[%s5181_s6 + $0x1b8] sm:$0xff] }
 0x29b   : > { %10870 = vst [vmem:[#allocation71_spill] sm:$0xff] %v6893_v21  ;;  %v6909_v19 = vmul.f32 %v4544_v44, %v6685_v49  ;;  %v4545_v21 = vld [vmem:[%s5181_s6 + $0x1c0] sm:$0xff] }
 0x29c   : > { %10871 = vst [vmem:[#allocation72_spill] sm:$0xff] %v6897_v43  ;;  %v6913_v0 = vmul.f32 %v4545_v21, %v6685_v49  ;;  %v4546_v43 = vld [vmem:[%s5181_s6 + $0x1c8] sm:$0xff] }
 0x29d   : > { %10872 = vst [vmem:[#allocation73_spill] sm:$0xff] %v6901_v6  ;;  %v6917_v29 = vmul.f32 %v4546_v43, %v6685_v49  ;;  %v4547_v6 = vld [vmem:[%s5181_s6 + $0x1d0] sm:$0xff] }
 0x29e   : > { %10873 = vst [vmem:[#allocation74_spill] sm:$0xff] %v6905_v1  ;;  %v6921_v14 = vmul.f32 %v4547_v6, %v6685_v49  ;;  %v4548_v1 = vld [vmem:[%s5181_s6 + $0x1d8] sm:$0xff] }
 0x29f   : > { %10874 = vst [vmem:[#allocation75_spill] sm:$0xff] %v6909_v19  ;;  %v6925_v44 = vmul.f32 %v4548_v1, %v6685_v49  ;;  %v4549_v19 = vld [vmem:[%s5181_s6 + $0x1e0] sm:$0xff] }
 0x2a0   : > { %10875 = vst [vmem:[#allocation76_spill] sm:$0xff] %v6913_v0  ;;  %v6929_v21 = vmul.f32 %v4549_v19, %v6685_v49  ;;  %v4550_v0 = vld [vmem:[%s5181_s6 + $0x1e8] sm:$0xff] }
 0x2a1   : > { %10876 = vst [vmem:[#allocation77_spill] sm:$0xff] %v6917_v29  ;;  %v6933_v43 = vmul.f32 %v4550_v0, %v6685_v49  ;;  %v4551_v29 = vld [vmem:[%s5181_s6 + $0x1f0] sm:$0xff] }
 0x2a2   : > { %10877 = vst [vmem:[#allocation78_spill] sm:$0xff] %v6921_v14  ;;  %v6937_v6 = vmul.f32 %v4551_v29, %v6685_v49  ;;  %v4552_v14 = vld [vmem:[%s5181_s6 + $0x1f8] sm:$0xff] }
 0x2a3   : > { %10878 = vst [vmem:[#allocation79_spill] sm:$0xff] %v6925_v44  ;;  %v6941_v1 = vmul.f32 %v4552_v14, %v6685_v49  ;;  %v4553_v44 = vld [vmem:[%s5181_s6 + $0x200] sm:$0xff] }
 0x2a4   : > { %10879 = vst [vmem:[#allocation80_spill] sm:$0xff] %v6929_v21  ;;  %v6945_v19 = vmul.f32 %v4553_v44, %v6685_v49  ;;  %v4554_v21 = vld [vmem:[%s5181_s6 + $0x208] sm:$0xff] }
 0x2a5   : > { %10880 = vst [vmem:[#allocation81_spill] sm:$0xff] %v6933_v43  ;;  %v6949_v0 = vmul.f32 %v4554_v21, %v6685_v49  ;;  %v4555_v43 = vld [vmem:[%s5181_s6 + $0x210] sm:$0xff] }
 0x2a6   : > { %10881 = vst [vmem:[#allocation82_spill] sm:$0xff] %v6937_v6  ;;  %v6953_v29 = vmul.f32 %v4555_v43, %v6685_v49  ;;  %v4556_v6 = vld [vmem:[%s5181_s6 + $0x218] sm:$0xff] }
 0x2a7   : > { %10882 = vst [vmem:[#allocation83_spill] sm:$0xff] %v6941_v1  ;;  %v6957_v14 = vmul.f32 %v4556_v6, %v6685_v49  ;;  %v4557_v1 = vld [vmem:[%s5181_s6 + $0x220] sm:$0xff] }
 0x2a8   : > { %10883 = vst [vmem:[#allocation84_spill] sm:$0xff] %v6945_v19  ;;  %v6961_v44 = vmul.f32 %v4557_v1, %v6685_v49  ;;  %v4558_v19 = vld [vmem:[%s5181_s6 + $0x228] sm:$0xff] }
 0x2a9   : > { %10884 = vst [vmem:[#allocation85_spill] sm:$0xff] %v6949_v0  ;;  %v6965_v21 = vmul.f32 %v4558_v19, %v6685_v49  ;;  %v4559_v0 = vld [vmem:[%s5181_s6 + $0x230] sm:$0xff] }
 0x2aa   : > { %10885 = vst [vmem:[#allocation86_spill] sm:$0xff] %v6953_v29  ;;  %v6969_v43 = vmul.f32 %v4559_v0, %v6685_v49  ;;  %v4560_v29 = vld [vmem:[%s5181_s6 + $0x238] sm:$0xff] }
 0x2ab   : > { %10886 = vst [vmem:[#allocation87_spill] sm:$0xff] %v6957_v14  ;;  %v6973_v6 = vmul.f32 %v4560_v29, %v6685_v49  ;;  %v4561_v14 = vld [vmem:[%s5181_s6 + $0x240] sm:$0xff] }
 0x2ac   : > { %10887 = vst [vmem:[#allocation88_spill] sm:$0xff] %v6961_v44  ;;  %v6977_v1 = vmul.f32 %v4561_v14, %v6685_v49  ;;  %v4562_v44 = vld [vmem:[%s5181_s6 + $0x248] sm:$0xff] }
 0x2ad   : > { %10888 = vst [vmem:[#allocation89_spill] sm:$0xff] %v6965_v21  ;;  %v6981_v19 = vmul.f32 %v4562_v44, %v6685_v49  ;;  %v4563_v21 = vld [vmem:[%s5181_s6 + $0x250] sm:$0xff] }
 0x2ae   : > { %10889 = vst [vmem:[#allocation90_spill] sm:$0xff] %v6969_v43  ;;  %v6985_v0 = vmul.f32 %v4563_v21, %v6685_v49  ;;  %v4564_v43 = vld [vmem:[%s5181_s6 + $0x258] sm:$0xff] }
 0x2af   : > { %10890 = vst [vmem:[#allocation91_spill] sm:$0xff] %v6973_v6  ;;  %v6989_v29 = vmul.f32 %v4564_v43, %v6685_v49  ;;  %v4565_v6 = vld [vmem:[%s5181_s6 + $0x260] sm:$0xff] }
 0x2b0   : > { %10891 = vst [vmem:[#allocation92_spill] sm:$0xff] %v6977_v1  ;;  %v6993_v14 = vmul.f32 %v4565_v6, %v6685_v49  ;;  %v4566_v1 = vld [vmem:[%s5181_s6 + $0x268] sm:$0xff] }
 0x2b1   : > { %10892 = vst [vmem:[#allocation93_spill] sm:$0xff] %v6981_v19  ;;  %v6997_v44 = vmul.f32 %v4566_v1, %v6685_v49  ;;  %v4567_v19 = vld [vmem:[%s5181_s6 + $0x270] sm:$0xff] }
 0x2b2   : > { %10893 = vst [vmem:[#allocation94_spill] sm:$0xff] %v6985_v0  ;;  %v7001_v21 = vmul.f32 %v4567_v19, %v6685_v49  ;;  %v4568_v0 = vld [vmem:[%s5181_s6 + $0x278] sm:$0xff] }
 0x2b3   : > { %10894 = vst [vmem:[#allocation95_spill] sm:$0xff] %v6989_v29  ;;  %v7005_v43 = vmul.f32 %v4568_v0, %v6685_v49  ;;  %v4569_v29 = vld [vmem:[%s5181_s6 + $0x280] sm:$0xff] }
 0x2b4   : > { %10895 = vst [vmem:[#allocation96_spill] sm:$0xff] %v6993_v14  ;;  %v7009_v6 = vmul.f32 %v4569_v29, %v6685_v49  ;;  %v4570_v14 = vld [vmem:[%s5181_s6 + $0x288] sm:$0xff] }
 0x2b5   : > { %10896 = vst [vmem:[#allocation97_spill] sm:$0xff] %v6997_v44  ;;  %v7013_v1 = vmul.f32 %v4570_v14, %v6685_v49  ;;  %v4571_v44 = vld [vmem:[%s5181_s6 + $0x290] sm:$0xff] }
 0x2b6   : > { %10897 = vst [vmem:[#allocation98_spill] sm:$0xff] %v7001_v21  ;;  %v7017_v19 = vmul.f32 %v4571_v44, %v6685_v49  ;;  %v4572_v21 = vld [vmem:[%s5181_s6 + $0x298] sm:$0xff] }
 0x2b7   : > { %10898 = vst [vmem:[#allocation99_spill] sm:$0xff] %v7005_v43  ;;  %v7021_v0 = vmul.f32 %v4572_v21, %v6685_v49  ;;  %v4573_v43 = vld [vmem:[%s5181_s6 + $0x2a0] sm:$0xff] }
 0x2b8   : > { %10899 = vst [vmem:[#allocation100_spill] sm:$0xff] %v7009_v6  ;;  %v7025_v29 = vmul.f32 %v4573_v43, %v6685_v49  ;;  %v4574_v6 = vld [vmem:[%s5181_s6 + $0x2a8] sm:$0xff] }
 0x2b9   : > { %10900 = vst [vmem:[#allocation101_spill] sm:$0xff] %v7013_v1  ;;  %v7029_v14 = vmul.f32 %v4574_v6, %v6685_v49  ;;  %v4575_v1 = vld [vmem:[%s5181_s6 + $0x2b0] sm:$0xff]  ;;  %v4578_v43 = vld [vmem:[%s5181_s6 + $0x2c8] sm:$0xff] }
 0x2ba   : > { %10901 = vst [vmem:[#allocation102_spill] sm:$0xff] %v7017_v19  ;;  %v7033_v44 = vmul.f32 %v4575_v1, %v6685_v49  ;;  %v4576_v19 = vld [vmem:[%s5181_s6 + $0x2b8] sm:$0xff]  ;;  %v4579_v6 = vld [vmem:[%s5181_s6 + $0x2d0] sm:$0xff]  ;;  %v7053_v1 = vmul.f32 %v4580_v54, %v6685_v49  ;;  %v7073_v54 = vmul.f32 %v6685_v49, %v6247_v12  ;;  %v7093_v12 = vmul.f32 %v6685_v49, %v6301_v30 }
 0x2bb   : > { %10902 = vst [vmem:[#allocation103_spill] sm:$0xff] %v7021_v0  ;;  %v7037_v21 = vmul.f32 %v4576_v19, %v6685_v49  ;;  %v4577_v0 = vld [vmem:[%s5181_s6 + $0x2c0] sm:$0xff]  ;;  %v7113_v30 = vmul.f32 %v6685_v49, %v6356_v2  ;;  %v7133_v2 = vmul.f32 %v6685_v49, %v6421_v59 }
 0x2bc   : > { %10903 = vst [vmem:[#allocation104_spill] sm:$0xff] %v7025_v29  ;;  %v7041_v37 = vmul.f32 %v4577_v0, %v6685_v49  ;;  %v7045_v29 = vmul.f32 %v4578_v43, %v6685_v49 }
 0x2bd   : > { %10904 = vst [vmem:[#allocation105_spill] sm:$0xff] %v7029_v14  ;;  %v7049_v14 = vmul.f32 %v4579_v6, %v6685_v49 }
 0x2be   : > { %10905 = vst [vmem:[#allocation106_spill] sm:$0xff] %v7033_v44  ;;  %v4581_v44 = vld [vmem:[%s5181_s6 + $0x2e0] sm:$0xff] }
 0x2bf   : > { %10906 = vst [vmem:[#allocation107_spill] sm:$0xff] %v7037_v21  ;;  %v7057_v19 = vmul.f32 %v4581_v44, %v6685_v49  ;;  %v4582_v21 = vld [vmem:[%s5181_s6 + $0x2e8] sm:$0xff]  ;;  %v7077_v44 = vmul.f32 %v6685_v49, %v6257_v10  ;;  %v7097_v10 = vmul.f32 %v6685_v49, %v6312_v63  ;;  %v7117_v63 = vmul.f32 %v6685_v49, %v6367_v5 }
 0x2c0   : > { %10907 = vst [vmem:[#allocation108_spill] sm:$0xff] %v7041_v37  ;;  %v7061_v0 = vmul.f32 %v4582_v21, %v6685_v49  ;;  %v4583_v37 = vld [vmem:[%s5181_s6 + $0x2f0] sm:$0xff]  ;;  %v7081_v21 = vmul.f32 %v6685_v49, %v6268_v39  ;;  %v7101_v39 = vmul.f32 %v6685_v49, %v6323_v17  ;;  %v7121_v17 = vmul.f32 %v6685_v49, %v6380_v56 }
 0x2c1   : > { %10908 = vst [vmem:[#allocation109_spill] sm:$0xff] %v7045_v29  ;;  %v7065_v43 = vmul.f32 %v4583_v37, %v6685_v49  ;;  %v4584_v29 = vld [vmem:[%s5181_s6 + $0x2f8] sm:$0xff]  ;;  %v7085_v37 = vmul.f32 %v6685_v49, %v6279_v40  ;;  %v7105_v40 = vmul.f32 %v6685_v49, %v6334_v18  ;;  %v7125_v18 = vmul.f32 %v6685_v49, %v6393_v57  ;;  %v10935_v57 = vld [vmem:[#allocation20_spill] sm:$0xff] }
 0x2c2   : > { %10909 = vst [vmem:[#allocation110_spill] sm:$0xff] %v7049_v14  ;;  %v7069_v6 = vmul.f32 %v4584_v29, %v6685_v49  ;;  %v7089_v29 = vmul.f32 %v6685_v49, %v6290_v26  ;;  %v7109_v26 = vmul.f32 %v6685_v49, %v6345_v61  ;;  %v7129_v61 = vmul.f32 %v6685_v49, %v6407_v58  ;;  %v10937_v58 = vld [vmem:[#allocation22_spill] sm:$0xff]  ;;  %v4617_v14 = vld [vmem:[%s5181_s6 + $0x500] sm:$0xff] }
 0x2c3   : > { %10910 = vst [vmem:[#allocation111_spill] sm:$0xff] %v7053_v1  ;;  %v7151_v59 = vmul.f32 %v6685_v49, %v10937_v58  ;;  %v7171_v58 = vmul.f32 %v6685_v49, %v6547_v60  ;;  %v7191_v60 = vmul.f32 %v6685_v49, %v6611_v7  ;;  %v4587_v7 = vld [vmem:[%s5181_s6 + $0x410] sm:$0xff]  ;;  %v4616_v1 = vld [vmem:[%s5181_s6 + $0x4f8] sm:$0xff] }
 0x2c4   : > { %10911 = vst [vmem:[#allocation112_spill] sm:$0xff] %v7057_v19  ;;  %v4615_v19 = vld [vmem:[%s5181_s6 + $0x4f0] sm:$0xff] }
 0x2c5   : > { %10912 = vst [vmem:[#allocation113_spill] sm:$0xff] %v7061_v0  ;;  %v4614_v0 = vld [vmem:[%s5181_s6 + $0x4e8] sm:$0xff] }
 0x2c6   : > { %10913 = vst [vmem:[#allocation114_spill] sm:$0xff] %v7065_v43  ;;  %v4613_v43 = vld [vmem:[%s5181_s6 + $0x4e0] sm:$0xff] }
 0x2c7   : > { %10914 = vst [vmem:[#allocation115_spill] sm:$0xff] %v7069_v6  ;;  %v4612_v6 = vld [vmem:[%s5181_s6 + $0x4d8] sm:$0xff] }
 0x2c8   : > { %10915 = vst [vmem:[#allocation116_spill] sm:$0xff] %v7073_v54  ;;  %v4611_v54 = vld [vmem:[%s5181_s6 + $0x4d0] sm:$0xff] }
 0x2c9   : > { %10916 = vst [vmem:[#allocation117_spill] sm:$0xff] %v7077_v44  ;;  %v4610_v44 = vld [vmem:[%s5181_s6 + $0x4c8] sm:$0xff] }
 0x2ca   : > { %10917 = vst [vmem:[#allocation118_spill] sm:$0xff] %v7081_v21  ;;  %v4609_v21 = vld [vmem:[%s5181_s6 + $0x4c0] sm:$0xff] }
 0x2cb   : > { %10918 = vst [vmem:[#allocation119_spill] sm:$0xff] %v7085_v37  ;;  %v4608_v37 = vld [vmem:[%s5181_s6 + $0x4b8] sm:$0xff] }
 0x2cc   : > { %10919 = vst [vmem:[#allocation120_spill] sm:$0xff] %v7089_v29  ;;  %v4607_v29 = vld [vmem:[%s5181_s6 + $0x4b0] sm:$0xff] }
 0x2cd   : > { %10920 = vst [vmem:[#allocation121_spill] sm:$0xff] %v7093_v12  ;;  %v4606_v12 = vld [vmem:[%s5181_s6 + $0x4a8] sm:$0xff] }
 0x2ce   : > { %10921 = vst [vmem:[#allocation122_spill] sm:$0xff] %v7097_v10  ;;  %v4605_v10 = vld [vmem:[%s5181_s6 + $0x4a0] sm:$0xff] }
 0x2cf   : > { %10922 = vst [vmem:[#allocation123_spill] sm:$0xff] %v7101_v39  ;;  %v4604_v39 = vld [vmem:[%s5181_s6 + $0x498] sm:$0xff] }
 0x2d0   : > { %10923 = vst [vmem:[#allocation124_spill] sm:$0xff] %v7105_v40  ;;  %v4603_v40 = vld [vmem:[%s5181_s6 + $0x490] sm:$0xff] }
 0x2d1   : > { %10924 = vst [vmem:[#allocation125_spill] sm:$0xff] %v7109_v26  ;;  %v4602_v26 = vld [vmem:[%s5181_s6 + $0x488] sm:$0xff] }
 0x2d2   : > { %10925 = vst [vmem:[#allocation126_spill] sm:$0xff] %v7113_v30  ;;  %v10931_v30 = vld [vmem:[#allocation16_spill] sm:$0xff] }
 0x2d3   : > { %10926 = vst [vmem:[#allocation127_spill] sm:$0xff] %v7117_v63  ;;  %v7137_v5 = vmul.f32 %v6685_v49, %v10931_v30  ;;  %v10933_v63 = vld [vmem:[#allocation18_spill] sm:$0xff] }
 0x2d4   : > { %10927 = vst [vmem:[#allocation128_spill] sm:$0xff] %v7121_v17  ;;  %v7141_v56 = vmul.f32 %v6685_v49, %v10933_v63  ;;  %v7143_v17 = vpop.permute.xlu2 %2113 }
 0x2d5   : > { %10928 = vst [vmem:[#allocation129_spill] sm:$0xff] %v7125_v18  ;;  %v7147_v18 = vmul.f32 %v6685_v49, %v10935_v57  ;;  %v7167_v57 = vmul.f32 %v6685_v49, %v6533_v42  ;;  %v7187_v42 = vmul.f32 %v6685_v49, %v6600_v53  ;;  %v4586_v53 = vld [vmem:[%s5181_s6 + $0x408] sm:$0xff] }
 0x2d6   : > { %10929 = vst [vmem:[#allocation130_spill] sm:$0xff] %v7129_v61  ;;  %v4601_v61 = vld [vmem:[%s5181_s6 + $0x480] sm:$0xff] }
 0x2d7   : > { %10930 = vst [vmem:[#allocation131_spill] sm:$0xff] %v7133_v2  ;;  %v10939_v2 = vld [vmem:[#allocation24_spill] sm:$0xff] }
 0x2d8   : > { %10932 = vst [vmem:[#allocation16_spill] sm:$0xff] %v7137_v5  ;;  %v7155_v30 = vmul.f32 %v6685_v49, %v10939_v2  ;;  %v10941_v5 = vld [vmem:[#allocation26_spill] sm:$0xff]  ;;  %v7175_v2 = vmul.f32 %v6685_v49, %v6563_v16  ;;  %v7195_v16 = vmul.f32 %v6685_v49, %v6621_v33  ;;  %v7211_v33 = vmul.f32 %v4587_v7, %v7143_v17 }
 0x2d9   : > { %10934 = vst [vmem:[#allocation18_spill] sm:$0xff] %v7141_v56  ;;  %v7159_v63 = vmul.f32 %v6685_v49, %v10941_v5  ;;  %v7163_v56 = vmul.f32 %v6685_v49, %v6519_v46  ;;  %v7179_v5 = vmul.f32 %v6685_v49, %v6577_v45  ;;  %v7183_v46 = vmul.f32 %v6685_v49, %v6588_v9  ;;  %v4585_v9 = vld [vmem:[%s5181_s6 + $0x400] sm:$0xff] }
 0x2da   : > { %10936 = vst [vmem:[#allocation20_spill] sm:$0xff] %v7147_v18  ;;  %v7199_v45 = vmul.f32 %v6685_v49, %v6631_v27  ;;  %v4589_v49 = vld [vmem:[%s5181_s6 + $0x420] sm:$0xff]  ;;  %v4600_v18 = vld [vmem:[%s5181_s6 + $0x478] sm:$0xff] }
 0x2db   : > { %10938 = vst [vmem:[#allocation22_spill] sm:$0xff] %v7151_v59  ;;  %v4599_v59 = vld [vmem:[%s5181_s6 + $0x470] sm:$0xff] }
 0x2dc   : > { %10940 = vst [vmem:[#allocation24_spill] sm:$0xff] %v7155_v30  ;;  %v4598_v30 = vld [vmem:[%s5181_s6 + $0x468] sm:$0xff] }
 0x2dd   : > { %10942 = vst [vmem:[#allocation26_spill] sm:$0xff] %v7159_v63  ;;  %v4597_v63 = vld [vmem:[%s5181_s6 + $0x460] sm:$0xff] }
 0x2de   : > { %10943 = vst [vmem:[#allocation132_spill] sm:$0xff] %v7163_v56  ;;  %v4596_v56 = vld [vmem:[%s5181_s6 + $0x458] sm:$0xff] }
 0x2df   : > { %10944 = vst [vmem:[#allocation133_spill] sm:$0xff] %v7167_v57  ;;  %v4595_v57 = vld [vmem:[%s5181_s6 + $0x450] sm:$0xff] }
 0x2e0   : > { %10945 = vst [vmem:[#allocation134_spill] sm:$0xff] %v7171_v58  ;;  %v4594_v58 = vld [vmem:[%s5181_s6 + $0x448] sm:$0xff] }
 0x2e1   : > { %10946 = vst [vmem:[#allocation135_spill] sm:$0xff] %v7175_v2  ;;  %v4593_v2 = vld [vmem:[%s5181_s6 + $0x440] sm:$0xff] }
 0x2e2   : > { %10947 = vst [vmem:[#allocation136_spill] sm:$0xff] %v7179_v5  ;;  %v4592_v5 = vld [vmem:[%s5181_s6 + $0x438] sm:$0xff] }
 0x2e3   : > { %10948 = vst [vmem:[#allocation137_spill] sm:$0xff] %v7183_v46  ;;  %v7203_v46 = vmul.f32 %v4585_v9, %v7143_v17  ;;  %v7219_v9 = vmul.f32 %v4589_v49, %v7143_v17  ;;  %v7235_v49 = vmul.f32 %v4593_v2, %v7143_v17  ;;  %v7251_v2 = vmul.f32 %v4597_v63, %v7143_v17 }
 0x2e4   : > { %10949 = vst [vmem:[#allocation138_spill] sm:$0xff] %v7187_v42  ;;  %v7207_v42 = vmul.f32 %v4586_v53, %v7143_v17  ;;  %v7267_v63 = vmul.f32 %v4601_v61, %v7143_v17  ;;  %v7283_v61 = vmul.f32 %v4605_v10, %v7143_v17  ;;  %v7299_v10 = vmul.f32 %v4609_v21, %v7143_v17 }
 0x2e5   : > { %10950 = vst [vmem:[#allocation139_spill] sm:$0xff] %v7191_v60  ;;  %v4591_v60 = vld [vmem:[%s5181_s6 + $0x430] sm:$0xff]  ;;  %v7315_v21 = vmul.f32 %v4613_v43, %v7143_v17  ;;  %v7331_v43 = vmul.f32 %v4617_v14, %v7143_v17 }
 0x2e6   : > { %10951 = vst [vmem:[#allocation140_spill] sm:$0xff] %v7195_v16  ;;  %v4588_v16 = vld [vmem:[%s5181_s6 + $0x418] sm:$0xff]  ;;  %v7227_v7 = vmul.f32 %v4591_v60, %v7143_v17  ;;  %v7243_v60 = vmul.f32 %v4595_v57, %v7143_v17  ;;  %v7259_v57 = vmul.f32 %v4599_v59, %v7143_v17  ;;  %v7275_v59 = vmul.f32 %v4603_v40, %v7143_v17 }
 0x2e7   : > { %10952 = vst [vmem:[#allocation141_spill] sm:$0xff] %v7199_v45  ;;  %v7215_v27 = vmul.f32 %v4588_v16, %v7143_v17  ;;  %v4590_v45 = vld [vmem:[%s5181_s6 + $0x428] sm:$0xff]  ;;  %v7231_v16 = vmul.f32 %v4592_v5, %v7143_v17  ;;  %v7247_v5 = vmul.f32 %v4596_v56, %v7143_v17  ;;  %v7263_v56 = vmul.f32 %v4600_v18, %v7143_v17 }
 0x2e8   : > { %v7223_v53 = vmul.f32 %v4590_v45, %v7143_v17  ;;  %v7239_v45 = vmul.f32 %v4594_v58, %v7143_v17  ;;  %v7255_v58 = vmul.f32 %v4598_v30, %v7143_v17  ;;  %10953 = vst [vmem:[#allocation142_spill] sm:$0xff] %v7267_v63  ;;  %v7271_v30 = vmul.f32 %v4602_v26, %v7143_v17  ;;  %v4828_v63 = vld [vmem:[%s5181_s6 + $0xc80] sm:$0xff] }
 0x2e9   : > { %10955 = vst [vmem:[#allocation144_spill] sm:$0xff] %v7275_v59  ;;  %v7279_v18 = vmul.f32 %v4604_v39, %v7143_v17  ;;  %v7287_v26 = vmul.f32 %v4606_v12, %v7143_v17  ;;  %v7291_v40 = vmul.f32 %v4607_v29, %v7143_v17  ;;  %v7295_v39 = vmul.f32 %v4608_v37, %v7143_v17  ;;  %v4826_v59 = vld [vmem:[%s5181_s6 + $0xc70] sm:$0xff] }
 0x2ea   : > { %10954 = vst [vmem:[#allocation143_spill] sm:$0xff] %v7271_v30  ;;  %v7303_v12 = vmul.f32 %v4610_v44, %v7143_v17  ;;  %v7307_v29 = vmul.f32 %v4611_v54, %v7143_v17  ;;  %v7311_v37 = vmul.f32 %v4612_v6, %v7143_v17  ;;  %v7319_v44 = vmul.f32 %v4614_v0, %v7143_v17  ;;  %v4827_v30 = vld [vmem:[%s5181_s6 + $0xc78] sm:$0xff] }
 0x2eb   : > { %10956 = vst [vmem:[#allocation145_spill] sm:$0xff] %v7279_v18  ;;  %v7323_v54 = vmul.f32 %v4615_v19, %v7143_v17  ;;  %v7327_v6 = vmul.f32 %v4616_v1, %v7143_v17  ;;  %v4825_v18 = vld [vmem:[%s5181_s6 + $0xc68] sm:$0xff] }
 0x2ec   : > { %10957 = vst [vmem:[#allocation146_spill] sm:$0xff] %v7283_v61  ;;  %v4824_v61 = vld [vmem:[%s5181_s6 + $0xc60] sm:$0xff] }
 0x2ed   : > { %10958 = vst [vmem:[#allocation147_spill] sm:$0xff] %v7287_v26  ;;  %v4823_v26 = vld [vmem:[%s5181_s6 + $0xc58] sm:$0xff] }
 0x2ee   : > { %10959 = vst [vmem:[#allocation148_spill] sm:$0xff] %v7291_v40  ;;  %v4822_v40 = vld [vmem:[%s5181_s6 + $0xc50] sm:$0xff] }
 0x2ef   : > { %10960 = vst [vmem:[#allocation149_spill] sm:$0xff] %v7295_v39  ;;  %v4821_v39 = vld [vmem:[%s5181_s6 + $0xc48] sm:$0xff] }
 0x2f0   : > { %10961 = vst [vmem:[#allocation150_spill] sm:$0xff] %v7299_v10  ;;  %v4709_v10 = vld [vmem:[%s5181_s6 + $0x8c0] sm:$0xff] }
 0x2f1   : > { %10962 = vst [vmem:[#allocation151_spill] sm:$0xff] %v7303_v12  ;;  %v4708_v12 = vld [vmem:[%s5181_s6 + $0x8b8] sm:$0xff] }
 0x2f2   : > { %10963 = vst [vmem:[#allocation152_spill] sm:$0xff] %v7307_v29  ;;  %v4680_v29 = vld [vmem:[%s5181_s6 + $0x6f8] sm:$0xff] }
 0x2f3   : > { %10964 = vst [vmem:[#allocation153_spill] sm:$0xff] %v7311_v37 }
 0x2f4   : > { %10965 = vst [vmem:[#allocation154_spill] sm:$0xff] %v7315_v21  ;;  %v4618_v21 = vld [vmem:[%s5181_s6 + $0x508] sm:$0xff] }
 0x2f5   : > { %10966 = vst [vmem:[#allocation155_spill] sm:$0xff] %v7319_v44  ;;  %v7335_v0 = vmul.f32 %v4618_v21, %v7143_v17  ;;  %v4619_v44 = vld [vmem:[%s5181_s6 + $0x510] sm:$0xff] }
 0x2f6   : > { %10967 = vst [vmem:[#allocation156_spill] sm:$0xff] %v7323_v54  ;;  %v7339_v19 = vmul.f32 %v4619_v44, %v7143_v17  ;;  %v4620_v54 = vld [vmem:[%s5181_s6 + $0x518] sm:$0xff] }
 0x2f7   : > { %10968 = vst [vmem:[#allocation157_spill] sm:$0xff] %v7327_v6  ;;  %v7343_v1 = vmul.f32 %v4620_v54, %v7143_v17  ;;  %v4621_v6 = vld [vmem:[%s5181_s6 + $0x520] sm:$0xff] }
 0x2f8   : > { %10969 = vst [vmem:[#allocation158_spill] sm:$0xff] %v7331_v43  ;;  %v7347_v14 = vmul.f32 %v4621_v6, %v7143_v17  ;;  %v4622_v43 = vld [vmem:[%s5181_s6 + $0x528] sm:$0xff] }
 0x2f9   : > { %10970 = vst [vmem:[#allocation159_spill] sm:$0xff] %v7335_v0  ;;  %v7351_v21 = vmul.f32 %v4622_v43, %v7143_v17  ;;  %v4623_v0 = vld [vmem:[%s5181_s6 + $0x530] sm:$0xff] }
 0x2fa   : > { %10971 = vst [vmem:[#allocation160_spill] sm:$0xff] %v7339_v19  ;;  %v7355_v44 = vmul.f32 %v4623_v0, %v7143_v17  ;;  %v4624_v19 = vld [vmem:[%s5181_s6 + $0x538] sm:$0xff] }
 0x2fb   : > { %10972 = vst [vmem:[#allocation161_spill] sm:$0xff] %v7343_v1  ;;  %v7359_v54 = vmul.f32 %v4624_v19, %v7143_v17  ;;  %v4625_v1 = vld [vmem:[%s5181_s6 + $0x540] sm:$0xff] }
 0x2fc   : > { %10973 = vst [vmem:[#allocation162_spill] sm:$0xff] %v7347_v14  ;;  %v7363_v6 = vmul.f32 %v4625_v1, %v7143_v17  ;;  %v4626_v14 = vld [vmem:[%s5181_s6 + $0x548] sm:$0xff] }
 0x2fd   : > { %10974 = vst [vmem:[#allocation163_spill] sm:$0xff] %v7351_v21  ;;  %v7367_v43 = vmul.f32 %v4626_v14, %v7143_v17  ;;  %v4627_v21 = vld [vmem:[%s5181_s6 + $0x550] sm:$0xff] }
 0x2fe   : > { %10975 = vst [vmem:[#allocation164_spill] sm:$0xff] %v7355_v44  ;;  %v7371_v0 = vmul.f32 %v4627_v21, %v7143_v17  ;;  %v4628_v44 = vld [vmem:[%s5181_s6 + $0x558] sm:$0xff] }
 0x2ff   : > { %10976 = vst [vmem:[#allocation165_spill] sm:$0xff] %v7359_v54  ;;  %v7375_v19 = vmul.f32 %v4628_v44, %v7143_v17  ;;  %v4629_v54 = vld [vmem:[%s5181_s6 + $0x560] sm:$0xff] }
 0x300   : > { %10977 = vst [vmem:[#allocation166_spill] sm:$0xff] %v7363_v6  ;;  %v7379_v1 = vmul.f32 %v4629_v54, %v7143_v17  ;;  %v4630_v6 = vld [vmem:[%s5181_s6 + $0x568] sm:$0xff] }
 0x301   : > { %10978 = vst [vmem:[#allocation167_spill] sm:$0xff] %v7367_v43  ;;  %v7383_v14 = vmul.f32 %v4630_v6, %v7143_v17  ;;  %v4631_v43 = vld [vmem:[%s5181_s6 + $0x570] sm:$0xff] }
 0x302   : > { %10979 = vst [vmem:[#allocation168_spill] sm:$0xff] %v7371_v0  ;;  %v7387_v21 = vmul.f32 %v4631_v43, %v7143_v17  ;;  %v4632_v0 = vld [vmem:[%s5181_s6 + $0x578] sm:$0xff] }
 0x303   : > { %10980 = vst [vmem:[#allocation169_spill] sm:$0xff] %v7375_v19  ;;  %v7391_v44 = vmul.f32 %v4632_v0, %v7143_v17  ;;  %v4633_v19 = vld [vmem:[%s5181_s6 + $0x580] sm:$0xff] }
 0x304   : > { %10981 = vst [vmem:[#allocation170_spill] sm:$0xff] %v7379_v1  ;;  %v7395_v54 = vmul.f32 %v4633_v19, %v7143_v17  ;;  %v4634_v1 = vld [vmem:[%s5181_s6 + $0x588] sm:$0xff] }
 0x305   : > { %10982 = vst [vmem:[#allocation171_spill] sm:$0xff] %v7383_v14  ;;  %v7399_v6 = vmul.f32 %v4634_v1, %v7143_v17  ;;  %v4635_v14 = vld [vmem:[%s5181_s6 + $0x590] sm:$0xff] }
 0x306   : > { %10983 = vst [vmem:[#allocation172_spill] sm:$0xff] %v7387_v21  ;;  %v7403_v43 = vmul.f32 %v4635_v14, %v7143_v17  ;;  %v4636_v21 = vld [vmem:[%s5181_s6 + $0x598] sm:$0xff] }
 0x307   : > { %10984 = vst [vmem:[#allocation173_spill] sm:$0xff] %v7391_v44  ;;  %v7407_v0 = vmul.f32 %v4636_v21, %v7143_v17  ;;  %v4637_v44 = vld [vmem:[%s5181_s6 + $0x5a0] sm:$0xff] }
 0x308   : > { %10985 = vst [vmem:[#allocation174_spill] sm:$0xff] %v7395_v54  ;;  %v7411_v19 = vmul.f32 %v4637_v44, %v7143_v17  ;;  %v4638_v54 = vld [vmem:[%s5181_s6 + $0x5a8] sm:$0xff] }
 0x309   : > { %10986 = vst [vmem:[#allocation175_spill] sm:$0xff] %v7399_v6  ;;  %v7415_v1 = vmul.f32 %v4638_v54, %v7143_v17  ;;  %v4639_v6 = vld [vmem:[%s5181_s6 + $0x5b0] sm:$0xff] }
 0x30a   : > { %10987 = vst [vmem:[#allocation176_spill] sm:$0xff] %v7403_v43  ;;  %v7419_v14 = vmul.f32 %v4639_v6, %v7143_v17  ;;  %v4640_v43 = vld [vmem:[%s5181_s6 + $0x5b8] sm:$0xff] }
 0x30b   : > { %10988 = vst [vmem:[#allocation177_spill] sm:$0xff] %v7407_v0  ;;  %v7423_v21 = vmul.f32 %v4640_v43, %v7143_v17  ;;  %v4641_v0 = vld [vmem:[%s5181_s6 + $0x5c0] sm:$0xff] }
 0x30c   : > { %10989 = vst [vmem:[#allocation178_spill] sm:$0xff] %v7411_v19  ;;  %v7427_v44 = vmul.f32 %v4641_v0, %v7143_v17  ;;  %v4642_v19 = vld [vmem:[%s5181_s6 + $0x5c8] sm:$0xff] }
 0x30d   : > { %10990 = vst [vmem:[#allocation179_spill] sm:$0xff] %v7415_v1  ;;  %v7431_v54 = vmul.f32 %v4642_v19, %v7143_v17  ;;  %v4643_v1 = vld [vmem:[%s5181_s6 + $0x5d0] sm:$0xff] }
 0x30e   : > { %10991 = vst [vmem:[#allocation180_spill] sm:$0xff] %v7419_v14  ;;  %v7435_v6 = vmul.f32 %v4643_v1, %v7143_v17  ;;  %v4644_v14 = vld [vmem:[%s5181_s6 + $0x5d8] sm:$0xff] }
 0x30f   : > { %10992 = vst [vmem:[#allocation181_spill] sm:$0xff] %v7423_v21  ;;  %v7439_v43 = vmul.f32 %v4644_v14, %v7143_v17  ;;  %v4645_v21 = vld [vmem:[%s5181_s6 + $0x5e0] sm:$0xff] }
 0x310   : > { %10993 = vst [vmem:[#allocation182_spill] sm:$0xff] %v7427_v44  ;;  %v7443_v0 = vmul.f32 %v4645_v21, %v7143_v17  ;;  %v4646_v44 = vld [vmem:[%s5181_s6 + $0x5e8] sm:$0xff] }
 0x311   : > { %10994 = vst [vmem:[#allocation183_spill] sm:$0xff] %v7431_v54  ;;  %v7447_v19 = vmul.f32 %v4646_v44, %v7143_v17  ;;  %v4647_v54 = vld [vmem:[%s5181_s6 + $0x5f0] sm:$0xff] }
 0x312   : > { %10995 = vst [vmem:[#allocation184_spill] sm:$0xff] %v7435_v6  ;;  %v7451_v1 = vmul.f32 %v4647_v54, %v7143_v17  ;;  %v4648_v6 = vld [vmem:[%s5181_s6 + $0x5f8] sm:$0xff] }
 0x313   : > { %10996 = vst [vmem:[#allocation185_spill] sm:$0xff] %v7439_v43  ;;  %v7455_v14 = vmul.f32 %v4648_v6, %v7143_v17  ;;  %v4649_v43 = vld [vmem:[%s5181_s6 + $0x600] sm:$0xff] }
 0x314   : > { %10997 = vst [vmem:[#allocation186_spill] sm:$0xff] %v7443_v0  ;;  %v7459_v21 = vmul.f32 %v4649_v43, %v7143_v17  ;;  %v4650_v0 = vld [vmem:[%s5181_s6 + $0x608] sm:$0xff] }
 0x315   : > { %10998 = vst [vmem:[#allocation187_spill] sm:$0xff] %v7447_v19  ;;  %v7463_v44 = vmul.f32 %v4650_v0, %v7143_v17  ;;  %v4651_v19 = vld [vmem:[%s5181_s6 + $0x610] sm:$0xff] }
 0x316   : > { %10999 = vst [vmem:[#allocation188_spill] sm:$0xff] %v7451_v1  ;;  %v7467_v54 = vmul.f32 %v4651_v19, %v7143_v17  ;;  %v4652_v1 = vld [vmem:[%s5181_s6 + $0x618] sm:$0xff] }
 0x317   : > { %11000 = vst [vmem:[#allocation189_spill] sm:$0xff] %v7455_v14  ;;  %v7471_v6 = vmul.f32 %v4652_v1, %v7143_v17  ;;  %v4653_v14 = vld [vmem:[%s5181_s6 + $0x620] sm:$0xff] }
 0x318   : > { %11001 = vst [vmem:[#allocation190_spill] sm:$0xff] %v7459_v21  ;;  %v7475_v43 = vmul.f32 %v4653_v14, %v7143_v17  ;;  %v4654_v21 = vld [vmem:[%s5181_s6 + $0x628] sm:$0xff] }
 0x319   : > { %11002 = vst [vmem:[#allocation191_spill] sm:$0xff] %v7463_v44  ;;  %v7479_v0 = vmul.f32 %v4654_v21, %v7143_v17  ;;  %v4655_v44 = vld [vmem:[%s5181_s6 + $0x630] sm:$0xff] }
 0x31a   : > { %11003 = vst [vmem:[#allocation192_spill] sm:$0xff] %v7467_v54  ;;  %v7483_v19 = vmul.f32 %v4655_v44, %v7143_v17  ;;  %v4656_v54 = vld [vmem:[%s5181_s6 + $0x638] sm:$0xff] }
 0x31b   : > { %11004 = vst [vmem:[#allocation193_spill] sm:$0xff] %v7471_v6  ;;  %v7487_v1 = vmul.f32 %v4656_v54, %v7143_v17  ;;  %v4657_v6 = vld [vmem:[%s5181_s6 + $0x640] sm:$0xff] }
 0x31c   : > { %11005 = vst [vmem:[#allocation194_spill] sm:$0xff] %v7475_v43  ;;  %v7491_v14 = vmul.f32 %v4657_v6, %v7143_v17  ;;  %v4658_v43 = vld [vmem:[%s5181_s6 + $0x648] sm:$0xff] }
 0x31d   : > { %11006 = vst [vmem:[#allocation195_spill] sm:$0xff] %v7479_v0  ;;  %v7495_v21 = vmul.f32 %v4658_v43, %v7143_v17  ;;  %v4659_v0 = vld [vmem:[%s5181_s6 + $0x650] sm:$0xff] }
 0x31e   : > { %11007 = vst [vmem:[#allocation196_spill] sm:$0xff] %v7483_v19  ;;  %v7499_v44 = vmul.f32 %v4659_v0, %v7143_v17  ;;  %v4660_v19 = vld [vmem:[%s5181_s6 + $0x658] sm:$0xff] }
 0x31f   : > { %11008 = vst [vmem:[#allocation197_spill] sm:$0xff] %v7487_v1  ;;  %v7503_v54 = vmul.f32 %v4660_v19, %v7143_v17  ;;  %v4661_v1 = vld [vmem:[%s5181_s6 + $0x660] sm:$0xff] }
 0x320   : > { %11009 = vst [vmem:[#allocation198_spill] sm:$0xff] %v7491_v14  ;;  %v7507_v6 = vmul.f32 %v4661_v1, %v7143_v17  ;;  %v4662_v14 = vld [vmem:[%s5181_s6 + $0x668] sm:$0xff] }
 0x321   : > { %11010 = vst [vmem:[#allocation199_spill] sm:$0xff] %v7495_v21  ;;  %v7511_v43 = vmul.f32 %v4662_v14, %v7143_v17  ;;  %v4663_v21 = vld [vmem:[%s5181_s6 + $0x670] sm:$0xff] }
 0x322   : > { %11011 = vst [vmem:[#allocation200_spill] sm:$0xff] %v7499_v44  ;;  %v7515_v0 = vmul.f32 %v4663_v21, %v7143_v17  ;;  %v4664_v44 = vld [vmem:[%s5181_s6 + $0x678] sm:$0xff] }
 0x323   : > { %11012 = vst [vmem:[#allocation201_spill] sm:$0xff] %v7503_v54  ;;  %v7519_v19 = vmul.f32 %v4664_v44, %v7143_v17  ;;  %v4665_v54 = vld [vmem:[%s5181_s6 + $0x680] sm:$0xff] }
 0x324   : > { %11013 = vst [vmem:[#allocation202_spill] sm:$0xff] %v7507_v6  ;;  %v7523_v1 = vmul.f32 %v4665_v54, %v7143_v17  ;;  %v4666_v6 = vld [vmem:[%s5181_s6 + $0x688] sm:$0xff] }
 0x325   : > { %11014 = vst [vmem:[#allocation203_spill] sm:$0xff] %v7511_v43  ;;  %v7527_v14 = vmul.f32 %v4666_v6, %v7143_v17  ;;  %v4667_v43 = vld [vmem:[%s5181_s6 + $0x690] sm:$0xff] }
 0x326   : > { %11015 = vst [vmem:[#allocation204_spill] sm:$0xff] %v7515_v0  ;;  %v7531_v21 = vmul.f32 %v4667_v43, %v7143_v17  ;;  %v4668_v0 = vld [vmem:[%s5181_s6 + $0x698] sm:$0xff] }
 0x327   : > { %11016 = vst [vmem:[#allocation205_spill] sm:$0xff] %v7519_v19  ;;  %v7535_v44 = vmul.f32 %v4668_v0, %v7143_v17  ;;  %v4669_v19 = vld [vmem:[%s5181_s6 + $0x6a0] sm:$0xff] }
 0x328   : > { %11017 = vst [vmem:[#allocation206_spill] sm:$0xff] %v7523_v1  ;;  %v7539_v54 = vmul.f32 %v4669_v19, %v7143_v17  ;;  %v4670_v1 = vld [vmem:[%s5181_s6 + $0x6a8] sm:$0xff] }
 0x329   : > { %11018 = vst [vmem:[#allocation207_spill] sm:$0xff] %v7527_v14  ;;  %v7543_v6 = vmul.f32 %v4670_v1, %v7143_v17  ;;  %v4671_v14 = vld [vmem:[%s5181_s6 + $0x6b0] sm:$0xff] }
 0x32a   : > { %11019 = vst [vmem:[#allocation208_spill] sm:$0xff] %v7531_v21  ;;  %v7547_v43 = vmul.f32 %v4671_v14, %v7143_v17  ;;  %v4672_v21 = vld [vmem:[%s5181_s6 + $0x6b8] sm:$0xff] }
 0x32b   : > { %11020 = vst [vmem:[#allocation209_spill] sm:$0xff] %v7535_v44  ;;  %v7551_v0 = vmul.f32 %v4672_v21, %v7143_v17  ;;  %v4673_v44 = vld [vmem:[%s5181_s6 + $0x6c0] sm:$0xff] }
 0x32c   : > { %11021 = vst [vmem:[#allocation210_spill] sm:$0xff] %v7539_v54  ;;  %v7555_v19 = vmul.f32 %v4673_v44, %v7143_v17  ;;  %v4674_v54 = vld [vmem:[%s5181_s6 + $0x6c8] sm:$0xff] }
 0x32d   : > { %11022 = vst [vmem:[#allocation211_spill] sm:$0xff] %v7543_v6  ;;  %v7559_v1 = vmul.f32 %v4674_v54, %v7143_v17  ;;  %v4675_v6 = vld [vmem:[%s5181_s6 + $0x6d0] sm:$0xff]  ;;  %v4678_v44 = vld [vmem:[%s5181_s6 + $0x6e8] sm:$0xff] }
 0x32e   : > { %11023 = vst [vmem:[#allocation212_spill] sm:$0xff] %v7547_v43  ;;  %v7563_v14 = vmul.f32 %v4675_v6, %v7143_v17  ;;  %v4676_v43 = vld [vmem:[%s5181_s6 + $0x6d8] sm:$0xff]  ;;  %v4679_v54 = vld [vmem:[%s5181_s6 + $0x6f0] sm:$0xff]  ;;  %v7583_v6 = vmul.f32 %v4680_v29, %v7143_v17 }
 0x32f   : > { %11024 = vst [vmem:[#allocation213_spill] sm:$0xff] %v7551_v0  ;;  %v7567_v21 = vmul.f32 %v4676_v43, %v7143_v17  ;;  %v4677_v0 = vld [vmem:[%s5181_s6 + $0x6e0] sm:$0xff] }
 0x330   : > { %11025 = vst [vmem:[#allocation214_spill] sm:$0xff] %v7555_v19  ;;  %v7571_v37 = vmul.f32 %v4677_v0, %v7143_v17  ;;  %v7575_v19 = vmul.f32 %v4678_v44, %v7143_v17 }
 0x331   : > { %11026 = vst [vmem:[#allocation215_spill] sm:$0xff] %v7559_v1  ;;  %v7579_v1 = vmul.f32 %v4679_v54, %v7143_v17 }
 0x332   : > { %11027 = vst [vmem:[#allocation216_spill] sm:$0xff] %v7563_v14  ;;  %v4681_v14 = vld [vmem:[%s5181_s6 + $0x700] sm:$0xff] }
 0x333   : > { %11028 = vst [vmem:[#allocation217_spill] sm:$0xff] %v7567_v21  ;;  %v7587_v43 = vmul.f32 %v4681_v14, %v7143_v17  ;;  %v4682_v21 = vld [vmem:[%s5181_s6 + $0x708] sm:$0xff] }
 0x334   : > { %11029 = vst [vmem:[#allocation218_spill] sm:$0xff] %v7571_v37  ;;  %v7591_v0 = vmul.f32 %v4682_v21, %v7143_v17  ;;  %v4683_v37 = vld [vmem:[%s5181_s6 + $0x710] sm:$0xff] }
 0x335   : > { %11030 = vst [vmem:[#allocation219_spill] sm:$0xff] %v7575_v19  ;;  %v7595_v44 = vmul.f32 %v4683_v37, %v7143_v17  ;;  %v4684_v19 = vld [vmem:[%s5181_s6 + $0x718] sm:$0xff] }
 0x336   : > { %11031 = vst [vmem:[#allocation220_spill] sm:$0xff] %v7579_v1  ;;  %v7599_v54 = vmul.f32 %v4684_v19, %v7143_v17  ;;  %v11037_v1 = vld [vmem:[#allocation11_spill] sm:$0xff] }
 0x337   : > { %11032 = vst [vmem:[#allocation221_spill] sm:$0xff] %v7583_v6  ;;  %v7603_v29 = vmul.f32 %v7143_v17, %v11037_v1  ;;  %v11039_v6 = vld [vmem:[#allocation12_spill] sm:$0xff] }
 0x338   : > { %11033 = vst [vmem:[#allocation222_spill] sm:$0xff] %v7587_v43  ;;  %v7607_v14 = vmul.f32 %v7143_v17, %v11039_v6  ;;  %v11041_v43 = vld [vmem:[#allocation13_spill] sm:$0xff] }
 0x339   : > { %11034 = vst [vmem:[#allocation223_spill] sm:$0xff] %v7591_v0  ;;  %v7611_v21 = vmul.f32 %v7143_v17, %v11041_v43  ;;  %v11043_v0 = vld [vmem:[#allocation14_spill] sm:$0xff] }
 0x33a   : > { %11035 = vst [vmem:[#allocation224_spill] sm:$0xff] %v7595_v44  ;;  %v7615_v37 = vmul.f32 %v7143_v17, %v11043_v0  ;;  %v11045_v44 = vld [vmem:[#allocation15_spill] sm:$0xff] }
 0x33b   : > { %11036 = vst [vmem:[#allocation225_spill] sm:$0xff] %v7599_v54  ;;  %v7619_v19 = vmul.f32 %v7143_v17, %v11045_v44  ;;  %v11047_v54 = vld [vmem:[#allocation17_spill] sm:$0xff] }
 0x33c   : > { %11038 = vst [vmem:[#allocation11_spill] sm:$0xff] %v7603_v29  ;;  %v7623_v1 = vmul.f32 %v7143_v17, %v11047_v54  ;;  %v11049_v29 = vld [vmem:[#allocation19_spill] sm:$0xff] }
 0x33d   : > { %11040 = vst [vmem:[#allocation12_spill] sm:$0xff] %v7607_v14  ;;  %v7627_v6 = vmul.f32 %v7143_v17, %v11049_v29  ;;  %v11051_v14 = vld [vmem:[#allocation21_spill] sm:$0xff] }
 0x33e   : > { %11042 = vst [vmem:[#allocation13_spill] sm:$0xff] %v7611_v21  ;;  %v7631_v43 = vmul.f32 %v7143_v17, %v11051_v14  ;;  %v11053_v21 = vld [vmem:[#allocation23_spill] sm:$0xff]  ;;  %v7651_v14 = vmul.f32 %v7143_v17, %v6542_v41  ;;  %v7669_v41 = vmul.f32 %v7143_v17, %v6597_v32  ;;  %v7689_v32 = vmul.f32 %v7143_v17, %v6645_v15 }
 0x33f   : > { %11044 = vst [vmem:[#allocation14_spill] sm:$0xff] %v7615_v37  ;;  %v7635_v0 = vmul.f32 %v7143_v17, %v11053_v21  ;;  %v11055_v37 = vld [vmem:[#allocation25_spill] sm:$0xff]  ;;  %v7655_v21 = vmul.f32 %v7143_v17, %v6558_v51  ;;  %v7673_v51 = vmul.f32 %v7143_v17, %v6607_v11  ;;  %v7693_v11 = vmul.f32 %v7143_v17, %v6650_v20 }
 0x340   : > { %11046 = vst [vmem:[#allocation15_spill] sm:$0xff] %v7619_v19  ;;  %v7639_v44 = vmul.f32 %v7143_v17, %v11055_v37  ;;  %v11057_v19 = vld [vmem:[#allocation27_spill] sm:$0xff]  ;;  %v7661_v37 = vmul.f32 %v7143_v17, %v6571_v34  ;;  %v7681_v34 = vmul.f32 %v7143_v17, %v6628_v25  ;;  %v7701_v25 = vmul.f32 %v7143_v17, %v6660_v48  ;;  %v4686_v48 = vld [vmem:[%s5181_s6 + $0x808] sm:$0xff] }
 0x341   : > { %11048 = vst [vmem:[#allocation17_spill] sm:$0xff] %v7623_v1  ;;  %v7643_v54 = vmul.f32 %v7143_v17, %v11057_v19  ;;  %v11059_v1 = vld [vmem:[#allocation28_spill] sm:$0xff]  ;;  %v7665_v19 = vmul.f32 %v7143_v17, %v6585_v13  ;;  %v7685_v13 = vmul.f32 %v7143_v17, %v6638_v31  ;;  %v7705_v31 = vmul.f32 %v7143_v17, %v6665_v24  ;;  %v4687_v24 = vld [vmem:[%s5181_s6 + $0x810] sm:$0xff] }
 0x342   : > { %11050 = vst [vmem:[#allocation19_spill] sm:$0xff] %v7627_v6  ;;  %v7647_v29 = vmul.f32 %v7143_v17, %v11059_v1  ;;  %v7677_v1 = vmul.f32 %v7143_v17, %v6618_v50  ;;  %v7697_v50 = vmul.f32 %v7143_v17, %v6655_v23  ;;  %v7709_v15 = vmul.f32 %v7143_v17, %v6670_v55  ;;  %v4685_v23 = vld [vmem:[%s5181_s6 + $0x800] sm:$0xff]  ;;  %v4707_v6 = vld [vmem:[%s5181_s6 + $0x8b0] sm:$0xff] }
 0x343   : > { %11052 = vst [vmem:[#allocation21_spill] sm:$0xff] %v7631_v43  ;;  %v7713_v20 = vmul.f32 %v7143_v17, %v6675_v62  ;;  %v4689_v17 = vld [vmem:[%s5181_s6 + $0x820] sm:$0xff]  ;;  %v4706_v43 = vld [vmem:[%s5181_s6 + $0x8a8] sm:$0xff] }
 0x344   : > { %11054 = vst [vmem:[#allocation23_spill] sm:$0xff] %v7635_v0  ;;  %v7657_v0 = vpop.permute.xlu0 %2118 }
 0x345   : > { %11056 = vst [vmem:[#allocation25_spill] sm:$0xff] %v7639_v44  ;;  %v7725_v55 = vmul.f32 %v4687_v24, %v7657_v0  ;;  %v4705_v44 = vld [vmem:[%s5181_s6 + $0x8a0] sm:$0xff] }
 0x346   : > { %11058 = vst [vmem:[#allocation27_spill] sm:$0xff] %v7643_v54  ;;  %v4704_v54 = vld [vmem:[%s5181_s6 + $0x898] sm:$0xff] }
 0x347   : > { %11060 = vst [vmem:[#allocation28_spill] sm:$0xff] %v7647_v29  ;;  %v4703_v29 = vld [vmem:[%s5181_s6 + $0x890] sm:$0xff] }
 0x348   : > { %11061 = vst [vmem:[#allocation226_spill] sm:$0xff] %v7651_v14  ;;  %v4702_v14 = vld [vmem:[%s5181_s6 + $0x888] sm:$0xff] }
 0x349   : > { %11062 = vst [vmem:[#allocation227_spill] sm:$0xff] %v7655_v21  ;;  %v4701_v21 = vld [vmem:[%s5181_s6 + $0x880] sm:$0xff] }
 0x34a   : > { %11063 = vst [vmem:[#allocation228_spill] sm:$0xff] %v7661_v37  ;;  %v4700_v37 = vld [vmem:[%s5181_s6 + $0x878] sm:$0xff] }
 0x34b   : > { %11064 = vst [vmem:[#allocation229_spill] sm:$0xff] %v7665_v19  ;;  %v4699_v19 = vld [vmem:[%s5181_s6 + $0x870] sm:$0xff] }
 0x34c   : > { %11065 = vst [vmem:[#allocation230_spill] sm:$0xff] %v7669_v41  ;;  %v4698_v41 = vld [vmem:[%s5181_s6 + $0x868] sm:$0xff] }
 0x34d   : > { %11066 = vst [vmem:[#allocation231_spill] sm:$0xff] %v7673_v51  ;;  %v4697_v51 = vld [vmem:[%s5181_s6 + $0x860] sm:$0xff] }
 0x34e   : > { %11067 = vst [vmem:[#allocation232_spill] sm:$0xff] %v7677_v1  ;;  %v4696_v1 = vld [vmem:[%s5181_s6 + $0x858] sm:$0xff] }
 0x34f   : > { %11068 = vst [vmem:[#allocation233_spill] sm:$0xff] %v7681_v34  ;;  %v4695_v34 = vld [vmem:[%s5181_s6 + $0x850] sm:$0xff] }
 0x350   : > { %11069 = vst [vmem:[#allocation234_spill] sm:$0xff] %v7685_v13  ;;  %v4694_v13 = vld [vmem:[%s5181_s6 + $0x848] sm:$0xff] }
 0x351   : > { %11070 = vst [vmem:[#allocation235_spill] sm:$0xff] %v7689_v32  ;;  %v4693_v32 = vld [vmem:[%s5181_s6 + $0x840] sm:$0xff] }
 0x352   : > { %11071 = vst [vmem:[#allocation236_spill] sm:$0xff] %v7693_v11  ;;  %v4692_v11 = vld [vmem:[%s5181_s6 + $0x838] sm:$0xff] }
 0x353   : > { %11072 = vst [vmem:[#allocation237_spill] sm:$0xff] %v7697_v50  ;;  %v7717_v50 = vmul.f32 %v4685_v23, %v7657_v0  ;;  %v7733_v23 = vmul.f32 %v4689_v17, %v7657_v0  ;;  %v7749_v17 = vmul.f32 %v4693_v32, %v7657_v0  ;;  %v7765_v32 = vmul.f32 %v4697_v51, %v7657_v0 }
 0x354   : > { %11073 = vst [vmem:[#allocation238_spill] sm:$0xff] %v7701_v25  ;;  %v7721_v25 = vmul.f32 %v4686_v48, %v7657_v0  ;;  %v7781_v51 = vmul.f32 %v4701_v21, %v7657_v0  ;;  %v7797_v21 = vmul.f32 %v4705_v44, %v7657_v0  ;;  %v7813_v44 = vmul.f32 %v4709_v10, %v7657_v0 }
 0x355   : > { %11074 = vst [vmem:[#allocation239_spill] sm:$0xff] %v7705_v31  ;;  %v4691_v31 = vld [vmem:[%s5181_s6 + $0x830] sm:$0xff] }
 0x356   : > { %11075 = vst [vmem:[#allocation240_spill] sm:$0xff] %v7709_v15  ;;  %v4688_v15 = vld [vmem:[%s5181_s6 + $0x818] sm:$0xff]  ;;  %v7741_v24 = vmul.f32 %v4691_v31, %v7657_v0  ;;  %v7757_v31 = vmul.f32 %v4695_v34, %v7657_v0  ;;  %v7773_v34 = vmul.f32 %v4699_v19, %v7657_v0  ;;  %v7789_v19 = vmul.f32 %v4703_v29, %v7657_v0 }
 0x357   : > { %11076 = vst [vmem:[#allocation241_spill] sm:$0xff] %v7713_v20  ;;  %v7729_v62 = vmul.f32 %v4688_v15, %v7657_v0  ;;  %v4690_v20 = vld [vmem:[%s5181_s6 + $0x828] sm:$0xff]  ;;  %v7745_v15 = vmul.f32 %v4692_v11, %v7657_v0  ;;  %v7761_v11 = vmul.f32 %v4696_v1, %v7657_v0  ;;  %v7777_v1 = vmul.f32 %v4700_v37, %v7657_v0 }
 0x358   : > { %v7737_v48 = vmul.f32 %v4690_v20, %v7657_v0  ;;  %v7753_v20 = vmul.f32 %v4694_v13, %v7657_v0  ;;  %v7769_v13 = vmul.f32 %v4698_v41, %v7657_v0  ;;  %11077 = vst [vmem:[#allocation242_spill] sm:$0xff] %v7781_v51  ;;  %v7785_v41 = vmul.f32 %v4702_v14, %v7657_v0  ;;  %v4820_v51 = vld [vmem:[%s5181_s6 + $0xc40] sm:$0xff] }
 0x359   : > { %11079 = vst [vmem:[#allocation244_spill] sm:$0xff] %v7789_v19  ;;  %v7793_v37 = vmul.f32 %v4704_v54, %v7657_v0  ;;  %v7801_v14 = vmul.f32 %v4706_v43, %v7657_v0  ;;  %v7805_v29 = vmul.f32 %v4707_v6, %v7657_v0  ;;  %v7809_v54 = vmul.f32 %v4708_v12, %v7657_v0 }
 0x35a   : > { %11078 = vst [vmem:[#allocation243_spill] sm:$0xff] %v7785_v41  ;;  %v4819_v41 = vld [vmem:[%s5181_s6 + $0xc38] sm:$0xff] }
 0x35b   : > { %11080 = vst [vmem:[#allocation245_spill] sm:$0xff] %v7793_v37 }
 0x35c   : > { %11081 = vst [vmem:[#allocation246_spill] sm:$0xff] %v7797_v21  ;;  %v4710_v21 = vld [vmem:[%s5181_s6 + $0x8c8] sm:$0xff] }
 0x35d   : > { %11082 = vst [vmem:[#allocation247_spill] sm:$0xff] %v7801_v14  ;;  %v7817_v43 = vmul.f32 %v4710_v21, %v7657_v0  ;;  %v4711_v14 = vld [vmem:[%s5181_s6 + $0x8d0] sm:$0xff] }
 0x35e   : > { %11083 = vst [vmem:[#allocation248_spill] sm:$0xff] %v7805_v29  ;;  %v7821_v6 = vmul.f32 %v4711_v14, %v7657_v0  ;;  %v4712_v29 = vld [vmem:[%s5181_s6 + $0x8d8] sm:$0xff] }
 0x35f   : > { %11084 = vst [vmem:[#allocation249_spill] sm:$0xff] %v7809_v54  ;;  %v7825_v12 = vmul.f32 %v4712_v29, %v7657_v0  ;;  %v4713_v54 = vld [vmem:[%s5181_s6 + $0x8e0] sm:$0xff] }
 0x360   : > { %11085 = vst [vmem:[#allocation250_spill] sm:$0xff] %v7813_v44  ;;  %v7829_v10 = vmul.f32 %v4713_v54, %v7657_v0  ;;  %v4714_v44 = vld [vmem:[%s5181_s6 + $0x8e8] sm:$0xff] }
 0x361   : > { %11086 = vst [vmem:[#allocation251_spill] sm:$0xff] %v7817_v43  ;;  %v7833_v21 = vmul.f32 %v4714_v44, %v7657_v0  ;;  %v4715_v43 = vld [vmem:[%s5181_s6 + $0x8f0] sm:$0xff] }
 0x362   : > { %11087 = vst [vmem:[#allocation252_spill] sm:$0xff] %v7821_v6  ;;  %v7837_v14 = vmul.f32 %v4715_v43, %v7657_v0  ;;  %v4716_v6 = vld [vmem:[%s5181_s6 + $0x8f8] sm:$0xff] }
 0x363   : > { %11088 = vst [vmem:[#allocation253_spill] sm:$0xff] %v7825_v12  ;;  %v7841_v29 = vmul.f32 %v4716_v6, %v7657_v0  ;;  %v4717_v12 = vld [vmem:[%s5181_s6 + $0x900] sm:$0xff] }
 0x364   : > { %11089 = vst [vmem:[#allocation254_spill] sm:$0xff] %v7829_v10  ;;  %v7845_v54 = vmul.f32 %v4717_v12, %v7657_v0  ;;  %v4718_v10 = vld [vmem:[%s5181_s6 + $0x908] sm:$0xff] }
 0x365   : > { %11090 = vst [vmem:[#allocation255_spill] sm:$0xff] %v7833_v21  ;;  %v7849_v44 = vmul.f32 %v4718_v10, %v7657_v0  ;;  %v4719_v21 = vld [vmem:[%s5181_s6 + $0x910] sm:$0xff] }
 0x366   : > { %11091 = vst [vmem:[#allocation256_spill] sm:$0xff] %v7837_v14  ;;  %v7853_v43 = vmul.f32 %v4719_v21, %v7657_v0  ;;  %v4720_v14 = vld [vmem:[%s5181_s6 + $0x918] sm:$0xff] }
 0x367   : > { %11092 = vst [vmem:[#allocation257_spill] sm:$0xff] %v7841_v29  ;;  %v7857_v6 = vmul.f32 %v4720_v14, %v7657_v0  ;;  %v4721_v29 = vld [vmem:[%s5181_s6 + $0x920] sm:$0xff] }
 0x368   : > { %11093 = vst [vmem:[#allocation258_spill] sm:$0xff] %v7845_v54  ;;  %v7861_v12 = vmul.f32 %v4721_v29, %v7657_v0  ;;  %v4722_v54 = vld [vmem:[%s5181_s6 + $0x928] sm:$0xff] }
 0x369   : > { %11094 = vst [vmem:[#allocation259_spill] sm:$0xff] %v7849_v44  ;;  %v7865_v10 = vmul.f32 %v4722_v54, %v7657_v0  ;;  %v4723_v44 = vld [vmem:[%s5181_s6 + $0x930] sm:$0xff] }
 0x36a   : > { %11095 = vst [vmem:[#allocation260_spill] sm:$0xff] %v7853_v43  ;;  %v7869_v21 = vmul.f32 %v4723_v44, %v7657_v0  ;;  %v4724_v43 = vld [vmem:[%s5181_s6 + $0x938] sm:$0xff] }
 0x36b   : > { %11096 = vst [vmem:[#allocation261_spill] sm:$0xff] %v7857_v6  ;;  %v7873_v14 = vmul.f32 %v4724_v43, %v7657_v0  ;;  %v4725_v6 = vld [vmem:[%s5181_s6 + $0x940] sm:$0xff] }
 0x36c   : > { %11097 = vst [vmem:[#allocation262_spill] sm:$0xff] %v7861_v12  ;;  %v7877_v29 = vmul.f32 %v4725_v6, %v7657_v0  ;;  %v4726_v12 = vld [vmem:[%s5181_s6 + $0x948] sm:$0xff] }
 0x36d   : > { %11098 = vst [vmem:[#allocation263_spill] sm:$0xff] %v7865_v10  ;;  %v7881_v54 = vmul.f32 %v4726_v12, %v7657_v0  ;;  %v4727_v10 = vld [vmem:[%s5181_s6 + $0x950] sm:$0xff] }
 0x36e   : > { %11099 = vst [vmem:[#allocation264_spill] sm:$0xff] %v7869_v21  ;;  %v7885_v44 = vmul.f32 %v4727_v10, %v7657_v0  ;;  %v4728_v21 = vld [vmem:[%s5181_s6 + $0x958] sm:$0xff] }
 0x36f   : > { %11100 = vst [vmem:[#allocation265_spill] sm:$0xff] %v7873_v14  ;;  %v7889_v43 = vmul.f32 %v4728_v21, %v7657_v0  ;;  %v4729_v14 = vld [vmem:[%s5181_s6 + $0x960] sm:$0xff] }
 0x370   : > { %11101 = vst [vmem:[#allocation266_spill] sm:$0xff] %v7877_v29  ;;  %v7893_v6 = vmul.f32 %v4729_v14, %v7657_v0  ;;  %v4730_v29 = vld [vmem:[%s5181_s6 + $0x968] sm:$0xff] }
 0x371   : > { %11102 = vst [vmem:[#allocation267_spill] sm:$0xff] %v7881_v54  ;;  %v7897_v12 = vmul.f32 %v4730_v29, %v7657_v0  ;;  %v4731_v54 = vld [vmem:[%s5181_s6 + $0x970] sm:$0xff] }
 0x372   : > { %11103 = vst [vmem:[#allocation268_spill] sm:$0xff] %v7885_v44  ;;  %v7901_v10 = vmul.f32 %v4731_v54, %v7657_v0  ;;  %v4732_v44 = vld [vmem:[%s5181_s6 + $0x978] sm:$0xff] }
 0x373   : > { %11104 = vst [vmem:[#allocation269_spill] sm:$0xff] %v7889_v43  ;;  %v7905_v21 = vmul.f32 %v4732_v44, %v7657_v0  ;;  %v4733_v43 = vld [vmem:[%s5181_s6 + $0x980] sm:$0xff] }
 0x374   : > { %11105 = vst [vmem:[#allocation270_spill] sm:$0xff] %v7893_v6  ;;  %v7909_v14 = vmul.f32 %v4733_v43, %v7657_v0  ;;  %v4734_v6 = vld [vmem:[%s5181_s6 + $0x988] sm:$0xff] }
 0x375   : > { %11106 = vst [vmem:[#allocation271_spill] sm:$0xff] %v7897_v12  ;;  %v7913_v29 = vmul.f32 %v4734_v6, %v7657_v0  ;;  %v4735_v12 = vld [vmem:[%s5181_s6 + $0x990] sm:$0xff] }
 0x376   : > { %11107 = vst [vmem:[#allocation272_spill] sm:$0xff] %v7901_v10  ;;  %v7917_v54 = vmul.f32 %v4735_v12, %v7657_v0  ;;  %v4736_v10 = vld [vmem:[%s5181_s6 + $0x998] sm:$0xff] }
 0x377   : > { %11108 = vst [vmem:[#allocation273_spill] sm:$0xff] %v7905_v21  ;;  %v7921_v44 = vmul.f32 %v4736_v10, %v7657_v0  ;;  %v4737_v21 = vld [vmem:[%s5181_s6 + $0x9a0] sm:$0xff] }
 0x378   : > { %11109 = vst [vmem:[#allocation274_spill] sm:$0xff] %v7909_v14  ;;  %v7925_v43 = vmul.f32 %v4737_v21, %v7657_v0  ;;  %v4738_v14 = vld [vmem:[%s5181_s6 + $0x9a8] sm:$0xff] }
 0x379   : > { %11110 = vst [vmem:[#allocation275_spill] sm:$0xff] %v7913_v29  ;;  %v7929_v6 = vmul.f32 %v4738_v14, %v7657_v0  ;;  %v4739_v29 = vld [vmem:[%s5181_s6 + $0x9b0] sm:$0xff] }
 0x37a   : > { %11111 = vst [vmem:[#allocation276_spill] sm:$0xff] %v7917_v54  ;;  %v7933_v12 = vmul.f32 %v4739_v29, %v7657_v0  ;;  %v4740_v54 = vld [vmem:[%s5181_s6 + $0x9b8] sm:$0xff] }
 0x37b   : > { %11112 = vst [vmem:[#allocation277_spill] sm:$0xff] %v7921_v44  ;;  %v7937_v10 = vmul.f32 %v4740_v54, %v7657_v0  ;;  %v4741_v44 = vld [vmem:[%s5181_s6 + $0x9c0] sm:$0xff] }
 0x37c   : > { %11113 = vst [vmem:[#allocation278_spill] sm:$0xff] %v7925_v43  ;;  %v7941_v21 = vmul.f32 %v4741_v44, %v7657_v0  ;;  %v4742_v43 = vld [vmem:[%s5181_s6 + $0x9c8] sm:$0xff] }
 0x37d   : > { %11114 = vst [vmem:[#allocation279_spill] sm:$0xff] %v7929_v6  ;;  %v7945_v14 = vmul.f32 %v4742_v43, %v7657_v0  ;;  %v4743_v6 = vld [vmem:[%s5181_s6 + $0x9d0] sm:$0xff] }
 0x37e   : > { %11115 = vst [vmem:[#allocation280_spill] sm:$0xff] %v7933_v12  ;;  %v7949_v29 = vmul.f32 %v4743_v6, %v7657_v0  ;;  %v4744_v12 = vld [vmem:[%s5181_s6 + $0x9d8] sm:$0xff] }
 0x37f   : > { %11116 = vst [vmem:[#allocation281_spill] sm:$0xff] %v7937_v10  ;;  %v7953_v54 = vmul.f32 %v4744_v12, %v7657_v0  ;;  %v4745_v10 = vld [vmem:[%s5181_s6 + $0x9e0] sm:$0xff] }
 0x380   : > { %11117 = vst [vmem:[#allocation282_spill] sm:$0xff] %v7941_v21  ;;  %v7957_v44 = vmul.f32 %v4745_v10, %v7657_v0  ;;  %v4746_v21 = vld [vmem:[%s5181_s6 + $0x9e8] sm:$0xff] }
 0x381   : > { %11118 = vst [vmem:[#allocation283_spill] sm:$0xff] %v7945_v14  ;;  %v7961_v43 = vmul.f32 %v4746_v21, %v7657_v0  ;;  %v4747_v14 = vld [vmem:[%s5181_s6 + $0x9f0] sm:$0xff] }
 0x382   : > { %11119 = vst [vmem:[#allocation284_spill] sm:$0xff] %v7949_v29  ;;  %v7965_v6 = vmul.f32 %v4747_v14, %v7657_v0  ;;  %v4748_v29 = vld [vmem:[%s5181_s6 + $0x9f8] sm:$0xff] }
 0x383   : > { %11120 = vst [vmem:[#allocation285_spill] sm:$0xff] %v7953_v54  ;;  %v7969_v12 = vmul.f32 %v4748_v29, %v7657_v0  ;;  %v4749_v54 = vld [vmem:[%s5181_s6 + $0xa00] sm:$0xff] }
 0x384   : > { %11121 = vst [vmem:[#allocation286_spill] sm:$0xff] %v7957_v44  ;;  %v7973_v10 = vmul.f32 %v4749_v54, %v7657_v0  ;;  %v4750_v44 = vld [vmem:[%s5181_s6 + $0xa08] sm:$0xff] }
 0x385   : > { %11122 = vst [vmem:[#allocation287_spill] sm:$0xff] %v7961_v43  ;;  %v7977_v21 = vmul.f32 %v4750_v44, %v7657_v0  ;;  %v4751_v43 = vld [vmem:[%s5181_s6 + $0xa10] sm:$0xff] }
 0x386   : > { %11123 = vst [vmem:[#allocation288_spill] sm:$0xff] %v7965_v6  ;;  %v7981_v14 = vmul.f32 %v4751_v43, %v7657_v0  ;;  %v4752_v6 = vld [vmem:[%s5181_s6 + $0xa18] sm:$0xff] }
 0x387   : > { %11124 = vst [vmem:[#allocation289_spill] sm:$0xff] %v7969_v12  ;;  %v7985_v29 = vmul.f32 %v4752_v6, %v7657_v0  ;;  %v4753_v12 = vld [vmem:[%s5181_s6 + $0xa20] sm:$0xff] }
 0x388   : > { %11125 = vst [vmem:[#allocation290_spill] sm:$0xff] %v7973_v10  ;;  %v7989_v54 = vmul.f32 %v4753_v12, %v7657_v0  ;;  %v4754_v10 = vld [vmem:[%s5181_s6 + $0xa28] sm:$0xff] }
 0x389   : > { %11126 = vst [vmem:[#allocation291_spill] sm:$0xff] %v7977_v21  ;;  %v7993_v44 = vmul.f32 %v4754_v10, %v7657_v0  ;;  %v4755_v21 = vld [vmem:[%s5181_s6 + $0xa30] sm:$0xff] }
 0x38a   : > { %11127 = vst [vmem:[#allocation292_spill] sm:$0xff] %v7981_v14  ;;  %v7997_v43 = vmul.f32 %v4755_v21, %v7657_v0  ;;  %v4756_v14 = vld [vmem:[%s5181_s6 + $0xa38] sm:$0xff] }
 0x38b   : > { %11128 = vst [vmem:[#allocation293_spill] sm:$0xff] %v7985_v29  ;;  %v8001_v6 = vmul.f32 %v4756_v14, %v7657_v0  ;;  %v4757_v29 = vld [vmem:[%s5181_s6 + $0xa40] sm:$0xff] }
 0x38c   : > { %11129 = vst [vmem:[#allocation294_spill] sm:$0xff] %v7989_v54  ;;  %v8005_v12 = vmul.f32 %v4757_v29, %v7657_v0  ;;  %v4758_v54 = vld [vmem:[%s5181_s6 + $0xa48] sm:$0xff] }
 0x38d   : > { %11130 = vst [vmem:[#allocation295_spill] sm:$0xff] %v7993_v44  ;;  %v8009_v10 = vmul.f32 %v4758_v54, %v7657_v0  ;;  %v4759_v44 = vld [vmem:[%s5181_s6 + $0xa50] sm:$0xff] }
 0x38e   : > { %11131 = vst [vmem:[#allocation296_spill] sm:$0xff] %v7997_v43  ;;  %v8013_v21 = vmul.f32 %v4759_v44, %v7657_v0  ;;  %v4760_v43 = vld [vmem:[%s5181_s6 + $0xa58] sm:$0xff] }
 0x38f   : > { %11132 = vst [vmem:[#allocation297_spill] sm:$0xff] %v8001_v6  ;;  %v8017_v14 = vmul.f32 %v4760_v43, %v7657_v0  ;;  %v4761_v6 = vld [vmem:[%s5181_s6 + $0xa60] sm:$0xff] }
 0x390   : > { %11133 = vst [vmem:[#allocation298_spill] sm:$0xff] %v8005_v12  ;;  %v8021_v29 = vmul.f32 %v4761_v6, %v7657_v0  ;;  %v4762_v12 = vld [vmem:[%s5181_s6 + $0xa68] sm:$0xff] }
 0x391   : > { %11134 = vst [vmem:[#allocation299_spill] sm:$0xff] %v8009_v10  ;;  %v8025_v54 = vmul.f32 %v4762_v12, %v7657_v0  ;;  %v4763_v10 = vld [vmem:[%s5181_s6 + $0xa70] sm:$0xff] }
 0x392   : > { %11135 = vst [vmem:[#allocation300_spill] sm:$0xff] %v8013_v21  ;;  %v8029_v44 = vmul.f32 %v4763_v10, %v7657_v0  ;;  %v4764_v21 = vld [vmem:[%s5181_s6 + $0xa78] sm:$0xff] }
 0x393   : > { %11136 = vst [vmem:[#allocation301_spill] sm:$0xff] %v8017_v14  ;;  %v8033_v43 = vmul.f32 %v4764_v21, %v7657_v0  ;;  %v4765_v14 = vld [vmem:[%s5181_s6 + $0xa80] sm:$0xff] }
 0x394   : > { %11137 = vst [vmem:[#allocation302_spill] sm:$0xff] %v8021_v29  ;;  %v8037_v6 = vmul.f32 %v4765_v14, %v7657_v0  ;;  %v4766_v29 = vld [vmem:[%s5181_s6 + $0xa88] sm:$0xff] }
 0x395   : > { %11138 = vst [vmem:[#allocation303_spill] sm:$0xff] %v8025_v54  ;;  %v8041_v12 = vmul.f32 %v4766_v29, %v7657_v0  ;;  %v4767_v54 = vld [vmem:[%s5181_s6 + $0xa90] sm:$0xff] }
 0x396   : > { %11139 = vst [vmem:[#allocation304_spill] sm:$0xff] %v8029_v44  ;;  %v8045_v10 = vmul.f32 %v4767_v54, %v7657_v0  ;;  %v4768_v44 = vld [vmem:[%s5181_s6 + $0xa98] sm:$0xff] }
 0x397   : > { %11140 = vst [vmem:[#allocation305_spill] sm:$0xff] %v8033_v43  ;;  %v8049_v21 = vmul.f32 %v4768_v44, %v7657_v0  ;;  %v4769_v43 = vld [vmem:[%s5181_s6 + $0xaa0] sm:$0xff] }
 0x398   : > { %11141 = vst [vmem:[#allocation306_spill] sm:$0xff] %v8037_v6  ;;  %v8053_v14 = vmul.f32 %v4769_v43, %v7657_v0  ;;  %v4770_v6 = vld [vmem:[%s5181_s6 + $0xaa8] sm:$0xff] }
 0x399   : > { %11142 = vst [vmem:[#allocation307_spill] sm:$0xff] %v8041_v12  ;;  %v8057_v29 = vmul.f32 %v4770_v6, %v7657_v0  ;;  %v4771_v12 = vld [vmem:[%s5181_s6 + $0xab0] sm:$0xff] }
 0x39a   : > { %11143 = vst [vmem:[#allocation308_spill] sm:$0xff] %v8045_v10  ;;  %v8061_v54 = vmul.f32 %v4771_v12, %v7657_v0  ;;  %v4772_v10 = vld [vmem:[%s5181_s6 + $0xab8] sm:$0xff] }
 0x39b   : > { %11144 = vst [vmem:[#allocation309_spill] sm:$0xff] %v8049_v21  ;;  %v8065_v44 = vmul.f32 %v4772_v10, %v7657_v0  ;;  %v4773_v21 = vld [vmem:[%s5181_s6 + $0xac0] sm:$0xff] }
 0x39c   : > { %11145 = vst [vmem:[#allocation310_spill] sm:$0xff] %v8053_v14  ;;  %v8069_v43 = vmul.f32 %v4773_v21, %v7657_v0  ;;  %v4774_v14 = vld [vmem:[%s5181_s6 + $0xac8] sm:$0xff] }
 0x39d   : > { %11146 = vst [vmem:[#allocation311_spill] sm:$0xff] %v8057_v29  ;;  %v8073_v6 = vmul.f32 %v4774_v14, %v7657_v0  ;;  %v4775_v29 = vld [vmem:[%s5181_s6 + $0xad0] sm:$0xff] }
 0x39e   : > { %11147 = vst [vmem:[#allocation312_spill] sm:$0xff] %v8061_v54  ;;  %v8077_v12 = vmul.f32 %v4775_v29, %v7657_v0  ;;  %v4776_v54 = vld [vmem:[%s5181_s6 + $0xad8] sm:$0xff] }
 0x39f   : > { %11148 = vst [vmem:[#allocation313_spill] sm:$0xff] %v8065_v44  ;;  %v8081_v10 = vmul.f32 %v4776_v54, %v7657_v0  ;;  %v4777_v44 = vld [vmem:[%s5181_s6 + $0xae0] sm:$0xff] }
 0x3a0   : > { %11149 = vst [vmem:[#allocation314_spill] sm:$0xff] %v8069_v43  ;;  %v8085_v21 = vmul.f32 %v4777_v44, %v7657_v0  ;;  %v4778_v43 = vld [vmem:[%s5181_s6 + $0xae8] sm:$0xff] }
 0x3a1   : > { %11150 = vst [vmem:[#allocation315_spill] sm:$0xff] %v8073_v6  ;;  %v8089_v14 = vmul.f32 %v4778_v43, %v7657_v0  ;;  %v4779_v6 = vld [vmem:[%s5181_s6 + $0xaf0] sm:$0xff] }
 0x3a2   : > { %11151 = vst [vmem:[#allocation316_spill] sm:$0xff] %v8077_v12  ;;  %v8093_v29 = vmul.f32 %v4779_v6, %v7657_v0  ;;  %v4780_v12 = vld [vmem:[%s5181_s6 + $0xaf8] sm:$0xff] }
 0x3a3   : > { %11152 = vst [vmem:[#allocation317_spill] sm:$0xff] %v8081_v10  ;;  %v8097_v54 = vmul.f32 %v4780_v12, %v7657_v0  ;;  %v4781_v10 = vld [vmem:[%s5181_s6 + $0xb00] sm:$0xff] }
 0x3a4   : > { %11153 = vst [vmem:[#allocation318_spill] sm:$0xff] %v8085_v21  ;;  %v8101_v44 = vmul.f32 %v4781_v10, %v7657_v0  ;;  %v4782_v21 = vld [vmem:[%s5181_s6 + $0xb08] sm:$0xff] }
 0x3a5   : > { %11154 = vst [vmem:[#allocation319_spill] sm:$0xff] %v8089_v14  ;;  %v8105_v43 = vmul.f32 %v4782_v21, %v7657_v0  ;;  %v4783_v14 = vld [vmem:[%s5181_s6 + $0xb10] sm:$0xff] }
 0x3a6   : > { %11155 = vst [vmem:[#allocation320_spill] sm:$0xff] %v8093_v29  ;;  %v8109_v6 = vmul.f32 %v4783_v14, %v7657_v0  ;;  %v4784_v29 = vld [vmem:[%s5181_s6 + $0xb18] sm:$0xff] }
 0x3a7   : > { %11156 = vst [vmem:[#allocation321_spill] sm:$0xff] %v8097_v54  ;;  %v8113_v12 = vmul.f32 %v4784_v29, %v7657_v0  ;;  %v4785_v54 = vld [vmem:[%s5181_s6 + $0xb20] sm:$0xff] }
 0x3a8   : > { %11157 = vst [vmem:[#allocation322_spill] sm:$0xff] %v8101_v44  ;;  %v8117_v10 = vmul.f32 %v4785_v54, %v7657_v0  ;;  %v4786_v44 = vld [vmem:[%s5181_s6 + $0xb28] sm:$0xff] }
 0x3a9   : > { %11158 = vst [vmem:[#allocation323_spill] sm:$0xff] %v8105_v43  ;;  %v8121_v21 = vmul.f32 %v4786_v44, %v7657_v0  ;;  %v4787_v43 = vld [vmem:[%s5181_s6 + $0xb30] sm:$0xff] }
 0x3aa   : > { %11159 = vst [vmem:[#allocation324_spill] sm:$0xff] %v8109_v6  ;;  %v8125_v14 = vmul.f32 %v4787_v43, %v7657_v0  ;;  %v4788_v6 = vld [vmem:[%s5181_s6 + $0xb38] sm:$0xff] }
 0x3ab   : > { %11160 = vst [vmem:[#allocation325_spill] sm:$0xff] %v8113_v12  ;;  %v8129_v29 = vmul.f32 %v4788_v6, %v7657_v0  ;;  %v4789_v12 = vld [vmem:[%s5181_s6 + $0xb40] sm:$0xff]  ;;  %v4792_v43 = vld [vmem:[%s5181_s6 + $0xb58] sm:$0xff] }
 0x3ac   : > { %11161 = vst [vmem:[#allocation326_spill] sm:$0xff] %v8117_v10  ;;  %v8133_v54 = vmul.f32 %v4789_v12, %v7657_v0  ;;  %v4790_v10 = vld [vmem:[%s5181_s6 + $0xb48] sm:$0xff]  ;;  %v4793_v6 = vld [vmem:[%s5181_s6 + $0xb60] sm:$0xff] }
 0x3ad   : > { %11162 = vst [vmem:[#allocation327_spill] sm:$0xff] %v8121_v21  ;;  %v8137_v44 = vmul.f32 %v4790_v10, %v7657_v0  ;;  %v4791_v21 = vld [vmem:[%s5181_s6 + $0xb50] sm:$0xff]  ;;  %v4794_v12 = vld [vmem:[%s5181_s6 + $0xb68] sm:$0xff] }
 0x3ae   : > { %11163 = vst [vmem:[#allocation328_spill] sm:$0xff] %v8125_v14  ;;  %v8141_v37 = vmul.f32 %v4791_v21, %v7657_v0  ;;  %v8145_v14 = vmul.f32 %v4792_v43, %v7657_v0  ;;  %v4795_v10 = vld [vmem:[%s5181_s6 + $0xb70] sm:$0xff] }
 0x3af   : > { %11164 = vst [vmem:[#allocation329_spill] sm:$0xff] %v8129_v29  ;;  %v8149_v29 = vmul.f32 %v4793_v6, %v7657_v0  ;;  %v8157_v21 = vmul.f32 %v4795_v10, %v7657_v0  ;;  %v4799_v10 = vld [vmem:[%s5181_s6 + $0xb90] sm:$0xff] }
 0x3b0   : > { %11165 = vst [vmem:[#allocation330_spill] sm:$0xff] %v8133_v54  ;;  %v8153_v54 = vmul.f32 %v4794_v12, %v7657_v0 }
 0x3b1   : > { %11166 = vst [vmem:[#allocation331_spill] sm:$0xff] %v8137_v44  ;;  %v4803_v44 = vld [vmem:[%s5181_s6 + $0xbb0] sm:$0xff] }
 0x3b2   : > { %11167 = vst [vmem:[#allocation332_spill] sm:$0xff] %v8141_v37  ;;  %v4796_v37 = vld [vmem:[%s5181_s6 + $0xb78] sm:$0xff] }
 0x3b3   : > { %11168 = vst [vmem:[#allocation333_spill] sm:$0xff] %v8145_v14  ;;  %v8161_v43 = vmul.f32 %v4796_v37, %v7657_v0  ;;  %v4797_v14 = vld [vmem:[%s5181_s6 + $0xb80] sm:$0xff]  ;;  %v4800_v37 = vld [vmem:[%s5181_s6 + $0xb98] sm:$0xff] }
 0x3b4   : > { %11169 = vst [vmem:[#allocation334_spill] sm:$0xff] %v8149_v29  ;;  %v8165_v6 = vmul.f32 %v4797_v14, %v7657_v0  ;;  %v4798_v29 = vld [vmem:[%s5181_s6 + $0xb88] sm:$0xff]  ;;  %v4801_v14 = vld [vmem:[%s5181_s6 + $0xba0] sm:$0xff] }
 0x3b5   : > { %11170 = vst [vmem:[#allocation335_spill] sm:$0xff] %v8153_v54  ;;  %v8169_v12 = vmul.f32 %v4798_v29, %v7657_v0  ;;  %v8171_v54 = vpop.permute.xlu1 %2123  ;;  %v4802_v29 = vld [vmem:[%s5181_s6 + $0xba8] sm:$0xff] }
 0x3b6   : > { %11171 = vst [vmem:[#allocation336_spill] sm:$0xff] %v8157_v21  ;;  %v8175_v21 = vmul.f32 %v4799_v10, %v7657_v0  ;;  %v8191_v10 = vmul.f32 %v4803_v44, %v7657_v0  ;;  %v4808_v44 = vld [vmem:[%s5181_s6 + $0xbd8] sm:$0xff] }
 0x3b7   : > { %11172 = vst [vmem:[#allocation337_spill] sm:$0xff] %v8161_v43  ;;  %v8179_v43 = vmul.f32 %v4800_v37, %v7657_v0  ;;  %v4805_v37 = vld [vmem:[%s5181_s6 + $0xbc0] sm:$0xff] }
 0x3b8   : > { %11173 = vst [vmem:[#allocation338_spill] sm:$0xff] %v8165_v6  ;;  %v8183_v6 = vmul.f32 %v4801_v14, %v7657_v0  ;;  %v4806_v14 = vld [vmem:[%s5181_s6 + $0xbc8] sm:$0xff] }
 0x3b9   : > { %11174 = vst [vmem:[#allocation339_spill] sm:$0xff] %v8169_v12  ;;  %v8187_v12 = vmul.f32 %v4802_v29, %v7657_v0  ;;  %v4807_v29 = vld [vmem:[%s5181_s6 + $0xbd0] sm:$0xff] }
 0x3ba   : > { %11175 = vst [vmem:[#allocation340_spill] sm:$0xff] %v8175_v21  ;;  %v4804_v21 = vld [vmem:[%s5181_s6 + $0xbb8] sm:$0xff] }
 0x3bb   : > { %11176 = vst [vmem:[#allocation341_spill] sm:$0xff] %v8179_v43  ;;  %v8195_v19 = vmul.f32 %v4804_v21, %v7657_v0  ;;  %v8199_v43 = vmul.f32 %v4805_v37, %v7657_v0  ;;  %v8211_v21 = vmul.f32 %v4808_v44, %v7657_v0 }
 0x3bc   : > { %11177 = vst [vmem:[#allocation342_spill] sm:$0xff] %v8183_v6  ;;  %v8203_v6 = vmul.f32 %v4806_v14, %v7657_v0 }
 0x3bd   : > { %11178 = vst [vmem:[#allocation343_spill] sm:$0xff] %v8187_v12  ;;  %v8207_v12 = vmul.f32 %v4807_v29, %v7657_v0 }
 0x3be   : > { %11179 = vst [vmem:[#allocation344_spill] sm:$0xff] %v8191_v10  ;;  %v4818_v10 = vld [vmem:[%s5181_s6 + $0xc30] sm:$0xff] }
 0x3bf   : > { %11180 = vst [vmem:[#allocation345_spill] sm:$0xff] %v8195_v19  ;;  %v4809_v19 = vld [vmem:[%s5181_s6 + $0xbe0] sm:$0xff] }
 0x3c0   : > { %11181 = vst [vmem:[#allocation346_spill] sm:$0xff] %v8199_v43  ;;  %v8215_v37 = vmul.f32 %v4809_v19, %v7657_v0  ;;  %v4810_v43 = vld [vmem:[%s5181_s6 + $0xbe8] sm:$0xff] }
 0x3c1   : > { %11182 = vst [vmem:[#allocation347_spill] sm:$0xff] %v8203_v6  ;;  %v8219_v14 = vmul.f32 %v4810_v43, %v7657_v0  ;;  %v4811_v6 = vld [vmem:[%s5181_s6 + $0xbf0] sm:$0xff] }
 0x3c2   : > { %11183 = vst [vmem:[#allocation348_spill] sm:$0xff] %v8207_v12  ;;  %v8223_v29 = vmul.f32 %v4811_v6, %v7657_v0  ;;  %v11188_v12 = vld [vmem:[#allocation29_spill] sm:$0xff] }
 0x3c3   : > { %11184 = vst [vmem:[#allocation349_spill] sm:$0xff] %v8211_v21  ;;  %v8227_v44 = vmul.f32 %v7657_v0, %v11188_v12  ;;  %v4812_v21 = vld [vmem:[%s5181_s6 + $0xc00] sm:$0xff] }
 0x3c4   : > { %11185 = vst [vmem:[#allocation350_spill] sm:$0xff] %v8215_v37  ;;  %v8231_v19 = vmul.f32 %v4812_v21, %v8171_v54  ;;  %v4813_v37 = vld [vmem:[%s5181_s6 + $0xc08] sm:$0xff]  ;;  %v4816_v12 = vld [vmem:[%s5181_s6 + $0xc20] sm:$0xff] }
 0x3c5   : > { %11186 = vst [vmem:[#allocation351_spill] sm:$0xff] %v8219_v14  ;;  %v8235_v43 = vmul.f32 %v4813_v37, %v8171_v54  ;;  %v4814_v14 = vld [vmem:[%s5181_s6 + $0xc10] sm:$0xff]  ;;  %v8247_v21 = vmul.f32 %v4816_v12, %v8171_v54  ;;  %v8263_v12 = vmul.f32 %v4820_v51, %v8171_v54  ;;  %v8279_v51 = vmul.f32 %v4824_v61, %v8171_v54 }
 0x3c6   : > { %11187 = vst [vmem:[#allocation352_spill] sm:$0xff] %v8223_v29  ;;  %v8239_v6 = vmul.f32 %v4814_v14, %v8171_v54  ;;  %v4815_v29 = vld [vmem:[%s5181_s6 + $0xc18] sm:$0xff]  ;;  %v8255_v14 = vmul.f32 %v4818_v10, %v8171_v54  ;;  %v8271_v10 = vmul.f32 %v4822_v40, %v8171_v54  ;;  %v8287_v40 = vmul.f32 %v4826_v59, %v8171_v54 }
 0x3c7   : > { %11189 = vst [vmem:[#allocation29_spill] sm:$0xff] %v8227_v44  ;;  %v8243_v0 = vmul.f32 %v4815_v29, %v8171_v54  ;;  %v4817_v44 = vld [vmem:[%s5181_s6 + $0xc28] sm:$0xff]  ;;  %v8259_v29 = vmul.f32 %v4819_v41, %v8171_v54  ;;  %v8275_v41 = vmul.f32 %v4823_v26, %v8171_v54  ;;  %v8291_v26 = vmul.f32 %v4827_v30, %v8171_v54 }
 0x3c8   : > { %v8251_v37 = vmul.f32 %v4817_v44, %v8171_v54  ;;  %v8267_v44 = vmul.f32 %v4821_v39, %v8171_v54  ;;  %11190 = vst [vmem:[#allocation353_spill] sm:$0xff] %v8271_v10  ;;  %v8283_v39 = vmul.f32 %v4825_v18, %v8171_v54  ;;  %v8295_v61 = vmul.f32 %v4828_v63, %v8171_v54  ;;  %v4913_v10 = vld [vmem:[%s5181_s6 + $0xf28] sm:$0xff] }
 0x3c9   : > { %11191 = vst [vmem:[#allocation354_spill] sm:$0xff] %v8275_v41 }
 0x3ca   : > { %11192 = vst [vmem:[#allocation355_spill] sm:$0xff] %v8279_v51  ;;  %v4829_v51 = vld [vmem:[%s5181_s6 + $0xc88] sm:$0xff] }
 0x3cb   : > { %11193 = vst [vmem:[#allocation356_spill] sm:$0xff] %v8283_v39  ;;  %v8299_v18 = vmul.f32 %v4829_v51, %v8171_v54  ;;  %v4830_v39 = vld [vmem:[%s5181_s6 + $0xc90] sm:$0xff] }
 0x3cc   : > { %11194 = vst [vmem:[#allocation357_spill] sm:$0xff] %v8287_v40  ;;  %v8303_v59 = vmul.f32 %v4830_v39, %v8171_v54  ;;  %v4831_v40 = vld [vmem:[%s5181_s6 + $0xc98] sm:$0xff] }
 0x3cd   : > { %11195 = vst [vmem:[#allocation358_spill] sm:$0xff] %v8291_v26  ;;  %v8307_v30 = vmul.f32 %v4831_v40, %v8171_v54  ;;  %v4832_v26 = vld [vmem:[%s5181_s6 + $0xca0] sm:$0xff] }
 0x3ce   : > { %11196 = vst [vmem:[#allocation359_spill] sm:$0xff] %v8295_v61  ;;  %v8311_v63 = vmul.f32 %v4832_v26, %v8171_v54  ;;  %v4833_v61 = vld [vmem:[%s5181_s6 + $0xca8] sm:$0xff] }
 0x3cf   : > { %11197 = vst [vmem:[#allocation360_spill] sm:$0xff] %v8299_v18  ;;  %v8315_v51 = vmul.f32 %v4833_v61, %v8171_v54  ;;  %v4834_v18 = vld [vmem:[%s5181_s6 + $0xcb0] sm:$0xff] }
 0x3d0   : > { %11198 = vst [vmem:[#allocation361_spill] sm:$0xff] %v8303_v59  ;;  %v8319_v39 = vmul.f32 %v4834_v18, %v8171_v54  ;;  %v4835_v59 = vld [vmem:[%s5181_s6 + $0xcb8] sm:$0xff] }
 0x3d1   : > { %11199 = vst [vmem:[#allocation362_spill] sm:$0xff] %v8307_v30  ;;  %v8323_v40 = vmul.f32 %v4835_v59, %v8171_v54  ;;  %v4836_v30 = vld [vmem:[%s5181_s6 + $0xcc0] sm:$0xff] }
 0x3d2   : > { %11200 = vst [vmem:[#allocation363_spill] sm:$0xff] %v8311_v63  ;;  %v8327_v26 = vmul.f32 %v4836_v30, %v8171_v54  ;;  %v4837_v63 = vld [vmem:[%s5181_s6 + $0xcc8] sm:$0xff] }
 0x3d3   : > { %11201 = vst [vmem:[#allocation364_spill] sm:$0xff] %v8315_v51  ;;  %v8331_v61 = vmul.f32 %v4837_v63, %v8171_v54  ;;  %v4838_v51 = vld [vmem:[%s5181_s6 + $0xcd0] sm:$0xff] }
 0x3d4   : > { %11202 = vst [vmem:[#allocation365_spill] sm:$0xff] %v8319_v39  ;;  %v8335_v18 = vmul.f32 %v4838_v51, %v8171_v54  ;;  %v4839_v39 = vld [vmem:[%s5181_s6 + $0xcd8] sm:$0xff] }
 0x3d5   : > { %11203 = vst [vmem:[#allocation366_spill] sm:$0xff] %v8323_v40  ;;  %v8339_v59 = vmul.f32 %v4839_v39, %v8171_v54  ;;  %v4840_v40 = vld [vmem:[%s5181_s6 + $0xce0] sm:$0xff] }
 0x3d6   : > { %11204 = vst [vmem:[#allocation367_spill] sm:$0xff] %v8327_v26  ;;  %v8343_v30 = vmul.f32 %v4840_v40, %v8171_v54  ;;  %v4841_v26 = vld [vmem:[%s5181_s6 + $0xce8] sm:$0xff] }
 0x3d7   : > { %11205 = vst [vmem:[#allocation368_spill] sm:$0xff] %v8331_v61  ;;  %v8347_v63 = vmul.f32 %v4841_v26, %v8171_v54  ;;  %v4842_v61 = vld [vmem:[%s5181_s6 + $0xcf0] sm:$0xff] }
 0x3d8   : > { %11206 = vst [vmem:[#allocation369_spill] sm:$0xff] %v8335_v18  ;;  %v8351_v51 = vmul.f32 %v4842_v61, %v8171_v54  ;;  %v4843_v18 = vld [vmem:[%s5181_s6 + $0xcf8] sm:$0xff] }
 0x3d9   : > { %11207 = vst [vmem:[#allocation370_spill] sm:$0xff] %v8339_v59  ;;  %v8355_v39 = vmul.f32 %v4843_v18, %v8171_v54  ;;  %v4844_v59 = vld [vmem:[%s5181_s6 + $0xd00] sm:$0xff] }
 0x3da   : > { %11208 = vst [vmem:[#allocation371_spill] sm:$0xff] %v8343_v30  ;;  %v8359_v40 = vmul.f32 %v4844_v59, %v8171_v54  ;;  %v4845_v30 = vld [vmem:[%s5181_s6 + $0xd08] sm:$0xff] }
 0x3db   : > { %11209 = vst [vmem:[#allocation372_spill] sm:$0xff] %v8347_v63  ;;  %v8363_v26 = vmul.f32 %v4845_v30, %v8171_v54  ;;  %v4846_v63 = vld [vmem:[%s5181_s6 + $0xd10] sm:$0xff] }
 0x3dc   : > { %11210 = vst [vmem:[#allocation373_spill] sm:$0xff] %v8351_v51  ;;  %v8367_v61 = vmul.f32 %v4846_v63, %v8171_v54  ;;  %v4847_v51 = vld [vmem:[%s5181_s6 + $0xd18] sm:$0xff] }
 0x3dd   : > { %11211 = vst [vmem:[#allocation374_spill] sm:$0xff] %v8355_v39  ;;  %v8371_v18 = vmul.f32 %v4847_v51, %v8171_v54  ;;  %v4848_v39 = vld [vmem:[%s5181_s6 + $0xd20] sm:$0xff] }
 0x3de   : > { %11212 = vst [vmem:[#allocation375_spill] sm:$0xff] %v8359_v40  ;;  %v8375_v59 = vmul.f32 %v4848_v39, %v8171_v54  ;;  %v4849_v40 = vld [vmem:[%s5181_s6 + $0xd28] sm:$0xff] }
 0x3df   : > { %11213 = vst [vmem:[#allocation376_spill] sm:$0xff] %v8363_v26  ;;  %v8379_v30 = vmul.f32 %v4849_v40, %v8171_v54  ;;  %v4850_v26 = vld [vmem:[%s5181_s6 + $0xd30] sm:$0xff] }
 0x3e0   : > { %11214 = vst [vmem:[#allocation377_spill] sm:$0xff] %v8367_v61  ;;  %v8383_v63 = vmul.f32 %v4850_v26, %v8171_v54  ;;  %v4851_v61 = vld [vmem:[%s5181_s6 + $0xd38] sm:$0xff] }
 0x3e1   : > { %11215 = vst [vmem:[#allocation378_spill] sm:$0xff] %v8371_v18  ;;  %v8387_v51 = vmul.f32 %v4851_v61, %v8171_v54  ;;  %v4852_v18 = vld [vmem:[%s5181_s6 + $0xd40] sm:$0xff] }
 0x3e2   : > { %11216 = vst [vmem:[#allocation379_spill] sm:$0xff] %v8375_v59  ;;  %v8391_v39 = vmul.f32 %v4852_v18, %v8171_v54  ;;  %v4853_v59 = vld [vmem:[%s5181_s6 + $0xd48] sm:$0xff] }
 0x3e3   : > { %11217 = vst [vmem:[#allocation380_spill] sm:$0xff] %v8379_v30  ;;  %v8395_v40 = vmul.f32 %v4853_v59, %v8171_v54  ;;  %v4854_v30 = vld [vmem:[%s5181_s6 + $0xd50] sm:$0xff] }
 0x3e4   : > { %11218 = vst [vmem:[#allocation381_spill] sm:$0xff] %v8383_v63  ;;  %v8399_v26 = vmul.f32 %v4854_v30, %v8171_v54  ;;  %v4855_v63 = vld [vmem:[%s5181_s6 + $0xd58] sm:$0xff] }
 0x3e5   : > { %11219 = vst [vmem:[#allocation382_spill] sm:$0xff] %v8387_v51  ;;  %v8403_v61 = vmul.f32 %v4855_v63, %v8171_v54  ;;  %v4856_v51 = vld [vmem:[%s5181_s6 + $0xd60] sm:$0xff] }
 0x3e6   : > { %11220 = vst [vmem:[#allocation383_spill] sm:$0xff] %v8391_v39  ;;  %v8407_v18 = vmul.f32 %v4856_v51, %v8171_v54  ;;  %v4857_v39 = vld [vmem:[%s5181_s6 + $0xd68] sm:$0xff] }
 0x3e7   : > { %11221 = vst [vmem:[#allocation384_spill] sm:$0xff] %v8395_v40  ;;  %v8411_v59 = vmul.f32 %v4857_v39, %v8171_v54  ;;  %v4858_v40 = vld [vmem:[%s5181_s6 + $0xd70] sm:$0xff] }
 0x3e8   : > { %11222 = vst [vmem:[#allocation385_spill] sm:$0xff] %v8399_v26  ;;  %v8415_v30 = vmul.f32 %v4858_v40, %v8171_v54  ;;  %v4859_v26 = vld [vmem:[%s5181_s6 + $0xd78] sm:$0xff] }
 0x3e9   : > { %11223 = vst [vmem:[#allocation386_spill] sm:$0xff] %v8403_v61  ;;  %v8419_v63 = vmul.f32 %v4859_v26, %v8171_v54  ;;  %v4860_v61 = vld [vmem:[%s5181_s6 + $0xd80] sm:$0xff] }
 0x3ea   : > { %11224 = vst [vmem:[#allocation387_spill] sm:$0xff] %v8407_v18  ;;  %v8423_v51 = vmul.f32 %v4860_v61, %v8171_v54  ;;  %v4861_v18 = vld [vmem:[%s5181_s6 + $0xd88] sm:$0xff] }
 0x3eb   : > { %11225 = vst [vmem:[#allocation388_spill] sm:$0xff] %v8411_v59  ;;  %v8427_v39 = vmul.f32 %v4861_v18, %v8171_v54  ;;  %v4862_v59 = vld [vmem:[%s5181_s6 + $0xd90] sm:$0xff] }
 0x3ec   : > { %11226 = vst [vmem:[#allocation389_spill] sm:$0xff] %v8415_v30  ;;  %v8431_v40 = vmul.f32 %v4862_v59, %v8171_v54  ;;  %v4863_v30 = vld [vmem:[%s5181_s6 + $0xd98] sm:$0xff] }
 0x3ed   : > { %11227 = vst [vmem:[#allocation390_spill] sm:$0xff] %v8419_v63  ;;  %v8435_v26 = vmul.f32 %v4863_v30, %v8171_v54  ;;  %v4864_v63 = vld [vmem:[%s5181_s6 + $0xda0] sm:$0xff] }
 0x3ee   : > { %11228 = vst [vmem:[#allocation391_spill] sm:$0xff] %v8423_v51  ;;  %v8439_v61 = vmul.f32 %v4864_v63, %v8171_v54  ;;  %v4865_v51 = vld [vmem:[%s5181_s6 + $0xda8] sm:$0xff] }
 0x3ef   : > { %11229 = vst [vmem:[#allocation392_spill] sm:$0xff] %v8427_v39  ;;  %v8443_v18 = vmul.f32 %v4865_v51, %v8171_v54  ;;  %v4866_v39 = vld [vmem:[%s5181_s6 + $0xdb0] sm:$0xff] }
 0x3f0   : > { %11230 = vst [vmem:[#allocation393_spill] sm:$0xff] %v8431_v40  ;;  %v8447_v59 = vmul.f32 %v4866_v39, %v8171_v54  ;;  %v4867_v40 = vld [vmem:[%s5181_s6 + $0xdb8] sm:$0xff] }
 0x3f1   : > { %11231 = vst [vmem:[#allocation394_spill] sm:$0xff] %v8435_v26  ;;  %v8451_v30 = vmul.f32 %v4867_v40, %v8171_v54  ;;  %v4868_v26 = vld [vmem:[%s5181_s6 + $0xdc0] sm:$0xff] }
 0x3f2   : > { %11232 = vst [vmem:[#allocation395_spill] sm:$0xff] %v8439_v61  ;;  %v8455_v63 = vmul.f32 %v4868_v26, %v8171_v54  ;;  %v4869_v61 = vld [vmem:[%s5181_s6 + $0xdc8] sm:$0xff] }
 0x3f3   : > { %11233 = vst [vmem:[#allocation396_spill] sm:$0xff] %v8443_v18  ;;  %v8459_v51 = vmul.f32 %v4869_v61, %v8171_v54  ;;  %v4870_v18 = vld [vmem:[%s5181_s6 + $0xdd0] sm:$0xff] }
 0x3f4   : > { %11234 = vst [vmem:[#allocation397_spill] sm:$0xff] %v8447_v59  ;;  %v8463_v39 = vmul.f32 %v4870_v18, %v8171_v54  ;;  %v4871_v59 = vld [vmem:[%s5181_s6 + $0xdd8] sm:$0xff] }
 0x3f5   : > { %11235 = vst [vmem:[#allocation398_spill] sm:$0xff] %v8451_v30  ;;  %v8467_v40 = vmul.f32 %v4871_v59, %v8171_v54  ;;  %v4872_v30 = vld [vmem:[%s5181_s6 + $0xde0] sm:$0xff] }
 0x3f6   : > { %11236 = vst [vmem:[#allocation399_spill] sm:$0xff] %v8455_v63  ;;  %v8471_v26 = vmul.f32 %v4872_v30, %v8171_v54  ;;  %v4873_v63 = vld [vmem:[%s5181_s6 + $0xde8] sm:$0xff] }
 0x3f7   : > { %11237 = vst [vmem:[#allocation400_spill] sm:$0xff] %v8459_v51  ;;  %v8475_v61 = vmul.f32 %v4873_v63, %v8171_v54  ;;  %v4874_v51 = vld [vmem:[%s5181_s6 + $0xdf0] sm:$0xff] }
 0x3f8   : > { %11238 = vst [vmem:[#allocation401_spill] sm:$0xff] %v8463_v39  ;;  %v8479_v18 = vmul.f32 %v4874_v51, %v8171_v54  ;;  %v4875_v39 = vld [vmem:[%s5181_s6 + $0xdf8] sm:$0xff] }
 0x3f9   : > { %11239 = vst [vmem:[#allocation402_spill] sm:$0xff] %v8467_v40  ;;  %v8483_v59 = vmul.f32 %v4875_v39, %v8171_v54  ;;  %v4876_v40 = vld [vmem:[%s5181_s6 + $0xe00] sm:$0xff] }
 0x3fa   : > { %11240 = vst [vmem:[#allocation403_spill] sm:$0xff] %v8471_v26  ;;  %v8487_v30 = vmul.f32 %v4876_v40, %v8171_v54  ;;  %v4877_v26 = vld [vmem:[%s5181_s6 + $0xe08] sm:$0xff] }
 0x3fb   : > { %11241 = vst [vmem:[#allocation404_spill] sm:$0xff] %v8475_v61  ;;  %v8491_v63 = vmul.f32 %v4877_v26, %v8171_v54  ;;  %v4878_v61 = vld [vmem:[%s5181_s6 + $0xe10] sm:$0xff] }
 0x3fc   : > { %11242 = vst [vmem:[#allocation405_spill] sm:$0xff] %v8479_v18  ;;  %v8495_v51 = vmul.f32 %v4878_v61, %v8171_v54  ;;  %v4879_v18 = vld [vmem:[%s5181_s6 + $0xe18] sm:$0xff] }
 0x3fd   : > { %11243 = vst [vmem:[#allocation406_spill] sm:$0xff] %v8483_v59  ;;  %v8499_v39 = vmul.f32 %v4879_v18, %v8171_v54  ;;  %v4880_v59 = vld [vmem:[%s5181_s6 + $0xe20] sm:$0xff] }
 0x3fe   : > { %11244 = vst [vmem:[#allocation407_spill] sm:$0xff] %v8487_v30  ;;  %v8503_v40 = vmul.f32 %v4880_v59, %v8171_v54  ;;  %v4881_v30 = vld [vmem:[%s5181_s6 + $0xe28] sm:$0xff] }
 0x3ff   : > { %11245 = vst [vmem:[#allocation408_spill] sm:$0xff] %v8491_v63  ;;  %v8507_v26 = vmul.f32 %v4881_v30, %v8171_v54  ;;  %v4882_v63 = vld [vmem:[%s5181_s6 + $0xe30] sm:$0xff] }
 0x400   : > { %11246 = vst [vmem:[#allocation409_spill] sm:$0xff] %v8495_v51  ;;  %v8511_v61 = vmul.f32 %v4882_v63, %v8171_v54  ;;  %v4883_v51 = vld [vmem:[%s5181_s6 + $0xe38] sm:$0xff] }
 0x401   : > { %11247 = vst [vmem:[#allocation410_spill] sm:$0xff] %v8499_v39  ;;  %v8515_v18 = vmul.f32 %v4883_v51, %v8171_v54  ;;  %v4884_v39 = vld [vmem:[%s5181_s6 + $0xe40] sm:$0xff] }
 0x402   : > { %11248 = vst [vmem:[#allocation411_spill] sm:$0xff] %v8503_v40  ;;  %v8519_v59 = vmul.f32 %v4884_v39, %v8171_v54  ;;  %v4885_v40 = vld [vmem:[%s5181_s6 + $0xe48] sm:$0xff] }
 0x403   : > { %11249 = vst [vmem:[#allocation412_spill] sm:$0xff] %v8507_v26  ;;  %v8523_v30 = vmul.f32 %v4885_v40, %v8171_v54  ;;  %v4886_v26 = vld [vmem:[%s5181_s6 + $0xe50] sm:$0xff] }
 0x404   : > { %11250 = vst [vmem:[#allocation413_spill] sm:$0xff] %v8511_v61  ;;  %v8527_v63 = vmul.f32 %v4886_v26, %v8171_v54  ;;  %v4887_v61 = vld [vmem:[%s5181_s6 + $0xe58] sm:$0xff] }
 0x405   : > { %11251 = vst [vmem:[#allocation414_spill] sm:$0xff] %v8515_v18  ;;  %v8531_v51 = vmul.f32 %v4887_v61, %v8171_v54  ;;  %v4888_v18 = vld [vmem:[%s5181_s6 + $0xe60] sm:$0xff] }
 0x406   : > { %11252 = vst [vmem:[#allocation415_spill] sm:$0xff] %v8519_v59  ;;  %v8535_v39 = vmul.f32 %v4888_v18, %v8171_v54  ;;  %v4889_v59 = vld [vmem:[%s5181_s6 + $0xe68] sm:$0xff] }
 0x407   : > { %11253 = vst [vmem:[#allocation416_spill] sm:$0xff] %v8523_v30  ;;  %v8539_v40 = vmul.f32 %v4889_v59, %v8171_v54  ;;  %v4890_v30 = vld [vmem:[%s5181_s6 + $0xe70] sm:$0xff] }
 0x408   : > { %11254 = vst [vmem:[#allocation417_spill] sm:$0xff] %v8527_v63  ;;  %v8543_v26 = vmul.f32 %v4890_v30, %v8171_v54  ;;  %v4891_v63 = vld [vmem:[%s5181_s6 + $0xe78] sm:$0xff] }
 0x409   : > { %11255 = vst [vmem:[#allocation418_spill] sm:$0xff] %v8531_v51  ;;  %v8547_v61 = vmul.f32 %v4891_v63, %v8171_v54  ;;  %v4892_v51 = vld [vmem:[%s5181_s6 + $0xe80] sm:$0xff] }
 0x40a   : > { %11256 = vst [vmem:[#allocation419_spill] sm:$0xff] %v8535_v39  ;;  %v8551_v18 = vmul.f32 %v4892_v51, %v8171_v54  ;;  %v4893_v39 = vld [vmem:[%s5181_s6 + $0xe88] sm:$0xff] }
 0x40b   : > { %11257 = vst [vmem:[#allocation420_spill] sm:$0xff] %v8539_v40  ;;  %v8555_v59 = vmul.f32 %v4893_v39, %v8171_v54  ;;  %v4894_v40 = vld [vmem:[%s5181_s6 + $0xe90] sm:$0xff] }
 0x40c   : > { %11258 = vst [vmem:[#allocation421_spill] sm:$0xff] %v8543_v26  ;;  %v8559_v30 = vmul.f32 %v4894_v40, %v8171_v54  ;;  %v4895_v26 = vld [vmem:[%s5181_s6 + $0xe98] sm:$0xff] }
 0x40d   : > { %11259 = vst [vmem:[#allocation422_spill] sm:$0xff] %v8547_v61  ;;  %v8563_v63 = vmul.f32 %v4895_v26, %v8171_v54  ;;  %v4896_v61 = vld [vmem:[%s5181_s6 + $0xea0] sm:$0xff] }
 0x40e   : > { %11260 = vst [vmem:[#allocation423_spill] sm:$0xff] %v8551_v18  ;;  %v8567_v51 = vmul.f32 %v4896_v61, %v8171_v54  ;;  %v4897_v18 = vld [vmem:[%s5181_s6 + $0xea8] sm:$0xff] }
 0x40f   : > { %11261 = vst [vmem:[#allocation424_spill] sm:$0xff] %v8555_v59  ;;  %v8571_v39 = vmul.f32 %v4897_v18, %v8171_v54  ;;  %v4898_v59 = vld [vmem:[%s5181_s6 + $0xeb0] sm:$0xff] }
 0x410   : > { %11262 = vst [vmem:[#allocation425_spill] sm:$0xff] %v8559_v30  ;;  %v8575_v40 = vmul.f32 %v4898_v59, %v8171_v54  ;;  %v4899_v30 = vld [vmem:[%s5181_s6 + $0xeb8] sm:$0xff] }
 0x411   : > { %11263 = vst [vmem:[#allocation426_spill] sm:$0xff] %v8563_v63  ;;  %v8579_v26 = vmul.f32 %v4899_v30, %v8171_v54  ;;  %v4900_v63 = vld [vmem:[%s5181_s6 + $0xec0] sm:$0xff] }
 0x412   : > { %11264 = vst [vmem:[#allocation427_spill] sm:$0xff] %v8567_v51  ;;  %v8583_v61 = vmul.f32 %v4900_v63, %v8171_v54  ;;  %v4901_v51 = vld [vmem:[%s5181_s6 + $0xec8] sm:$0xff] }
 0x413   : > { %11265 = vst [vmem:[#allocation428_spill] sm:$0xff] %v8571_v39  ;;  %v8587_v18 = vmul.f32 %v4901_v51, %v8171_v54  ;;  %v4902_v39 = vld [vmem:[%s5181_s6 + $0xed0] sm:$0xff] }
 0x414   : > { %11266 = vst [vmem:[#allocation429_spill] sm:$0xff] %v8575_v40  ;;  %v8591_v59 = vmul.f32 %v4902_v39, %v8171_v54  ;;  %v4903_v40 = vld [vmem:[%s5181_s6 + $0xed8] sm:$0xff] }
 0x415   : > { %11267 = vst [vmem:[#allocation430_spill] sm:$0xff] %v8579_v26  ;;  %v8595_v30 = vmul.f32 %v4903_v40, %v8171_v54  ;;  %v4904_v26 = vld [vmem:[%s5181_s6 + $0xee0] sm:$0xff] }
 0x416   : > { %11268 = vst [vmem:[#allocation431_spill] sm:$0xff] %v8583_v61  ;;  %v8599_v63 = vmul.f32 %v4904_v26, %v8171_v54  ;;  %v4905_v61 = vld [vmem:[%s5181_s6 + $0xee8] sm:$0xff] }
 0x417   : > { %11269 = vst [vmem:[#allocation432_spill] sm:$0xff] %v8587_v18  ;;  %v8603_v51 = vmul.f32 %v4905_v61, %v8171_v54  ;;  %v4906_v18 = vld [vmem:[%s5181_s6 + $0xef0] sm:$0xff] }
 0x418   : > { %11270 = vst [vmem:[#allocation433_spill] sm:$0xff] %v8591_v59  ;;  %v8607_v39 = vmul.f32 %v4906_v18, %v8171_v54  ;;  %v4907_v59 = vld [vmem:[%s5181_s6 + $0xef8] sm:$0xff] }
 0x419   : > { %11271 = vst [vmem:[#allocation434_spill] sm:$0xff] %v8595_v30  ;;  %v8611_v40 = vmul.f32 %v4907_v59, %v8171_v54  ;;  %v4908_v30 = vld [vmem:[%s5181_s6 + $0xf00] sm:$0xff]  ;;  %v4911_v18 = vld [vmem:[%s5181_s6 + $0xf18] sm:$0xff] }
 0x41a   : > { %11272 = vst [vmem:[#allocation435_spill] sm:$0xff] %v8599_v63  ;;  %v8615_v26 = vmul.f32 %v4908_v30, %v8171_v54  ;;  %v4909_v63 = vld [vmem:[%s5181_s6 + $0xf08] sm:$0xff]  ;;  %v4912_v59 = vld [vmem:[%s5181_s6 + $0xf20] sm:$0xff]  ;;  %v8635_v30 = vmul.f32 %v4913_v10, %v8171_v54  ;;  %v2638_v10 = vadd.f32 %v7203_v46, %v6689_v52  ;;  %v2701_v52 = vadd.f32 %v7231_v16, %v6717_v35 }
 0x41b   : > { %11273 = vst [vmem:[#allocation436_spill] sm:$0xff] %v8603_v51  ;;  %v8619_v61 = vmul.f32 %v4909_v63, %v8171_v54  ;;  %v4910_v51 = vld [vmem:[%s5181_s6 + $0xf10] sm:$0xff] }
 0x41c   : > { %11274 = vst [vmem:[#allocation437_spill] sm:$0xff] %v8607_v39  ;;  %v8623_v41 = vmul.f32 %v4910_v51, %v8171_v54  ;;  %v8627_v39 = vmul.f32 %v4911_v18, %v8171_v54 }
 0x41d   : > { %11275 = vst [vmem:[#allocation438_spill] sm:$0xff] %v8611_v40  ;;  %v8631_v40 = vmul.f32 %v4912_v59, %v8171_v54 }
 0x41e   : > { %11276 = vst [vmem:[#allocation439_spill] sm:$0xff] %v8615_v26  ;;  %v4914_v26 = vld [vmem:[%s5181_s6 + $0xf30] sm:$0xff] }
 0x41f   : > { %11277 = vst [vmem:[#allocation440_spill] sm:$0xff] %v8619_v61  ;;  %v8639_v63 = vmul.f32 %v4914_v26, %v8171_v54  ;;  %v4915_v61 = vld [vmem:[%s5181_s6 + $0xf38] sm:$0xff]  ;;  %v2656_v26 = vadd.f32 %v7211_v33, %v6697_v4 }
 0x420   : > { %11278 = vst [vmem:[#allocation441_spill] sm:$0xff] %v8623_v41  ;;  %v8643_v51 = vmul.f32 %v4915_v61, %v8171_v54  ;;  %v4916_v41 = vld [vmem:[%s5181_s6 + $0xf40] sm:$0xff]  ;;  %v2665_v61 = vadd.f32 %v7215_v27, %v6701_v8 }
 0x421   : > { %11279 = vst [vmem:[#allocation442_spill] sm:$0xff] %v8627_v39  ;;  %v8647_v18 = vmul.f32 %v4916_v41, %v8171_v54  ;;  %v4917_v39 = vld [vmem:[%s5181_s6 + $0xf48] sm:$0xff]  ;;  %v2674_v41 = vadd.f32 %v7219_v9, %v6705_v3  ;;  %v2657_v46 = vadd.f32 %v2656_v26, %v7725_v55 }
 0x422   : > { %11280 = vst [vmem:[#allocation443_spill] sm:$0xff] %v8635_v30  ;;  %v8651_v59 = vmul.f32 %v4917_v39, %v8171_v54  ;;  %v2647_v30 = vadd.f32 %v7207_v42, %v6693_v28  ;;  %v2692_v39 = vadd.f32 %v7227_v7, %v6713_v36  ;;  %v2639_v28 = vadd.f32 %v2638_v10, %v7717_v50 }
 0x423   : > { %11281 = vst [vmem:[#allocation444_spill] sm:$0xff] %v8647_v18  ;;  %v2683_v18 = vadd.f32 %v7223_v53, %v6709_v38  ;;  %v2666_v8 = vadd.f32 %v2665_v61, %v7729_v62  ;;  %v2675_v3 = vadd.f32 %v2674_v41, %v7733_v23  ;;  %v2702_v36 = vadd.f32 %v2701_v52, %v7745_v15  ;;  %v4919_v62 = vld [vmem:[%s5181_s6 + $0xf58] sm:$0xff]  ;;  %v4920_v15 = vld [vmem:[%s5181_s6 + $0xf60] sm:$0xff] }
 0x424   : > { %v2648_v4 = vadd.f32 %v2647_v30, %v7721_v25  ;;  %v2693_v42 = vadd.f32 %v2692_v39, %v7741_v24  ;;  %v2640_v35 = vadd.f32 %v2639_v28, %v8231_v19  ;;  %v2658_v27 = vadd.f32 %v2657_v46, %v8239_v6  ;;  %v4918_v25 = vld [vmem:[%s5181_s6 + $0xf50] sm:$0xff]  ;;  %v4924_v52 = vld [vmem:[%s5181_s6 + $0xf80] sm:$0xff] }
 0x425   : > { %v2684_v38 = vadd.f32 %v2683_v18, %v7737_v48  ;;  %v2667_v9 = vadd.f32 %v2666_v8, %v8243_v0  ;;  %v2676_v53 = vadd.f32 %v2675_v3, %v8247_v21  ;;  %v2703_v50 = vadd.f32 %v2702_v36, %v8259_v29  ;;  %v4922_v0 = vld [vmem:[%s5181_s6 + $0xf70] sm:$0xff]  ;;  %v4928_v36 = vld [vmem:[%s5181_s6 + $0xfa0] sm:$0xff] }
 0x426   : > { %v2649_v33 = vadd.f32 %v2648_v4, %v8235_v43  ;;  %v2694_v16 = vadd.f32 %v2693_v42, %v8255_v14  ;;  %v8687_v55 = vmul.f32 %v4918_v25, %v8171_v54  ;;  %v8691_v23 = vmul.f32 %v4919_v62, %v8171_v54  ;;  %v4921_v43 = vld [vmem:[%s5181_s6 + $0xf68] sm:$0xff]  ;;  %v4926_v8 = vld [vmem:[%s5181_s6 + $0xf90] sm:$0xff] }
 0x427   : > { %v2685_v7 = vadd.f32 %v2684_v38, %v8251_v37  ;;  %v2641_v48 = vrot.slane %v2640_v35, 4  ;;  %v8695_v19 = vmul.f32 %v4920_v15, %v8171_v54  ;;  %v8699_v6 = vmul.f32 %v4921_v43, %v8171_v54  ;;  %v4923_v37 = vld [vmem:[%s5181_s6 + $0xf78] sm:$0xff]  ;;  %v4925_v4 = vld [vmem:[%s5181_s6 + $0xf88] sm:$0xff]  ;;  %v4930_v62 = vld [vmem:[%s5181_s6 + $0xfb0] sm:$0xff] }
 0x428   : > { %v2650_v24 = vrot.slane %v2649_v33, 4  ;;  %v8703_v21 = vmul.f32 %v4922_v0, %v8171_v54  ;;  %v8707_v14 = vmul.f32 %v4923_v37, %v8171_v54  ;;  %v2659_v29 = vrot.slane %v2658_v27, 4  ;;  %v4927_v38 = vld [vmem:[%s5181_s6 + $0xf98] sm:$0xff] }
 0x429   : > { %v2668_v30 = vrot.slane %v2667_v9, 4  ;;  %v2677_v18 = vrot.slane %v2676_v53, 4  ;;  %v2686_v10 = vrot.slane %v2685_v7, 4  ;;  %v2642_v26 = vadd.f32 %v2641_v48, %v2640_v35 }
 0x42a   : > { %v2651_v61 = vadd.f32 %v2650_v24, %v2649_v33  ;;  %v2695_v41 = vrot.slane %v2694_v16, 4  ;;  %v2704_v39 = vrot.slane %v2703_v50, 4  ;;  %v8711_v28 = vmul.f32 %v4924_v52, %v8171_v54  ;;  %v4929_v33 = vld [vmem:[%s5181_s6 + $0xfa8] sm:$0xff]  ;;  %v4931_v24 = vld [vmem:[%s5181_s6 + $0xfb8] sm:$0xff] }
 0x42b   : > { %v8715_v46 = vmul.f32 %v4925_v4, %v8171_v54  ;;  %v8719_v3 = vmul.f32 %v4926_v8, %v8171_v54  ;;  %v8723_v42 = vmul.f32 %v4927_v38, %v8171_v54  ;;  %v8727_v35 = vmul.f32 %v4928_v36, %v8171_v54 }
 0x42c   : > { %v8731_v25 = vmul.f32 %v4929_v33, %v8171_v54  ;;  %v8735_v48 = vmul.f32 %v4930_v62, %v8171_v54  ;;  %v8739_v15 = vmul.f32 %v4931_v24, %v8171_v54  ;;  %v2660_v43 = vadd.f32 %v2659_v29, %v2658_v27  ;;  %v4932_v33 = vld [vmem:[%s5181_s6 + $0xfc0] sm:$0xff]  ;;  %v4934_v27 = vld [vmem:[%s5181_s6 + $0xfd0] sm:$0xff] }
 0x42d   : > { %v2669_v0 = vadd.f32 %v2668_v30, %v2667_v9  ;;  %v2678_v37 = vadd.f32 %v2677_v18, %v2676_v53  ;;  %v2687_v52 = vadd.f32 %v2686_v10, %v2685_v7  ;;  %v2643_v4 = vrot.slane %v2642_v26, 2  ;;  %v4935_v53 = vld [vmem:[%s5181_s6 + $0xfd8] sm:$0xff]  ;;  %v4936_v29 = vld [vmem:[%s5181_s6 + $0xfe0] sm:$0xff]  ;;  %v4938_v18 = vld [vmem:[%s5181_s6 + $0xff0] sm:$0xff] }
 0x42e   : > { %11282 = vst [vmem:[#allocation445_spill] sm:$0xff] %v8735_v48  ;;  %v2652_v8 = vrot.slane %v2651_v61, 2  ;;  %v2696_v38 = vadd.f32 %v2695_v41, %v2694_v16  ;;  %v2705_v36 = vadd.f32 %v2704_v39, %v2703_v50  ;;  %v8743_v62 = vmul.f32 %v4932_v33, %v8171_v54  ;;  %v4933_v48 = vld [vmem:[%s5181_s6 + $0xfc8] sm:$0xff]  ;;  %v4939_v41 = vld [vmem:[%s5181_s6 + $0xff8] sm:$0xff] }
 0x42f   : > { %v8747_v24 = vmul.f32 %v4933_v48, %v8171_v54  ;;  %v8751_v9 = vmul.f32 %v4934_v27, %v8171_v54  ;;  %v8755_v7 = vmul.f32 %v4935_v53, %v8171_v54  ;;  %v8759_v16 = vmul.f32 %v4936_v29, %v8171_v54  ;;  %v4937_v50 = vld [vmem:[%s5181_s6 + $0xfe8] sm:$0xff] }
 0x430   : > { %11283 = vst [vmem:[#allocation446_spill] sm:$0xff] %v8743_v62  ;;  %v8763_v30 = vmul.f32 %v4937_v50, %v8171_v54  ;;  %v8767_v10 = vmul.f32 %v4938_v18, %v8171_v54  ;;  %v8771_v39 = vmul.f32 %v4939_v41, %v8171_v54  ;;  %v2661_v48 = vrot.slane %v2660_v43, 2  ;;  %v11291_v18 = vld [vmem:[#allocation30_spill] sm:$0xff]  ;;  %v11293_v41 = vld [vmem:[#allocation32_spill] sm:$0xff]  ;;  %v11294_v62 = vld [vmem:[#allocation33_spill] sm:$0xff] }
 0x431   : > { %11284 = vst [vmem:[#allocation447_spill] sm:$0xff] %v8747_v24  ;;  %v2670_v33 = vrot.slane %v2669_v0, 2  ;;  %v2679_v27 = vrot.slane %v2678_v37, 2  ;;  %v2688_v53 = vrot.slane %v2687_v52, 2  ;;  %v2697_v29 = vrot.slane %v2696_v38, 2  ;;  %v11292_v24 = vld [vmem:[#allocation31_spill] sm:$0xff] }
 0x432   : > { %11285 = vst [vmem:[#allocation448_spill] sm:$0xff] %v8751_v9  ;;  %v2653_v9 = vadd.f32 %v2652_v8, %v2651_v61  ;;  %v2710_v50 = vadd.f32 %v7235_v49, %v6721_v22  ;;  %v2737_v54 = vadd.f32 %v7247_v5, %v11292_v24  ;;  %v11295_v61 = vld [vmem:[#allocation34_spill] sm:$0xff]  ;;  %v11296_v8 = vld [vmem:[#allocation35_spill] sm:$0xff]  ;;  %v11297_v24 = vld [vmem:[#allocation353_spill] sm:$0xff] }
 0x433   : > { %11286 = vst [vmem:[#allocation449_spill] sm:$0xff] %v8755_v7  ;;  %v2644_v7 = vadd.f32 %v2643_v4, %v2642_v26  ;;  %v2755_v26 = vadd.f32 %v7255_v58, %v11294_v62  ;;  %v2764_v4 = vadd.f32 %v7259_v57, %v11295_v61  ;;  %v2773_v22 = vadd.f32 %v7263_v56, %v11296_v8 }
 0x434   : > { %11287 = vst [vmem:[#allocation450_spill] sm:$0xff] %v8759_v16  ;;  %v2706_v16 = vrot.slane %v2705_v36, 2  ;;  %v2698_v61 = vadd.f32 %v2697_v29, %v2696_v38 }
 0x435   : > { %11288 = vst [vmem:[#allocation451_spill] sm:$0xff] %v8763_v30  ;;  %v2719_v30 = vadd.f32 %v7239_v45, %v6725_v47  ;;  %v2711_v47 = vadd.f32 %v2710_v50, %v7749_v17  ;;  %v2765_v58 = vadd.f32 %v2764_v4, %v7773_v34  ;;  %v2774_v62 = vadd.f32 %v2773_v22, %v7777_v1  ;;  %v11298_v50 = vld [vmem:[#allocation354_spill] sm:$0xff] }
 0x436   : > { %11289 = vst [vmem:[#allocation452_spill] sm:$0xff] %v8767_v10  ;;  %v2728_v10 = vadd.f32 %v7243_v60, %v11291_v18  ;;  %v2738_v60 = vadd.f32 %v2737_v54, %v7761_v11  ;;  %v11301_v18 = vld [vmem:[#allocation357_spill] sm:$0xff]  ;;  %v2662_v54 = vadd.f32 %v2661_v48, %v2660_v43  ;;  %v2671_v34 = vadd.f32 %v2670_v33, %v2669_v0 }
 0x437   : > { %11290 = vst [vmem:[#allocation453_spill] sm:$0xff] %v8771_v39  ;;  %v2746_v39 = vadd.f32 %v7251_v2, %v11293_v41  ;;  %v2720_v49 = vadd.f32 %v2719_v30, %v7753_v20  ;;  %v2756_v2 = vadd.f32 %v2755_v26, %v7769_v13  ;;  %v2712_v57 = vadd.f32 %v2711_v47, %v8263_v12  ;;  %v11299_v30 = vld [vmem:[#allocation355_spill] sm:$0xff] }
 0x438   : > { %v2729_v45 = vadd.f32 %v2728_v10, %v7757_v31  ;;  %v2739_v20 = vadd.f32 %v2738_v60, %v11298_v50  ;;  %v11300_v10 = vld [vmem:[#allocation356_spill] sm:$0xff]  ;;  %v2680_v26 = vadd.f32 %v2679_v27, %v2678_v37  ;;  %v2689_v12 = vadd.f32 %v2688_v53, %v2687_v52 }
 0x439   : > { %v2747_v5 = vadd.f32 %v2746_v39, %v7765_v32  ;;  %v2721_v56 = vadd.f32 %v2720_v49, %v8267_v44  ;;  %v2757_v11 = vadd.f32 %v2756_v2, %v11300_v10  ;;  %v2766_v32 = vadd.f32 %v2765_v58, %v11301_v18  ;;  %v11302_v39 = vld [vmem:[#allocation358_spill] sm:$0xff] }
 0x43a   : > { %v2730_v17 = vadd.f32 %v2729_v45, %v11297_v24  ;;  %v2775_v13 = vadd.f32 %v2774_v62, %v11302_v39  ;;  %v2713_v41 = vrot.slane %v2712_v57, 4  ;;  %v2707_v44 = vadd.f32 %v2706_v16, %v2705_v36 }
 0x43b   : > { %v2748_v31 = vadd.f32 %v2747_v5, %v11299_v30  ;;  %v2722_v1 = vrot.slane %v2721_v56, 4  ;;  %v2740_v8 = vrot.slane %v2739_v20, 4  ;;  %v2758_v47 = vrot.slane %v2757_v11, 4 }
 0x43c   : > { %v2731_v4 = vrot.slane %v2730_v17, 4  ;;  %v2714_v49 = vadd.f32 %v2713_v41, %v2712_v57  ;;  %v2767_v60 = vrot.slane %v2766_v32, 4  ;;  %v2776_v5 = vrot.slane %v2775_v13, 4 }
 0x43d   : > { %v2749_v22 = vrot.slane %v2748_v31, 4  ;;  %v2723_v45 = vadd.f32 %v2722_v1, %v2721_v56  ;;  %v2645_v2 = vrot.slane %v2644_v7, 1  ;;  %v2654_v58 = vrot.slane %v2653_v9, 1  ;;  %v11309_v1 = vld [vmem:[#allocation142_spill] sm:$0xff] }
 0x43e   : > { %v2663_v24 = vrot.slane %v2662_v54, 1  ;;  %v2672_v62 = vrot.slane %v2671_v34, 1  ;;  %v2681_v43 = vrot.slane %v2680_v26, 1  ;;  %v2690_v0 = vrot.slane %v2689_v12, 1 }
 0x43f   : > { %v2699_v48 = vrot.slane %v2698_v61, 1  ;;  %v2708_v33 = vrot.slane %v2707_v44, 1  ;;  %v2732_v37 = vadd.f32 %v2731_v4, %v2730_v17  ;;  %v2741_v52 = vadd.f32 %v2740_v8, %v2739_v20  ;;  %v11310_v4 = vld [vmem:[#allocation37_spill] sm:$0xff] }
 0x440   : > { %v2750_v38 = vadd.f32 %v2749_v22, %v2748_v31  ;;  %v2759_v36 = vadd.f32 %v2758_v47, %v2757_v11  ;;  %v2715_v16 = vrot.slane %v2714_v49, 2  ;;  %v2724_v27 = vrot.slane %v2723_v45, 2  ;;  %v11313_v22 = vld [vmem:[#allocation144_spill] sm:$0xff]  ;;  %v11314_v47 = vld [vmem:[#allocation39_spill] sm:$0xff] }
 0x441   : > { %v2768_v53 = vadd.f32 %v2767_v60, %v2766_v32  ;;  %v2777_v29 = vadd.f32 %v2776_v5, %v2775_v13  ;;  %v8805_v57 = vadd.f32 %v2645_v2, %v2644_v7  ;;  %v8807_v56 = vadd.f32 %v2654_v58, %v2653_v9  ;;  %v11316_v5 = vld [vmem:[#allocation40_spill] sm:$0xff]  ;;  %v11317_v2 = vld [vmem:[#allocation146_spill] sm:$0xff] }
 0x442   : > { %v8809_v50 = vadd.f32 %v2663_v24, %v2662_v54  ;;  %v8811_v30 = vadd.f32 %v2672_v62, %v2671_v34  ;;  %v8813_v10 = vadd.f32 %v2681_v43, %v2680_v26  ;;  %v8815_v18 = vadd.f32 %v2690_v0, %v2689_v12  ;;  %v11308_v54 = vld [vmem:[#allocation36_spill] sm:$0xff]  ;;  %v11311_v26 = vld [vmem:[#allocation143_spill] sm:$0xff]  ;;  %v11312_v12 = vld [vmem:[#allocation38_spill] sm:$0xff] }
 0x443   : > { %v8817_v17 = vadd.f32 %v2699_v48, %v2698_v61  ;;  %v8819_v20 = vadd.f32 %v2708_v33, %v2707_v44  ;;  %v2733_v31 = vrot.slane %v2732_v37, 2  ;;  %v2742_v11 = vrot.slane %v2741_v52, 2  ;;  %v11315_v44 = vld [vmem:[#allocation145_spill] sm:$0xff]  ;;  %v11320_v62 = vld [vmem:[#allocation42_spill] sm:$0xff]  ;;  %v11321_v43 = vld [vmem:[#allocation148_spill] sm:$0xff] }
 0x444   : > { %11303 = vst [vmem:[#allocation30_spill] sm:$0xff] %v8811_v30  ;;  %v2751_v32 = vrot.slane %v2750_v38, 2  ;;  %v2760_v39 = vrot.slane %v2759_v36, 2  ;;  %v2716_v7 = vadd.f32 %v2715_v16, %v2714_v49  ;;  %v2725_v13 = vadd.f32 %v2724_v27, %v2723_v45  ;;  %v11318_v24 = vld [vmem:[#allocation41_spill] sm:$0xff]  ;;  %v11319_v49 = vld [vmem:[#allocation147_spill] sm:$0xff]  ;;  %v11324_v27 = vld [vmem:[#allocation242_spill] sm:$0xff] }
 0x445   : > { %11304 = vst [vmem:[#allocation31_spill] sm:$0xff] %v8813_v10  ;;  %v2769_v9 = vrot.slane %v2768_v53, 2  ;;  %v2778_v41 = vrot.slane %v2777_v29, 2  ;;  %v2782_v34 = vadd.f32 %v11309_v1, %v11308_v54  ;;  %v2791_v8 = vadd.f32 %v11311_v26, %v11310_v4  ;;  %v11322_v48 = vld [vmem:[#allocation43_spill] sm:$0xff]  ;;  %v11323_v33 = vld [vmem:[#allocation149_spill] sm:$0xff]  ;;  %v11326_v26 = vld [vmem:[#allocation244_spill] sm:$0xff] }
 0x446   : > { %11305 = vst [vmem:[#allocation32_spill] sm:$0xff] %v8815_v18  ;;  %v2800_v61 = vadd.f32 %v11313_v22, %v11312_v12  ;;  %v2809_v60 = vadd.f32 %v11315_v44, %v11314_v47  ;;  %v2818_v58 = vadd.f32 %v11317_v2, %v11316_v5  ;;  %v2827_v45 = vadd.f32 %v11319_v49, %v11318_v24  ;;  %v11325_v1 = vld [vmem:[#allocation243_spill] sm:$0xff]  ;;  %v11327_v22 = vld [vmem:[#allocation245_spill] sm:$0xff]  ;;  %v11328_v44 = vld [vmem:[#allocation246_spill] sm:$0xff] }
 0x447   : > { %11306 = vst [vmem:[#allocation33_spill] sm:$0xff] %v8817_v17  ;;  %v2836_v0 = vadd.f32 %v11321_v43, %v11320_v62  ;;  %v2845_v16 = vadd.f32 %v11323_v33, %v11322_v48  ;;  %v2783_v54 = vadd.f32 %v2782_v34, %v11324_v27  ;;  %v2792_v4 = vadd.f32 %v2791_v8, %v11325_v1  ;;  %v11329_v5 = vld [vmem:[#allocation247_spill] sm:$0xff]  ;;  %v11330_v17 = vld [vmem:[#allocation248_spill] sm:$0xff]  ;;  %v11331_v49 = vld [vmem:[#allocation249_spill] sm:$0xff] }
 0x448   : > { %11307 = vst [vmem:[#allocation34_spill] sm:$0xff] %v8819_v20  ;;  %v2801_v12 = vadd.f32 %v2800_v61, %v11326_v26  ;;  %v2810_v47 = vadd.f32 %v2809_v60, %v11327_v22  ;;  %v2819_v20 = vadd.f32 %v2818_v58, %v11328_v44  ;;  %v2828_v2 = vadd.f32 %v2827_v45, %v11329_v5  ;;  %v11332_v62 = vld [vmem:[#allocation359_spill] sm:$0xff]  ;;  %v11333_v10 = vld [vmem:[#allocation360_spill] sm:$0xff]  ;;  %v11334_v33 = vld [vmem:[#allocation361_spill] sm:$0xff] }
 0x449   : > { %v2837_v24 = vadd.f32 %v2836_v0, %v11330_v17  ;;  %v2846_v18 = vadd.f32 %v2845_v16, %v11331_v49  ;;  %v2784_v43 = vadd.f32 %v2783_v54, %v11332_v62  ;;  %v2793_v48 = vadd.f32 %v2792_v4, %v11333_v10  ;;  %v11335_v27 = vld [vmem:[#allocation362_spill] sm:$0xff]  ;;  %v11336_v1 = vld [vmem:[#allocation363_spill] sm:$0xff]  ;;  %v11337_v26 = vld [vmem:[#allocation364_spill] sm:$0xff] }
 0x44a   : > { %v2802_v34 = vadd.f32 %v2801_v12, %v11334_v33  ;;  %v2811_v8 = vadd.f32 %v2810_v47, %v11335_v27  ;;  %v2820_v61 = vadd.f32 %v2819_v20, %v11336_v1  ;;  %v2829_v60 = vadd.f32 %v2828_v2, %v11337_v26  ;;  %v11338_v22 = vld [vmem:[#allocation365_spill] sm:$0xff]  ;;  %v11339_v44 = vld [vmem:[#allocation366_spill] sm:$0xff] }
 0x44b   : > { %v2838_v58 = vadd.f32 %v2837_v24, %v11338_v22  ;;  %v2847_v45 = vadd.f32 %v2846_v18, %v11339_v44  ;;  %v2734_v5 = vadd.f32 %v2733_v31, %v2732_v37  ;;  %v2743_v17 = vadd.f32 %v2742_v11, %v2741_v52 }
 0x44c   : > { %v2785_v0 = vrot.slane %v2784_v43, 4  ;;  %v2794_v16 = vrot.slane %v2793_v48, 4  ;;  %v2752_v49 = vadd.f32 %v2751_v32, %v2750_v38  ;;  %v2761_v54 = vadd.f32 %v2760_v39, %v2759_v36 }
 0x44d   : > { %v2770_v62 = vadd.f32 %v2769_v9, %v2768_v53  ;;  %v2779_v10 = vadd.f32 %v2778_v41, %v2777_v29  ;;  %v2803_v4 = vrot.slane %v2802_v34, 4  ;;  %v2812_v12 = vrot.slane %v2811_v8, 4 }
 0x44e   : > { %v2821_v33 = vrot.slane %v2820_v61, 4  ;;  %v2830_v47 = vrot.slane %v2829_v60, 4  ;;  %v2786_v27 = vadd.f32 %v2785_v0, %v2784_v43  ;;  %v2795_v20 = vadd.f32 %v2794_v16, %v2793_v48 }
 0x44f   : > { %v2839_v1 = vrot.slane %v2838_v58, 4  ;;  %v2848_v2 = vrot.slane %v2847_v45, 4  ;;  %v2717_v26 = vrot.slane %v2716_v7, 1  ;;  %v2726_v24 = vrot.slane %v2725_v13, 1 }
 0x450   : > { %v2735_v22 = vrot.slane %v2734_v5, 1  ;;  %v2744_v18 = vrot.slane %v2743_v17, 1  ;;  %v2753_v37 = vrot.slane %v2752_v49, 1  ;;  %v2762_v52 = vrot.slane %v2761_v54, 1 }
 0x451   : > { %v2771_v31 = vrot.slane %v2770_v62, 1  ;;  %v2780_v11 = vrot.slane %v2779_v10, 1  ;;  %v2804_v38 = vadd.f32 %v2803_v4, %v2802_v34  ;;  %v2813_v36 = vadd.f32 %v2812_v12, %v2811_v8 }
 0x452   : > { %v2822_v53 = vadd.f32 %v2821_v33, %v2820_v61  ;;  %v2831_v29 = vadd.f32 %v2830_v47, %v2829_v60  ;;  %v2787_v32 = vrot.slane %v2786_v27, 2  ;;  %v2796_v39 = vrot.slane %v2795_v20, 2  ;;  %v11349_v33 = vld [vmem:[#allocation150_spill] sm:$0xff]  ;;  %v11350_v47 = vld [vmem:[#allocation45_spill] sm:$0xff] }
 0x453   : > { %v2840_v9 = vadd.f32 %v2839_v1, %v2838_v58  ;;  %v2849_v41 = vadd.f32 %v2848_v2, %v2847_v45  ;;  %v8853_v43 = vadd.f32 %v2717_v26, %v2716_v7  ;;  %v8855_v48 = vadd.f32 %v2726_v24, %v2725_v13  ;;  %v11353_v2 = vld [vmem:[#allocation152_spill] sm:$0xff]  ;;  %v11354_v26 = vld [vmem:[#allocation47_spill] sm:$0xff] }
 0x454   : > { %v8857_v44 = vadd.f32 %v2735_v22, %v2734_v5  ;;  %v8859_v0 = vadd.f32 %v2744_v18, %v2743_v17  ;;  %v8861_v16 = vadd.f32 %v2753_v37, %v2752_v49  ;;  %v8863_v30 = vadd.f32 %v2762_v52, %v2761_v54  ;;  %v11348_v5 = vld [vmem:[#allocation44_spill] sm:$0xff]  ;;  %v11351_v49 = vld [vmem:[#allocation151_spill] sm:$0xff]  ;;  %v11352_v54 = vld [vmem:[#allocation46_spill] sm:$0xff] }
 0x455   : > { %11340 = vst [vmem:[#allocation35_spill] sm:$0xff] %v8853_v43  ;;  %v8865_v34 = vadd.f32 %v2771_v31, %v2770_v62  ;;  %v8867_v8 = vadd.f32 %v2780_v11, %v2779_v10  ;;  %v2805_v61 = vrot.slane %v2804_v38, 2  ;;  %v2814_v60 = vrot.slane %v2813_v36, 2  ;;  %v11355_v10 = vld [vmem:[#allocation153_spill] sm:$0xff]  ;;  %v11356_v22 = vld [vmem:[#allocation48_spill] sm:$0xff]  ;;  %v11357_v18 = vld [vmem:[#allocation154_spill] sm:$0xff] }
 0x456   : > { %11341 = vst [vmem:[#allocation353_spill] sm:$0xff] %v8855_v48  ;;  %v2823_v58 = vrot.slane %v2822_v53, 2  ;;  %v2832_v45 = vrot.slane %v2831_v29, 2  ;;  %v2788_v7 = vadd.f32 %v2787_v32, %v2786_v27  ;;  %v2797_v4 = vadd.f32 %v2796_v39, %v2795_v20  ;;  %v11358_v52 = vld [vmem:[#allocation49_spill] sm:$0xff]  ;;  %v11359_v27 = vld [vmem:[#allocation155_spill] sm:$0xff]  ;;  %v11360_v31 = vld [vmem:[#allocation50_spill] sm:$0xff] }
 0x457   : > { %11342 = vst [vmem:[#allocation354_spill] sm:$0xff] %v8857_v44  ;;  %v2841_v13 = vrot.slane %v2840_v9, 2  ;;  %v2850_v12 = vrot.slane %v2849_v41, 2  ;;  %v2854_v17 = vadd.f32 %v11349_v33, %v11348_v5  ;;  %v2863_v1 = vadd.f32 %v11351_v49, %v11350_v47  ;;  %v11361_v11 = vld [vmem:[#allocation156_spill] sm:$0xff]  ;;  %v11362_v39 = vld [vmem:[#allocation51_spill] sm:$0xff]  ;;  %v11363_v5 = vld [vmem:[#allocation157_spill] sm:$0xff] }
 0x458   : > { %11343 = vst [vmem:[#allocation355_spill] sm:$0xff] %v8859_v0  ;;  %v2872_v62 = vadd.f32 %v11353_v2, %v11352_v54  ;;  %v2881_v24 = vadd.f32 %v11355_v10, %v11354_v26  ;;  %v2890_v37 = vadd.f32 %v11357_v18, %v11356_v22  ;;  %v2899_v20 = vadd.f32 %v11359_v27, %v11358_v52  ;;  %v11365_v49 = vld [vmem:[#allocation251_spill] sm:$0xff]  ;;  %v11366_v54 = vld [vmem:[#allocation252_spill] sm:$0xff]  ;;  %v11368_v10 = vld [vmem:[#allocation254_spill] sm:$0xff] }
 0x459   : > { %11344 = vst [vmem:[#allocation356_spill] sm:$0xff] %v8861_v16  ;;  %v2908_v32 = vadd.f32 %v11361_v11, %v11360_v31  ;;  %v2917_v33 = vadd.f32 %v11363_v5, %v11362_v39  ;;  %v11369_v22 = vld [vmem:[#allocation255_spill] sm:$0xff]  ;;  %v11370_v0 = vld [vmem:[#allocation256_spill] sm:$0xff]  ;;  %v11371_v27 = vld [vmem:[#allocation257_spill] sm:$0xff] }
 0x45a   : > { %11345 = vst [vmem:[#allocation357_spill] sm:$0xff] %v8863_v30  ;;  %v2873_v2 = vadd.f32 %v2872_v62, %v11366_v54  ;;  %v11367_v30 = vld [vmem:[#allocation253_spill] sm:$0xff]  ;;  %v2891_v16 = vadd.f32 %v2890_v37, %v11368_v10  ;;  %v2900_v18 = vadd.f32 %v2899_v20, %v11369_v22  ;;  %v11372_v31 = vld [vmem:[#allocation367_spill] sm:$0xff]  ;;  %v11373_v48 = vld [vmem:[#allocation368_spill] sm:$0xff]  ;;  %v2806_v22 = vadd.f32 %v2805_v61, %v2804_v38 }
 0x45b   : > { %11346 = vst [vmem:[#allocation358_spill] sm:$0xff] %v8865_v34  ;;  %v2864_v34 = vadd.f32 %v2863_v1, %v11365_v49  ;;  %v2882_v26 = vadd.f32 %v2881_v24, %v11367_v30  ;;  %v2909_v52 = vadd.f32 %v2908_v32, %v11370_v0  ;;  %v2918_v44 = vadd.f32 %v2917_v33, %v11371_v27  ;;  %v11374_v5 = vld [vmem:[#allocation369_spill] sm:$0xff]  ;;  %v11376_v49 = vld [vmem:[#allocation371_spill] sm:$0xff]  ;;  %v11377_v54 = vld [vmem:[#allocation372_spill] sm:$0xff] }
 0x45c   : > { %11347 = vst [vmem:[#allocation36_spill] sm:$0xff] %v8867_v8  ;;  %v11364_v8 = vld [vmem:[#allocation250_spill] sm:$0xff]  ;;  %v2892_v62 = vadd.f32 %v2891_v16, %v11376_v49  ;;  %v2901_v30 = vadd.f32 %v2900_v18, %v11377_v54  ;;  %v11378_v24 = vld [vmem:[#allocation373_spill] sm:$0xff]  ;;  %v2815_v0 = vadd.f32 %v2814_v60, %v2813_v36  ;;  %v2824_v27 = vadd.f32 %v2823_v58, %v2822_v53 }
 0x45d   : > { %v2855_v47 = vadd.f32 %v2854_v17, %v11364_v8  ;;  %v2865_v39 = vadd.f32 %v2864_v34, %v11373_v48  ;;  %v2874_v8 = vadd.f32 %v2873_v2, %v11374_v5  ;;  %v11375_v17 = vld [vmem:[#allocation370_spill] sm:$0xff]  ;;  %v2910_v37 = vadd.f32 %v2909_v52, %v11378_v24 }
 0x45e   : > { %v2883_v1 = vadd.f32 %v2882_v26, %v11375_v17  ;;  %v11379_v10 = vld [vmem:[#allocation374_spill] sm:$0xff]  ;;  %v2851_v48 = vadd.f32 %v2850_v12, %v2849_v41  ;;  %v2893_v5 = vrot.slane %v2892_v62, 4  ;;  %v2902_v26 = vrot.slane %v2901_v30, 4 }
 0x45f   : > { %v2856_v11 = vadd.f32 %v2855_v47, %v11372_v31  ;;  %v2919_v20 = vadd.f32 %v2918_v44, %v11379_v10  ;;  %v2866_v33 = vrot.slane %v2865_v39, 4  ;;  %v2833_v47 = vadd.f32 %v2832_v45, %v2831_v29 }
 0x460   : > { %v2842_v31 = vadd.f32 %v2841_v13, %v2840_v9  ;;  %v2875_v34 = vrot.slane %v2874_v8, 4  ;;  %v2884_v2 = vrot.slane %v2883_v1, 4  ;;  %v2911_v49 = vrot.slane %v2910_v37, 4 }
 0x461   : > { %v2857_v32 = vrot.slane %v2856_v11, 4  ;;  %v2867_v16 = vadd.f32 %v2866_v33, %v2865_v39  ;;  %v2920_v18 = vrot.slane %v2919_v20, 4  ;;  %v2789_v54 = vrot.slane %v2788_v7, 1 }
 0x462   : > { %v2798_v52 = vrot.slane %v2797_v4, 1  ;;  %v2807_v24 = vrot.slane %v2806_v22, 1  ;;  %v2816_v44 = vrot.slane %v2815_v0, 1  ;;  %v2825_v38 = vrot.slane %v2824_v27, 1 }
 0x463   : > { %v2858_v17 = vadd.f32 %v2857_v32, %v2856_v11  ;;  %v2834_v36 = vrot.slane %v2833_v47, 1  ;;  %v2843_v61 = vrot.slane %v2842_v31, 1  ;;  %v2852_v60 = vrot.slane %v2851_v48, 1 }
 0x464   : > { %v2876_v53 = vadd.f32 %v2875_v34, %v2874_v8  ;;  %v2885_v29 = vadd.f32 %v2884_v2, %v2883_v1  ;;  %v2894_v9 = vadd.f32 %v2893_v5, %v2892_v62  ;;  %v2903_v41 = vadd.f32 %v2902_v26, %v2901_v30  ;;  %v11389_v5 = vld [vmem:[#allocation158_spill] sm:$0xff]  ;;  %v11390_v26 = vld [vmem:[#allocation53_spill] sm:$0xff] }
 0x465   : > { %v2859_v58 = vrot.slane %v2858_v17, 2  ;;  %v2868_v45 = vrot.slane %v2867_v16, 2  ;;  %v2912_v13 = vadd.f32 %v2911_v49, %v2910_v37  ;;  %v2921_v12 = vadd.f32 %v2920_v18, %v2919_v20  ;;  %v11393_v18 = vld [vmem:[#allocation160_spill] sm:$0xff] }
 0x466   : > { %v8901_v11 = vadd.f32 %v2789_v54, %v2788_v7  ;;  %v8903_v39 = vadd.f32 %v2798_v52, %v2797_v4  ;;  %v8905_v10 = vadd.f32 %v2807_v24, %v2806_v22  ;;  %v8907_v32 = vadd.f32 %v2816_v44, %v2815_v0  ;;  %v11388_v22 = vld [vmem:[#allocation52_spill] sm:$0xff]  ;;  %v11394_v54 = vld [vmem:[#allocation55_spill] sm:$0xff]  ;;  %v11397_v44 = vld [vmem:[#allocation162_spill] sm:$0xff] }
 0x467   : > { %v8909_v33 = vadd.f32 %v2825_v38, %v2824_v27  ;;  %v8911_v43 = vadd.f32 %v2834_v36, %v2833_v47  ;;  %v8913_v8 = vadd.f32 %v2843_v61, %v2842_v31  ;;  %v8915_v1 = vadd.f32 %v2852_v60, %v2851_v48  ;;  %v11391_v27 = vld [vmem:[#allocation159_spill] sm:$0xff]  ;;  %v11392_v47 = vld [vmem:[#allocation54_spill] sm:$0xff]  ;;  %v11395_v48 = vld [vmem:[#allocation161_spill] sm:$0xff] }
 0x468   : > { %11380 = vst [vmem:[#allocation142_spill] sm:$0xff] %v8901_v11  ;;  %v2877_v62 = vrot.slane %v2876_v53, 2  ;;  %v2886_v30 = vrot.slane %v2885_v29, 2  ;;  %v2895_v37 = vrot.slane %v2894_v9, 2  ;;  %v2904_v20 = vrot.slane %v2903_v41, 2  ;;  %v11396_v24 = vld [vmem:[#allocation56_spill] sm:$0xff] }
 0x469   : > { %11381 = vst [vmem:[#allocation37_spill] sm:$0xff] %v8903_v39  ;;  %v2860_v7 = vadd.f32 %v2859_v58, %v2858_v17  ;;  %v2869_v34 = vadd.f32 %v2868_v45, %v2867_v16  ;;  %v2913_v4 = vrot.slane %v2912_v13, 2  ;;  %v2922_v2 = vrot.slane %v2921_v12, 2  ;;  %v11398_v36 = vld [vmem:[#allocation57_spill] sm:$0xff]  ;;  %v11399_v17 = vld [vmem:[#allocation163_spill] sm:$0xff]  ;;  %v11400_v61 = vld [vmem:[#allocation58_spill] sm:$0xff] }
 0x46a   : > { %11382 = vst [vmem:[#allocation143_spill] sm:$0xff] %v8905_v10  ;;  %v2926_v0 = vadd.f32 %v11389_v5, %v11388_v22  ;;  %v2935_v49 = vadd.f32 %v11391_v27, %v11390_v26  ;;  %v2944_v31 = vadd.f32 %v11393_v18, %v11392_v47  ;;  %v2953_v52 = vadd.f32 %v11395_v48, %v11394_v54  ;;  %v11401_v60 = vld [vmem:[#allocation164_spill] sm:$0xff]  ;;  %v11402_v45 = vld [vmem:[#allocation59_spill] sm:$0xff]  ;;  %v11403_v22 = vld [vmem:[#allocation165_spill] sm:$0xff] }
 0x46b   : > { %11383 = vst [vmem:[#allocation38_spill] sm:$0xff] %v8907_v32  ;;  %v2962_v38 = vadd.f32 %v11397_v44, %v11396_v24  ;;  %v2971_v16 = vadd.f32 %v11399_v17, %v11398_v36  ;;  %v2980_v58 = vadd.f32 %v11401_v60, %v11400_v61  ;;  %v2989_v5 = vadd.f32 %v11403_v22, %v11402_v45  ;;  %v11405_v27 = vld [vmem:[#allocation259_spill] sm:$0xff]  ;;  %v11406_v47 = vld [vmem:[#allocation260_spill] sm:$0xff]  ;;  %v11408_v48 = vld [vmem:[#allocation262_spill] sm:$0xff] }
 0x46c   : > { %11384 = vst [vmem:[#allocation144_spill] sm:$0xff] %v8909_v33  ;;  %v2945_v18 = vadd.f32 %v2944_v31, %v11406_v47  ;;  %v11409_v24 = vld [vmem:[#allocation263_spill] sm:$0xff]  ;;  %v11410_v32 = vld [vmem:[#allocation264_spill] sm:$0xff]  ;;  %v11411_v17 = vld [vmem:[#allocation265_spill] sm:$0xff] }
 0x46d   : > { %11385 = vst [vmem:[#allocation39_spill] sm:$0xff] %v8911_v43  ;;  %v11407_v43 = vld [vmem:[#allocation261_spill] sm:$0xff]  ;;  %v2963_v33 = vadd.f32 %v2962_v38, %v11408_v48  ;;  %v2972_v44 = vadd.f32 %v2971_v16, %v11409_v24  ;;  %v2981_v36 = vadd.f32 %v2980_v58, %v11410_v32  ;;  %v2990_v10 = vadd.f32 %v2989_v5, %v11411_v17  ;;  %v11412_v61 = vld [vmem:[#allocation375_spill] sm:$0xff]  ;;  %v11413_v39 = vld [vmem:[#allocation376_spill] sm:$0xff] }
 0x46e   : > { %11386 = vst [vmem:[#allocation145_spill] sm:$0xff] %v8913_v8  ;;  %v2936_v8 = vadd.f32 %v2935_v49, %v11405_v27  ;;  %v2954_v54 = vadd.f32 %v2953_v52, %v11407_v43  ;;  %v11414_v22 = vld [vmem:[#allocation377_spill] sm:$0xff]  ;;  %v11416_v27 = vld [vmem:[#allocation379_spill] sm:$0xff]  ;;  %v11417_v47 = vld [vmem:[#allocation380_spill] sm:$0xff]  ;;  %v2878_v24 = vadd.f32 %v2877_v62, %v2876_v53  ;;  %v2887_v32 = vadd.f32 %v2886_v30, %v2885_v29 }
 0x46f   : > { %11387 = vst [vmem:[#allocation40_spill] sm:$0xff] %v8915_v1  ;;  %v11404_v1 = vld [vmem:[#allocation258_spill] sm:$0xff]  ;;  %v2964_v31 = vadd.f32 %v2963_v33, %v11416_v27  ;;  %v2973_v43 = vadd.f32 %v2972_v44, %v11417_v47  ;;  %v11418_v52 = vld [vmem:[#allocation381_spill] sm:$0xff]  ;;  %v2896_v17 = vadd.f32 %v2895_v37, %v2894_v9  ;;  %v2861_v47 = vrot.slane %v2860_v7, 1 }
 0x470   : > { %v2927_v26 = vadd.f32 %v2926_v0, %v11404_v1  ;;  %v2937_v45 = vadd.f32 %v2936_v8, %v11413_v39  ;;  %v2946_v1 = vadd.f32 %v2945_v18, %v11414_v22  ;;  %v11415_v0 = vld [vmem:[#allocation378_spill] sm:$0xff]  ;;  %v2982_v38 = vadd.f32 %v2981_v36, %v11418_v52 }
 0x471   : > { %v2955_v49 = vadd.f32 %v2954_v54, %v11415_v0  ;;  %v11419_v48 = vld [vmem:[#allocation382_spill] sm:$0xff]  ;;  %v2923_v39 = vadd.f32 %v2922_v2, %v2921_v12  ;;  %v2965_v22 = vrot.slane %v2964_v31, 4  ;;  %v2974_v54 = vrot.slane %v2973_v43, 4 }
 0x472   : > { %v2928_v60 = vadd.f32 %v2927_v26, %v11412_v61  ;;  %v2991_v16 = vadd.f32 %v2990_v10, %v11419_v48  ;;  %v2938_v5 = vrot.slane %v2937_v45, 4  ;;  %v2905_v26 = vadd.f32 %v2904_v20, %v2903_v41 }
 0x473   : > { %v2914_v61 = vadd.f32 %v2913_v4, %v2912_v13  ;;  %v2947_v8 = vrot.slane %v2946_v1, 4  ;;  %v2956_v18 = vrot.slane %v2955_v49, 4  ;;  %v2983_v27 = vrot.slane %v2982_v38, 4 }
 0x474   : > { %v2929_v58 = vrot.slane %v2928_v60, 4  ;;  %v2939_v33 = vadd.f32 %v2938_v5, %v2937_v45  ;;  %v2992_v44 = vrot.slane %v2991_v16, 4  ;;  %v2870_v36 = vrot.slane %v2869_v34, 1 }
 0x475   : > { %v2879_v52 = vrot.slane %v2878_v24, 1  ;;  %v2888_v10 = vrot.slane %v2887_v32, 1  ;;  %v2897_v53 = vrot.slane %v2896_v17, 1  ;;  %v2906_v29 = vrot.slane %v2905_v26, 1 }
 0x476   : > { %v2930_v0 = vadd.f32 %v2929_v58, %v2928_v60  ;;  %v2915_v62 = vrot.slane %v2914_v61, 1  ;;  %v2924_v30 = vrot.slane %v2923_v39, 1  ;;  %v2948_v9 = vadd.f32 %v2947_v8, %v2946_v1 }
 0x477   : > { %v2957_v41 = vadd.f32 %v2956_v18, %v2955_v49  ;;  %v2966_v13 = vadd.f32 %v2965_v22, %v2964_v31  ;;  %v2975_v12 = vadd.f32 %v2974_v54, %v2973_v43  ;;  %v2940_v20 = vrot.slane %v2939_v33, 2  ;;  %v11429_v22 = vld [vmem:[#allocation166_spill] sm:$0xff]  ;;  %v11430_v54 = vld [vmem:[#allocation61_spill] sm:$0xff] }
 0x478   : > { %v2931_v37 = vrot.slane %v2930_v0, 2  ;;  %v2984_v4 = vadd.f32 %v2983_v27, %v2982_v38  ;;  %v2993_v2 = vadd.f32 %v2992_v44, %v2991_v16  ;;  %v8949_v60 = vadd.f32 %v2861_v47, %v2860_v7  ;;  %v11433_v44 = vld [vmem:[#allocation168_spill] sm:$0xff]  ;;  %v11434_v47 = vld [vmem:[#allocation63_spill] sm:$0xff] }
 0x479   : > { %v8951_v45 = vadd.f32 %v2870_v36, %v2869_v34  ;;  %v8953_v48 = vadd.f32 %v2879_v52, %v2878_v24  ;;  %v8955_v58 = vadd.f32 %v2888_v10, %v2887_v32  ;;  %v8957_v5 = vadd.f32 %v2897_v53, %v2896_v17  ;;  %v11428_v24 = vld [vmem:[#allocation60_spill] sm:$0xff]  ;;  %v11431_v17 = vld [vmem:[#allocation167_spill] sm:$0xff]  ;;  %v11437_v10 = vld [vmem:[#allocation170_spill] sm:$0xff] }
 0x47a   : > { %11420 = vst [vmem:[#allocation146_spill] sm:$0xff] %v8949_v60  ;;  %v8959_v11 = vadd.f32 %v2906_v29, %v2905_v26  ;;  %v8961_v1 = vadd.f32 %v2915_v62, %v2914_v61  ;;  %v8963_v49 = vadd.f32 %v2924_v30, %v2923_v39  ;;  %v2949_v31 = vrot.slane %v2948_v9, 2  ;;  %v11432_v26 = vld [vmem:[#allocation62_spill] sm:$0xff]  ;;  %v11435_v39 = vld [vmem:[#allocation169_spill] sm:$0xff]  ;;  %v11436_v52 = vld [vmem:[#allocation64_spill] sm:$0xff] }
 0x47b   : > { %11421 = vst [vmem:[#allocation41_spill] sm:$0xff] %v8951_v45  ;;  %v2958_v43 = vrot.slane %v2957_v41, 2  ;;  %v2967_v38 = vrot.slane %v2966_v13, 2  ;;  %v2976_v16 = vrot.slane %v2975_v12, 2  ;;  %v2932_v7 = vadd.f32 %v2931_v37, %v2930_v0  ;;  %v11438_v29 = vld [vmem:[#allocation65_spill] sm:$0xff]  ;;  %v11439_v0 = vld [vmem:[#allocation171_spill] sm:$0xff] }
 0x47c   : > { %11422 = vst [vmem:[#allocation147_spill] sm:$0xff] %v8953_v48  ;;  %v2941_v8 = vadd.f32 %v2940_v20, %v2939_v33  ;;  %v2985_v34 = vrot.slane %v2984_v4, 2  ;;  %v2994_v18 = vrot.slane %v2993_v2, 2  ;;  %v2998_v32 = vadd.f32 %v11429_v22, %v11428_v24  ;;  %v11440_v62 = vld [vmem:[#allocation66_spill] sm:$0xff]  ;;  %v11441_v30 = vld [vmem:[#allocation172_spill] sm:$0xff]  ;;  %v11442_v20 = vld [vmem:[#allocation67_spill] sm:$0xff] }
 0x47d   : > { %11423 = vst [vmem:[#allocation42_spill] sm:$0xff] %v8955_v58  ;;  %v3007_v27 = vadd.f32 %v11431_v17, %v11430_v54  ;;  %v3016_v61 = vadd.f32 %v11433_v44, %v11432_v26  ;;  %v3025_v36 = vadd.f32 %v11435_v39, %v11434_v47  ;;  %v3034_v53 = vadd.f32 %v11437_v10, %v11436_v52  ;;  %v11443_v24 = vld [vmem:[#allocation173_spill] sm:$0xff]  ;;  %v11445_v17 = vld [vmem:[#allocation267_spill] sm:$0xff]  ;;  %v11446_v26 = vld [vmem:[#allocation268_spill] sm:$0xff] }
 0x47e   : > { %11424 = vst [vmem:[#allocation148_spill] sm:$0xff] %v8957_v5  ;;  %v3043_v33 = vadd.f32 %v11439_v0, %v11438_v29  ;;  %v3052_v37 = vadd.f32 %v11441_v30, %v11440_v62  ;;  %v3061_v22 = vadd.f32 %v11443_v24, %v11442_v20  ;;  %v11448_v39 = vld [vmem:[#allocation270_spill] sm:$0xff]  ;;  %v11449_v52 = vld [vmem:[#allocation271_spill] sm:$0xff]  ;;  %v11450_v58 = vld [vmem:[#allocation272_spill] sm:$0xff] }
 0x47f   : > { %11425 = vst [vmem:[#allocation43_spill] sm:$0xff] %v8959_v11  ;;  %v3017_v44 = vadd.f32 %v3016_v61, %v11446_v26  ;;  %v11447_v11 = vld [vmem:[#allocation269_spill] sm:$0xff]  ;;  %v3035_v5 = vadd.f32 %v3034_v53, %v11448_v39  ;;  %v11452_v62 = vld [vmem:[#allocation383_spill] sm:$0xff]  ;;  %v11453_v45 = vld [vmem:[#allocation384_spill] sm:$0xff] }
 0x480   : > { %11426 = vst [vmem:[#allocation149_spill] sm:$0xff] %v8961_v1  ;;  %v3008_v1 = vadd.f32 %v3007_v27, %v11445_v17  ;;  %v3026_v47 = vadd.f32 %v3025_v36, %v11447_v11  ;;  %v3044_v10 = vadd.f32 %v3043_v33, %v11449_v52  ;;  %v3053_v29 = vadd.f32 %v3052_v37, %v11450_v58  ;;  %v11451_v0 = vld [vmem:[#allocation273_spill] sm:$0xff]  ;;  %v11456_v17 = vld [vmem:[#allocation387_spill] sm:$0xff]  ;;  %v11457_v26 = vld [vmem:[#allocation388_spill] sm:$0xff] }
 0x481   : > { %11427 = vst [vmem:[#allocation242_spill] sm:$0xff] %v8963_v49  ;;  %v11444_v49 = vld [vmem:[#allocation266_spill] sm:$0xff]  ;;  %v3062_v48 = vadd.f32 %v3061_v22, %v11451_v0  ;;  %v11454_v24 = vld [vmem:[#allocation385_spill] sm:$0xff]  ;;  %v3036_v61 = vadd.f32 %v3035_v5, %v11456_v17  ;;  %v2950_v52 = vadd.f32 %v2949_v31, %v2948_v9  ;;  %v2959_v58 = vadd.f32 %v2958_v43, %v2957_v41 }
 0x482   : > { %v2999_v54 = vadd.f32 %v2998_v32, %v11444_v49  ;;  %v3009_v20 = vadd.f32 %v3008_v1, %v11453_v45  ;;  %v3018_v49 = vadd.f32 %v3017_v44, %v11454_v24  ;;  %v11455_v32 = vld [vmem:[#allocation386_spill] sm:$0xff]  ;;  %v3045_v11 = vadd.f32 %v3044_v10, %v11457_v26  ;;  %v11458_v36 = vld [vmem:[#allocation389_spill] sm:$0xff] }
 0x483   : > { %v3027_v27 = vadd.f32 %v3026_v47, %v11455_v32  ;;  %v3054_v53 = vadd.f32 %v3053_v29, %v11458_v36  ;;  %v11459_v39 = vld [vmem:[#allocation390_spill] sm:$0xff]  ;;  %v2968_v0 = vadd.f32 %v2967_v38, %v2966_v13  ;;  %v2995_v45 = vadd.f32 %v2994_v18, %v2993_v2 }
 0x484   : > { %v3000_v30 = vadd.f32 %v2999_v54, %v11452_v62  ;;  %v3063_v33 = vadd.f32 %v3062_v48, %v11459_v39  ;;  %v3010_v22 = vrot.slane %v3009_v20, 4  ;;  %v2977_v54 = vadd.f32 %v2976_v16, %v2975_v12 }
 0x485   : > { %v2986_v62 = vadd.f32 %v2985_v34, %v2984_v4  ;;  %v3019_v1 = vrot.slane %v3018_v49, 4  ;;  %v3028_v44 = vrot.slane %v3027_v27, 4  ;;  %v3037_v24 = vrot.slane %v3036_v61, 4 }
 0x486   : > { %v3001_v37 = vrot.slane %v3000_v30, 4  ;;  %v3046_v47 = vrot.slane %v3045_v11, 4  ;;  %v3011_v5 = vadd.f32 %v3010_v22, %v3009_v20  ;;  %v3055_v17 = vrot.slane %v3054_v53, 4 }
 0x487   : > { %v3064_v10 = vrot.slane %v3063_v33, 4  ;;  %v2933_v26 = vrot.slane %v2932_v7, 1  ;;  %v2942_v29 = vrot.slane %v2941_v8, 1  ;;  %v2951_v36 = vrot.slane %v2950_v52, 1 }
 0x488   : > { %v3002_v32 = vadd.f32 %v3001_v37, %v3000_v30  ;;  %v2960_v48 = vrot.slane %v2959_v58, 1  ;;  %v2969_v9 = vrot.slane %v2968_v0, 1  ;;  %v2978_v41 = vrot.slane %v2977_v54, 1 }
 0x489   : > { %v2987_v31 = vrot.slane %v2986_v62, 1  ;;  %v2996_v43 = vrot.slane %v2995_v45, 1  ;;  %v3020_v13 = vadd.f32 %v3019_v1, %v3018_v49  ;;  %v3029_v12 = vadd.f32 %v3028_v44, %v3027_v27 }
 0x48a   : > { %v3038_v4 = vadd.f32 %v3037_v24, %v3036_v61  ;;  %v3047_v2 = vadd.f32 %v3046_v47, %v3045_v11  ;;  %v3003_v38 = vrot.slane %v3002_v32, 2  ;;  %v3012_v16 = vrot.slane %v3011_v5, 2  ;;  %v11469_v24 = vld [vmem:[#allocation174_spill] sm:$0xff]  ;;  %v11470_v47 = vld [vmem:[#allocation69_spill] sm:$0xff] }
 0x48b   : > { %v3056_v34 = vadd.f32 %v3055_v17, %v3054_v53  ;;  %v3065_v18 = vadd.f32 %v3064_v10, %v3063_v33  ;;  %v8997_v30 = vadd.f32 %v2933_v26, %v2932_v7  ;;  %v8999_v20 = vadd.f32 %v2942_v29, %v2941_v8  ;;  %v11473_v10 = vld [vmem:[#allocation176_spill] sm:$0xff]  ;;  %v11474_v26 = vld [vmem:[#allocation71_spill] sm:$0xff] }
 0x48c   : > { %v9001_v39 = vadd.f32 %v2951_v36, %v2950_v52  ;;  %v9003_v37 = vadd.f32 %v2960_v48, %v2959_v58  ;;  %v9005_v22 = vadd.f32 %v2969_v9, %v2968_v0  ;;  %v9007_v60 = vadd.f32 %v2978_v41, %v2977_v54  ;;  %v11468_v52 = vld [vmem:[#allocation68_spill] sm:$0xff]  ;;  %v11471_v0 = vld [vmem:[#allocation175_spill] sm:$0xff]  ;;  %v11472_v54 = vld [vmem:[#allocation70_spill] sm:$0xff] }
 0x48d   : > { %11460 = vst [vmem:[#allocation243_spill] sm:$0xff] %v8997_v30  ;;  %v9009_v49 = vadd.f32 %v2987_v31, %v2986_v62  ;;  %v9011_v27 = vadd.f32 %v2996_v43, %v2995_v45  ;;  %v3021_v61 = vrot.slane %v3020_v13, 2  ;;  %v3030_v11 = vrot.slane %v3029_v12, 2  ;;  %v11475_v45 = vld [vmem:[#allocation177_spill] sm:$0xff]  ;;  %v11476_v36 = vld [vmem:[#allocation72_spill] sm:$0xff]  ;;  %v11477_v48 = vld [vmem:[#allocation178_spill] sm:$0xff] }
 0x48e   : > { %11461 = vst [vmem:[#allocation244_spill] sm:$0xff] %v8999_v20  ;;  %v3039_v53 = vrot.slane %v3038_v4, 2  ;;  %v3048_v33 = vrot.slane %v3047_v2, 2  ;;  %v3004_v7 = vadd.f32 %v3003_v38, %v3002_v32  ;;  %v3013_v1 = vadd.f32 %v3012_v16, %v3011_v5  ;;  %v11478_v41 = vld [vmem:[#allocation73_spill] sm:$0xff]  ;;  %v11479_v32 = vld [vmem:[#allocation179_spill] sm:$0xff]  ;;  %v11480_v31 = vld [vmem:[#allocation74_spill] sm:$0xff] }
 0x48f   : > { %11462 = vst [vmem:[#allocation245_spill] sm:$0xff] %v9001_v39  ;;  %v3057_v8 = vrot.slane %v3056_v34, 2  ;;  %v3066_v44 = vrot.slane %v3065_v18, 2  ;;  %v3070_v58 = vadd.f32 %v11469_v24, %v11468_v52  ;;  %v3079_v17 = vadd.f32 %v11471_v0, %v11470_v47  ;;  %v11481_v43 = vld [vmem:[#allocation180_spill] sm:$0xff]  ;;  %v11482_v16 = vld [vmem:[#allocation75_spill] sm:$0xff]  ;;  %v11483_v52 = vld [vmem:[#allocation181_spill] sm:$0xff] }
 0x490   : > { %11463 = vst [vmem:[#allocation246_spill] sm:$0xff] %v9003_v37  ;;  %v3088_v62 = vadd.f32 %v11473_v10, %v11472_v54  ;;  %v3097_v29 = vadd.f32 %v11475_v45, %v11474_v26  ;;  %v3106_v9 = vadd.f32 %v11477_v48, %v11476_v36  ;;  %v3115_v5 = vadd.f32 %v11479_v32, %v11478_v41  ;;  %v11485_v0 = vld [vmem:[#allocation275_spill] sm:$0xff]  ;;  %v11486_v54 = vld [vmem:[#allocation276_spill] sm:$0xff]  ;;  %v11488_v45 = vld [vmem:[#allocation278_spill] sm:$0xff] }
 0x491   : > { %11464 = vst [vmem:[#allocation247_spill] sm:$0xff] %v9005_v22  ;;  %v3124_v38 = vadd.f32 %v11481_v43, %v11480_v31  ;;  %v3133_v24 = vadd.f32 %v11483_v52, %v11482_v16  ;;  %v11489_v36 = vld [vmem:[#allocation279_spill] sm:$0xff]  ;;  %v11490_v37 = vld [vmem:[#allocation280_spill] sm:$0xff]  ;;  %v11491_v32 = vld [vmem:[#allocation281_spill] sm:$0xff] }
 0x492   : > { %11465 = vst [vmem:[#allocation248_spill] sm:$0xff] %v9007_v60  ;;  %v3089_v10 = vadd.f32 %v3088_v62, %v11486_v54  ;;  %v11487_v60 = vld [vmem:[#allocation277_spill] sm:$0xff]  ;;  %v3107_v22 = vadd.f32 %v3106_v9, %v11488_v45  ;;  %v3116_v48 = vadd.f32 %v3115_v5, %v11489_v36  ;;  %v11492_v31 = vld [vmem:[#allocation391_spill] sm:$0xff]  ;;  %v11493_v20 = vld [vmem:[#allocation392_spill] sm:$0xff]  ;;  %v3022_v36 = vadd.f32 %v3021_v61, %v3020_v13 }
 0x493   : > { %11466 = vst [vmem:[#allocation249_spill] sm:$0xff] %v9009_v49  ;;  %v3080_v49 = vadd.f32 %v3079_v17, %v11485_v0  ;;  %v3098_v26 = vadd.f32 %v3097_v29, %v11487_v60  ;;  %v3125_v41 = vadd.f32 %v3124_v38, %v11490_v37  ;;  %v3134_v39 = vadd.f32 %v3133_v24, %v11491_v32  ;;  %v11494_v52 = vld [vmem:[#allocation393_spill] sm:$0xff]  ;;  %v11496_v0 = vld [vmem:[#allocation395_spill] sm:$0xff]  ;;  %v11497_v54 = vld [vmem:[#allocation396_spill] sm:$0xff] }
 0x494   : > { %11467 = vst [vmem:[#allocation359_spill] sm:$0xff] %v9011_v27  ;;  %v11484_v27 = vld [vmem:[#allocation274_spill] sm:$0xff]  ;;  %v3108_v62 = vadd.f32 %v3107_v22, %v11496_v0  ;;  %v3117_v60 = vadd.f32 %v3116_v48, %v11497_v54  ;;  %v11498_v29 = vld [vmem:[#allocation397_spill] sm:$0xff]  ;;  %v3031_v37 = vadd.f32 %v3030_v11, %v3029_v12  ;;  %v3040_v32 = vadd.f32 %v3039_v53, %v3038_v4 }
 0x495   : > { %v3071_v47 = vadd.f32 %v3070_v58, %v11484_v27  ;;  %v3081_v16 = vadd.f32 %v3080_v49, %v11493_v20  ;;  %v3090_v27 = vadd.f32 %v3089_v10, %v11494_v52  ;;  %v11495_v58 = vld [vmem:[#allocation394_spill] sm:$0xff]  ;;  %v3126_v9 = vadd.f32 %v3125_v41, %v11498_v29 }
 0x496   : > { %v3099_v17 = vadd.f32 %v3098_v26, %v11495_v58  ;;  %v11499_v45 = vld [vmem:[#allocation398_spill] sm:$0xff]  ;;  %v3067_v20 = vadd.f32 %v3066_v44, %v3065_v18  ;;  %v3109_v52 = vrot.slane %v3108_v62, 4  ;;  %v3118_v26 = vrot.slane %v3117_v60, 4 }
 0x497   : > { %v3072_v43 = vadd.f32 %v3071_v47, %v11492_v31  ;;  %v3135_v5 = vadd.f32 %v3134_v39, %v11499_v45  ;;  %v3082_v24 = vrot.slane %v3081_v16, 4  ;;  %v3049_v47 = vadd.f32 %v3048_v33, %v3047_v2 }
 0x498   : > { %v3058_v31 = vadd.f32 %v3057_v8, %v3056_v34  ;;  %v3091_v49 = vrot.slane %v3090_v27, 4  ;;  %v3100_v10 = vrot.slane %v3099_v17, 4  ;;  %v3127_v0 = vrot.slane %v3126_v9, 4 }
 0x499   : > { %v3073_v38 = vrot.slane %v3072_v43, 4  ;;  %v3083_v22 = vadd.f32 %v3082_v24, %v3081_v16  ;;  %v3136_v48 = vrot.slane %v3135_v5, 4  ;;  %v3005_v54 = vrot.slane %v3004_v7, 1 }
 0x49a   : > { %v3014_v41 = vrot.slane %v3013_v1, 1  ;;  %v3023_v29 = vrot.slane %v3022_v36, 1  ;;  %v3032_v39 = vrot.slane %v3031_v37, 1  ;;  %v3041_v13 = vrot.slane %v3040_v32, 1 }
 0x49b   : > { %v3074_v58 = vadd.f32 %v3073_v38, %v3072_v43  ;;  %v3050_v12 = vrot.slane %v3049_v47, 1  ;;  %v3059_v61 = vrot.slane %v3058_v31, 1  ;;  %v3068_v11 = vrot.slane %v3067_v20, 1 }
 0x49c   : > { %v3092_v4 = vadd.f32 %v3091_v49, %v3090_v27  ;;  %v3101_v2 = vadd.f32 %v3100_v10, %v3099_v17  ;;  %v3110_v34 = vadd.f32 %v3109_v52, %v3108_v62  ;;  %v3119_v18 = vadd.f32 %v3118_v26, %v3117_v60  ;;  %v11509_v52 = vld [vmem:[#allocation182_spill] sm:$0xff]  ;;  %v11510_v26 = vld [vmem:[#allocation77_spill] sm:$0xff] }
 0x49d   : > { %v3075_v53 = vrot.slane %v3074_v58, 2  ;;  %v3084_v33 = vrot.slane %v3083_v22, 2  ;;  %v3128_v8 = vadd.f32 %v3127_v0, %v3126_v9  ;;  %v3137_v44 = vadd.f32 %v3136_v48, %v3135_v5  ;;  %v11513_v48 = vld [vmem:[#allocation184_spill] sm:$0xff] }
 0x49e   : > { %v9045_v43 = vadd.f32 %v3005_v54, %v3004_v7  ;;  %v9047_v16 = vadd.f32 %v3014_v41, %v3013_v1  ;;  %v9049_v45 = vadd.f32 %v3023_v29, %v3022_v36  ;;  %v9051_v38 = vadd.f32 %v3032_v39, %v3031_v37  ;;  %v11508_v36 = vld [vmem:[#allocation76_spill] sm:$0xff]  ;;  %v11514_v54 = vld [vmem:[#allocation79_spill] sm:$0xff]  ;;  %v11517_v39 = vld [vmem:[#allocation186_spill] sm:$0xff] }
 0x49f   : > { %v9053_v24 = vadd.f32 %v3041_v13, %v3040_v32  ;;  %v9055_v30 = vadd.f32 %v3050_v12, %v3049_v47  ;;  %v9057_v27 = vadd.f32 %v3059_v61, %v3058_v31  ;;  %v9059_v17 = vadd.f32 %v3068_v11, %v3067_v20  ;;  %v11511_v32 = vld [vmem:[#allocation183_spill] sm:$0xff]  ;;  %v11512_v47 = vld [vmem:[#allocation78_spill] sm:$0xff]  ;;  %v11515_v20 = vld [vmem:[#allocation185_spill] sm:$0xff] }
 0x4a0   : > { %11500 = vst [vmem:[#allocation360_spill] sm:$0xff] %v9045_v43  ;;  %v3093_v62 = vrot.slane %v3092_v4, 2  ;;  %v3102_v60 = vrot.slane %v3101_v2, 2  ;;  %v3111_v9 = vrot.slane %v3110_v34, 2  ;;  %v3120_v5 = vrot.slane %v3119_v18, 2  ;;  %v11516_v29 = vld [vmem:[#allocation80_spill] sm:$0xff] }
 0x4a1   : > { %11501 = vst [vmem:[#allocation361_spill] sm:$0xff] %v9047_v16  ;;  %v3076_v7 = vadd.f32 %v3075_v53, %v3074_v58  ;;  %v3085_v49 = vadd.f32 %v3084_v33, %v3083_v22  ;;  %v3129_v1 = vrot.slane %v3128_v8, 2  ;;  %v3138_v10 = vrot.slane %v3137_v44, 2  ;;  %v11518_v12 = vld [vmem:[#allocation81_spill] sm:$0xff]  ;;  %v11519_v58 = vld [vmem:[#allocation187_spill] sm:$0xff]  ;;  %v11520_v61 = vld [vmem:[#allocation82_spill] sm:$0xff] }
 0x4a2   : > { %11502 = vst [vmem:[#allocation362_spill] sm:$0xff] %v9049_v45  ;;  %v3142_v37 = vadd.f32 %v11509_v52, %v11508_v36  ;;  %v3151_v0 = vadd.f32 %v11511_v32, %v11510_v26  ;;  %v3160_v31 = vadd.f32 %v11513_v48, %v11512_v47  ;;  %v3169_v41 = vadd.f32 %v11515_v20, %v11514_v54  ;;  %v11521_v11 = vld [vmem:[#allocation188_spill] sm:$0xff]  ;;  %v11522_v33 = vld [vmem:[#allocation83_spill] sm:$0xff]  ;;  %v11523_v36 = vld [vmem:[#allocation189_spill] sm:$0xff] }
 0x4a3   : > { %11503 = vst [vmem:[#allocation363_spill] sm:$0xff] %v9051_v38  ;;  %v3178_v13 = vadd.f32 %v11517_v39, %v11516_v29  ;;  %v3187_v22 = vadd.f32 %v11519_v58, %v11518_v12  ;;  %v3196_v53 = vadd.f32 %v11521_v11, %v11520_v61  ;;  %v3205_v52 = vadd.f32 %v11523_v36, %v11522_v33  ;;  %v11525_v32 = vld [vmem:[#allocation283_spill] sm:$0xff]  ;;  %v11526_v47 = vld [vmem:[#allocation284_spill] sm:$0xff]  ;;  %v11528_v20 = vld [vmem:[#allocation286_spill] sm:$0xff] }
 0x4a4   : > { %11504 = vst [vmem:[#allocation364_spill] sm:$0xff] %v9053_v24  ;;  %v3161_v48 = vadd.f32 %v3160_v31, %v11526_v47  ;;  %v11529_v29 = vld [vmem:[#allocation287_spill] sm:$0xff]  ;;  %v11530_v38 = vld [vmem:[#allocation288_spill] sm:$0xff]  ;;  %v11531_v58 = vld [vmem:[#allocation289_spill] sm:$0xff] }
 0x4a5   : > { %11505 = vst [vmem:[#allocation365_spill] sm:$0xff] %v9055_v30  ;;  %v11527_v30 = vld [vmem:[#allocation285_spill] sm:$0xff]  ;;  %v3179_v24 = vadd.f32 %v3178_v13, %v11528_v20  ;;  %v3188_v39 = vadd.f32 %v3187_v22, %v11529_v29  ;;  %v3197_v12 = vadd.f32 %v3196_v53, %v11530_v38  ;;  %v3206_v45 = vadd.f32 %v3205_v52, %v11531_v58  ;;  %v11532_v61 = vld [vmem:[#allocation399_spill] sm:$0xff]  ;;  %v11533_v16 = vld [vmem:[#allocation400_spill] sm:$0xff] }
 0x4a6   : > { %11506 = vst [vmem:[#allocation366_spill] sm:$0xff] %v9057_v27  ;;  %v3152_v27 = vadd.f32 %v3151_v0, %v11525_v32  ;;  %v3170_v54 = vadd.f32 %v3169_v41, %v11527_v30  ;;  %v11534_v36 = vld [vmem:[#allocation401_spill] sm:$0xff]  ;;  %v11536_v32 = vld [vmem:[#allocation403_spill] sm:$0xff]  ;;  %v11537_v47 = vld [vmem:[#allocation404_spill] sm:$0xff]  ;;  %v3094_v29 = vadd.f32 %v3093_v62, %v3092_v4  ;;  %v3103_v38 = vadd.f32 %v3102_v60, %v3101_v2 }
 0x4a7   : > { %11507 = vst [vmem:[#allocation44_spill] sm:$0xff] %v9059_v17  ;;  %v11524_v17 = vld [vmem:[#allocation282_spill] sm:$0xff]  ;;  %v3180_v31 = vadd.f32 %v3179_v24, %v11536_v32  ;;  %v3189_v30 = vadd.f32 %v3188_v39, %v11537_v47  ;;  %v11538_v41 = vld [vmem:[#allocation405_spill] sm:$0xff]  ;;  %v3112_v58 = vadd.f32 %v3111_v9, %v3110_v34  ;;  %v3077_v47 = vrot.slane %v3076_v7, 1 }
 0x4a8   : > { %v3143_v26 = vadd.f32 %v3142_v37, %v11524_v17  ;;  %v3153_v33 = vadd.f32 %v3152_v27, %v11533_v16  ;;  %v3162_v17 = vadd.f32 %v3161_v48, %v11534_v36  ;;  %v11535_v37 = vld [vmem:[#allocation402_spill] sm:$0xff]  ;;  %v3198_v13 = vadd.f32 %v3197_v12, %v11538_v41 }
 0x4a9   : > { %v3171_v0 = vadd.f32 %v3170_v54, %v11535_v37  ;;  %v11539_v20 = vld [vmem:[#allocation406_spill] sm:$0xff]  ;;  %v3139_v16 = vadd.f32 %v3138_v10, %v3137_v44  ;;  %v3181_v36 = vrot.slane %v3180_v31, 4  ;;  %v3190_v54 = vrot.slane %v3189_v30, 4 }
 0x4aa   : > { %v3144_v11 = vadd.f32 %v3143_v26, %v11532_v61  ;;  %v3207_v22 = vadd.f32 %v3206_v45, %v11539_v20  ;;  %v3154_v52 = vrot.slane %v3153_v33, 4  ;;  %v3121_v26 = vadd.f32 %v3120_v5, %v3119_v18 }
 0x4ab   : > { %v3130_v61 = vadd.f32 %v3129_v1, %v3128_v8  ;;  %v3163_v27 = vrot.slane %v3162_v17, 4  ;;  %v3172_v48 = vrot.slane %v3171_v0, 4  ;;  %v3199_v32 = vrot.slane %v3198_v13, 4 }
 0x4ac   : > { %v3145_v53 = vrot.slane %v3144_v11, 4  ;;  %v3155_v24 = vadd.f32 %v3154_v52, %v3153_v33  ;;  %v3208_v39 = vrot.slane %v3207_v22, 4  ;;  %v3086_v12 = vrot.slane %v3085_v49, 1 }
 0x4ad   : > { %v3095_v41 = vrot.slane %v3094_v29, 1  ;;  %v3104_v45 = vrot.slane %v3103_v38, 1  ;;  %v3113_v4 = vrot.slane %v3112_v58, 1  ;;  %v3122_v2 = vrot.slane %v3121_v26, 1 }
 0x4ae   : > { %v3146_v37 = vadd.f32 %v3145_v53, %v3144_v11  ;;  %v3131_v62 = vrot.slane %v3130_v61, 1  ;;  %v3140_v60 = vrot.slane %v3139_v16, 1  ;;  %v3164_v34 = vadd.f32 %v3163_v27, %v3162_v17 }
 0x4af   : > { %v3173_v18 = vadd.f32 %v3172_v48, %v3171_v0  ;;  %v3182_v8 = vadd.f32 %v3181_v36, %v3180_v31  ;;  %v3191_v44 = vadd.f32 %v3190_v54, %v3189_v30  ;;  %v3156_v5 = vrot.slane %v3155_v24, 2  ;;  %v11549_v36 = vld [vmem:[#allocation190_spill] sm:$0xff]  ;;  %v11550_v54 = vld [vmem:[#allocation85_spill] sm:$0xff] }
 0x4b0   : > { %v3147_v9 = vrot.slane %v3146_v37, 2  ;;  %v3200_v1 = vadd.f32 %v3199_v32, %v3198_v13  ;;  %v3209_v10 = vadd.f32 %v3208_v39, %v3207_v22  ;;  %v9093_v11 = vadd.f32 %v3077_v47, %v3076_v7  ;;  %v11553_v39 = vld [vmem:[#allocation192_spill] sm:$0xff]  ;;  %v11554_v47 = vld [vmem:[#allocation87_spill] sm:$0xff] }
 0x4b1   : > { %v9095_v33 = vadd.f32 %v3086_v12, %v3085_v49  ;;  %v9097_v20 = vadd.f32 %v3095_v41, %v3094_v29  ;;  %v9099_v53 = vadd.f32 %v3104_v45, %v3103_v38  ;;  %v9101_v52 = vadd.f32 %v3113_v4, %v3112_v58  ;;  %v11548_v29 = vld [vmem:[#allocation84_spill] sm:$0xff]  ;;  %v11551_v58 = vld [vmem:[#allocation191_spill] sm:$0xff]  ;;  %v11557_v45 = vld [vmem:[#allocation194_spill] sm:$0xff] }
 0x4b2   : > { %11540 = vst [vmem:[#allocation150_spill] sm:$0xff] %v9093_v11  ;;  %v9103_v43 = vadd.f32 %v3122_v2, %v3121_v26  ;;  %v9105_v17 = vadd.f32 %v3131_v62, %v3130_v61  ;;  %v9107_v0 = vadd.f32 %v3140_v60, %v3139_v16  ;;  %v3165_v31 = vrot.slane %v3164_v34, 2  ;;  %v11552_v26 = vld [vmem:[#allocation86_spill] sm:$0xff]  ;;  %v11555_v16 = vld [vmem:[#allocation193_spill] sm:$0xff]  ;;  %v11556_v41 = vld [vmem:[#allocation88_spill] sm:$0xff] }
 0x4b3   : > { %11541 = vst [vmem:[#allocation45_spill] sm:$0xff] %v9095_v33  ;;  %v3174_v30 = vrot.slane %v3173_v18, 2  ;;  %v3183_v13 = vrot.slane %v3182_v8, 2  ;;  %v3192_v22 = vrot.slane %v3191_v44, 2  ;;  %v3148_v7 = vadd.f32 %v3147_v9, %v3146_v37  ;;  %v11558_v2 = vld [vmem:[#allocation89_spill] sm:$0xff]  ;;  %v11559_v37 = vld [vmem:[#allocation195_spill] sm:$0xff] }
 0x4b4   : > { %11542 = vst [vmem:[#allocation151_spill] sm:$0xff] %v9097_v20  ;;  %v3157_v27 = vadd.f32 %v3156_v5, %v3155_v24  ;;  %v3201_v49 = vrot.slane %v3200_v1, 2  ;;  %v3210_v48 = vrot.slane %v3209_v10, 2  ;;  %v3214_v38 = vadd.f32 %v11549_v36, %v11548_v29  ;;  %v11560_v62 = vld [vmem:[#allocation90_spill] sm:$0xff]  ;;  %v11561_v60 = vld [vmem:[#allocation196_spill] sm:$0xff]  ;;  %v11562_v5 = vld [vmem:[#allocation91_spill] sm:$0xff] }
 0x4b5   : > { %11543 = vst [vmem:[#allocation46_spill] sm:$0xff] %v9099_v53  ;;  %v3223_v32 = vadd.f32 %v11551_v58, %v11550_v54  ;;  %v3232_v61 = vadd.f32 %v11553_v39, %v11552_v26  ;;  %v3241_v12 = vadd.f32 %v11555_v16, %v11554_v47  ;;  %v3250_v4 = vadd.f32 %v11557_v45, %v11556_v41  ;;  %v11563_v29 = vld [vmem:[#allocation197_spill] sm:$0xff]  ;;  %v11565_v58 = vld [vmem:[#allocation291_spill] sm:$0xff]  ;;  %v11566_v26 = vld [vmem:[#allocation292_spill] sm:$0xff] }
 0x4b6   : > { %11544 = vst [vmem:[#allocation152_spill] sm:$0xff] %v9101_v52  ;;  %v3259_v24 = vadd.f32 %v11559_v37, %v11558_v2  ;;  %v3268_v9 = vadd.f32 %v11561_v60, %v11560_v62  ;;  %v3277_v36 = vadd.f32 %v11563_v29, %v11562_v5  ;;  %v11568_v16 = vld [vmem:[#allocation294_spill] sm:$0xff]  ;;  %v11569_v41 = vld [vmem:[#allocation295_spill] sm:$0xff]  ;;  %v11570_v53 = vld [vmem:[#allocation296_spill] sm:$0xff] }
 0x4b7   : > { %11545 = vst [vmem:[#allocation47_spill] sm:$0xff] %v9103_v43  ;;  %v3233_v39 = vadd.f32 %v3232_v61, %v11566_v26  ;;  %v11567_v43 = vld [vmem:[#allocation293_spill] sm:$0xff]  ;;  %v3251_v52 = vadd.f32 %v3250_v4, %v11568_v16  ;;  %v11572_v62 = vld [vmem:[#allocation407_spill] sm:$0xff]  ;;  %v11573_v33 = vld [vmem:[#allocation408_spill] sm:$0xff] }
 0x4b8   : > { %11546 = vst [vmem:[#allocation153_spill] sm:$0xff] %v9105_v17  ;;  %v3224_v17 = vadd.f32 %v3223_v32, %v11565_v58  ;;  %v3242_v47 = vadd.f32 %v3241_v12, %v11567_v43  ;;  %v3260_v45 = vadd.f32 %v3259_v24, %v11569_v41  ;;  %v3269_v2 = vadd.f32 %v3268_v9, %v11570_v53  ;;  %v11571_v37 = vld [vmem:[#allocation297_spill] sm:$0xff]  ;;  %v11576_v58 = vld [vmem:[#allocation411_spill] sm:$0xff]  ;;  %v11577_v26 = vld [vmem:[#allocation412_spill] sm:$0xff] }
 0x4b9   : > { %11547 = vst [vmem:[#allocation48_spill] sm:$0xff] %v9107_v0  ;;  %v11564_v0 = vld [vmem:[#allocation290_spill] sm:$0xff]  ;;  %v3278_v20 = vadd.f32 %v3277_v36, %v11571_v37  ;;  %v11574_v29 = vld [vmem:[#allocation409_spill] sm:$0xff]  ;;  %v3252_v61 = vadd.f32 %v3251_v52, %v11576_v58  ;;  %v3166_v41 = vadd.f32 %v3165_v31, %v3164_v34  ;;  %v3175_v53 = vadd.f32 %v3174_v30, %v3173_v18 }
 0x4ba   : > { %v3215_v54 = vadd.f32 %v3214_v38, %v11564_v0  ;;  %v3225_v5 = vadd.f32 %v3224_v17, %v11573_v33  ;;  %v3234_v0 = vadd.f32 %v3233_v39, %v11574_v29  ;;  %v11575_v38 = vld [vmem:[#allocation410_spill] sm:$0xff]  ;;  %v3261_v43 = vadd.f32 %v3260_v45, %v11577_v26  ;;  %v11578_v12 = vld [vmem:[#allocation413_spill] sm:$0xff] }
 0x4bb   : > { %v3243_v32 = vadd.f32 %v3242_v47, %v11575_v38  ;;  %v3270_v4 = vadd.f32 %v3269_v2, %v11578_v12  ;;  %v11579_v16 = vld [vmem:[#allocation414_spill] sm:$0xff]  ;;  %v3184_v37 = vadd.f32 %v3183_v13, %v3182_v8  ;;  %v3211_v33 = vadd.f32 %v3210_v48, %v3209_v10 }
 0x4bc   : > { %v3216_v60 = vadd.f32 %v3215_v54, %v11572_v62  ;;  %v3279_v24 = vadd.f32 %v3278_v20, %v11579_v16  ;;  %v3226_v36 = vrot.slane %v3225_v5, 4  ;;  %v3193_v54 = vadd.f32 %v3192_v22, %v3191_v44 }
 0x4bd   : > { %v3202_v62 = vadd.f32 %v3201_v49, %v3200_v1  ;;  %v3235_v17 = vrot.slane %v3234_v0, 4  ;;  %v3244_v39 = vrot.slane %v3243_v32, 4  ;;  %v3253_v29 = vrot.slane %v3252_v61, 4 }
 0x4be   : > { %v3217_v9 = vrot.slane %v3216_v60, 4  ;;  %v3262_v47 = vrot.slane %v3261_v43, 4  ;;  %v3227_v52 = vadd.f32 %v3226_v36, %v3225_v5  ;;  %v3271_v58 = vrot.slane %v3270_v4, 4 }
 0x4bf   : > { %v3280_v45 = vrot.slane %v3279_v24, 4  ;;  %v3149_v26 = vrot.slane %v3148_v7, 1  ;;  %v3158_v2 = vrot.slane %v3157_v27, 1  ;;  %v3167_v12 = vrot.slane %v3166_v41, 1 }
 0x4c0   : > { %v3218_v38 = vadd.f32 %v3217_v9, %v3216_v60  ;;  %v3176_v20 = vrot.slane %v3175_v53, 1  ;;  %v3185_v34 = vrot.slane %v3184_v37, 1  ;;  %v3194_v18 = vrot.slane %v3193_v54, 1 }
 0x4c1   : > { %v3203_v31 = vrot.slane %v3202_v62, 1  ;;  %v3212_v30 = vrot.slane %v3211_v33, 1  ;;  %v3236_v8 = vadd.f32 %v3235_v17, %v3234_v0  ;;  %v3245_v44 = vadd.f32 %v3244_v39, %v3243_v32 }
 0x4c2   : > { %v3254_v1 = vadd.f32 %v3253_v29, %v3252_v61  ;;  %v3263_v10 = vadd.f32 %v3262_v47, %v3261_v43  ;;  %v3219_v13 = vrot.slane %v3218_v38, 2  ;;  %v3228_v22 = vrot.slane %v3227_v52, 2  ;;  %v11589_v29 = vld [vmem:[#allocation198_spill] sm:$0xff]  ;;  %v11590_v47 = vld [vmem:[#allocation93_spill] sm:$0xff] }
 0x4c3   : > { %v3272_v49 = vadd.f32 %v3271_v58, %v3270_v4  ;;  %v3281_v48 = vadd.f32 %v3280_v45, %v3279_v24  ;;  %v9141_v60 = vadd.f32 %v3149_v26, %v3148_v7  ;;  %v9143_v5 = vadd.f32 %v3158_v2, %v3157_v27  ;;  %v11593_v45 = vld [vmem:[#allocation200_spill] sm:$0xff]  ;;  %v11594_v26 = vld [vmem:[#allocation95_spill] sm:$0xff] }
 0x4c4   : > { %v9145_v16 = vadd.f32 %v3167_v12, %v3166_v41  ;;  %v9147_v9 = vadd.f32 %v3176_v20, %v3175_v53  ;;  %v9149_v36 = vadd.f32 %v3185_v34, %v3184_v37  ;;  %v9151_v11 = vadd.f32 %v3194_v18, %v3193_v54  ;;  %v11588_v41 = vld [vmem:[#allocation92_spill] sm:$0xff]  ;;  %v11591_v37 = vld [vmem:[#allocation199_spill] sm:$0xff]  ;;  %v11592_v54 = vld [vmem:[#allocation94_spill] sm:$0xff] }
 0x4c5   : > { %11580 = vst [vmem:[#allocation154_spill] sm:$0xff] %v9141_v60  ;;  %v9153_v0 = vadd.f32 %v3203_v31, %v3202_v62  ;;  %v9155_v32 = vadd.f32 %v3212_v30, %v3211_v33  ;;  %v3237_v61 = vrot.slane %v3236_v8, 2  ;;  %v3246_v43 = vrot.slane %v3245_v44, 2  ;;  %v11595_v33 = vld [vmem:[#allocation201_spill] sm:$0xff]  ;;  %v11596_v12 = vld [vmem:[#allocation96_spill] sm:$0xff]  ;;  %v11597_v20 = vld [vmem:[#allocation202_spill] sm:$0xff] }
 0x4c6   : > { %11581 = vst [vmem:[#allocation49_spill] sm:$0xff] %v9143_v5  ;;  %v3255_v4 = vrot.slane %v3254_v1, 2  ;;  %v3264_v24 = vrot.slane %v3263_v10, 2  ;;  %v3220_v7 = vadd.f32 %v3219_v13, %v3218_v38  ;;  %v3229_v17 = vadd.f32 %v3228_v22, %v3227_v52  ;;  %v11598_v18 = vld [vmem:[#allocation97_spill] sm:$0xff]  ;;  %v11599_v38 = vld [vmem:[#allocation203_spill] sm:$0xff]  ;;  %v11600_v31 = vld [vmem:[#allocation98_spill] sm:$0xff] }
 0x4c7   : > { %11582 = vst [vmem:[#allocation155_spill] sm:$0xff] %v9145_v16  ;;  %v3273_v27 = vrot.slane %v3272_v49, 2  ;;  %v3282_v39 = vrot.slane %v3281_v48, 2  ;;  %v3286_v53 = vadd.f32 %v11589_v29, %v11588_v41  ;;  %v3295_v58 = vadd.f32 %v11591_v37, %v11590_v47  ;;  %v11601_v30 = vld [vmem:[#allocation204_spill] sm:$0xff]  ;;  %v11602_v22 = vld [vmem:[#allocation99_spill] sm:$0xff]  ;;  %v11603_v41 = vld [vmem:[#allocation205_spill] sm:$0xff] }
 0x4c8   : > { %11583 = vst [vmem:[#allocation50_spill] sm:$0xff] %v9147_v9  ;;  %v3304_v62 = vadd.f32 %v11593_v45, %v11592_v54  ;;  %v3313_v2 = vadd.f32 %v11595_v33, %v11594_v26  ;;  %v3322_v34 = vadd.f32 %v11597_v20, %v11596_v12  ;;  %v3331_v52 = vadd.f32 %v11599_v38, %v11598_v18  ;;  %v11605_v37 = vld [vmem:[#allocation299_spill] sm:$0xff]  ;;  %v11606_v54 = vld [vmem:[#allocation300_spill] sm:$0xff]  ;;  %v11608_v33 = vld [vmem:[#allocation302_spill] sm:$0xff] }
 0x4c9   : > { %11584 = vst [vmem:[#allocation156_spill] sm:$0xff] %v9149_v36  ;;  %v3340_v13 = vadd.f32 %v11601_v30, %v11600_v31  ;;  %v3349_v29 = vadd.f32 %v11603_v41, %v11602_v22  ;;  %v11609_v12 = vld [vmem:[#allocation303_spill] sm:$0xff]  ;;  %v11610_v9 = vld [vmem:[#allocation304_spill] sm:$0xff]  ;;  %v11611_v38 = vld [vmem:[#allocation305_spill] sm:$0xff] }
 0x4ca   : > { %11585 = vst [vmem:[#allocation51_spill] sm:$0xff] %v9151_v11  ;;  %v3305_v45 = vadd.f32 %v3304_v62, %v11606_v54  ;;  %v11607_v11 = vld [vmem:[#allocation301_spill] sm:$0xff]  ;;  %v3323_v36 = vadd.f32 %v3322_v34, %v11608_v33  ;;  %v3332_v20 = vadd.f32 %v3331_v52, %v11609_v12  ;;  %v11612_v31 = vld [vmem:[#allocation415_spill] sm:$0xff]  ;;  %v11613_v5 = vld [vmem:[#allocation416_spill] sm:$0xff]  ;;  %v3238_v12 = vadd.f32 %v3237_v61, %v3236_v8 }
 0x4cb   : > { %11586 = vst [vmem:[#allocation157_spill] sm:$0xff] %v9153_v0  ;;  %v3296_v0 = vadd.f32 %v3295_v58, %v11605_v37  ;;  %v3314_v26 = vadd.f32 %v3313_v2, %v11607_v11  ;;  %v3341_v18 = vadd.f32 %v3340_v13, %v11610_v9  ;;  %v3350_v16 = vadd.f32 %v3349_v29, %v11611_v38  ;;  %v11614_v41 = vld [vmem:[#allocation417_spill] sm:$0xff]  ;;  %v11616_v37 = vld [vmem:[#allocation419_spill] sm:$0xff]  ;;  %v11617_v54 = vld [vmem:[#allocation420_spill] sm:$0xff] }
 0x4cc   : > { %11587 = vst [vmem:[#allocation250_spill] sm:$0xff] %v9155_v32  ;;  %v11604_v32 = vld [vmem:[#allocation298_spill] sm:$0xff]  ;;  %v3324_v62 = vadd.f32 %v3323_v36, %v11616_v37  ;;  %v3333_v11 = vadd.f32 %v3332_v20, %v11617_v54  ;;  %v11618_v2 = vld [vmem:[#allocation421_spill] sm:$0xff]  ;;  %v3247_v9 = vadd.f32 %v3246_v43, %v3245_v44  ;;  %v3256_v38 = vadd.f32 %v3255_v4, %v3254_v1 }
 0x4cd   : > { %v3287_v47 = vadd.f32 %v3286_v53, %v11604_v32  ;;  %v3297_v22 = vadd.f32 %v3296_v0, %v11613_v5  ;;  %v3306_v32 = vadd.f32 %v3305_v45, %v11614_v41  ;;  %v11615_v53 = vld [vmem:[#allocation418_spill] sm:$0xff]  ;;  %v3342_v34 = vadd.f32 %v3341_v18, %v11618_v2 }
 0x4ce   : > { %v3315_v58 = vadd.f32 %v3314_v26, %v11615_v53  ;;  %v11619_v33 = vld [vmem:[#allocation422_spill] sm:$0xff]  ;;  %v3283_v5 = vadd.f32 %v3282_v39, %v3281_v48  ;;  %v3325_v41 = vrot.slane %v3324_v62, 4  ;;  %v3334_v26 = vrot.slane %v3333_v11, 4 }
 0x4cf   : > { %v3288_v30 = vadd.f32 %v3287_v47, %v11612_v31  ;;  %v3351_v52 = vadd.f32 %v3350_v16, %v11619_v33  ;;  %v3298_v29 = vrot.slane %v3297_v22, 4  ;;  %v3265_v47 = vadd.f32 %v3264_v24, %v3263_v10 }
 0x4d0   : > { %v3274_v31 = vadd.f32 %v3273_v27, %v3272_v49  ;;  %v3307_v0 = vrot.slane %v3306_v32, 4  ;;  %v3316_v45 = vrot.slane %v3315_v58, 4  ;;  %v3343_v37 = vrot.slane %v3342_v34, 4 }
 0x4d1   : > { %v3289_v13 = vrot.slane %v3288_v30, 4  ;;  %v3299_v36 = vadd.f32 %v3298_v29, %v3297_v22  ;;  %v3352_v20 = vrot.slane %v3351_v52, 4  ;;  %v3221_v54 = vrot.slane %v3220_v7, 1 }
 0x4d2   : > { %v3230_v18 = vrot.slane %v3229_v17, 1  ;;  %v3239_v2 = vrot.slane %v3238_v12, 1  ;;  %v3248_v16 = vrot.slane %v3247_v9, 1  ;;  %v3257_v8 = vrot.slane %v3256_v38, 1 }
 0x4d3   : > { %v3290_v53 = vadd.f32 %v3289_v13, %v3288_v30  ;;  %v3266_v44 = vrot.slane %v3265_v47, 1  ;;  %v3275_v61 = vrot.slane %v3274_v31, 1  ;;  %v3284_v43 = vrot.slane %v3283_v5, 1 }
 0x4d4   : > { %v3308_v1 = vadd.f32 %v3307_v0, %v3306_v32  ;;  %v3317_v10 = vadd.f32 %v3316_v45, %v3315_v58  ;;  %v3326_v49 = vadd.f32 %v3325_v41, %v3324_v62  ;;  %v3335_v48 = vadd.f32 %v3334_v26, %v3333_v11  ;;  %v11629_v41 = vld [vmem:[#allocation206_spill] sm:$0xff]  ;;  %v11630_v26 = vld [vmem:[#allocation101_spill] sm:$0xff] }
 0x4d5   : > { %v3291_v4 = vrot.slane %v3290_v53, 2  ;;  %v3300_v24 = vrot.slane %v3299_v36, 2  ;;  %v3344_v27 = vadd.f32 %v3343_v37, %v3342_v34  ;;  %v3353_v39 = vadd.f32 %v3352_v20, %v3351_v52  ;;  %v11633_v20 = vld [vmem:[#allocation208_spill] sm:$0xff] }
 0x4d6   : > { %v9189_v30 = vadd.f32 %v3221_v54, %v3220_v7  ;;  %v9191_v22 = vadd.f32 %v3230_v18, %v3229_v17  ;;  %v9193_v33 = vadd.f32 %v3239_v2, %v3238_v12  ;;  %v9195_v13 = vadd.f32 %v3248_v16, %v3247_v9  ;;  %v11628_v12 = vld [vmem:[#allocation100_spill] sm:$0xff]  ;;  %v11634_v54 = vld [vmem:[#allocation103_spill] sm:$0xff]  ;;  %v11637_v16 = vld [vmem:[#allocation210_spill] sm:$0xff] }
 0x4d7   : > { %v9197_v29 = vadd.f32 %v3257_v8, %v3256_v38  ;;  %v9199_v60 = vadd.f32 %v3266_v44, %v3265_v47  ;;  %v9201_v32 = vadd.f32 %v3275_v61, %v3274_v31  ;;  %v9203_v58 = vadd.f32 %v3284_v43, %v3283_v5  ;;  %v11631_v38 = vld [vmem:[#allocation207_spill] sm:$0xff]  ;;  %v11632_v47 = vld [vmem:[#allocation102_spill] sm:$0xff]  ;;  %v11635_v5 = vld [vmem:[#allocation209_spill] sm:$0xff] }
 0x4d8   : > { %11620 = vst [vmem:[#allocation251_spill] sm:$0xff] %v9189_v30  ;;  %v3309_v62 = vrot.slane %v3308_v1, 2  ;;  %v3318_v11 = vrot.slane %v3317_v10, 2  ;;  %v3327_v34 = vrot.slane %v3326_v49, 2  ;;  %v3336_v52 = vrot.slane %v3335_v48, 2  ;;  %v11636_v2 = vld [vmem:[#allocation104_spill] sm:$0xff] }
 0x4d9   : > { %11621 = vst [vmem:[#allocation252_spill] sm:$0xff] %v9191_v22  ;;  %v3292_v7 = vadd.f32 %v3291_v4, %v3290_v53  ;;  %v3301_v0 = vadd.f32 %v3300_v24, %v3299_v36  ;;  %v3345_v17 = vrot.slane %v3344_v27, 2  ;;  %v3354_v45 = vrot.slane %v3353_v39, 2  ;;  %v11638_v44 = vld [vmem:[#allocation105_spill] sm:$0xff]  ;;  %v11639_v53 = vld [vmem:[#allocation211_spill] sm:$0xff]  ;;  %v11640_v61 = vld [vmem:[#allocation106_spill] sm:$0xff] }
 0x4da   : > { %11622 = vst [vmem:[#allocation253_spill] sm:$0xff] %v9193_v33  ;;  %v3358_v9 = vadd.f32 %v11629_v41, %v11628_v12  ;;  %v3367_v37 = vadd.f32 %v11631_v38, %v11630_v26  ;;  %v3376_v31 = vadd.f32 %v11633_v20, %v11632_v47  ;;  %v3385_v18 = vadd.f32 %v11635_v5, %v11634_v54  ;;  %v11641_v43 = vld [vmem:[#allocation212_spill] sm:$0xff]  ;;  %v11642_v24 = vld [vmem:[#allocation107_spill] sm:$0xff]  ;;  %v11643_v12 = vld [vmem:[#allocation213_spill] sm:$0xff] }
 0x4db   : > { %11623 = vst [vmem:[#allocation254_spill] sm:$0xff] %v9195_v13  ;;  %v3394_v8 = vadd.f32 %v11637_v16, %v11636_v2  ;;  %v3403_v36 = vadd.f32 %v11639_v53, %v11638_v44  ;;  %v3412_v4 = vadd.f32 %v11641_v43, %v11640_v61  ;;  %v3421_v41 = vadd.f32 %v11643_v12, %v11642_v24  ;;  %v11645_v38 = vld [vmem:[#allocation307_spill] sm:$0xff]  ;;  %v11646_v47 = vld [vmem:[#allocation308_spill] sm:$0xff]  ;;  %v11648_v5 = vld [vmem:[#allocation310_spill] sm:$0xff] }
 0x4dc   : > { %11624 = vst [vmem:[#allocation255_spill] sm:$0xff] %v9197_v29  ;;  %v3377_v20 = vadd.f32 %v3376_v31, %v11646_v47  ;;  %v11649_v2 = vld [vmem:[#allocation311_spill] sm:$0xff]  ;;  %v11650_v13 = vld [vmem:[#allocation312_spill] sm:$0xff]  ;;  %v11651_v53 = vld [vmem:[#allocation313_spill] sm:$0xff] }
 0x4dd   : > { %11625 = vst [vmem:[#allocation256_spill] sm:$0xff] %v9199_v60  ;;  %v11647_v60 = vld [vmem:[#allocation309_spill] sm:$0xff]  ;;  %v3395_v29 = vadd.f32 %v3394_v8, %v11648_v5  ;;  %v3404_v16 = vadd.f32 %v3403_v36, %v11649_v2  ;;  %v3413_v44 = vadd.f32 %v3412_v4, %v11650_v13  ;;  %v3422_v33 = vadd.f32 %v3421_v41, %v11651_v53  ;;  %v11652_v61 = vld [vmem:[#allocation423_spill] sm:$0xff]  ;;  %v11653_v22 = vld [vmem:[#allocation424_spill] sm:$0xff] }
 0x4de   : > { %11626 = vst [vmem:[#allocation257_spill] sm:$0xff] %v9201_v32  ;;  %v3368_v32 = vadd.f32 %v3367_v37, %v11645_v38  ;;  %v3386_v54 = vadd.f32 %v3385_v18, %v11647_v60  ;;  %v11654_v12 = vld [vmem:[#allocation425_spill] sm:$0xff]  ;;  %v11656_v38 = vld [vmem:[#allocation427_spill] sm:$0xff]  ;;  %v11657_v47 = vld [vmem:[#allocation428_spill] sm:$0xff]  ;;  %v3310_v2 = vadd.f32 %v3309_v62, %v3308_v1  ;;  %v3319_v13 = vadd.f32 %v3318_v11, %v3317_v10 }
 0x4df   : > { %11627 = vst [vmem:[#allocation367_spill] sm:$0xff] %v9203_v58  ;;  %v11644_v58 = vld [vmem:[#allocation306_spill] sm:$0xff]  ;;  %v3396_v31 = vadd.f32 %v3395_v29, %v11656_v38  ;;  %v3405_v60 = vadd.f32 %v3404_v16, %v11657_v47  ;;  %v11658_v18 = vld [vmem:[#allocation429_spill] sm:$0xff]  ;;  %v3328_v53 = vadd.f32 %v3327_v34, %v3326_v49  ;;  %v3293_v47 = vrot.slane %v3292_v7, 1 }
 0x4e0   : > { %v3359_v26 = vadd.f32 %v3358_v9, %v11644_v58  ;;  %v3369_v24 = vadd.f32 %v3368_v32, %v11653_v22  ;;  %v3378_v58 = vadd.f32 %v3377_v20, %v11654_v12  ;;  %v11655_v9 = vld [vmem:[#allocation426_spill] sm:$0xff]  ;;  %v3414_v8 = vadd.f32 %v3413_v44, %v11658_v18 }
 0x4e1   : > { %v3387_v37 = vadd.f32 %v3386_v54, %v11655_v9  ;;  %v11659_v5 = vld [vmem:[#allocation430_spill] sm:$0xff]  ;;  %v3355_v22 = vadd.f32 %v3354_v45, %v3353_v39  ;;  %v3397_v12 = vrot.slane %v3396_v31, 4  ;;  %v3406_v54 = vrot.slane %v3405_v60, 4 }
 0x4e2   : > { %v3360_v43 = vadd.f32 %v3359_v26, %v11652_v61  ;;  %v3423_v36 = vadd.f32 %v3422_v33, %v11659_v5  ;;  %v3370_v41 = vrot.slane %v3369_v24, 4  ;;  %v3337_v26 = vadd.f32 %v3336_v52, %v3335_v48 }
 0x4e3   : > { %v3346_v61 = vadd.f32 %v3345_v17, %v3344_v27  ;;  %v3379_v32 = vrot.slane %v3378_v58, 4  ;;  %v3388_v20 = vrot.slane %v3387_v37, 4  ;;  %v3415_v38 = vrot.slane %v3414_v8, 4 }
 0x4e4   : > { %v3361_v4 = vrot.slane %v3360_v43, 4  ;;  %v3371_v29 = vadd.f32 %v3370_v41, %v3369_v24  ;;  %v3424_v16 = vrot.slane %v3423_v36, 4  ;;  %v3302_v44 = vrot.slane %v3301_v0, 1 }
 0x4e5   : > { %v3311_v18 = vrot.slane %v3310_v2, 1  ;;  %v3320_v33 = vrot.slane %v3319_v13, 1  ;;  %v3329_v1 = vrot.slane %v3328_v53, 1  ;;  %v3338_v10 = vrot.slane %v3337_v26, 1 }
 0x4e6   : > { %v3362_v9 = vadd.f32 %v3361_v4, %v3360_v43  ;;  %v3347_v62 = vrot.slane %v3346_v61, 1  ;;  %v3356_v11 = vrot.slane %v3355_v22, 1  ;;  %v3380_v49 = vadd.f32 %v3379_v32, %v3378_v58 }
 0x4e7   : > { %v3389_v48 = vadd.f32 %v3388_v20, %v3387_v37  ;;  %v3398_v27 = vadd.f32 %v3397_v12, %v3396_v31  ;;  %v3407_v39 = vadd.f32 %v3406_v54, %v3405_v60  ;;  %v3372_v52 = vrot.slane %v3371_v29, 2  ;;  %v11669_v12 = vld [vmem:[#allocation214_spill] sm:$0xff]  ;;  %v11670_v54 = vld [vmem:[#allocation109_spill] sm:$0xff] }
 0x4e8   : > { %v3363_v34 = vrot.slane %v3362_v9, 2  ;;  %v3416_v17 = vadd.f32 %v3415_v38, %v3414_v8  ;;  %v3425_v45 = vadd.f32 %v3424_v16, %v3423_v36  ;;  %v9237_v43 = vadd.f32 %v3293_v47, %v3292_v7  ;;  %v11673_v16 = vld [vmem:[#allocation216_spill] sm:$0xff]  ;;  %v11674_v47 = vld [vmem:[#allocation111_spill] sm:$0xff] }
 0x4e9   : > { %v9239_v24 = vadd.f32 %v3302_v44, %v3301_v0  ;;  %v9241_v5 = vadd.f32 %v3311_v18, %v3310_v2  ;;  %v9243_v4 = vadd.f32 %v3320_v33, %v3319_v13  ;;  %v9245_v41 = vadd.f32 %v3329_v1, %v3328_v53  ;;  %v11668_v2 = vld [vmem:[#allocation108_spill] sm:$0xff]  ;;  %v11671_v53 = vld [vmem:[#allocation215_spill] sm:$0xff]  ;;  %v11677_v33 = vld [vmem:[#allocation218_spill] sm:$0xff] }
 0x4ea   : > { %11660 = vst [vmem:[#allocation368_spill] sm:$0xff] %v9237_v43  ;;  %v9247_v30 = vadd.f32 %v3338_v10, %v3337_v26  ;;  %v9249_v58 = vadd.f32 %v3347_v62, %v3346_v61  ;;  %v9251_v37 = vadd.f32 %v3356_v11, %v3355_v22  ;;  %v3381_v31 = vrot.slane %v3380_v49, 2  ;;  %v11672_v26 = vld [vmem:[#allocation110_spill] sm:$0xff]  ;;  %v11675_v22 = vld [vmem:[#allocation217_spill] sm:$0xff]  ;;  %v11676_v18 = vld [vmem:[#allocation112_spill] sm:$0xff] }
 0x4eb   : > { %11661 = vst [vmem:[#allocation369_spill] sm:$0xff] %v9239_v24  ;;  %v3390_v60 = vrot.slane %v3389_v48, 2  ;;  %v3399_v8 = vrot.slane %v3398_v27, 2  ;;  %v3408_v36 = vrot.slane %v3407_v39, 2  ;;  %v3364_v7 = vadd.f32 %v3363_v34, %v3362_v9  ;;  %v11678_v10 = vld [vmem:[#allocation113_spill] sm:$0xff]  ;;  %v11679_v9 = vld [vmem:[#allocation219_spill] sm:$0xff] }
 0x4ec   : > { %11662 = vst [vmem:[#allocation370_spill] sm:$0xff] %v9241_v5  ;;  %v3373_v32 = vadd.f32 %v3372_v52, %v3371_v29  ;;  %v3417_v0 = vrot.slane %v3416_v17, 2  ;;  %v3426_v20 = vrot.slane %v3425_v45, 2  ;;  %v3430_v13 = vadd.f32 %v11669_v12, %v11668_v2  ;;  %v11680_v62 = vld [vmem:[#allocation114_spill] sm:$0xff]  ;;  %v11681_v11 = vld [vmem:[#allocation220_spill] sm:$0xff]  ;;  %v11682_v52 = vld [vmem:[#allocation115_spill] sm:$0xff] }
 0x4ed   : > { %11663 = vst [vmem:[#allocation371_spill] sm:$0xff] %v9243_v4  ;;  %v3439_v38 = vadd.f32 %v11671_v53, %v11670_v54  ;;  %v3448_v61 = vadd.f32 %v11673_v16, %v11672_v26  ;;  %v3457_v44 = vadd.f32 %v11675_v22, %v11674_v47  ;;  %v3466_v1 = vadd.f32 %v11677_v33, %v11676_v18  ;;  %v11683_v2 = vld [vmem:[#allocation221_spill] sm:$0xff]  ;;  %v11685_v53 = vld [vmem:[#allocation315_spill] sm:$0xff]  ;;  %v11686_v26 = vld [vmem:[#allocation316_spill] sm:$0xff] }
 0x4ee   : > { %11664 = vst [vmem:[#allocation372_spill] sm:$0xff] %v9245_v41  ;;  %v3475_v29 = vadd.f32 %v11679_v9, %v11678_v10  ;;  %v3484_v34 = vadd.f32 %v11681_v11, %v11680_v62  ;;  %v3493_v12 = vadd.f32 %v11683_v2, %v11682_v52  ;;  %v11688_v22 = vld [vmem:[#allocation318_spill] sm:$0xff]  ;;  %v11689_v18 = vld [vmem:[#allocation319_spill] sm:$0xff]  ;;  %v11690_v4 = vld [vmem:[#allocation320_spill] sm:$0xff] }
 0x4ef   : > { %11665 = vst [vmem:[#allocation373_spill] sm:$0xff] %v9247_v30  ;;  %v3449_v16 = vadd.f32 %v3448_v61, %v11686_v26  ;;  %v11687_v30 = vld [vmem:[#allocation317_spill] sm:$0xff]  ;;  %v3467_v41 = vadd.f32 %v3466_v1, %v11688_v22  ;;  %v11692_v62 = vld [vmem:[#allocation431_spill] sm:$0xff]  ;;  %v11693_v24 = vld [vmem:[#allocation432_spill] sm:$0xff] }
 0x4f0   : > { %11666 = vst [vmem:[#allocation374_spill] sm:$0xff] %v9249_v58  ;;  %v3440_v58 = vadd.f32 %v3439_v38, %v11685_v53  ;;  %v3458_v47 = vadd.f32 %v3457_v44, %v11687_v30  ;;  %v3476_v33 = vadd.f32 %v3475_v29, %v11689_v18  ;;  %v3485_v10 = vadd.f32 %v3484_v34, %v11690_v4  ;;  %v11691_v9 = vld [vmem:[#allocation321_spill] sm:$0xff]  ;;  %v11696_v53 = vld [vmem:[#allocation435_spill] sm:$0xff]  ;;  %v11697_v26 = vld [vmem:[#allocation436_spill] sm:$0xff] }
 0x4f1   : > { %11667 = vst [vmem:[#allocation52_spill] sm:$0xff] %v9251_v37  ;;  %v11684_v37 = vld [vmem:[#allocation314_spill] sm:$0xff]  ;;  %v3494_v5 = vadd.f32 %v3493_v12, %v11691_v9  ;;  %v11694_v2 = vld [vmem:[#allocation433_spill] sm:$0xff]  ;;  %v3468_v61 = vadd.f32 %v3467_v41, %v11696_v53  ;;  %v3382_v18 = vadd.f32 %v3381_v31, %v3380_v49  ;;  %v3391_v4 = vadd.f32 %v3390_v60, %v3389_v48 }
 0x4f2   : > { %v3431_v54 = vadd.f32 %v3430_v13, %v11684_v37  ;;  %v3441_v52 = vadd.f32 %v3440_v58, %v11693_v24  ;;  %v3450_v37 = vadd.f32 %v3449_v16, %v11694_v2  ;;  %v11695_v13 = vld [vmem:[#allocation434_spill] sm:$0xff]  ;;  %v3477_v30 = vadd.f32 %v3476_v33, %v11697_v26  ;;  %v11698_v44 = vld [vmem:[#allocation437_spill] sm:$0xff] }
 0x4f3   : > { %v3459_v38 = vadd.f32 %v3458_v47, %v11695_v13  ;;  %v3486_v1 = vadd.f32 %v3485_v10, %v11698_v44  ;;  %v11699_v22 = vld [vmem:[#allocation438_spill] sm:$0xff]  ;;  %v3400_v9 = vadd.f32 %v3399_v8, %v3398_v27  ;;  %v3427_v24 = vadd.f32 %v3426_v20, %v3425_v45 }
 0x4f4   : > { %v3432_v11 = vadd.f32 %v3431_v54, %v11692_v62  ;;  %v3495_v29 = vadd.f32 %v3494_v5, %v11699_v22  ;;  %v3442_v12 = vrot.slane %v3441_v52, 4  ;;  %v3409_v54 = vadd.f32 %v3408_v36, %v3407_v39 }
 0x4f5   : > { %v3418_v62 = vadd.f32 %v3417_v0, %v3416_v17  ;;  %v3451_v58 = vrot.slane %v3450_v37, 4  ;;  %v3460_v16 = vrot.slane %v3459_v38, 4  ;;  %v3469_v2 = vrot.slane %v3468_v61, 4 }
 0x4f6   : > { %v3433_v34 = vrot.slane %v3432_v11, 4  ;;  %v3478_v47 = vrot.slane %v3477_v30, 4  ;;  %v3443_v41 = vadd.f32 %v3442_v12, %v3441_v52  ;;  %v3487_v53 = vrot.slane %v3486_v1, 4 }
 0x4f7   : > { %v3496_v33 = vrot.slane %v3495_v29, 4  ;;  %v3365_v26 = vrot.slane %v3364_v7, 1  ;;  %v3374_v10 = vrot.slane %v3373_v32, 1  ;;  %v3383_v44 = vrot.slane %v3382_v18, 1 }
 0x4f8   : > { %v3434_v13 = vadd.f32 %v3433_v34, %v3432_v11  ;;  %v3392_v5 = vrot.slane %v3391_v4, 1  ;;  %v3401_v49 = vrot.slane %v3400_v9, 1  ;;  %v3410_v48 = vrot.slane %v3409_v54, 1 }
 0x4f9   : > { %v3419_v31 = vrot.slane %v3418_v62, 1  ;;  %v3428_v60 = vrot.slane %v3427_v24, 1  ;;  %v3452_v27 = vadd.f32 %v3451_v58, %v3450_v37  ;;  %v3461_v39 = vadd.f32 %v3460_v16, %v3459_v38 }
 0x4fa   : > { %v3470_v17 = vadd.f32 %v3469_v2, %v3468_v61  ;;  %v3479_v45 = vadd.f32 %v3478_v47, %v3477_v30  ;;  %v3435_v8 = vrot.slane %v3434_v13, 2  ;;  %v3444_v36 = vrot.slane %v3443_v41, 2  ;;  %v11708_v2 = vld [vmem:[#allocation222_spill] sm:$0xff]  ;;  %v11709_v47 = vld [vmem:[#allocation117_spill] sm:$0xff] }
 0x4fb   : > { %v3488_v0 = vadd.f32 %v3487_v53, %v3486_v1  ;;  %v3497_v20 = vadd.f32 %v3496_v33, %v3495_v29  ;;  %v9285_v11 = vadd.f32 %v3365_v26, %v3364_v7  ;;  %v9287_v52 = vadd.f32 %v3374_v10, %v3373_v32  ;;  %v11712_v33 = vld [vmem:[#allocation224_spill] sm:$0xff]  ;;  %v11713_v26 = vld [vmem:[#allocation119_spill] sm:$0xff] }
 0x4fc   : > { %v9289_v22 = vadd.f32 %v3383_v44, %v3382_v18  ;;  %v9291_v34 = vadd.f32 %v3392_v5, %v3391_v4  ;;  %v9293_v12 = vadd.f32 %v3401_v49, %v3400_v9  ;;  %v9295_v43 = vadd.f32 %v3410_v48, %v3409_v54  ;;  %v11707_v18 = vld [vmem:[#allocation116_spill] sm:$0xff]  ;;  %v11710_v9 = vld [vmem:[#allocation223_spill] sm:$0xff]  ;;  %v11711_v54 = vld [vmem:[#allocation118_spill] sm:$0xff] }
 0x4fd   : > { %11700 = vst [vmem:[#allocation158_spill] sm:$0xff] %v9287_v52  ;;  %v9297_v37 = vadd.f32 %v3419_v31, %v3418_v62  ;;  %v9299_v38 = vadd.f32 %v3428_v60, %v3427_v24  ;;  %v3453_v61 = vrot.slane %v3452_v27, 2  ;;  %v3462_v30 = vrot.slane %v3461_v39, 2  ;;  %v11714_v24 = vld [vmem:[#allocation225_spill] sm:$0xff]  ;;  %v11715_v44 = vld [vmem:[#allocation120_spill] sm:$0xff]  ;;  %v11716_v5 = vld [vmem:[#allocation11_spill] sm:$0xff] }
 0x4fe   : > { %11701 = vst [vmem:[#allocation53_spill] sm:$0xff] %v9289_v22  ;;  %v3471_v1 = vrot.slane %v3470_v17, 2  ;;  %v3480_v29 = vrot.slane %v3479_v45, 2  ;;  %v3436_v7 = vadd.f32 %v3435_v8, %v3434_v13  ;;  %v3445_v58 = vadd.f32 %v3444_v36, %v3443_v41  ;;  %v11717_v48 = vld [vmem:[#allocation121_spill] sm:$0xff]  ;;  %v11718_v13 = vld [vmem:[#allocation12_spill] sm:$0xff]  ;;  %v11719_v31 = vld [vmem:[#allocation122_spill] sm:$0xff] }
 0x4ff   : > { %11702 = vst [vmem:[#allocation159_spill] sm:$0xff] %v9291_v34  ;;  %v3489_v32 = vrot.slane %v3488_v0, 2  ;;  %v3498_v16 = vrot.slane %v3497_v20, 2  ;;  %v3502_v4 = vadd.f32 %v11708_v2, %v11707_v18  ;;  %v3511_v53 = vadd.f32 %v11710_v9, %v11709_v47  ;;  %v11720_v60 = vld [vmem:[#allocation13_spill] sm:$0xff]  ;;  %v11721_v36 = vld [vmem:[#allocation123_spill] sm:$0xff]  ;;  %v11722_v18 = vld [vmem:[#allocation14_spill] sm:$0xff] }
 0x500   : > { %11703 = vst [vmem:[#allocation54_spill] sm:$0xff] %v9293_v12  ;;  %v3520_v62 = vadd.f32 %v11712_v33, %v11711_v54  ;;  %v3529_v10 = vadd.f32 %v11714_v24, %v11713_v26  ;;  %v3538_v49 = vadd.f32 %v11716_v5, %v11715_v44  ;;  %v3547_v41 = vadd.f32 %v11718_v13, %v11717_v48  ;;  %v11724_v9 = vld [vmem:[#allocation323_spill] sm:$0xff]  ;;  %v11725_v54 = vld [vmem:[#allocation324_spill] sm:$0xff]  ;;  %v11727_v24 = vld [vmem:[#allocation326_spill] sm:$0xff] }
 0x501   : > { %11704 = vst [vmem:[#allocation160_spill] sm:$0xff] %v9295_v43  ;;  %v3556_v8 = vadd.f32 %v11720_v60, %v11719_v31  ;;  %v3565_v2 = vadd.f32 %v11722_v18, %v11721_v36  ;;  %v11726_v43 = vld [vmem:[#allocation325_spill] sm:$0xff]  ;;  %v11728_v44 = vld [vmem:[#allocation327_spill] sm:$0xff]  ;;  %v11729_v34 = vld [vmem:[#allocation328_spill] sm:$0xff] }
 0x502   : > { %11705 = vst [vmem:[#allocation55_spill] sm:$0xff] %v9297_v37  ;;  %v3512_v37 = vadd.f32 %v3511_v53, %v11724_v9  ;;  %v3521_v33 = vadd.f32 %v3520_v62, %v11725_v54  ;;  %v3530_v26 = vadd.f32 %v3529_v10, %v11726_v43  ;;  %v3539_v12 = vadd.f32 %v3538_v49, %v11727_v24  ;;  %v11730_v13 = vld [vmem:[#allocation329_spill] sm:$0xff]  ;;  %v11731_v31 = vld [vmem:[#allocation439_spill] sm:$0xff]  ;;  %v11732_v52 = vld [vmem:[#allocation440_spill] sm:$0xff] }
 0x503   : > { %11706 = vst [vmem:[#allocation161_spill] sm:$0xff] %v9299_v38  ;;  %v11723_v38 = vld [vmem:[#allocation322_spill] sm:$0xff]  ;;  %v3548_v5 = vadd.f32 %v3547_v41, %v11728_v44  ;;  %v3557_v48 = vadd.f32 %v3556_v8, %v11729_v34  ;;  %v3566_v22 = vadd.f32 %v3565_v2, %v11730_v13  ;;  %v11733_v18 = vld [vmem:[#allocation441_spill] sm:$0xff]  ;;  %v11735_v9 = vld [vmem:[#allocation443_spill] sm:$0xff]  ;;  %v3454_v41 = vadd.f32 %v3453_v61, %v3452_v27 }
 0x504   : > { %v3503_v47 = vadd.f32 %v3502_v4, %v11723_v38  ;;  %v3513_v36 = vadd.f32 %v3512_v37, %v11732_v52  ;;  %v3522_v38 = vadd.f32 %v3521_v33, %v11733_v18  ;;  %v11734_v4 = vld [vmem:[#allocation442_spill] sm:$0xff]  ;;  %v3540_v62 = vadd.f32 %v3539_v12, %v8631_v40 }
 0x505   : > { %v3531_v53 = vadd.f32 %v3530_v26, %v11734_v4  ;;  %v3549_v43 = vadd.f32 %v3548_v5, %v11735_v9  ;;  %v3558_v10 = vadd.f32 %v3557_v48, %v8639_v63  ;;  %v3567_v49 = vadd.f32 %v3566_v22, %v8643_v51 }
 0x506   : > { %v3504_v60 = vadd.f32 %v3503_v47, %v11731_v31  ;;  %v3463_v34 = vadd.f32 %v3462_v30, %v3461_v39  ;;  %v3514_v2 = vrot.slane %v3513_v36, 4  ;;  %v3472_v54 = vadd.f32 %v3471_v1, %v3470_v17 }
 0x507   : > { %v3481_v47 = vadd.f32 %v3480_v29, %v3479_v45  ;;  %v3490_v24 = vadd.f32 %v3489_v32, %v3488_v0  ;;  %v3499_v52 = vadd.f32 %v3498_v16, %v3497_v20  ;;  %v3523_v37 = vrot.slane %v3522_v38, 4 }
 0x508   : > { %v3505_v8 = vrot.slane %v3504_v60, 4  ;;  %v3532_v33 = vrot.slane %v3531_v53, 4  ;;  %v3541_v44 = vrot.slane %v3540_v62, 4  ;;  %v3550_v26 = vrot.slane %v3549_v43, 4 }
 0x509   : > { %v3515_v40 = vadd.f32 %v3514_v2, %v3513_v36  ;;  %v3559_v12 = vrot.slane %v3558_v10, 4  ;;  %v3568_v5 = vrot.slane %v3567_v49, 4  ;;  %v3437_v31 = vrot.slane %v3436_v7, 1 }
 0x50a   : > { %v3506_v13 = vadd.f32 %v3505_v8, %v3504_v60  ;;  %v3446_v63 = vrot.slane %v3445_v58, 1  ;;  %v3455_v48 = vrot.slane %v3454_v41, 1  ;;  %v3464_v51 = vrot.slane %v3463_v34, 1 }
 0x50b   : > { %v3473_v27 = vrot.slane %v3472_v54, 1  ;;  %v3482_v39 = vrot.slane %v3481_v47, 1  ;;  %v3491_v22 = vrot.slane %v3490_v24, 1  ;;  %v3500_v61 = vrot.slane %v3499_v52, 1 }
 0x50c   : > { %v3524_v17 = vadd.f32 %v3523_v37, %v3522_v38  ;;  %v3533_v45 = vadd.f32 %v3532_v33, %v3531_v53  ;;  %v3542_v0 = vadd.f32 %v3541_v44, %v3540_v62  ;;  %v3551_v20 = vadd.f32 %v3550_v26, %v3549_v43  ;;  %v11741_v37 = vld [vmem:[#allocation15_spill] sm:$0xff]  ;;  %v11742_v33 = vld [vmem:[#allocation125_spill] sm:$0xff] }
 0x50d   : > { %v3507_v30 = vrot.slane %v3506_v13, 2  ;;  %v3516_v1 = vrot.slane %v3515_v40, 2  ;;  %v3560_v29 = vadd.f32 %v3559_v12, %v3558_v10  ;;  %v3569_v32 = vadd.f32 %v3568_v5, %v3567_v49  ;;  %v11745_v26 = vld [vmem:[#allocation19_spill] sm:$0xff] }
 0x50e   : > { %v9333_v16 = vadd.f32 %v3437_v31, %v3436_v7  ;;  %v9335_v60 = vadd.f32 %v3446_v63, %v3445_v58  ;;  %v9337_v36 = vadd.f32 %v3455_v48, %v3454_v41  ;;  %v9339_v18 = vadd.f32 %v3464_v51, %v3463_v34  ;;  %v11740_v41 = vld [vmem:[#allocation124_spill] sm:$0xff]  ;;  %v11746_v12 = vld [vmem:[#allocation127_spill] sm:$0xff]  ;;  %v11750_v51 = vld [vmem:[#allocation129_spill] sm:$0xff] }
 0x50f   : > { %v9341_v4 = vadd.f32 %v3473_v27, %v3472_v54  ;;  %v9343_v9 = vadd.f32 %v3482_v39, %v3481_v47  ;;  %v9345_v38 = vadd.f32 %v3491_v22, %v3490_v24  ;;  %v9347_v53 = vadd.f32 %v3500_v61, %v3499_v52  ;;  %v11743_v54 = vld [vmem:[#allocation17_spill] sm:$0xff]  ;;  %v11744_v47 = vld [vmem:[#allocation126_spill] sm:$0xff]  ;;  %v11748_v31 = vld [vmem:[#allocation128_spill] sm:$0xff] }
 0x510   : > { %v3525_v62 = vrot.slane %v3524_v17, 2  ;;  %v3534_v43 = vrot.slane %v3533_v45, 2  ;;  %v3543_v10 = vrot.slane %v3542_v0, 2  ;;  %v3552_v49 = vrot.slane %v3551_v20, 2  ;;  %v11747_v52 = vld [vmem:[#allocation21_spill] sm:$0xff]  ;;  %v11749_v63 = vld [vmem:[#allocation23_spill] sm:$0xff] }
 0x511   : > { %11736 = vst [vmem:[#allocation56_spill] sm:$0xff] %v9341_v4  ;;  %v3508_v7 = vadd.f32 %v3507_v30, %v3506_v13  ;;  %v3517_v8 = vadd.f32 %v3516_v1, %v3515_v40  ;;  %v3561_v58 = vrot.slane %v3560_v29, 2  ;;  %v3570_v2 = vrot.slane %v3569_v32, 2  ;;  %v11751_v13 = vld [vmem:[#allocation25_spill] sm:$0xff]  ;;  %v11752_v27 = vld [vmem:[#allocation130_spill] sm:$0xff]  ;;  %v11753_v39 = vld [vmem:[#allocation27_spill] sm:$0xff] }
 0x512   : > { %11737 = vst [vmem:[#allocation162_spill] sm:$0xff] %v9343_v9  ;;  %v3574_v34 = vadd.f32 %v11741_v37, %v11740_v41  ;;  %v3583_v44 = vadd.f32 %v11743_v54, %v11742_v33  ;;  %v3592_v24 = vadd.f32 %v11745_v26, %v11744_v47  ;;  %v3601_v5 = vadd.f32 %v11747_v52, %v11746_v12  ;;  %v11754_v61 = vld [vmem:[#allocation131_spill] sm:$0xff]  ;;  %v11755_v30 = vld [vmem:[#allocation28_spill] sm:$0xff]  ;;  %v11756_v41 = vld [vmem:[#allocation330_spill] sm:$0xff] }
 0x513   : > { %11738 = vst [vmem:[#allocation57_spill] sm:$0xff] %v9345_v38  ;;  %v3610_v48 = vadd.f32 %v11749_v63, %v11748_v31  ;;  %v3619_v40 = vadd.f32 %v11751_v13, %v11750_v51  ;;  %v3628_v22 = vadd.f32 %v11753_v39, %v11752_v27  ;;  %v3637_v1 = vadd.f32 %v11755_v30, %v11754_v61  ;;  %v11757_v33 = vld [vmem:[#allocation331_spill] sm:$0xff]  ;;  %v11758_v47 = vld [vmem:[#allocation332_spill] sm:$0xff]  ;;  %v11760_v52 = vld [vmem:[#allocation334_spill] sm:$0xff] }
 0x514   : > { %11739 = vst [vmem:[#allocation163_spill] sm:$0xff] %v9347_v53  ;;  %v3575_v37 = vadd.f32 %v3574_v34, %v11756_v41  ;;  %v3584_v54 = vadd.f32 %v3583_v44, %v11757_v33  ;;  %v3593_v26 = vadd.f32 %v3592_v24, %v11758_v47  ;;  %v11759_v53 = vld [vmem:[#allocation333_spill] sm:$0xff]  ;;  %v11761_v31 = vld [vmem:[#allocation335_spill] sm:$0xff]  ;;  %v11762_v9 = vld [vmem:[#allocation336_spill] sm:$0xff]  ;;  %v3553_v41 = vadd.f32 %v3552_v49, %v3551_v20 }
 0x515   : > { %v3602_v12 = vadd.f32 %v3601_v5, %v11759_v53  ;;  %v3611_v38 = vadd.f32 %v3610_v48, %v11760_v52  ;;  %v3620_v63 = vadd.f32 %v3619_v40, %v11761_v31  ;;  %v3629_v51 = vadd.f32 %v3628_v22, %v11762_v9  ;;  %v11763_v13 = vld [vmem:[#allocation337_spill] sm:$0xff]  ;;  %v11764_v27 = vld [vmem:[#allocation444_spill] sm:$0xff] }
 0x516   : > { %v3638_v4 = vadd.f32 %v3637_v1, %v11763_v13  ;;  %v3576_v39 = vadd.f32 %v3575_v37, %v11764_v27  ;;  %v3585_v61 = vadd.f32 %v3584_v54, %v8651_v59  ;;  %v3594_v34 = vadd.f32 %v3593_v26, %v8687_v55 }
 0x517   : > { %v3603_v44 = vadd.f32 %v3602_v12, %v8691_v23  ;;  %v3612_v24 = vadd.f32 %v3611_v38, %v8695_v19  ;;  %v3621_v53 = vadd.f32 %v3620_v63, %v8699_v6  ;;  %v3630_v5 = vadd.f32 %v3629_v51, %v8703_v21 }
 0x518   : > { %v3639_v48 = vadd.f32 %v3638_v4, %v8707_v14  ;;  %v3526_v40 = vadd.f32 %v3525_v62, %v3524_v17  ;;  %v3535_v9 = vadd.f32 %v3534_v43, %v3533_v45  ;;  %v3577_v22 = vrot.slane %v3576_v39, 4 }
 0x519   : > { %v3586_v30 = vrot.slane %v3585_v61, 4  ;;  %v3544_v1 = vadd.f32 %v3543_v10, %v3542_v0  ;;  %v3562_v37 = vadd.f32 %v3561_v58, %v3560_v29  ;;  %v3571_v59 = vadd.f32 %v3570_v2, %v3569_v32 }
 0x51a   : > { %v3595_v33 = vrot.slane %v3594_v34, 4  ;;  %v3604_v55 = vrot.slane %v3603_v44, 4  ;;  %v3613_v54 = vrot.slane %v3612_v24, 4  ;;  %v3622_v23 = vrot.slane %v3621_v53, 4 }
 0x51b   : > { %v3578_v47 = vadd.f32 %v3577_v22, %v3576_v39  ;;  %v3587_v19 = vadd.f32 %v3586_v30, %v3585_v61  ;;  %v3631_v38 = vrot.slane %v3630_v5, 4  ;;  %v3640_v6 = vrot.slane %v3639_v48, 4  ;;  %v11768_v22 = vld [vmem:[#allocation18_spill] sm:$0xff]  ;;  %v11769_v30 = vld [vmem:[#allocation227_spill] sm:$0xff] }
 0x51c   : > { %v3509_v26 = vrot.slane %v3508_v7, 1  ;;  %v3518_v21 = vrot.slane %v3517_v8, 1  ;;  %v3527_v12 = vrot.slane %v3526_v40, 1  ;;  %v3536_v14 = vrot.slane %v3535_v9, 1 }
 0x51d   : > { %v3545_v17 = vrot.slane %v3544_v1, 1  ;;  %v3554_v45 = vrot.slane %v3553_v41, 1  ;;  %v3563_v4 = vrot.slane %v3562_v37, 1  ;;  %v3572_v62 = vrot.slane %v3571_v59, 1 }
 0x51e   : > { %v3596_v0 = vadd.f32 %v3595_v33, %v3594_v34  ;;  %v3605_v20 = vadd.f32 %v3604_v55, %v3603_v44  ;;  %v3614_v29 = vadd.f32 %v3613_v54, %v3612_v24  ;;  %v3623_v32 = vadd.f32 %v3622_v23, %v3621_v53  ;;  %v11771_v33 = vld [vmem:[#allocation228_spill] sm:$0xff]  ;;  %v11772_v55 = vld [vmem:[#allocation22_spill] sm:$0xff] }
 0x51f   : > { %v3579_v43 = vrot.slane %v3578_v47, 2  ;;  %v3588_v10 = vrot.slane %v3587_v19, 2  ;;  %v3632_v49 = vadd.f32 %v3631_v38, %v3630_v5  ;;  %v3641_v58 = vadd.f32 %v3640_v6, %v3639_v48  ;;  %v11766_v48 = vld [vmem:[#allocation16_spill] sm:$0xff]  ;;  %v11775_v38 = vld [vmem:[#allocation230_spill] sm:$0xff] }
 0x520   : > { %v9381_v2 = vadd.f32 %v3509_v26, %v3508_v7  ;;  %v9383_v52 = vadd.f32 %v3518_v21, %v3517_v8  ;;  %v9385_v31 = vadd.f32 %v3527_v12, %v3526_v40  ;;  %v9387_v63 = vadd.f32 %v3536_v14, %v3535_v9  ;;  %v11767_v40 = vld [vmem:[#allocation226_spill] sm:$0xff]  ;;  %v11774_v23 = vld [vmem:[#allocation24_spill] sm:$0xff] }
 0x521   : > { %v9389_v51 = vadd.f32 %v3545_v17, %v3544_v1  ;;  %v9391_v13 = vadd.f32 %v3554_v45, %v3553_v41  ;;  %v9393_v27 = vadd.f32 %v3563_v4, %v3562_v37  ;;  %v9395_v39 = vadd.f32 %v3572_v62, %v3571_v59  ;;  %v11770_v41 = vld [vmem:[#allocation20_spill] sm:$0xff]  ;;  %v11773_v59 = vld [vmem:[#allocation229_spill] sm:$0xff]  ;;  %v11776_v26 = vld [vmem:[#allocation26_spill] sm:$0xff] }
 0x522   : > { %v3597_v61 = vrot.slane %v3596_v0, 2  ;;  %v3606_v34 = vrot.slane %v3605_v20, 2  ;;  %v3615_v44 = vrot.slane %v3614_v29, 2  ;;  %v3624_v24 = vrot.slane %v3623_v32, 2  ;;  %v11778_v21 = vld [vmem:[#allocation132_spill] sm:$0xff]  ;;  %v11780_v17 = vld [vmem:[#allocation133_spill] sm:$0xff] }
 0x523   : > { %11765 = vst [vmem:[#allocation58_spill] sm:$0xff] %v9395_v39  ;;  %v3580_v7 = vadd.f32 %v3579_v43, %v3578_v47  ;;  %v3589_v53 = vadd.f32 %v3588_v10, %v3587_v19  ;;  %v3633_v8 = vrot.slane %v3632_v49, 2  ;;  %v3642_v5 = vrot.slane %v3641_v58, 2  ;;  %v11777_v47 = vld [vmem:[#allocation231_spill] sm:$0xff]  ;;  %v11779_v12 = vld [vmem:[#allocation232_spill] sm:$0xff]  ;;  %v11781_v45 = vld [vmem:[#allocation233_spill] sm:$0xff] }
 0x524   : > { %v3646_v9 = vadd.f32 %v11767_v40, %v11766_v48  ;;  %v3655_v1 = vadd.f32 %v11769_v30, %v11768_v22  ;;  %v3664_v37 = vadd.f32 %v11771_v33, %v11770_v41  ;;  %v3673_v54 = vadd.f32 %v11773_v59, %v11772_v55  ;;  %v11782_v62 = vld [vmem:[#allocation338_spill] sm:$0xff]  ;;  %v11783_v10 = vld [vmem:[#allocation339_spill] sm:$0xff]  ;;  %v11784_v40 = vld [vmem:[#allocation340_spill] sm:$0xff] }
 0x525   : > { %v3682_v6 = vadd.f32 %v11775_v38, %v11774_v23  ;;  %v3691_v19 = vadd.f32 %v11777_v47, %v11776_v26  ;;  %v3700_v14 = vadd.f32 %v11779_v12, %v11778_v21  ;;  %v3709_v4 = vadd.f32 %v11781_v45, %v11780_v17  ;;  %v11785_v30 = vld [vmem:[#allocation341_spill] sm:$0xff]  ;;  %v11786_v33 = vld [vmem:[#allocation342_spill] sm:$0xff]  ;;  %v11787_v59 = vld [vmem:[#allocation343_spill] sm:$0xff] }
 0x526   : > { %v3647_v43 = vadd.f32 %v3646_v9, %v11782_v62  ;;  %v3656_v48 = vadd.f32 %v3655_v1, %v11783_v10  ;;  %v3665_v22 = vadd.f32 %v3664_v37, %v11784_v40  ;;  %v3674_v41 = vadd.f32 %v3673_v54, %v11785_v30  ;;  %v11788_v38 = vld [vmem:[#allocation344_spill] sm:$0xff]  ;;  %v11789_v47 = vld [vmem:[#allocation345_spill] sm:$0xff] }
 0x527   : > { %v3683_v55 = vadd.f32 %v3682_v6, %v11786_v33  ;;  %v3692_v23 = vadd.f32 %v3691_v19, %v11787_v59  ;;  %v3701_v26 = vadd.f32 %v3700_v14, %v11788_v38  ;;  %v3710_v39 = vadd.f32 %v3709_v4, %v11789_v47  ;;  %v11790_v17 = vld [vmem:[#allocation445_spill] sm:$0xff] }
 0x528   : > { %v3648_v21 = vadd.f32 %v3647_v43, %v8711_v28  ;;  %v3657_v12 = vadd.f32 %v3656_v48, %v8715_v46  ;;  %v3666_v9 = vadd.f32 %v3665_v22, %v8719_v3  ;;  %v3675_v1 = vadd.f32 %v3674_v41, %v8723_v42 }
 0x529   : > { %v3684_v37 = vadd.f32 %v3683_v55, %v8727_v35  ;;  %v3693_v54 = vadd.f32 %v3692_v23, %v8731_v25  ;;  %v3702_v6 = vadd.f32 %v3701_v26, %v11790_v17  ;;  %v3711_v19 = vadd.f32 %v3710_v39, %v8739_v15 }
 0x52a   : > { %v3598_v45 = vadd.f32 %v3597_v61, %v3596_v0  ;;  %v3607_v14 = vadd.f32 %v3606_v34, %v3605_v20  ;;  %v3649_v62 = vrot.slane %v3648_v21, 4  ;;  %v3658_v4 = vrot.slane %v3657_v12, 4 }
 0x52b   : > { %v3616_v10 = vadd.f32 %v3615_v44, %v3614_v29  ;;  %v3625_v28 = vadd.f32 %v3624_v24, %v3623_v32  ;;  %v3634_v43 = vadd.f32 %v3633_v8, %v3632_v49  ;;  %v3643_v46 = vadd.f32 %v3642_v5, %v3641_v58 }
 0x52c   : > { %v3667_v48 = vrot.slane %v3666_v9, 4  ;;  %v3676_v3 = vrot.slane %v3675_v1, 4  ;;  %v3685_v40 = vrot.slane %v3684_v37, 4  ;;  %v3694_v42 = vrot.slane %v3693_v54, 4 }
 0x52d   : > { %v3650_v22 = vadd.f32 %v3649_v62, %v3648_v21  ;;  %v3659_v35 = vadd.f32 %v3658_v4, %v3657_v12  ;;  %v3703_v30 = vrot.slane %v3702_v6, 4  ;;  %v3712_v25 = vrot.slane %v3711_v19, 4  ;;  %v11800_v62 = vld [vmem:[#allocation135_spill] sm:$0xff] }
 0x52e   : > { %v3581_v41 = vrot.slane %v3580_v7, 1  ;;  %v3590_v33 = vrot.slane %v3589_v53, 1  ;;  %v3599_v55 = vrot.slane %v3598_v45, 1  ;;  %v3608_v15 = vrot.slane %v3607_v14, 1  ;;  %v11801_v4 = vld [vmem:[#allocation235_spill] sm:$0xff] }
 0x52f   : > { %v3617_v0 = vrot.slane %v3616_v10, 1  ;;  %v3626_v20 = vrot.slane %v3625_v28, 1  ;;  %v3635_v39 = vrot.slane %v3634_v43, 1  ;;  %v3644_v61 = vrot.slane %v3643_v46, 1 }
 0x530   : > { %v9429_v29 = vadd.f32 %v3667_v48, %v3666_v9  ;;  %v9431_v32 = vadd.f32 %v3676_v3, %v3675_v1  ;;  %v9433_v49 = vadd.f32 %v3685_v40, %v3684_v37  ;;  %v9435_v58 = vadd.f32 %v3694_v42, %v3693_v54  ;;  %v11804_v48 = vld [vmem:[#allocation137_spill] sm:$0xff]  ;;  %v11806_v42 = vld [vmem:[#allocation138_spill] sm:$0xff] }
 0x531   : > { %v3651_v34 = vrot.slane %v3650_v22, 2  ;;  %v3660_v44 = vrot.slane %v3659_v35, 2  ;;  %v9437_v24 = vadd.f32 %v3703_v30, %v3702_v6  ;;  %v9439_v8 = vadd.f32 %v3712_v25, %v3711_v19  ;;  %v11798_v19 = vld [vmem:[#allocation134_spill] sm:$0xff]  ;;  %v11805_v3 = vld [vmem:[#allocation237_spill] sm:$0xff]  ;;  %v11808_v30 = vld [vmem:[#allocation139_spill] sm:$0xff] }
 0x532   : > { %v9441_v5 = vadd.f32 %v3581_v41, %v3580_v7  ;;  %v9443_v59 = vadd.f32 %v3590_v33, %v3589_v53  ;;  %v9445_v23 = vadd.f32 %v3599_v55, %v3598_v45  ;;  %v9447_v38 = vadd.f32 %v3608_v15, %v3607_v14  ;;  %v11799_v45 = vld [vmem:[#allocation234_spill] sm:$0xff]  ;;  %v11809_v25 = vld [vmem:[#allocation239_spill] sm:$0xff]  ;;  %v11810_v33 = vld [vmem:[#allocation140_spill] sm:$0xff] }
 0x533   : > { %v9449_v26 = vadd.f32 %v3617_v0, %v3616_v10  ;;  %v9451_v47 = vadd.f32 %v3626_v20, %v3625_v28  ;;  %v9453_v21 = vadd.f32 %v3635_v39, %v3634_v43  ;;  %v9455_v12 = vadd.f32 %v3644_v61, %v3643_v46  ;;  %v11802_v28 = vld [vmem:[#allocation136_spill] sm:$0xff]  ;;  %v11812_v0 = vld [vmem:[#allocation141_spill] sm:$0xff]  ;;  %v11814_v61 = vld [vmem:[#allocation346_spill] sm:$0xff] }
 0x534   : > { %11791 = vst [vmem:[#allocation164_spill] sm:$0xff] %v9443_v59  ;;  %v3669_v9 = vrot.slane %v9429_v29, 2  ;;  %v3678_v1 = vrot.slane %v9431_v32, 2  ;;  %v3687_v7 = vrot.slane %v9433_v49, 2  ;;  %v3696_v53 = vrot.slane %v9435_v58, 2  ;;  %v11803_v43 = vld [vmem:[#allocation236_spill] sm:$0xff] }
 0x535   : > { %11792 = vst [vmem:[#allocation59_spill] sm:$0xff] %v9445_v23  ;;  %v9461_v37 = vadd.f32 %v3651_v34, %v3650_v22  ;;  %v9463_v54 = vadd.f32 %v3660_v44, %v3659_v35  ;;  %v3705_v17 = vrot.slane %v9437_v24, 2  ;;  %v3714_v6 = vrot.slane %v9439_v8, 2  ;;  %v11807_v22 = vld [vmem:[#allocation238_spill] sm:$0xff]  ;;  %v11811_v55 = vld [vmem:[#allocation240_spill] sm:$0xff]  ;;  %v11813_v20 = vld [vmem:[#allocation241_spill] sm:$0xff] }
 0x536   : > { %11793 = vst [vmem:[#allocation165_spill] sm:$0xff] %v9447_v38  ;;  %v3718_v14 = vadd.f32 %v11799_v45, %v11798_v19  ;;  %v3727_v10 = vadd.f32 %v11801_v4, %v11800_v62  ;;  %v3736_v46 = vadd.f32 %v11803_v43, %v11802_v28  ;;  %v3745_v40 = vadd.f32 %v11805_v3, %v11804_v48  ;;  %v11815_v44 = vld [vmem:[#allocation347_spill] sm:$0xff]  ;;  %v11816_v45 = vld [vmem:[#allocation348_spill] sm:$0xff]  ;;  %v11817_v4 = vld [vmem:[#allocation349_spill] sm:$0xff] }
 0x537   : > { %11794 = vst [vmem:[#allocation258_spill] sm:$0xff] %v9449_v26  ;;  %v3754_v35 = vadd.f32 %v11807_v22, %v11806_v42  ;;  %v3763_v41 = vadd.f32 %v11809_v25, %v11808_v30  ;;  %v3772_v15 = vadd.f32 %v11811_v55, %v11810_v33  ;;  %v3781_v39 = vadd.f32 %v11813_v20, %v11812_v0  ;;  %v11818_v43 = vld [vmem:[#allocation350_spill] sm:$0xff]  ;;  %v11819_v3 = vld [vmem:[#allocation351_spill] sm:$0xff]  ;;  %v11820_v22 = vld [vmem:[#allocation352_spill] sm:$0xff] }
 0x538   : > { %11795 = vst [vmem:[#allocation259_spill] sm:$0xff] %v9451_v47  ;;  %v3719_v34 = vadd.f32 %v3718_v14, %v11814_v61  ;;  %v3728_v19 = vadd.f32 %v3727_v10, %v11815_v44  ;;  %v3737_v62 = vadd.f32 %v3736_v46, %v11816_v45  ;;  %v3746_v28 = vadd.f32 %v3745_v40, %v11817_v4  ;;  %v11821_v25 = vld [vmem:[#allocation29_spill] sm:$0xff]  ;;  %v11822_v33 = vld [vmem:[#allocation446_spill] sm:$0xff]  ;;  %v11824_v20 = vld [vmem:[#allocation448_spill] sm:$0xff] }
 0x539   : > { %11796 = vst [vmem:[#allocation260_spill] sm:$0xff] %v9453_v21  ;;  %v3755_v48 = vadd.f32 %v3754_v35, %v11818_v43  ;;  %v3764_v42 = vadd.f32 %v3763_v41, %v11819_v3  ;;  %v3773_v30 = vadd.f32 %v3772_v15, %v11820_v22  ;;  %v11823_v21 = vld [vmem:[#allocation447_spill] sm:$0xff]  ;;  %v11825_v61 = vld [vmem:[#allocation449_spill] sm:$0xff]  ;;  %v11826_v44 = vld [vmem:[#allocation450_spill] sm:$0xff]  ;;  %v3670_v23 = vadd.f32 %v3669_v9, %v9429_v29 }
 0x53a   : > { %11797 = vst [vmem:[#allocation261_spill] sm:$0xff] %v9455_v12  ;;  %v3782_v12 = vadd.f32 %v3781_v39, %v11821_v25  ;;  %v3720_v55 = vadd.f32 %v3719_v34, %v11822_v33  ;;  %v3729_v0 = vadd.f32 %v3728_v19, %v11823_v21  ;;  %v3738_v14 = vadd.f32 %v3737_v62, %v11824_v20  ;;  %v11827_v45 = vld [vmem:[#allocation451_spill] sm:$0xff]  ;;  %v11828_v4 = vld [vmem:[#allocation452_spill] sm:$0xff]  ;;  %v11829_v43 = vld [vmem:[#allocation453_spill] sm:$0xff] }
 0x53b   : > { %v3747_v10 = vadd.f32 %v3746_v28, %v11825_v61  ;;  %v3756_v46 = vadd.f32 %v3755_v48, %v11826_v44  ;;  %v3765_v40 = vadd.f32 %v3764_v42, %v11827_v45  ;;  %v3774_v35 = vadd.f32 %v3773_v30, %v11828_v4 }
 0x53c   : > { %v3783_v41 = vadd.f32 %v3782_v12, %v11829_v43  ;;  %v3721_v3 = vrot.slane %v3720_v55, 4  ;;  %v3730_v15 = vrot.slane %v3729_v0, 4  ;;  %v3739_v22 = vrot.slane %v3738_v14, 4 }
 0x53d   : > { %v3748_v39 = vrot.slane %v3747_v10, 4  ;;  %v3757_v25 = vrot.slane %v3756_v46, 4  ;;  %v3766_v34 = vrot.slane %v3765_v40, 4  ;;  %v3775_v33 = vrot.slane %v3774_v35, 4 }
 0x53e   : > { %v3784_v21 = vrot.slane %v3783_v41, 4  ;;  %v3722_v19 = vadd.f32 %v3721_v3, %v3720_v55  ;;  %v3731_v62 = vadd.f32 %v3730_v15, %v3729_v0  ;;  %v3740_v20 = vadd.f32 %v3739_v22, %v3738_v14 }
 0x53f   : > { %v3749_v28 = vadd.f32 %v3748_v39, %v3747_v10  ;;  %v3758_v61 = vadd.f32 %v3757_v25, %v3756_v46  ;;  %v3767_v48 = vadd.f32 %v3766_v34, %v3765_v40  ;;  %v3776_v44 = vadd.f32 %v3775_v33, %v3774_v35 }
 0x540   : > { %v3785_v42 = vadd.f32 %v3784_v21, %v3783_v41  ;;  %v3723_v45 = vrot.slane %v3722_v19, 2  ;;  %v3732_v30 = vrot.slane %v3731_v62, 2  ;;  %v3741_v4 = vrot.slane %v3740_v20, 2 }
 0x541   : > { %v3750_v12 = vrot.slane %v3749_v28, 2  ;;  %v3759_v43 = vrot.slane %v3758_v61, 2  ;;  %v3768_v47 = vrot.slane %v3767_v48, 2  ;;  %v3777_v26 = vrot.slane %v3776_v44, 2 }
 0x542   : > { %v3786_v38 = vrot.slane %v3785_v42, 2  ;;  %v3679_v59 = vadd.f32 %v3678_v1, %v9431_v32  ;;  %v3688_v55 = vadd.f32 %v3687_v7, %v9433_v49  ;;  %v3697_v0 = vadd.f32 %v3696_v53, %v9435_v58 }
 0x543   : > { %v3706_v14 = vadd.f32 %v3705_v17, %v9437_v24  ;;  %v3715_v10 = vadd.f32 %v3714_v6, %v9439_v8  ;;  %v3724_v46 = vadd.f32 %v3723_v45, %v3722_v19  ;;  %v3733_v40 = vadd.f32 %v3732_v30, %v3731_v62 }
 0x544   : > { %v3742_v35 = vadd.f32 %v3741_v4, %v3740_v20  ;;  %v3751_v41 = vadd.f32 %v3750_v12, %v3749_v28  ;;  %v3760_v3 = vadd.f32 %v3759_v43, %v3758_v61  ;;  %v3769_v15 = vadd.f32 %v3768_v47, %v3767_v48  ;;  %v11831_v43 = vld [vmem:[#allocation30_spill] sm:$0xff] }
 0x545   : > { %v3653_v22 = vrot.slane %v9461_v37, 1  ;;  %v3662_v29 = vrot.slane %v9463_v54, 1  ;;  %v3778_v9 = vadd.f32 %v3777_v26, %v3776_v44  ;;  %v3787_v32 = vadd.f32 %v3786_v38, %v3785_v42 }
 0x546   : > { %v3671_v1 = vrot.slane %v3670_v23, 1  ;;  %v3680_v49 = vrot.slane %v3679_v59, 1  ;;  %v3689_v7 = vrot.slane %v3688_v55, 1  ;;  %v3698_v58 = vrot.slane %v3697_v0, 1 }
 0x547   : > { %v3707_v53 = vrot.slane %v3706_v14, 1  ;;  %v3716_v24 = vrot.slane %v3715_v10, 1  ;;  %v3725_v17 = vrot.slane %v3724_v46, 1  ;;  %v3734_v8 = vrot.slane %v3733_v40, 1 }
 0x548   : > { %v3743_v6 = vrot.slane %v3742_v35, 1  ;;  %v3752_v39 = vrot.slane %v3751_v41, 1  ;;  %v3761_v25 = vrot.slane %v3760_v3, 1  ;;  %v3770_v34 = vrot.slane %v3769_v15, 1 }
 0x549   : > { %v9508_v47 = vadd.f32 %v3653_v22, %v9461_v37  ;;  %v9511_v33 = vadd.f32 %v3662_v29, %v9463_v54  ;;  %v3779_v26 = vrot.slane %v3778_v9, 1  ;;  %v3788_v38 = vrot.slane %v3787_v32, 1  ;;  %v11839_v22 = vld [vmem:[#allocation354_spill] sm:$0xff] }
 0x54a   : > { %v9513_v21 = vadd.f32 %v3671_v1, %v3670_v23  ;;  %v9515_v19 = vadd.f32 %v3680_v49, %v3679_v59  ;;  %v9517_v62 = vadd.f32 %v3689_v7, %v3688_v55  ;;  %v9519_v20 = vadd.f32 %v3698_v58, %v3697_v0  ;;  %v11832_v0 = vld [vmem:[#allocation31_spill] sm:$0xff]  ;;  %v11841_v1 = vld [vmem:[#allocation356_spill] sm:$0xff]  ;;  %v11842_v7 = vld [vmem:[#allocation357_spill] sm:$0xff] }
 0x54b   : > { %v9521_v28 = vadd.f32 %v3707_v53, %v3706_v14  ;;  %v9523_v61 = vadd.f32 %v3716_v24, %v3715_v10  ;;  %v9525_v48 = vadd.f32 %v3725_v17, %v3724_v46  ;;  %v9527_v37 = vadd.f32 %v3734_v8, %v3733_v40  ;;  %v11833_v10 = vld [vmem:[#allocation32_spill] sm:$0xff]  ;;  %v11834_v40 = vld [vmem:[#allocation33_spill] sm:$0xff]  ;;  %v11843_v53 = vld [vmem:[#allocation358_spill] sm:$0xff] }
 0x54c   : > { %v9529_v54 = vadd.f32 %v3743_v6, %v3742_v35  ;;  %v9531_v44 = vadd.f32 %v3752_v39, %v3751_v41  ;;  %v9533_v23 = vadd.f32 %v3761_v25, %v3760_v3  ;;  %v9535_v59 = vadd.f32 %v3770_v34, %v3769_v15  ;;  %v11844_v17 = vld [vmem:[#allocation36_spill] sm:$0xff]  ;;  %v11845_v6 = vld [vmem:[#allocation142_spill] sm:$0xff]  ;;  %v11847_v25 = vld [vmem:[#allocation37_spill] sm:$0xff] }
 0x54d   : > { %v9537_v42 = vadd.f32 %v3779_v26, %v3778_v9  ;;  %v9539_v45 = vadd.f32 %v3788_v38, %v3787_v32  ;;  %v9542_v30 = vmul.f32 4.0, %v8805_v57  ;;  %v9545_v4 = vmul.f32 4.0, %v8807_v56  ;;  %v11835_v57 = vld [vmem:[#allocation34_spill] sm:$0xff]  ;;  %v11836_v56 = vld [vmem:[#allocation35_spill] sm:$0xff] }
 0x54e   : > { %v9548_v12 = vmul.f32 4.0, %v8809_v50  ;;  %v9551_v55 = vmul.f32 4.0, %v11831_v43  ;;  %v9554_v14 = vmul.f32 4.0, %v11832_v0  ;;  %v9557_v46 = vmul.f32 4.0, %v11833_v10  ;;  %v11838_v50 = vld [vmem:[#allocation353_spill] sm:$0xff]  ;;  %v11840_v9 = vld [vmem:[#allocation355_spill] sm:$0xff] }
 0x54f   : > { %11830 = vst [vmem:[#allocation262_spill] sm:$0xff] %v9542_v30  ;;  %v9560_v35 = vmul.f32 4.0, %v11834_v40  ;;  %v9563_v41 = vmul.f32 4.0, %v11835_v57  ;;  %v9566_v3 = vmul.f32 4.0, %v11836_v56  ;;  %v9569_v15 = vmul.f32 4.0, %v11838_v50  ;;  %v11849_v26 = vld [vmem:[#allocation143_spill] sm:$0xff] }
 0x550   : > { %v9572_v29 = vmul.f32 4.0, %v11839_v22  ;;  %v9575_v32 = vmul.f32 4.0, %v11840_v9  ;;  %v9578_v49 = vmul.f32 4.0, %v11841_v1  ;;  %v9581_v58 = vmul.f32 4.0, %v11842_v7  ;;  %v11851_v43 = vld [vmem:[#allocation38_spill] sm:$0xff]  ;;  %v11853_v10 = vld [vmem:[#allocation144_spill] sm:$0xff] }
 0x551   : > { %11837 = vst [vmem:[#allocation263_spill] sm:$0xff] %v9566_v3  ;;  %v9584_v24 = vmul.f32 4.0, %v11843_v53  ;;  %v9587_v8 = vmul.f32 4.0, %v11844_v17  ;;  %v9590_v39 = vmul.f32 4.0, %v11845_v6  ;;  %v9593_v34 = vmul.f32 4.0, %v11847_v25  ;;  %v11855_v57 = vld [vmem:[#allocation39_spill] sm:$0xff] }
 0x552   : > { %v9596_v38 = vmul.f32 4.0, %v11849_v26  ;;  %v9599_v0 = vmul.f32 4.0, %v11851_v43  ;;  %v9602_v40 = vmul.f32 4.0, %v11853_v10  ;;  %v9605_v56 = vmul.f32 4.0, %v11855_v57  ;;  %v11857_v50 = vld [vmem:[#allocation145_spill] sm:$0xff]  ;;  %v11859_v9 = vld [vmem:[#allocation40_spill] sm:$0xff] }
 0x553   : > { %11846 = vst [vmem:[#allocation264_spill] sm:$0xff] %v9590_v39  ;;  %v9608_v22 = vmul.f32 4.0, %v11857_v50  ;;  %v9611_v1 = vmul.f32 4.0, %v11859_v9  ;;  %v11861_v7 = vld [vmem:[#allocation146_spill] sm:$0xff]  ;;  %v11863_v17 = vld [vmem:[#allocation41_spill] sm:$0xff]  ;;  %v11865_v25 = vld [vmem:[#allocation147_spill] sm:$0xff] }
 0x554   : > { %11848 = vst [vmem:[#allocation265_spill] sm:$0xff] %v9593_v34  ;;  %v9614_v53 = vmul.f32 4.0, %v11861_v7  ;;  %v9617_v6 = vmul.f32 4.0, %v11863_v17  ;;  %v9620_v26 = vmul.f32 4.0, %v11865_v25  ;;  %v11867_v43 = vld [vmem:[#allocation42_spill] sm:$0xff]  ;;  %v11869_v57 = vld [vmem:[#allocation148_spill] sm:$0xff] }
 0x555   : > { %11850 = vst [vmem:[#allocation375_spill] sm:$0xff] %v9596_v38  ;;  %v9623_v10 = vmul.f32 4.0, %v11867_v43  ;;  %v9626_v39 = vmul.f32 4.0, %v11869_v57  ;;  %v11871_v50 = vld [vmem:[#allocation43_spill] sm:$0xff]  ;;  %v11873_v9 = vld [vmem:[#allocation149_spill] sm:$0xff]  ;;  %v11875_v7 = vld [vmem:[#allocation242_spill] sm:$0xff] }
 0x556   : > { %11852 = vst [vmem:[#allocation376_spill] sm:$0xff] %v9599_v0  ;;  %v9629_v3 = vmul.f32 4.0, %v11871_v50  ;;  %v9632_v30 = vmul.f32 4.0, %v11873_v9  ;;  %v11877_v17 = vld [vmem:[#allocation243_spill] sm:$0xff]  ;;  %v11879_v25 = vld [vmem:[#allocation244_spill] sm:$0xff]  ;;  %v11881_v43 = vld [vmem:[#allocation245_spill] sm:$0xff] }
 0x557   : > { %11854 = vst [vmem:[#allocation377_spill] sm:$0xff] %v9602_v40  ;;  %v11883_v57 = vld [vmem:[#allocation246_spill] sm:$0xff]  ;;  %v11885_v50 = vld [vmem:[#allocation247_spill] sm:$0xff]  ;;  %v11887_v9 = vld [vmem:[#allocation248_spill] sm:$0xff] }
 0x558   : > { %11856 = vst [vmem:[#allocation378_spill] sm:$0xff] %v9605_v56 }
 0x559   : > { %11858 = vst [vmem:[#allocation379_spill] sm:$0xff] %v9608_v22 }
 0x55a   : > { %11860 = vst [vmem:[#allocation380_spill] sm:$0xff] %v9611_v1 }
 0x55b   : > { %11862 = vst [vmem:[#allocation381_spill] sm:$0xff] %v9614_v53  ;;  %v9635_v53 = vmul.f32 4.0, %v11875_v7  ;;  %v11889_v7 = vld [vmem:[#allocation249_spill] sm:$0xff] }
 0x55c   : > { %11864 = vst [vmem:[#allocation382_spill] sm:$0xff] %v9617_v6  ;;  %v9638_v6 = vmul.f32 4.0, %v11877_v17  ;;  %v11891_v17 = vld [vmem:[#allocation359_spill] sm:$0xff] }
 0x55d   : > { %11866 = vst [vmem:[#allocation60_spill] sm:$0xff] %v9620_v26  ;;  %v9641_v26 = vmul.f32 4.0, %v11879_v25  ;;  %v11893_v25 = vld [vmem:[#allocation360_spill] sm:$0xff] }
 0x55e   : > { %11868 = vst [vmem:[#allocation166_spill] sm:$0xff] %v9623_v10  ;;  %v9644_v10 = vmul.f32 4.0, %v11881_v43  ;;  %v11895_v43 = vld [vmem:[#allocation361_spill] sm:$0xff] }
 0x55f   : > { %11870 = vst [vmem:[#allocation61_spill] sm:$0xff] %v9626_v39  ;;  %v9647_v39 = vmul.f32 4.0, %v11883_v57  ;;  %v11897_v57 = vld [vmem:[#allocation362_spill] sm:$0xff] }
 0x560   : > { %11872 = vst [vmem:[#allocation167_spill] sm:$0xff] %v9629_v3  ;;  %v9650_v3 = vmul.f32 4.0, %v11885_v50  ;;  %v11899_v50 = vld [vmem:[#allocation363_spill] sm:$0xff] }
 0x561   : > { %11874 = vst [vmem:[#allocation62_spill] sm:$0xff] %v9632_v30  ;;  %v9653_v30 = vmul.f32 4.0, %v11887_v9  ;;  %v11901_v9 = vld [vmem:[#allocation364_spill] sm:$0xff] }
 0x562   : > { %11876 = vst [vmem:[#allocation168_spill] sm:$0xff] %v9635_v53  ;;  %v9656_v53 = vmul.f32 4.0, %v11889_v7  ;;  %v11903_v7 = vld [vmem:[#allocation365_spill] sm:$0xff] }
 0x563   : > { %11878 = vst [vmem:[#allocation63_spill] sm:$0xff] %v9638_v6  ;;  %v9659_v6 = vmul.f32 4.0, %v11891_v17  ;;  %v11905_v17 = vld [vmem:[#allocation366_spill] sm:$0xff] }
 0x564   : > { %11880 = vst [vmem:[#allocation169_spill] sm:$0xff] %v9641_v26  ;;  %v9662_v26 = vmul.f32 4.0, %v11893_v25  ;;  %v11907_v25 = vld [vmem:[#allocation44_spill] sm:$0xff] }
 0x565   : > { %11882 = vst [vmem:[#allocation64_spill] sm:$0xff] %v9644_v10  ;;  %v9665_v10 = vmul.f32 4.0, %v11895_v43  ;;  %v11909_v43 = vld [vmem:[#allocation150_spill] sm:$0xff] }
 0x566   : > { %11884 = vst [vmem:[#allocation170_spill] sm:$0xff] %v9647_v39  ;;  %v9668_v39 = vmul.f32 4.0, %v11897_v57  ;;  %v11911_v57 = vld [vmem:[#allocation45_spill] sm:$0xff] }
 0x567   : > { %11886 = vst [vmem:[#allocation65_spill] sm:$0xff] %v9650_v3  ;;  %v9671_v3 = vmul.f32 4.0, %v11899_v50  ;;  %v11913_v50 = vld [vmem:[#allocation151_spill] sm:$0xff] }
 0x568   : > { %11888 = vst [vmem:[#allocation171_spill] sm:$0xff] %v9653_v30  ;;  %v9674_v30 = vmul.f32 4.0, %v11901_v9  ;;  %v11915_v9 = vld [vmem:[#allocation46_spill] sm:$0xff] }
 0x569   : > { %11890 = vst [vmem:[#allocation66_spill] sm:$0xff] %v9656_v53  ;;  %v9677_v53 = vmul.f32 4.0, %v11903_v7  ;;  %v11917_v7 = vld [vmem:[#allocation152_spill] sm:$0xff] }
 0x56a   : > { %11892 = vst [vmem:[#allocation172_spill] sm:$0xff] %v9659_v6  ;;  %v9680_v6 = vmul.f32 4.0, %v11905_v17  ;;  %v11919_v17 = vld [vmem:[#allocation47_spill] sm:$0xff] }
 0x56b   : > { %11894 = vst [vmem:[#allocation67_spill] sm:$0xff] %v9662_v26  ;;  %v9683_v26 = vmul.f32 4.0, %v11907_v25  ;;  %v11921_v25 = vld [vmem:[#allocation153_spill] sm:$0xff] }
 0x56c   : > { %11896 = vst [vmem:[#allocation173_spill] sm:$0xff] %v9665_v10  ;;  %v9686_v10 = vmul.f32 4.0, %v11909_v43  ;;  %v11923_v43 = vld [vmem:[#allocation48_spill] sm:$0xff] }
 0x56d   : > { %11898 = vst [vmem:[#allocation266_spill] sm:$0xff] %v9668_v39  ;;  %v9689_v39 = vmul.f32 4.0, %v11911_v57  ;;  %v11925_v57 = vld [vmem:[#allocation154_spill] sm:$0xff] }
 0x56e   : > { %11900 = vst [vmem:[#allocation267_spill] sm:$0xff] %v9671_v3  ;;  %v9692_v3 = vmul.f32 4.0, %v11913_v50  ;;  %v11927_v50 = vld [vmem:[#allocation49_spill] sm:$0xff] }
 0x56f   : > { %11902 = vst [vmem:[#allocation268_spill] sm:$0xff] %v9674_v30  ;;  %v9695_v30 = vmul.f32 4.0, %v11915_v9  ;;  %v11929_v9 = vld [vmem:[#allocation155_spill] sm:$0xff] }
 0x570   : > { %11904 = vst [vmem:[#allocation269_spill] sm:$0xff] %v9677_v53  ;;  %v9698_v53 = vmul.f32 4.0, %v11917_v7  ;;  %v11931_v7 = vld [vmem:[#allocation50_spill] sm:$0xff] }
 0x571   : > { %11906 = vst [vmem:[#allocation270_spill] sm:$0xff] %v9680_v6  ;;  %v9701_v6 = vmul.f32 4.0, %v11919_v17  ;;  %v11933_v17 = vld [vmem:[#allocation156_spill] sm:$0xff] }
 0x572   : > { %11908 = vst [vmem:[#allocation271_spill] sm:$0xff] %v9683_v26  ;;  %v9704_v26 = vmul.f32 4.0, %v11921_v25  ;;  %v11935_v25 = vld [vmem:[#allocation51_spill] sm:$0xff] }
 0x573   : > { %11910 = vst [vmem:[#allocation272_spill] sm:$0xff] %v9686_v10  ;;  %v9707_v10 = vmul.f32 4.0, %v11923_v43  ;;  %v11937_v43 = vld [vmem:[#allocation157_spill] sm:$0xff] }
 0x574   : > { %11912 = vst [vmem:[#allocation273_spill] sm:$0xff] %v9689_v39  ;;  %v9710_v39 = vmul.f32 4.0, %v11925_v57  ;;  %v11939_v57 = vld [vmem:[#allocation250_spill] sm:$0xff] }
 0x575   : > { %11914 = vst [vmem:[#allocation383_spill] sm:$0xff] %v9692_v3  ;;  %v9713_v3 = vmul.f32 4.0, %v11927_v50  ;;  %v11941_v50 = vld [vmem:[#allocation251_spill] sm:$0xff] }
 0x576   : > { %11916 = vst [vmem:[#allocation384_spill] sm:$0xff] %v9695_v30  ;;  %v9716_v30 = vmul.f32 4.0, %v11929_v9  ;;  %v11943_v9 = vld [vmem:[#allocation252_spill] sm:$0xff] }
 0x577   : > { %11918 = vst [vmem:[#allocation385_spill] sm:$0xff] %v9698_v53  ;;  %v9719_v53 = vmul.f32 4.0, %v11931_v7  ;;  %v11945_v7 = vld [vmem:[#allocation253_spill] sm:$0xff] }
 0x578   : > { %11920 = vst [vmem:[#allocation386_spill] sm:$0xff] %v9701_v6  ;;  %v9722_v6 = vmul.f32 4.0, %v11933_v17  ;;  %v11947_v17 = vld [vmem:[#allocation254_spill] sm:$0xff] }
 0x579   : > { %11922 = vst [vmem:[#allocation387_spill] sm:$0xff] %v9704_v26  ;;  %v9725_v26 = vmul.f32 4.0, %v11935_v25  ;;  %v11949_v25 = vld [vmem:[#allocation255_spill] sm:$0xff] }
 0x57a   : > { %11924 = vst [vmem:[#allocation388_spill] sm:$0xff] %v9707_v10  ;;  %v9728_v10 = vmul.f32 4.0, %v11937_v43  ;;  %v11951_v43 = vld [vmem:[#allocation256_spill] sm:$0xff] }
 0x57b   : > { %11926 = vst [vmem:[#allocation389_spill] sm:$0xff] %v9710_v39  ;;  %v9731_v39 = vmul.f32 4.0, %v11939_v57  ;;  %v11953_v57 = vld [vmem:[#allocation257_spill] sm:$0xff] }
 0x57c   : > { %11928 = vst [vmem:[#allocation390_spill] sm:$0xff] %v9713_v3  ;;  %v9734_v3 = vmul.f32 4.0, %v11941_v50  ;;  %v11955_v50 = vld [vmem:[#allocation367_spill] sm:$0xff] }
 0x57d   : > { %11930 = vst [vmem:[#allocation68_spill] sm:$0xff] %v9716_v30  ;;  %v9737_v30 = vmul.f32 4.0, %v11943_v9  ;;  %v11957_v9 = vld [vmem:[#allocation368_spill] sm:$0xff] }
 0x57e   : > { %11932 = vst [vmem:[#allocation174_spill] sm:$0xff] %v9719_v53  ;;  %v9740_v53 = vmul.f32 4.0, %v11945_v7  ;;  %v11959_v7 = vld [vmem:[#allocation369_spill] sm:$0xff] }
 0x57f   : > { %11934 = vst [vmem:[#allocation69_spill] sm:$0xff] %v9722_v6  ;;  %v9743_v6 = vmul.f32 4.0, %v11947_v17  ;;  %v11961_v17 = vld [vmem:[#allocation370_spill] sm:$0xff] }
 0x580   : > { %11936 = vst [vmem:[#allocation175_spill] sm:$0xff] %v9725_v26  ;;  %v9746_v26 = vmul.f32 4.0, %v11949_v25  ;;  %v11963_v25 = vld [vmem:[#allocation371_spill] sm:$0xff] }
 0x581   : > { %11938 = vst [vmem:[#allocation70_spill] sm:$0xff] %v9728_v10  ;;  %v9749_v10 = vmul.f32 4.0, %v11951_v43  ;;  %v11965_v43 = vld [vmem:[#allocation372_spill] sm:$0xff] }
 0x582   : > { %11940 = vst [vmem:[#allocation176_spill] sm:$0xff] %v9731_v39  ;;  %v9752_v39 = vmul.f32 4.0, %v11953_v57  ;;  %v11967_v57 = vld [vmem:[#allocation373_spill] sm:$0xff] }
 0x583   : > { %11942 = vst [vmem:[#allocation71_spill] sm:$0xff] %v9734_v3  ;;  %v9755_v3 = vmul.f32 4.0, %v11955_v50  ;;  %v11969_v50 = vld [vmem:[#allocation374_spill] sm:$0xff] }
 0x584   : > { %11944 = vst [vmem:[#allocation177_spill] sm:$0xff] %v9737_v30  ;;  %v9758_v30 = vmul.f32 4.0, %v11957_v9  ;;  %v11971_v9 = vld [vmem:[#allocation52_spill] sm:$0xff] }
 0x585   : > { %11946 = vst [vmem:[#allocation72_spill] sm:$0xff] %v9740_v53  ;;  %v9761_v53 = vmul.f32 4.0, %v11959_v7  ;;  %v9782_v7 = vmul.f32 4.0, %v9285_v11  ;;  %v11983_v11 = vld [vmem:[#allocation161_spill] sm:$0xff] }
 0x586   : > { %11948 = vst [vmem:[#allocation178_spill] sm:$0xff] %v9743_v6  ;;  %v9764_v6 = vmul.f32 4.0, %v11961_v17  ;;  %v11974_v17 = vld [vmem:[#allocation158_spill] sm:$0xff] }
 0x587   : > { %11950 = vst [vmem:[#allocation73_spill] sm:$0xff] %v9746_v26  ;;  %v9767_v26 = vmul.f32 4.0, %v11963_v25  ;;  %v11975_v25 = vld [vmem:[#allocation53_spill] sm:$0xff]  ;;  %v12057_v1 = vld [vmem:[#allocation175_spill] sm:$0xff] }
 0x588   : > { %11952 = vst [vmem:[#allocation179_spill] sm:$0xff] %v9749_v10  ;;  %v9770_v10 = vmul.f32 4.0, %v11965_v43  ;;  %v11976_v43 = vld [vmem:[#allocation159_spill] sm:$0xff] }
 0x589   : > { %11954 = vst [vmem:[#allocation74_spill] sm:$0xff] %v9752_v39  ;;  %v9773_v39 = vmul.f32 4.0, %v11967_v57  ;;  %v11977_v57 = vld [vmem:[#allocation54_spill] sm:$0xff] }
 0x58a   : > { %11956 = vst [vmem:[#allocation180_spill] sm:$0xff] %v9755_v3  ;;  %v9776_v3 = vmul.f32 4.0, %v11969_v50  ;;  %v11979_v50 = vld [vmem:[#allocation160_spill] sm:$0xff] }
 0x58b   : > { %11958 = vst [vmem:[#allocation75_spill] sm:$0xff] %v9758_v30  ;;  %v9779_v30 = vmul.f32 4.0, %v11971_v9  ;;  %v11981_v9 = vld [vmem:[#allocation55_spill] sm:$0xff] }
 0x58c   : > { %11960 = vst [vmem:[#allocation181_spill] sm:$0xff] %v9761_v53 }
 0x58d   : > { %11962 = vst [vmem:[#allocation274_spill] sm:$0xff] %v9764_v6  ;;  %v9785_v6 = vmul.f32 4.0, %v11974_v17  ;;  %v9806_v17 = vmul.f32 4.0, %v9333_v16  ;;  %v11992_v16 = vld [vmem:[#allocation163_spill] sm:$0xff] }
 0x58e   : > { %11964 = vst [vmem:[#allocation275_spill] sm:$0xff] %v9767_v26  ;;  %v9788_v26 = vmul.f32 4.0, %v11975_v25  ;;  %v9809_v25 = vmul.f32 4.0, %v9335_v60  ;;  %v9830_v60 = vmul.f32 4.0, %v9381_v2  ;;  %v11999_v2 = vld [vmem:[#allocation58_spill] sm:$0xff]  ;;  %v12063_v38 = vld [vmem:[#allocation73_spill] sm:$0xff] }
 0x58f   : > { %11966 = vst [vmem:[#allocation276_spill] sm:$0xff] %v9770_v10  ;;  %v9791_v10 = vmul.f32 4.0, %v11976_v43  ;;  %v9812_v43 = vmul.f32 4.0, %v9337_v36  ;;  %v9833_v36 = vmul.f32 4.0, %v9383_v52  ;;  %v9854_v52 = vmul.f32 4.0, %v9441_v5  ;;  %v12008_v5 = vld [vmem:[#allocation261_spill] sm:$0xff] }
 0x590   : > { %11968 = vst [vmem:[#allocation277_spill] sm:$0xff] %v9773_v39  ;;  %v9794_v39 = vmul.f32 4.0, %v11977_v57  ;;  %v9815_v57 = vmul.f32 4.0, %v9339_v18  ;;  %v9836_v18 = vmul.f32 4.0, %v9385_v31  ;;  %v12002_v31 = vld [vmem:[#allocation164_spill] sm:$0xff]  ;;  %v12064_v0 = vld [vmem:[#allocation179_spill] sm:$0xff] }
 0x591   : > { %11970 = vst [vmem:[#allocation278_spill] sm:$0xff] %v9776_v3  ;;  %v9797_v3 = vmul.f32 4.0, %v11979_v50  ;;  %v11989_v50 = vld [vmem:[#allocation56_spill] sm:$0xff]  ;;  %v12065_v40 = vld [vmem:[#allocation74_spill] sm:$0xff] }
 0x592   : > { %11972 = vst [vmem:[#allocation279_spill] sm:$0xff] %v9779_v30  ;;  %v9800_v30 = vmul.f32 4.0, %v11981_v9  ;;  %v11990_v9 = vld [vmem:[#allocation162_spill] sm:$0xff]  ;;  %v12066_v56 = vld [vmem:[#allocation180_spill] sm:$0xff] }
 0x593   : > { %11973 = vst [vmem:[#allocation280_spill] sm:$0xff] %v9782_v7  ;;  %v9803_v7 = vmul.f32 4.0, %v11983_v11  ;;  %v11991_v11 = vld [vmem:[#allocation57_spill] sm:$0xff] }
 0x594   : > { %11978 = vst [vmem:[#allocation281_spill] sm:$0xff] %v9794_v39 }
 0x595   : > { %11980 = vst [vmem:[#allocation391_spill] sm:$0xff] %v9797_v3  ;;  %v9818_v3 = vmul.f32 4.0, %v11989_v50  ;;  %v9839_v50 = vmul.f32 4.0, %v9387_v63  ;;  %v12003_v63 = vld [vmem:[#allocation59_spill] sm:$0xff] }
 0x596   : > { %11982 = vst [vmem:[#allocation392_spill] sm:$0xff] %v9800_v30  ;;  %v9821_v30 = vmul.f32 4.0, %v11990_v9  ;;  %v9842_v9 = vmul.f32 4.0, %v9389_v51  ;;  %v12004_v51 = vld [vmem:[#allocation165_spill] sm:$0xff] }
 0x597   : > { %11984 = vst [vmem:[#allocation393_spill] sm:$0xff] %v9803_v7  ;;  %v9824_v7 = vmul.f32 4.0, %v11991_v11  ;;  %v9845_v11 = vmul.f32 4.0, %v9391_v13  ;;  %v12005_v13 = vld [vmem:[#allocation258_spill] sm:$0xff] }
 0x598   : > { %11985 = vst [vmem:[#allocation394_spill] sm:$0xff] %v9806_v17  ;;  %v9827_v17 = vmul.f32 4.0, %v11992_v16  ;;  %v9848_v16 = vmul.f32 4.0, %v9393_v27  ;;  %v12006_v27 = vld [vmem:[#allocation259_spill] sm:$0xff] }
 0x599   : > { %11986 = vst [vmem:[#allocation395_spill] sm:$0xff] %v9809_v25  ;;  %v12072_v34 = vld [vmem:[#allocation279_spill] sm:$0xff] }
 0x59a   : > { %11987 = vst [vmem:[#allocation396_spill] sm:$0xff] %v9812_v43 }
 0x59b   : > { %11988 = vst [vmem:[#allocation397_spill] sm:$0xff] %v9815_v57 }
 0x59c   : > { %11993 = vst [vmem:[#allocation398_spill] sm:$0xff] %v9830_v60  ;;  %v9851_v60 = vmul.f32 4.0, %v11999_v2  ;;  %v12007_v2 = vld [vmem:[#allocation260_spill] sm:$0xff]  ;;  %v12073_v53 = vld [vmem:[#allocation391_spill] sm:$0xff] }
 0x59d   : > { %11994 = vst [vmem:[#allocation76_spill] sm:$0xff] %v9836_v18  ;;  %v9857_v18 = vmul.f32 4.0, %v12002_v31  ;;  %v9878_v31 = vmul.f32 4.0, %v9508_v47  ;;  %v9899_v47 = vmul.f32 4.0, %v9523_v61  ;;  %v9920_v61 = vmul.f32 4.0, %v9537_v42 }
 0x59e   : > { %11995 = vst [vmem:[#allocation182_spill] sm:$0xff] %v9839_v50  ;;  %v9860_v50 = vmul.f32 4.0, %v12003_v63  ;;  %v9881_v63 = vmul.f32 4.0, %v9511_v33  ;;  %v9902_v33 = vmul.f32 4.0, %v9525_v48  ;;  %v9923_v48 = vmul.f32 4.0, %v9539_v45 }
 0x59f   : > { %11996 = vst [vmem:[#allocation77_spill] sm:$0xff] %v9842_v9  ;;  %v9863_v9 = vmul.f32 4.0, %v12004_v51  ;;  %v9884_v51 = vmul.f32 4.0, %v9513_v21  ;;  %v9905_v21 = vmul.f32 4.0, %v9527_v37  ;;  %v12082_v37 = vrot.slane %v9545_v4, 7 }
 0x5a0   : > { %11997 = vst [vmem:[#allocation183_spill] sm:$0xff] %v9845_v11  ;;  %v9866_v11 = vmul.f32 4.0, %v12005_v13  ;;  %v9887_v13 = vmul.f32 4.0, %v9515_v19  ;;  %v9908_v19 = vmul.f32 4.0, %v9529_v54  ;;  %v12083_v54 = vld [vmem:[#allocation262_spill] sm:$0xff]  ;;  %v12088_v45 = vrot.slane %v9563_v41, 1 }
 0x5a1   : > { %11998 = vst [vmem:[#allocation78_spill] sm:$0xff] %v9848_v16  ;;  %v9869_v16 = vmul.f32 4.0, %v12006_v27  ;;  %v9890_v27 = vmul.f32 4.0, %v9517_v62  ;;  %v9911_v62 = vmul.f32 4.0, %v9531_v44  ;;  %v4159_v44 = vsel %vm4158_vm0, %v12083_v54, %v12082_v37 }
 0x5a2   : > { %12000 = vst [vmem:[#allocation184_spill] sm:$0xff] %v9851_v60  ;;  %v9872_v60 = vmul.f32 4.0, %v12007_v2  ;;  %v9893_v2 = vmul.f32 4.0, %v9519_v20  ;;  %v9914_v20 = vmul.f32 4.0, %v9533_v23  ;;  %v12085_v23 = vrot.slane %v9548_v12, 6 }
 0x5a3   : > { %12001 = vst [vmem:[#allocation79_spill] sm:$0xff] %v9854_v52  ;;  %v9875_v52 = vmul.f32 4.0, %v12008_v5  ;;  %v9896_v5 = vmul.f32 4.0, %v9521_v28  ;;  %v9917_v28 = vmul.f32 4.0, %v9535_v59  ;;  %v12086_v54 = vrot.slane %v9557_v46, 3 }
 0x5a4   : > { %12009 = vst [vmem:[#allocation185_spill] sm:$0xff] %v9878_v31  ;;  %v12076_v39 = vld [vmem:[#allocation76_spill] sm:$0xff]  ;;  %v12089_v59 = vrot.slane %v9560_v35, 2  ;;  %v12090_v37 = vrot.slane %v9569_v15, 7  ;;  %v12093_v46 = vrot.slane %v9572_v29, 6  ;;  %v12095_v41 = vrot.slane %v9578_v49, 4 }
 0x5a5   : > { %12010 = vst [vmem:[#allocation80_spill] sm:$0xff] %v9881_v63  ;;  %v12077_v22 = vld [vmem:[#allocation182_spill] sm:$0xff]  ;;  %v12101_v29 = vld [vmem:[#allocation376_spill] sm:$0xff] }
 0x5a6   : > { %12011 = vst [vmem:[#allocation186_spill] sm:$0xff] %v9884_v51  ;;  %v4167_v4 = vsel %vm4166_vm4, %v12089_v59, %v12088_v45  ;;  %v12096_v59 = vrot.slane %v9587_v8, 1  ;;  %v12097_v45 = vrot.slane %v9584_v24, 2  ;;  %v12105_v49 = vld [vmem:[#allocation378_spill] sm:$0xff]  ;;  %v12109_v24 = vld [vmem:[#allocation380_spill] sm:$0xff] }
 0x5a7   : > { %12012 = vst [vmem:[#allocation81_spill] sm:$0xff] %v9887_v13  ;;  %v12079_v25 = vld [vmem:[#allocation183_spill] sm:$0xff] }
 0x5a8   : > { %12013 = vst [vmem:[#allocation187_spill] sm:$0xff] %v9890_v27  ;;  %v12080_v43 = vld [vmem:[#allocation78_spill] sm:$0xff]  ;;  %v4176_v15 = vsel %vm4166_vm4, %v12097_v45, %v12096_v59  ;;  %v12111_v59 = vld [vmem:[#allocation379_spill] sm:$0xff] }
 0x5a9   : > { %12014 = vst [vmem:[#allocation82_spill] sm:$0xff] %v9893_v2  ;;  %v12081_v57 = vld [vmem:[#allocation184_spill] sm:$0xff]  ;;  %v12112_v45 = vrot.slane %v12111_v59, 2  ;;  %v12128_v2 = vld [vmem:[#allocation169_spill] sm:$0xff] }
 0x5aa   : > { %12015 = vst [vmem:[#allocation188_spill] sm:$0xff] %v9896_v5  ;;  %v12124_v59 = vld [vmem:[#allocation168_spill] sm:$0xff] }
 0x5ab   : > { %12016 = vst [vmem:[#allocation83_spill] sm:$0xff] %v9899_v47  ;;  %v12125_v27 = vrot.slane %v12124_v59, 1 }
 0x5ac   : > { %12017 = vst [vmem:[#allocation189_spill] sm:$0xff] %v9902_v33  ;;  %v12084_v33 = vrot.slane %v9551_v55, 5  ;;  %v12091_v55 = vld [vmem:[#allocation263_spill] sm:$0xff] }
 0x5ad   : > { %12018 = vst [vmem:[#allocation282_spill] sm:$0xff] %v9905_v21  ;;  %v4172_v12 = vsel %vm4158_vm0, %v12091_v55, %v12090_v37  ;;  %v12100_v55 = vld [vmem:[#allocation264_spill] sm:$0xff]  ;;  %v12113_v21 = vld [vmem:[#allocation382_spill] sm:$0xff] }
 0x5ae   : > { %12019 = vst [vmem:[#allocation283_spill] sm:$0xff] %v9908_v19  ;;  %v4161_v31 = vsel %vm4160_vm1, %v12085_v23, %v12084_v33  ;;  %v12087_v23 = vrot.slane %v9554_v14, 4  ;;  %v12110_v19 = vrot.slane %v12109_v24, 1 }
 0x5af   : > { %12020 = vst [vmem:[#allocation284_spill] sm:$0xff] %v9911_v62  ;;  %v12071_v62 = vld [vmem:[#allocation278_spill] sm:$0xff]  ;;  %v4163_v33 = vsel %vm4162_vm2, %v4159_v44, %v4161_v31  ;;  %v12092_v31 = vrot.slane %v9575_v32, 5  ;;  %v12094_v44 = vrot.slane %v9581_v58, 3 }
 0x5b0   : > { %12021 = vst [vmem:[#allocation285_spill] sm:$0xff] %v9914_v20  ;;  %v12070_v20 = vld [vmem:[#allocation277_spill] sm:$0xff]  ;;  %v4165_v42 = vsel %vm4164_vm3, %v12087_v23, %v12086_v54  ;;  %v12102_v23 = vrot.slane %v12101_v29, 5 }
 0x5b1   : > { %12022 = vst [vmem:[#allocation286_spill] sm:$0xff] %v9917_v28  ;;  %v12069_v28 = vld [vmem:[#allocation276_spill] sm:$0xff]  ;;  %v4173_v14 = vsel %vm4160_vm1, %v12093_v46, %v12092_v31  ;;  %v4175_v35 = vsel %vm4164_vm3, %v12095_v41, %v12094_v44  ;;  %v12098_v54 = vld [vmem:[#allocation265_spill] sm:$0xff]  ;;  %v12103_v31 = vld [vmem:[#allocation375_spill] sm:$0xff] }
 0x5b2   : > { %12023 = vst [vmem:[#allocation287_spill] sm:$0xff] %v9920_v61  ;;  %v12099_v37 = vrot.slane %v12098_v54, 7  ;;  %v12104_v46 = vrot.slane %v12103_v31, 6  ;;  %v12106_v61 = vrot.slane %v12105_v49, 3  ;;  %v12107_v44 = vld [vmem:[#allocation377_spill] sm:$0xff]  ;;  %v4183_v54 = vsel %vm4166_vm4, %v12112_v45, %v12110_v19  ;;  %v12116_v31 = vld [vmem:[#allocation166_spill] sm:$0xff] }
 0x5b3   : > { %12024 = vst [vmem:[#allocation288_spill] sm:$0xff] %v9923_v48  ;;  %v12078_v48 = vld [vmem:[#allocation77_spill] sm:$0xff]  ;;  %v12108_v41 = vrot.slane %v12107_v44, 4  ;;  %v12117_v5 = vrot.slane %v12116_v31, 5  ;;  %v12120_v44 = vld [vmem:[#allocation167_spill] sm:$0xff]  ;;  %v12126_v19 = vld [vmem:[#allocation62_spill] sm:$0xff] }
 0x5b4   : > { %v4179_v32 = vsel %vm4158_vm0, %v12100_v55, %v12099_v37  ;;  %v4180_v58 = vsel %vm4160_vm1, %v12104_v46, %v12102_v23  ;;  %v12114_v37 = vrot.slane %v12113_v21, 7  ;;  %v12115_v55 = vld [vmem:[#allocation381_spill] sm:$0xff]  ;;  %v12118_v23 = vld [vmem:[#allocation60_spill] sm:$0xff]  ;;  %v12121_v47 = vrot.slane %v12120_v44, 3 }
 0x5b5   : > { %v4182_v8 = vsel %vm4164_vm3, %v12108_v41, %v12106_v61  ;;  %v12119_v46 = vrot.slane %v12118_v23, 6  ;;  %v12122_v61 = vld [vmem:[#allocation61_spill] sm:$0xff]  ;;  %v12127_v45 = vrot.slane %v12126_v19, 2  ;;  %v12131_v23 = vld [vmem:[#allocation170_spill] sm:$0xff]  ;;  %v12139_v19 = vld [vmem:[#allocation172_spill] sm:$0xff] }
 0x5b6   : > { %v4186_v29 = vsel %vm4158_vm0, %v12115_v55, %v12114_v37  ;;  %v12123_v41 = vrot.slane %v12122_v61, 4  ;;  %v12129_v37 = vrot.slane %v12128_v2, 7  ;;  %v12130_v55 = vld [vmem:[#allocation63_spill] sm:$0xff]  ;;  %v12132_v51 = vrot.slane %v12131_v23, 5 }
 0x5b7   : > { %v4187_v49 = vsel %vm4160_vm1, %v12119_v46, %v12117_v5  ;;  %v4190_v21 = vsel %vm4166_vm4, %v12127_v45, %v12125_v27  ;;  %v12133_v5 = vld [vmem:[#allocation64_spill] sm:$0xff]  ;;  %v12135_v61 = vld [vmem:[#allocation171_spill] sm:$0xff]  ;;  %v12140_v63 = vrot.slane %v12139_v19, 1  ;;  %v12141_v27 = vld [vmem:[#allocation66_spill] sm:$0xff]  ;;  %v4177_v23 = vsel %vm4168_vm5, %v4175_v35, %v4176_v15 }
 0x5b8   : > { %v4189_v24 = vsel %vm4164_vm3, %v12123_v41, %v12121_v47  ;;  %v4193_v31 = vsel %vm4158_vm0, %v12130_v55, %v12129_v37  ;;  %v12134_v46 = vrot.slane %v12133_v5, 6  ;;  %v12136_v13 = vrot.slane %v12135_v61, 3  ;;  %v12137_v47 = vld [vmem:[#allocation65_spill] sm:$0xff]  ;;  %v12143_v61 = vld [vmem:[#allocation284_spill] sm:$0xff] }
 0x5b9   : > { %v12138_v41 = vrot.slane %v12137_v47, 4  ;;  %v12142_v45 = vrot.slane %v12141_v27, 2  ;;  %v4169_v37 = vsel %vm4168_vm5, %v4165_v42, %v4167_v4  ;;  %v4174_v55 = vsel %vm4162_vm2, %v4172_v12, %v4173_v14  ;;  %v12153_v27 = vld [vmem:[#allocation266_spill] sm:$0xff] }
 0x5ba   : > { %v4194_v44 = vsel %vm4160_vm1, %v12134_v46, %v12132_v51  ;;  %v4181_v51 = vsel %vm4162_vm2, %v4179_v32, %v4180_v58  ;;  %v4184_v5 = vsel %vm4168_vm5, %v4182_v8, %v4183_v54  ;;  %v4188_v46 = vsel %vm4162_vm2, %v4186_v29, %v4187_v49  ;;  %v12148_v49 = vld [vmem:[#allocation173_spill] sm:$0xff]  ;;  %v12178_v47 = vld [vmem:[#allocation390_spill] sm:$0xff] }
 0x5bb   : > { %v4196_v59 = vsel %vm4164_vm3, %v12138_v41, %v12136_v13  ;;  %v4197_v2 = vsel %vm4166_vm4, %v12142_v45, %v12140_v63  ;;  %v4191_v13 = vsel %vm4168_vm5, %v4189_v24, %v4190_v21  ;;  %v4195_v63 = vsel %vm4162_vm2, %v4193_v31, %v4194_v44  ;;  %v12150_v21 = vld [vmem:[#allocation67_spill] sm:$0xff]  ;;  %v12192_v41 = vld [vmem:[#allocation177_spill] sm:$0xff] }
 0x5bc   : > { %v4198_v42 = vsel %vm4168_vm5, %v4196_v59, %v4197_v2  ;;  %v10143_v58 = vsel %vm4170_vm6, %v4163_v33, %v4169_v37  ;;  %v10146_v8 = vsel %vm4170_vm6, %v4174_v55, %v4177_v23  ;;  %v10149_v54 = vsel %vm4170_vm6, %v4181_v51, %v4184_v5  ;;  %v12151_v59 = vld [vmem:[#allocation267_spill] sm:$0xff]  ;;  %v12155_v37 = vld [vmem:[#allocation269_spill] sm:$0xff]  ;;  %v12157_v23 = vld [vmem:[#allocation268_spill] sm:$0xff] }
 0x5bd   : > { %v10152_v29 = vsel %vm4170_vm6, %v4188_v46, %v4191_v13  ;;  %v12149_v24 = vrot.slane %v12148_v49, 7  ;;  %v10159_v44 = vsel %vm4170_vm6, %v4195_v63, %v4198_v42  ;;  %v12152_v33 = vrot.slane %v12151_v59, 5  ;;  %v12159_v46 = vld [vmem:[#allocation271_spill] sm:$0xff]  ;;  %v12161_v49 = vld [vmem:[#allocation270_spill] sm:$0xff]  ;;  %v12163_v63 = vld [vmem:[#allocation273_spill] sm:$0xff] }
 0x5be   : > { %v12154_v45 = vrot.slane %v12153_v27, 6  ;;  %v12156_v55 = vrot.slane %v12155_v37, 3  ;;  %v12158_v51 = vrot.slane %v12157_v23, 4  ;;  %v12160_v13 = vrot.slane %v12159_v46, 1  ;;  %v12166_v27 = vld [vmem:[#allocation384_spill] sm:$0xff]  ;;  %v12170_v23 = vld [vmem:[#allocation386_spill] sm:$0xff] }
 0x5bf   : > { %v4200_v31 = vsel %vm4158_vm0, %v12150_v21, %v12149_v24  ;;  %v12162_v35 = vrot.slane %v12161_v49, 2  ;;  %v12164_v42 = vrot.slane %v12163_v63, 7  ;;  %v12165_v21 = vld [vmem:[#allocation272_spill] sm:$0xff]  ;;  %v12167_v32 = vrot.slane %v12166_v27, 5 }
 0x5c0   : > { %v4201_v2 = vsel %vm4160_vm1, %v12154_v45, %v12152_v33  ;;  %v4203_v5 = vsel %vm4164_vm3, %v12158_v51, %v12156_v55  ;;  %v12168_v33 = vld [vmem:[#allocation383_spill] sm:$0xff]  ;;  %v12171_v19 = vrot.slane %v12170_v23, 3  ;;  %v12172_v55 = vld [vmem:[#allocation385_spill] sm:$0xff]  ;;  %v12174_v49 = vld [vmem:[#allocation388_spill] sm:$0xff] }
 0x5c1   : > { %v4204_v24 = vsel %vm4166_vm4, %v12162_v35, %v12160_v13  ;;  %v4207_v59 = vsel %vm4158_vm0, %v12165_v21, %v12164_v42  ;;  %v12169_v45 = vrot.slane %v12168_v33, 6  ;;  %v12173_v51 = vrot.slane %v12172_v55, 4  ;;  %v12176_v35 = vld [vmem:[#allocation387_spill] sm:$0xff]  ;;  %v12180_v21 = vld [vmem:[#allocation389_spill] sm:$0xff]  ;;  %v12181_v33 = vld [vmem:[#allocation174_spill] sm:$0xff] }
 0x5c2   : > { %v12175_v12 = vrot.slane %v12174_v49, 1  ;;  %v12177_v13 = vrot.slane %v12176_v35, 2  ;;  %v12179_v42 = vrot.slane %v12178_v47, 7  ;;  %v12182_v14 = vrot.slane %v12181_v33, 5  ;;  %v12188_v35 = vld [vmem:[#allocation176_spill] sm:$0xff] }
 0x5c3   : > { %v4208_v37 = vsel %vm4160_vm1, %v12169_v45, %v12167_v32  ;;  %v4210_v46 = vsel %vm4164_vm3, %v12173_v51, %v12171_v19  ;;  %v12183_v32 = vld [vmem:[#allocation68_spill] sm:$0xff]  ;;  %v12185_v55 = vrot.slane %v12057_v1, 3  ;;  %v12186_v19 = vld [vmem:[#allocation69_spill] sm:$0xff]  ;;  %v12189_v15 = vrot.slane %v12188_v35, 1 }
 0x5c4   : > { %v4211_v63 = vsel %vm4166_vm4, %v12177_v13, %v12175_v12  ;;  %v4214_v27 = vsel %vm4158_vm0, %v12180_v21, %v12179_v42  ;;  %v12184_v45 = vrot.slane %v12183_v32, 6  ;;  %v12187_v51 = vrot.slane %v12186_v19, 4  ;;  %v12190_v12 = vld [vmem:[#allocation70_spill] sm:$0xff]  ;;  %v12194_v21 = vld [vmem:[#allocation71_spill] sm:$0xff] }
 0x5c5   : > { %v12191_v13 = vrot.slane %v12190_v12, 2  ;;  %v12193_v42 = vrot.slane %v12192_v41, 7  ;;  %v12195_v32 = vld [vmem:[#allocation178_spill] sm:$0xff]  ;;  %v12199_v19 = vrot.slane %v12064_v0, 3  ;;  %v12201_v35 = vrot.slane %v12066_v56, 1  ;;  %v12203_v12 = vld [vmem:[#allocation181_spill] sm:$0xff] }
 0x5c6   : > { %v4215_v23 = vsel %vm4160_vm1, %v12184_v45, %v12182_v14  ;;  %v4217_v49 = vsel %vm4164_vm3, %v12187_v51, %v12185_v55  ;;  %v12196_v4 = vrot.slane %v12195_v32, 5  ;;  %v12197_v14 = vld [vmem:[#allocation72_spill] sm:$0xff]  ;;  %v12200_v55 = vrot.slane %v12063_v38, 4  ;;  %v12206_v32 = vld [vmem:[#allocation275_spill] sm:$0xff] }
 0x5c7   : > { %v4218_v47 = vsel %vm4166_vm4, %v12191_v13, %v12189_v15  ;;  %v4221_v33 = vsel %vm4158_vm0, %v12194_v21, %v12193_v42  ;;  %v12198_v45 = vrot.slane %v12197_v14, 6  ;;  %v12202_v15 = vrot.slane %v12065_v40, 2  ;;  %v12205_v42 = vld [vmem:[#allocation75_spill] sm:$0xff] }
 0x5c8   : > { %v4224_v51 = vsel %vm4164_vm3, %v12200_v55, %v12199_v19  ;;  %v12204_v13 = vrot.slane %v12203_v12, 7  ;;  %v12207_v14 = vrot.slane %v12206_v32, 5  ;;  %v12210_v38 = vrot.slane %v12070_v20, 3 }
 0x5c9   : > { %v4222_v1 = vsel %vm4160_vm1, %v12198_v45, %v12196_v4  ;;  %v4225_v41 = vsel %vm4166_vm4, %v12202_v15, %v12201_v35  ;;  %v12208_v4 = vld [vmem:[#allocation274_spill] sm:$0xff]  ;;  %v12211_v19 = vrot.slane %v12069_v28, 4  ;;  %v12212_v40 = vrot.slane %v12072_v34, 1 }
 0x5ca   : > { %v4228_v21 = vsel %vm4158_vm0, %v12205_v42, %v12204_v13  ;;  %v12209_v45 = vrot.slane %v12208_v4, 6  ;;  %v12213_v55 = vrot.slane %v12071_v62, 2  ;;  %v4202_v15 = vsel %vm4162_vm2, %v4200_v31, %v4201_v2  ;;  %v12215_v2 = vld [vmem:[#allocation280_spill] sm:$0xff] }
 0x5cb   : > { %v4231_v56 = vsel %vm4164_vm3, %v12211_v19, %v12210_v38  ;;  %v4205_v12 = vsel %vm4168_vm5, %v4203_v5, %v4204_v24  ;;  %v4209_v13 = vsel %vm4162_vm2, %v4207_v59, %v4208_v37  ;;  %v4212_v42 = vsel %vm4168_vm5, %v4210_v46, %v4211_v63  ;;  %v12219_v63 = vld [vmem:[#allocation281_spill] sm:$0xff] }
 0x5cc   : > { %v4229_v0 = vsel %vm4160_vm1, %v12209_v45, %v12207_v14  ;;  %v4232_v35 = vsel %vm4166_vm4, %v12213_v55, %v12212_v40  ;;  %v4216_v20 = vsel %vm4162_vm2, %v4214_v27, %v4215_v23  ;;  %v4219_v28 = vsel %vm4168_vm5, %v4217_v49, %v4218_v47  ;;  %v12221_v49 = vld [vmem:[#allocation393_spill] sm:$0xff]  ;;  %v12230_v45 = vld [vmem:[#allocation396_spill] sm:$0xff] }
 0x5cd   : > { %v4223_v32 = vsel %vm4162_vm2, %v4221_v33, %v4222_v1  ;;  %v4226_v34 = vsel %vm4168_vm5, %v4224_v51, %v4225_v41  ;;  %v4230_v62 = vsel %vm4162_vm2, %v4228_v21, %v4229_v0  ;;  %v4233_v14 = vsel %vm4168_vm5, %v4231_v56, %v4232_v35  ;;  %v12223_v33 = vld [vmem:[#allocation392_spill] sm:$0xff]  ;;  %v12225_v51 = vld [vmem:[#allocation395_spill] sm:$0xff]  ;;  %v12227_v21 = vld [vmem:[#allocation394_spill] sm:$0xff] }
 0x5ce   : > { %v12214_v31 = vrot.slane %v9785_v6, 7  ;;  %v12216_v24 = vrot.slane %v9791_v10, 5  ;;  %v12217_v59 = vrot.slane %v9788_v26, 6  ;;  %v12218_v46 = vrot.slane %v12073_v53, 3  ;;  %v12228_v26 = vld [vmem:[#allocation397_spill] sm:$0xff] }
 0x5cf   : > { %v12220_v27 = vrot.slane %v12219_v63, 4  ;;  %v12222_v47 = vrot.slane %v12221_v49, 1  ;;  %v12224_v1 = vrot.slane %v12223_v33, 2  ;;  %v12226_v41 = vrot.slane %v12225_v51, 7  ;;  %v2091_v63 = vld [vmem:[#allocation7 + $0x8] sm:$0xff]  ;;  %v2092_v33 = vld [vmem:[#allocation7 + $0x10] sm:$0xff] }
 0x5d0   : > { %v4235_v5 = vsel %vm4158_vm0, %v12215_v2, %v12214_v31  ;;  %v4236_v37 = vsel %vm4160_vm1, %v12217_v59, %v12216_v24  ;;  %v12229_v4 = vrot.slane %v12228_v26, 5  ;;  %v12231_v0 = vrot.slane %v12230_v45, 6  ;;  %v12237_v2 = vld [vmem:[#allocation398_spill] sm:$0xff] }
 0x5d1   : > { %v4238_v23 = vsel %vm4164_vm3, %v12220_v27, %v12218_v46  ;;  %v4239_v6 = vsel %vm4166_vm4, %v12224_v1, %v12222_v47  ;;  %v4242_v10 = vsel %vm4158_vm0, %v12227_v21, %v12226_v41  ;;  %v12232_v38 = vrot.slane %v9821_v30, 3  ;;  %v2093_v1 = vld [vmem:[#allocation7 + $0x18] sm:$0xff]  ;;  %v2095_v41 = vld [vmem:[#allocation7 + $0x28] sm:$0xff] }
 0x5d2   : > { %v4243_v53 = vsel %vm4160_vm1, %v12231_v0, %v12229_v4  ;;  %v12233_v19 = vrot.slane %v9818_v3, 4  ;;  %v12234_v40 = vrot.slane %v9827_v17, 1  ;;  %v12235_v55 = vrot.slane %v9824_v7, 2  ;;  %v2090_v3 = vld [vmem:[#allocation7] sm:$0xff] }
 0x5d3   : > { %v12236_v31 = vrot.slane %v9833_v36, 7  ;;  %v12238_v59 = vrot.slane %v12077_v22, 5  ;;  %v12239_v46 = vrot.slane %v12076_v39, 6  ;;  %v4206_v27 = vsel %vm4170_vm6, %v4202_v15, %v4205_v12 }
 0x5d4   : > { %v4245_v56 = vsel %vm4164_vm3, %v12233_v19, %v12232_v38  ;;  %v4246_v35 = vsel %vm4166_vm4, %v12235_v55, %v12234_v40  ;;  %v4213_v17 = vsel %vm4170_vm6, %v4209_v13, %v4212_v42  ;;  %v12240_v7 = vrot.slane %v12079_v25, 3  ;;  %v2094_v13 = vld [vmem:[#allocation7 + $0x20] sm:$0xff]  ;;  %v12255_v38 = vld [vmem:[#allocation81_spill] sm:$0xff]  ;;  %v12257_v19 = vld [vmem:[#allocation186_spill] sm:$0xff] }
 0x5d5   : > { %v4249_v24 = vsel %vm4158_vm0, %v12237_v2, %v12236_v31  ;;  %v4250_v30 = vsel %vm4160_vm1, %v12239_v46, %v12238_v59  ;;  %v12241_v49 = vrot.slane %v12078_v48, 4  ;;  %v12242_v47 = vrot.slane %v12081_v57, 1  ;;  %v2098_v40 = vld [vmem:[#allocation7 + $0x40] sm:$0xff]  ;;  %v12265_v59 = vld [vmem:[#allocation188_spill] sm:$0xff] }
 0x5d6   : > { %v12243_v22 = vrot.slane %v12080_v43, 2  ;;  %v4220_v51 = vsel %vm4170_vm6, %v4216_v20, %v4219_v28  ;;  %v4227_v15 = vsel %vm4170_vm6, %v4223_v32, %v4226_v34  ;;  %v4234_v12 = vsel %vm4170_vm6, %v4230_v62, %v4233_v14  ;;  %v12245_v28 = vld [vmem:[#allocation79_spill] sm:$0xff]  ;;  %v2096_v14 = vld [vmem:[#allocation7 + $0x30] sm:$0xff] }
 0x5d7   : > { %v4252_v36 = vsel %vm4164_vm3, %v12241_v49, %v12240_v7  ;;  %v4237_v25 = vsel %vm4162_vm2, %v4235_v5, %v4236_v37  ;;  %v4240_v48 = vsel %vm4168_vm5, %v4238_v23, %v4239_v6  ;;  %v4244_v42 = vsel %vm4162_vm2, %v4242_v10, %v4243_v53  ;;  %v12254_v53 = vld [vmem:[#allocation185_spill] sm:$0xff]  ;;  %v12263_v2 = vld [vmem:[#allocation83_spill] sm:$0xff] }
 0x5d8   : > { %v4253_v39 = vsel %vm4166_vm4, %v12243_v22, %v12242_v47  ;;  %v4247_v57 = vsel %vm4168_vm5, %v4245_v56, %v4246_v35  ;;  %v4251_v43 = vsel %vm4162_vm2, %v4249_v24, %v4250_v30  ;;  %v12244_v20 = vrot.slane %v9857_v18, 7  ;;  %v12269_v7 = vld [vmem:[#allocation189_spill] sm:$0xff]  ;;  %v12271_v22 = vld [vmem:[#allocation283_spill] sm:$0xff] }
 0x5d9   : > { %v4254_v21 = vsel %vm4168_vm5, %v4252_v36, %v4253_v39  ;;  %v4293_v34 = vadd.f32 %v10143_v58, %v2090_v3  ;;  %v4294_v62 = vadd.f32 %v10146_v8, %v2091_v63  ;;  %v12246_v5 = vrot.slane %v9863_v9, 5  ;;  %v2097_v58 = vld [vmem:[#allocation7 + $0x38] sm:$0xff]  ;;  %v2099_v36 = vld [vmem:[#allocation7 + $0x48] sm:$0xff] }
 0x5da   : > { %v4256_v32 = vsel %vm4158_vm0, %v12245_v28, %v12244_v20  ;;  %v12247_v37 = vrot.slane %v9860_v50, 6  ;;  %v12248_v6 = vrot.slane %v9869_v16, 3  ;;  %v12249_v10 = vrot.slane %v9866_v11, 4  ;;  %v12252_v50 = vld [vmem:[#allocation80_spill] sm:$0xff]  ;;  %v12267_v3 = vld [vmem:[#allocation282_spill] sm:$0xff]  ;;  %v12275_v20 = vld [vmem:[#allocation285_spill] sm:$0xff] }
 0x5db   : > { %v4295_v26 = vadd.f32 %v10149_v54, %v2092_v33  ;;  %v4296_v4 = vadd.f32 %v10152_v29, %v2093_v1  ;;  %v12250_v8 = vrot.slane %v9875_v52, 1  ;;  %v12251_v45 = vrot.slane %v9872_v60, 2  ;;  %4309 = vst [vmem:[#allocation7] sm:$0xff] %v4293_v34  ;;  %v12259_v52 = vld [vmem:[#allocation82_spill] sm:$0xff]  ;;  %v12261_v60 = vld [vmem:[#allocation187_spill] sm:$0xff] }
 0x5dc   : > { %v4257_v23 = vsel %vm4160_vm1, %v12247_v37, %v12246_v5  ;;  %v4259_v18 = vsel %vm4164_vm3, %v12249_v10, %v12248_v6  ;;  %v12253_v0 = vrot.slane %v12252_v50, 7  ;;  %v12256_v11 = vrot.slane %v12255_v38, 5  ;;  %4310 = vst [vmem:[#allocation7 + $0x8] sm:$0xff] %v4294_v62  ;;  %v12273_v1 = vld [vmem:[#allocation286_spill] sm:$0xff]  ;;  %v12277_v5 = vld [vmem:[#allocation288_spill] sm:$0xff]  ;;  %v12279_v6 = vld [vmem:[#allocation287_spill] sm:$0xff] }
 0x5dd   : > { %v4260_v9 = vsel %vm4166_vm4, %v12251_v45, %v12250_v8  ;;  %v12258_v56 = vrot.slane %v12257_v19, 6  ;;  %v4297_v29 = vadd.f32 %v10159_v44, %v2094_v13  ;;  %v12260_v55 = vrot.slane %v12259_v52, 3  ;;  %4311 = vst [vmem:[#allocation7 + $0x10] sm:$0xff] %v4295_v26  ;;  %v2100_v62 = vld [vmem:[#allocation7 + $0x50] sm:$0xff] }
 0x5de   : > { %v4263_v16 = vsel %vm4158_vm0, %v12254_v53, %v12253_v0  ;;  %v12262_v35 = vrot.slane %v12261_v60, 4  ;;  %v12264_v24 = vrot.slane %v12263_v2, 1  ;;  %v12266_v46 = vrot.slane %v12265_v59, 2  ;;  %4312 = vst [vmem:[#allocation7 + $0x18] sm:$0xff] %v4296_v4  ;;  %v2101_v0 = vld [vmem:[#allocation7 + $0x58] sm:$0xff] }
 0x5df   : > { %v4264_v54 = vsel %vm4160_vm1, %v12258_v56, %v12256_v11  ;;  %v12268_v63 = vrot.slane %v12267_v3, 7  ;;  %v4298_v44 = vadd.f32 %v4206_v27, %v2095_v41  ;;  %v12270_v47 = vrot.slane %v12143_v61, 5  ;;  %4313 = vst [vmem:[#allocation7 + $0x20] sm:$0xff] %v4297_v29 }
 0x5e0   : > { %v4266_v31 = vsel %vm4164_vm3, %v12262_v35, %v12260_v55  ;;  %v4267_v30 = vsel %vm4166_vm4, %v12266_v46, %v12264_v24  ;;  %v12272_v39 = vrot.slane %v12271_v22, 6  ;;  %v12274_v13 = vrot.slane %v12273_v1, 3 }
 0x5e1   : > { %v4270_v49 = vsel %vm4158_vm0, %v12269_v7, %v12268_v63  ;;  %v12276_v28 = vrot.slane %v12275_v20, 4  ;;  %v12278_v37 = vrot.slane %v12277_v5, 1  ;;  %v12280_v10 = vrot.slane %v12279_v6, 2  ;;  %4314 = vst [vmem:[#allocation7 + $0x28] sm:$0xff] %v4298_v44 }
 0x5e2   : > { %v4271_v33 = vsel %vm4160_vm1, %v12272_v39, %v12270_v47  ;;  %v4299_v41 = vadd.f32 %v4213_v17, %v2096_v14  ;;  %v4241_v61 = vsel %vm4170_vm6, %v4237_v25, %v4240_v48  ;;  %v4258_v8 = vsel %vm4162_vm2, %v4256_v32, %v4257_v23  ;;  %v2102_v17 = vld [vmem:[#allocation7 + $0x60] sm:$0xff] }
 0x5e3   : > { %v4273_v34 = vsel %vm4164_vm3, %v12276_v28, %v12274_v13  ;;  %v4274_v27 = vsel %vm4166_vm4, %v12280_v10, %v12278_v37  ;;  %v4261_v45 = vsel %vm4168_vm5, %v4259_v18, %v4260_v9  ;;  %v4300_v50 = vadd.f32 %v4220_v51, %v2097_v58  ;;  %v2103_v51 = vld [vmem:[#allocation7 + $0x68] sm:$0xff] }
 0x5e4   : > { %v4248_v53 = vsel %vm4170_vm6, %v4244_v42, %v4247_v57  ;;  %v4265_v38 = vsel %vm4162_vm2, %v4263_v16, %v4264_v54  ;;  %v4268_v11 = vsel %vm4168_vm5, %v4266_v31, %v4267_v30  ;;  %v4301_v19 = vadd.f32 %v4227_v15, %v2098_v40  ;;  %4315 = vst [vmem:[#allocation7 + $0x30] sm:$0xff] %v4299_v41  ;;  %v2104_v42 = vld [vmem:[#allocation7 + $0x70] sm:$0xff]  ;;  %v2105_v15 = vld [vmem:[#allocation7 + $0x78] sm:$0xff] }
 0x5e5   : > { %v4255_v14 = vsel %vm4170_vm6, %v4251_v43, %v4254_v21  ;;  %v4272_v25 = vsel %vm4162_vm2, %v4270_v49, %v4271_v33  ;;  %v4275_v48 = vsel %vm4168_vm5, %v4273_v34, %v4274_v27  ;;  %v4302_v32 = vadd.f32 %v4234_v12, %v2099_v36  ;;  %4316 = vst [vmem:[#allocation7 + $0x38] sm:$0xff] %v4300_v50 }
 0x5e6   : > { %v4262_v23 = vsel %vm4170_vm6, %v4258_v8, %v4261_v45  ;;  %v4303_v18 = vadd.f32 %v4241_v61, %v2100_v62  ;;  %v4269_v57 = vsel %vm4170_vm6, %v4265_v38, %v4268_v11  ;;  %v4304_v26 = vadd.f32 %v4248_v53, %v2101_v0  ;;  %4317 = vst [vmem:[#allocation7 + $0x40] sm:$0xff] %v4301_v19 }
 0x5e7   : > { %v4276_v43 = vsel %vm4170_vm6, %v4272_v25, %v4275_v48  ;;  %v4305_v21 = vadd.f32 %v4255_v14, %v2102_v17  ;;  %v4306_v4 = vadd.f32 %v4262_v23, %v2103_v51  ;;  %4318 = vst [vmem:[#allocation7 + $0x48] sm:$0xff] %v4302_v32  ;;  %v4307_v12 = vadd.f32 %v4269_v57, %v2104_v42 }
 0x5e8   : > { %4319 = vst [vmem:[#allocation7 + $0x50] sm:$0xff] %v4303_v18  ;;  %v4308_v58 = vadd.f32 %v4276_v43, %v2105_v15 }
 0x5e9   : > { %4320 = vst [vmem:[#allocation7 + $0x58] sm:$0xff] %v4304_v26 }
 0x5ea   : > { %4321 = vst [vmem:[#allocation7 + $0x60] sm:$0xff] %v4305_v21 }
 0x5eb   : > { %4322 = vst [vmem:[#allocation7 + $0x68] sm:$0xff] %v4306_v4 }
 0x5ec   : > { %4323 = vst [vmem:[#allocation7 + $0x70] sm:$0xff] %v4307_v12 }
 0x5ed   : > { %4324 = vst [vmem:[#allocation7 + $0x78] sm:$0xff] %v4308_v58 }
 0x5ee   : > { %4433 = dma.vmem_to_hbm [thread:$0]  (%p4447_p5), %s4332_s10, 2048, %s4334_s18, [#allocation4]  }
 0x5ef   : > { %5053 = dma.done.wait (%p4447_p5), [#allocation4], 2048  }
 0x5f0   : > { %5055 = vsyncadd (%p4447_p5), [#allocation4], 4294965248 }
 0x5f1 PF: > { %p15_p8 = scmp.ge.s32.totalorder %s5119_s17, 6   ;;  %s12281_s12 = smov %s5062_s13 }
 0x5f2   : > { %s12282_s13 = smov %s5066_s14  ;;  %s12283_s14 = smov %s5129_s20 }
 0x5f3   : > { %s12284_s15 = smov %s5119_s17  ;;  %17 = sbr.rel (!%p15_p8) target bundleno = 5 (0x5), region = 80 }
 0x5f8   :  { %4347 = vsyncpa [#allocation3], 1 }
 0x5f9   :  { %4349 = vsyncpa [#allocation3 + $0x1], 1 }
 0x5fa   :  { %4350 = vsyncpa [#allocation6], 1 }
 0x5fb   :  { %4351 = vsyncpa [#allocation4], 1 }
 0x5fc   :  { %4353 = vsyncpa [#allocation4 + $0x1], 1 }

</bundles_post_ra>
